<compile_context>
chip_gen: v7x
topology: tpu7x:2x2x1
jax: 0.10.0
libtpu: 0.0.40
codegen_flags: <defaults>
</compile_context>

<pallas_src>
import functools

import jax
import jax.numpy as jnp
import numpy as np
from jax.experimental import pallas as pl
from jax.experimental.pallas import tpu as pltpu

EPS = 1e-5
LANE = 128  # TPU lane width; channel / contraction dims are zero-padded to this.


# ---------------------------------------------------------------------------
# In-kernel helpers (traced inside the Pallas kernel).
# ---------------------------------------------------------------------------
def _bn_affine(y, gamma, beta, relu):
    """Training-mode BatchNorm (+ optional ReLU), fused with gamma/beta.

    Two-pass (mean, then centred variance) for numerical robustness; y is a
    live VMEM/vreg value so the second pass costs one extra VPU sweep only.
    Padded channels (gamma == beta == 0, y == 0) stay exactly 0.
    """
    inv_n = jnp.float32(1.0 / y.shape[0])
    mean = jnp.sum(y, axis=0, keepdims=True) * inv_n
    yc = y - mean
    var = jnp.sum(yc * yc, axis=0, keepdims=True) * inv_n
    out = yc * jax.lax.rsqrt(var + EPS) * gamma + beta
    if relu:
        out = jnp.maximum(out, 0.0)
    return out


def _conv3x3_from_padded(pad_ref, w_ref, N, H, W, C):
    """3x3 'same' conv: 9 shifted lane-dense bf16 taps read straight from the
    halo-padded VMEM scratch Ref (no whole-buffer load, no per-tap cast).

    pad_ref: (N, H+2, W+2, C) bf16 scratch ref (halo ring zeroed).
    w_ref  : (3, 3, C, C) bf16 VMEM ref.
    Returns (N*H*W, C) float32 accumulator (initialized from the first tap).
    """
    acc = None
    for kh in range(3):
        for kw in range(3):
            patch = pad_ref[:, kh:kh + H, kw:kw + W, :].reshape(N * H * W, C)
            d = jnp.dot(patch, w_ref[kh, kw], preferred_element_type=jnp.float32)
            acc = d if acc is None else acc + d
    return acc


def _zero_halo(ref, N, H, W, C):
    """Zero only the 1-pixel halo ring of a (N, H+2, W+2, C) scratch ref."""
    dt = ref.dtype
    ref[:, 0:1, :, :] = jnp.zeros((N, 1, W + 2, C), dt)            # top row
    ref[:, H + 1:H + 2, :, :] = jnp.zeros((N, 1, W + 2, C), dt)    # bottom row
    ref[:, 1:H + 1, 0:1, :] = jnp.zeros((N, H, 1, C), dt)          # left col
    ref[:, 1:H + 1, W + 1:W + 2, :] = jnp.zeros((N, H, 1, C), dt)  # right col


# ---------------------------------------------------------------------------
# Fused Pallas kernel: conv1 -> bn1 -> relu -> conv2 -> bn2 -> (+skip) -> relu
# ---------------------------------------------------------------------------
def _residual_kernel(xcol_ref, w1_ref, g1_ref, be1_ref,
                     w2_ref, g2_ref, be2_ref,
                     wskip_ref, bskip_ref,
                     out_ref, y1pad_sc):
    N, H, W, C = out_ref.shape
    rows = N * H * W

    # im2col operand: lanes hold (kh, kw, cin) packed + zero padding, bf16.
    xcol = xcol_ref[...].reshape(rows, C)

    # ---- stage 1: relu(bn1(conv1(X))) -- one K=128 MXU matmul ----
    y1 = jnp.dot(xcol, w1_ref[...], preferred_element_type=jnp.float32)
    y1 = _bn_affine(y1, g1_ref[...], be1_ref[...], relu=True)

    # y1 never leaves VMEM: bf16 scratch with a 1-px halo, ring-only zeroing.
    _zero_halo(y1pad_sc, N, H, W, C)
    y1pad_sc[:, 1:H + 1, 1:W + 1, :] = y1.reshape(N, H, W, C).astype(y1pad_sc.dtype)

    # ---- stage 2: bn2(conv2(Y)) -- 9 bf16 taps from the scratch ref ----
    y2 = _conv3x3_from_padded(y1pad_sc, w2_ref, N, H, W, C)
    y2 = _bn_affine(y2, g2_ref[...], be2_ref[...], relu=False)

    # ---- skip path: one matmul on the same im2col operand ----
    # wskip embeds either the 1x1 projection or the identity at the centre-tap
    # rows of the packed contraction dim (MXU has plenty of slack here).
    skip = jnp.dot(xcol, wskip_ref[...], preferred_element_type=jnp.float32)
    skip = skip + bskip_ref[...]

    out_ref[...] = jnp.maximum(y2 + skip, 0.0).reshape(N, H, W, C)


# ---------------------------------------------------------------------------
# Wrapper: layout conversion, im2col packing, lane padding of params.
# ---------------------------------------------------------------------------
def _pad_lanes(a, axes, target=LANE):
    pads = [(0, 0)] * a.ndim
    for ax in axes:
        pads[ax] = (0, target - a.shape[ax])
    return jnp.pad(a, pads)


@functools.partial(jax.jit, static_argnames=("use_1x1conv",))
def residual_block(x_nchw, params, use_1x1conv=True):
    N, Cin, H, W = x_nchw.shape
    Cout = params["w1"].shape[-1]
    assert 9 * Cin <= LANE and Cout <= LANE, "demo path requires 9*Cin <= 128"
    if not use_1x1conv:
        assert Cin == Cout, "identity skip requires Cin == Cout (as in PyTorch)"

    # NCHW -> NHWC, then im2col: pack (kh, kw, cin) into the lane/contraction
    # dim.  Boundary copy is the same size as the old lane-padded input
    # (bf16 -> half the HBM bytes).
    x = jnp.transpose(x_nchw, (0, 2, 3, 1)).astype(jnp.float32)
    xp = jnp.pad(x, ((0, 0), (1, 1), (1, 1), (0, 0)))
    cols = [xp[:, kh:kh + H, kw:kw + W, :] for kh in range(3) for kw in range(3)]
    xcol = jnp.concatenate(cols, axis=-1)                 # (N, H, W, 9*Cin)
    xcol = _pad_lanes(xcol, [3]).astype(jnp.bfloat16)     # lane-dense bf16 operand

    # conv1 weights packed to (9*Cin -> 128, Cout -> 128), bf16.
    w1p = params["w1"].astype(jnp.float32).reshape(9 * Cin, Cout)
    w1p = _pad_lanes(w1p, [0, 1]).astype(jnp.bfloat16)

    # conv2 weights: 9 taps, K = Cout padded to 128, bf16.
    w2p = _pad_lanes(params["w2"].astype(jnp.float32), [2, 3]).astype(jnp.bfloat16)

    # Skip weights: embedded at the centre-tap (kh=1, kw=1) rows of the packed
    # contraction dim.  Identity skip uses eye(Cin); projection skip uses w3.
    ctr = 4 * Cin
    if use_1x1conv:
        w3 = params["w3"].astype(jnp.float32)                    # (Cin, Cout)
        b3 = params["b3"].reshape(1, -1).astype(jnp.float32)     # (1, Cout)
    else:
        w3 = jnp.eye(Cin, dtype=jnp.float32)
        b3 = jnp.zeros((1, Cout), jnp.float32)
    wskip = jnp.zeros((LANE, LANE), jnp.float32).at[ctr:ctr + Cin, :Cout].set(w3)
    wskip = wskip.astype(jnp.bfloat16)
    bskip = _pad_lanes(b3, [1])

    # BN affine params (f32).  Conv biases b1/b2 are intentionally NOT passed:
    # they are absorbed exactly by the training-mode batch mean.
    g1 = _pad_lanes(params["g1"].reshape(1, -1).astype(jnp.float32), [1])
    g2 = _pad_lanes(params["g2"].reshape(1, -1).astype(jnp.float32), [1])
    be1 = _pad_lanes(params["be1"].reshape(1, -1).astype(jnp.float32), [1])
    be2 = _pad_lanes(params["be2"].reshape(1, -1).astype(jnp.float32), [1])

    args = [xcol, w1p, g1, be1, w2p, g2, be2, wskip, bskip]

    # Explicit VMEM budget: resident input/output + bf16 scratch + weights
    # + live f32 intermediates, plus headroom.  Capped well under v7x physical.
    lane_elems = N * H * W * LANE
    vmem_limit = (lane_elems * 2                         # xcol (bf16)
                  + lane_elems * 4                       # output (f32)
                  + N * (H + 2) * (W + 2) * LANE * 2     # y1 halo scratch (bf16)
                  + 11 * LANE * LANE * 2                 # packed weights (bf16)
                  + 6 * lane_elems * 4                   # live f32 intermediates
                  + (8 << 20))                           # headroom
    vmem_limit = int(min(vmem_limit, 48 << 20))

    out_padded = pl.pallas_call(
        _residual_kernel,
        out_shape=jax.ShapeDtypeStruct((N, H, W, LANE), jnp.float32),
        in_specs=[pl.BlockSpec(memory_space=pltpu.MemorySpace.VMEM)] * len(args),
        out_specs=pl.BlockSpec(memory_space=pltpu.MemorySpace.VMEM),
        scratch_shapes=[
            pltpu.VMEM((N, H + 2, W + 2, LANE), jnp.bfloat16),  # halo-padded y1
        ],
        compiler_params=pltpu.CompilerParams(vmem_limit_bytes=vmem_limit),
    )(*args)

    out = out_padded[..., :Cout]              # drop lane padding
    return jnp.transpose(out, (0, 3, 1, 2))   # NHWC -> NCHW


# ---------------------------------------------------------------------------
# Pure-JAX f32 reference (correctness check only; keeps b1/b2 to verify the
# bias-absorption-by-BatchNorm equivalence).
# ---------------------------------------------------------------------------
def reference_block(x_nchw, params, use_1x1conv=True):
    x = jnp.transpose(x_nchw, (0, 2, 3, 1)).astype(jnp.float32)

    def conv(h, w, b):
        y = jax.lax.conv_general_dilated(
            h, w, (1, 1), "SAME", dimension_numbers=("NHWC", "HWIO", "NHWC"))
        return y + b.reshape(1, 1, 1, -1)

    def bn(y, g, beta):
        m = jnp.mean(y, axis=(0, 1, 2), keepdims=True)
        v = jnp.mean((y - m) ** 2, axis=(0, 1, 2), keepdims=True)
        return (y - m) * jax.lax.rsqrt(v + EPS) * g.reshape(1, 1, 1, -1) \
            + beta.reshape(1, 1, 1, -1)

    y = jax.nn.relu(bn(conv(x, params["w1"], params["b1"]), params["g1"], params["be1"]))
    y = bn(conv(y, params["w2"], params["b2"]), params["g2"], params["be2"])
    if use_1x1conv:
        skip = conv(x, params["w3"].reshape(1, 1, *params["w3"].shape), params["b3"])
    else:
        skip = x
    out = jax.nn.relu(y + skip)
    return jnp.transpose(out, (0, 3, 1, 2))


# ---------------------------------------------------------------------------
# Main.
# ---------------------------------------------------------------------------
if __name__ == "__main__":
    def make_params(key, cin, cout, use_1x1conv):
        ks = jax.random.split(key, 12)
        p = {
            "w1": jax.random.normal(ks[0], (3, 3, cin, cout), jnp.float32) * 0.1,
            "b1": jax.random.normal(ks[1], (cout,), jnp.float32) * 0.05,
            "w2": jax.random.normal(ks[2], (3, 3, cout, cout), jnp.float32) * 0.1,
            "b2": jax.random.normal(ks[3], (cout,), jnp.float32) * 0.05,
            "g1": 1.0 + 0.1 * jax.random.normal(ks[6], (cout,), jnp.float32),
            "be1": 0.05 * jax.random.normal(ks[7], (cout,), jnp.float32),
            "g2": 1.0 + 0.1 * jax.random.normal(ks[8], (cout,), jnp.float32),
            "be2": 0.05 * jax.random.normal(ks[9], (cout,), jnp.float32),
        }
        if use_1x1conv:
            p["w3"] = jax.random.normal(ks[4], (cin, cout), jnp.float32) * 0.1
            p["b3"] = jax.random.normal(ks[5], (cout,), jnp.float32) * 0.05
        return p

    key = jax.random.PRNGKey(0)
    k1, k2, kx1, kx2 = jax.random.split(key, 4)

    # Tolerances account for bf16 matmul operands (f32 accumulation) vs the
    # pure-f32 reference; this is an intentional precision tradeoff.
    TOL = dict(rtol=5e-2, atol=5e-2)

    # Test 1: projection skip (use_1x1conv=True), Cin != Cout.
    N, Cin, H, W, Cout = 2, 4, 16, 16, 8
    params = make_params(k1, Cin, Cout, True)
    x = jax.random.normal(kx1, (N, Cin, H, W), jnp.float32)
    out = jax.block_until_ready(residual_block(x, params, use_1x1conv=True))
    ref = jax.block_until_ready(reference_block(x, params, use_1x1conv=True))
    np.testing.assert_allclose(np.asarray(out), np.asarray(ref), **TOL)

    # Test 2: identity skip (use_1x1conv=False), Cin == Cout.
    params2 = make_params(k2, Cout, Cout, False)
    x2 = jax.random.normal(kx2, (N, Cout, H, W), jnp.float32)
    out2 = jax.block_until_ready(residual_block(x2, params2, use_1x1conv=False))
    ref2 = jax.block_until_ready(reference_block(x2, params2, use_1x1conv=False))
    np.testing.assert_allclose(np.asarray(out2), np.asarray(ref2), **TOL)

    print("KERNEL_OK")
</pallas_src>

<mosaic_0001>
module attributes {stable_mosaic.version = 11 : i64} {
  func.func @_residual_kernel(%arg0: memref<2x16x16x128xbf16, #tpu.memory_space<vmem>>, %arg1: memref<128x128xbf16, #tpu.memory_space<vmem>>, %arg2: memref<1x128xf32, #tpu.memory_space<vmem>>, %arg3: memref<1x128xf32, #tpu.memory_space<vmem>>, %arg4: memref<3x3x128x128xbf16, #tpu.memory_space<vmem>>, %arg5: memref<1x128xf32, #tpu.memory_space<vmem>>, %arg6: memref<1x128xf32, #tpu.memory_space<vmem>>, %arg7: memref<128x128xbf16, #tpu.memory_space<vmem>>, %arg8: memref<1x128xf32, #tpu.memory_space<vmem>>, %arg9: memref<2x16x16x128xf32, #tpu.memory_space<vmem>>, %arg10: memref<2x18x18x128xbf16, #tpu.memory_space<vmem>>) attributes {dimension_semantics = [], scalar_prefetch = 0 : i64, scratch_operands = 1 : i64, tpu.core_type = #tpu.core_type<tc>} {
    %c0 = arith.constant 0 : index
    %c0_0 = arith.constant 0 : index
    %c0_1 = arith.constant 0 : index
    %c0_2 = arith.constant 0 : index
    %0 = vector.load %arg0[%c0, %c0_0, %c0_1, %c0_2] : memref<2x16x16x128xbf16, #tpu.memory_space<vmem>>, vector<2x16x16x128xbf16>
    %1 = vector.shape_cast %0 : vector<2x16x16x128xbf16> to vector<512x128xbf16>
    %c0_3 = arith.constant 0 : index
    %c0_4 = arith.constant 0 : index
    %2 = vector.load %arg1[%c0_3, %c0_4] : memref<128x128xbf16, #tpu.memory_space<vmem>>, vector<128x128xbf16>
    %cst = arith.constant dense<0.000000e+00> : vector<512x128xf32>
    %3 = tpu.matmul %1, %2, %cst {dimension_numbers = #tpu.dot_dimension_numbers<[1], [0], [0], [1], [0, 0, 1, 1], [], []>} : vector<512x128xbf16>, vector<128x128xbf16>, vector<512x128xf32> -> vector<512x128xf32>
    %c0_5 = arith.constant 0 : index
    %c0_6 = arith.constant 0 : index
    %4 = vector.load %arg2[%c0_5, %c0_6] : memref<1x128xf32, #tpu.memory_space<vmem>>, vector<1x128xf32>
    %c0_7 = arith.constant 0 : index
    %c0_8 = arith.constant 0 : index
    %5 = vector.load %arg3[%c0_7, %c0_8] : memref<1x128xf32, #tpu.memory_space<vmem>>, vector<1x128xf32>
    %cst_9 = arith.constant dense<0.000000e+00> : vector<128xf32>
    %6 = vector.multi_reduction <add>, %3, %cst_9 [0] : vector<512x128xf32> to vector<128xf32>
    %7 = vector.shape_cast %6 : vector<128xf32> to vector<1x128xf32>
    %cst_10 = arith.constant 0.001953125 : f32
    %8 = vector.broadcast %cst_10 : f32 to vector<1x128xf32>
    %9 = arith.mulf %7, %8 : vector<1x128xf32>
    %10 = vector.broadcast %9 : vector<1x128xf32> to vector<512x128xf32>
    %11 = arith.subf %3, %10 : vector<512x128xf32>
    %12 = arith.mulf %11, %11 : vector<512x128xf32>
    %cst_11 = arith.constant dense<0.000000e+00> : vector<128xf32>
    %13 = vector.multi_reduction <add>, %12, %cst_11 [0] : vector<512x128xf32> to vector<128xf32>
    %14 = vector.shape_cast %13 : vector<128xf32> to vector<1x128xf32>
    %cst_12 = arith.constant 0.001953125 : f32
    %15 = vector.broadcast %cst_12 : f32 to vector<1x128xf32>
    %16 = arith.mulf %14, %15 : vector<1x128xf32>
    %cst_13 = arith.constant 9.99999974E-6 : f32
    %17 = vector.broadcast %cst_13 : f32 to vector<1x128xf32>
    %18 = arith.addf %16, %17 : vector<1x128xf32>
    %19 = math.rsqrt %18 : vector<1x128xf32>
    %20 = vector.broadcast %19 : vector<1x128xf32> to vector<512x128xf32>
    %21 = arith.mulf %11, %20 : vector<512x128xf32>
    %22 = vector.broadcast %4 : vector<1x128xf32> to vector<512x128xf32>
    %23 = arith.mulf %21, %22 : vector<512x128xf32>
    %24 = vector.broadcast %5 : vector<1x128xf32> to vector<512x128xf32>
    %25 = arith.addf %23, %24 : vector<512x128xf32>
    %cst_14 = arith.constant 0.000000e+00 : f32
    %26 = vector.broadcast %cst_14 : f32 to vector<512x128xf32>
    %27 = arith.maximumf %25, %26 : vector<512x128xf32>
    %cst_15 = arith.constant 0.000000e+00 : bf16
    %28 = vector.broadcast %cst_15 : bf16 to vector<2x1x18x128xbf16>
    %c0_16 = arith.constant 0 : index
    %c0_17 = arith.constant 0 : index
    %c0_18 = arith.constant 0 : index
    %c0_19 = arith.constant 0 : index
    %29 = vector.load %arg10[%c0_16, %c0_17, %c0_18, %c0_19] : memref<2x18x18x128xbf16, #tpu.memory_space<vmem>>, vector<2x1x18x128xbf16>
    tpu.vector_store %arg10[%c0_16, %c0_17, %c0_18, %c0_19], %28 {strides = array<i32>} : memref<2x18x18x128xbf16, #tpu.memory_space<vmem>>, vector<2x1x18x128xbf16>,
    %cst_20 = arith.constant 0.000000e+00 : bf16
    %30 = vector.broadcast %cst_20 : bf16 to vector<2x1x18x128xbf16>
    %c0_21 = arith.constant 0 : index
    %c17 = arith.constant 17 : index
    %c0_22 = arith.constant 0 : index
    %c0_23 = arith.constant 0 : index
    %31 = vector.load %arg10[%c0_21, %c17, %c0_22, %c0_23] : memref<2x18x18x128xbf16, #tpu.memory_space<vmem>>, vector<2x1x18x128xbf16>
    tpu.vector_store %arg10[%c0_21, %c17, %c0_22, %c0_23], %30 {strides = array<i32>} : memref<2x18x18x128xbf16, #tpu.memory_space<vmem>>, vector<2x1x18x128xbf16>,
    %cst_24 = arith.constant 0.000000e+00 : bf16
    %32 = vector.broadcast %cst_24 : bf16 to vector<2x16x1x128xbf16>
    %c0_25 = arith.constant 0 : index
    %c1 = arith.constant 1 : index
    %c0_26 = arith.constant 0 : index
    %c0_27 = arith.constant 0 : index
    %33 = vector.load %arg10[%c0_25, %c1, %c0_26, %c0_27] : memref<2x18x18x128xbf16, #tpu.memory_space<vmem>>, vector<2x16x1x128xbf16>
    tpu.vector_store %arg10[%c0_25, %c1, %c0_26, %c0_27], %32 {strides = array<i32>} : memref<2x18x18x128xbf16, #tpu.memory_space<vmem>>, vector<2x16x1x128xbf16>,
    %cst_28 = arith.constant 0.000000e+00 : bf16
    %34 = vector.broadcast %cst_28 : bf16 to vector<2x16x1x128xbf16>
    %c0_29 = arith.constant 0 : index
    %c1_30 = arith.constant 1 : index
    %c17_31 = arith.constant 17 : index
    %c0_32 = arith.constant 0 : index
    %35 = vector.load %arg10[%c0_29, %c1_30, %c17_31, %c0_32] : memref<2x18x18x128xbf16, #tpu.memory_space<vmem>>, vector<2x16x1x128xbf16>
    tpu.vector_store %arg10[%c0_29, %c1_30, %c17_31, %c0_32], %34 {strides = array<i32>} : memref<2x18x18x128xbf16, #tpu.memory_space<vmem>>, vector<2x16x1x128xbf16>,
    %36 = vector.shape_cast %27 : vector<512x128xf32> to vector<2x16x16x128xf32>
    %37 = arith.truncf %36 : vector<2x16x16x128xf32> to vector<2x16x16x128xbf16>
    %c0_33 = arith.constant 0 : index
    %c1_34 = arith.constant 1 : index
    %c1_35 = arith.constant 1 : index
    %c0_36 = arith.constant 0 : index
    %38 = vector.load %arg10[%c0_33, %c1_34, %c1_35, %c0_36] : memref<2x18x18x128xbf16, #tpu.memory_space<vmem>>, vector<2x16x16x128xbf16>
    tpu.vector_store %arg10[%c0_33, %c1_34, %c1_35, %c0_36], %37 {strides = array<i32>} : memref<2x18x18x128xbf16, #tpu.memory_space<vmem>>, vector<2x16x16x128xbf16>,
    %c0_37 = arith.constant 0 : index
    %c0_38 = arith.constant 0 : index
    %c0_39 = arith.constant 0 : index
    %c0_40 = arith.constant 0 : index
    %39 = vector.load %arg10[%c0_37, %c0_38, %c0_39, %c0_40] : memref<2x18x18x128xbf16, #tpu.memory_space<vmem>>, vector<2x16x16x128xbf16>
    %40 = vector.shape_cast %39 : vector<2x16x16x128xbf16> to vector<512x128xbf16>
    %c0_41 = arith.constant 0 : index
    %c0_42 = arith.constant 0 : index
    %c0_43 = arith.constant 0 : index
    %c0_44 = arith.constant 0 : index
    %41 = vector.load %arg4[%c0_41, %c0_42, %c0_43, %c0_44] : memref<3x3x128x128xbf16, #tpu.memory_space<vmem>>, vector<1x1x128x128xbf16>
    %42 = vector.shape_cast %41 : vector<1x1x128x128xbf16> to vector<128x128xbf16>
    %cst_45 = arith.constant dense<0.000000e+00> : vector<512x128xf32>
    %43 = tpu.matmul %40, %42, %cst_45 {dimension_numbers = #tpu.dot_dimension_numbers<[1], [0], [0], [1], [0, 0, 1, 1], [], []>} : vector<512x128xbf16>, vector<128x128xbf16>, vector<512x128xf32> -> vector<512x128xf32>
    %c0_46 = arith.constant 0 : index
    %c0_47 = arith.constant 0 : index
    %c1_48 = arith.constant 1 : index
    %c0_49 = arith.constant 0 : index
    %44 = vector.load %arg10[%c0_46, %c0_47, %c1_48, %c0_49] : memref<2x18x18x128xbf16, #tpu.memory_space<vmem>>, vector<2x16x16x128xbf16>
    %45 = vector.shape_cast %44 : vector<2x16x16x128xbf16> to vector<512x128xbf16>
    %c0_50 = arith.constant 0 : index
    %c1_51 = arith.constant 1 : index
    %c0_52 = arith.constant 0 : index
    %c0_53 = arith.constant 0 : index
    %46 = vector.load %arg4[%c0_50, %c1_51, %c0_52, %c0_53] : memref<3x3x128x128xbf16, #tpu.memory_space<vmem>>, vector<1x1x128x128xbf16>
    %47 = vector.shape_cast %46 : vector<1x1x128x128xbf16> to vector<128x128xbf16>
    %cst_54 = arith.constant dense<0.000000e+00> : vector<512x128xf32>
    %48 = tpu.matmul %45, %47, %cst_54 {dimension_numbers = #tpu.dot_dimension_numbers<[1], [0], [0], [1], [0, 0, 1, 1], [], []>} : vector<512x128xbf16>, vector<128x128xbf16>, vector<512x128xf32> -> vector<512x128xf32>
    %49 = arith.addf %43, %48 : vector<512x128xf32>
    %c0_55 = arith.constant 0 : index
    %c0_56 = arith.constant 0 : index
    %c2 = arith.constant 2 : index
    %c0_57 = arith.constant 0 : index
    %50 = vector.load %arg10[%c0_55, %c0_56, %c2, %c0_57] : memref<2x18x18x128xbf16, #tpu.memory_space<vmem>>, vector<2x16x16x128xbf16>
    %51 = vector.shape_cast %50 : vector<2x16x16x128xbf16> to vector<512x128xbf16>
    %c0_58 = arith.constant 0 : index
    %c2_59 = arith.constant 2 : index
    %c0_60 = arith.constant 0 : index
    %c0_61 = arith.constant 0 : index
    %52 = vector.load %arg4[%c0_58, %c2_59, %c0_60, %c0_61] : memref<3x3x128x128xbf16, #tpu.memory_space<vmem>>, vector<1x1x128x128xbf16>
    %53 = vector.shape_cast %52 : vector<1x1x128x128xbf16> to vector<128x128xbf16>
    %cst_62 = arith.constant dense<0.000000e+00> : vector<512x128xf32>
    %54 = tpu.matmul %51, %53, %cst_62 {dimension_numbers = #tpu.dot_dimension_numbers<[1], [0], [0], [1], [0, 0, 1, 1], [], []>} : vector<512x128xbf16>, vector<128x128xbf16>, vector<512x128xf32> -> vector<512x128xf32>
    %55 = arith.addf %49, %54 : vector<512x128xf32>
    %c0_63 = arith.constant 0 : index
    %c1_64 = arith.constant 1 : index
    %c0_65 = arith.constant 0 : index
    %c0_66 = arith.constant 0 : index
    %56 = vector.load %arg10[%c0_63, %c1_64, %c0_65, %c0_66] : memref<2x18x18x128xbf16, #tpu.memory_space<vmem>>, vector<2x16x16x128xbf16>
    %57 = vector.shape_cast %56 : vector<2x16x16x128xbf16> to vector<512x128xbf16>
    %c1_67 = arith.constant 1 : index
    %c0_68 = arith.constant 0 : index
    %c0_69 = arith.constant 0 : index
    %c0_70 = arith.constant 0 : index
    %58 = vector.load %arg4[%c1_67, %c0_68, %c0_69, %c0_70] : memref<3x3x128x128xbf16, #tpu.memory_space<vmem>>, vector<1x1x128x128xbf16>
    %59 = vector.shape_cast %58 : vector<1x1x128x128xbf16> to vector<128x128xbf16>
    %cst_71 = arith.constant dense<0.000000e+00> : vector<512x128xf32>
    %60 = tpu.matmul %57, %59, %cst_71 {dimension_numbers = #tpu.dot_dimension_numbers<[1], [0], [0], [1], [0, 0, 1, 1], [], []>} : vector<512x128xbf16>, vector<128x128xbf16>, vector<512x128xf32> -> vector<512x128xf32>
    %61 = arith.addf %55, %60 : vector<512x128xf32>
    %c0_72 = arith.constant 0 : index
    %c1_73 = arith.constant 1 : index
    %c1_74 = arith.constant 1 : index
    %c0_75 = arith.constant 0 : index
    %62 = vector.load %arg10[%c0_72, %c1_73, %c1_74, %c0_75] : memref<2x18x18x128xbf16, #tpu.memory_space<vmem>>, vector<2x16x16x128xbf16>
    %63 = vector.shape_cast %62 : vector<2x16x16x128xbf16> to vector<512x128xbf16>
    %c1_76 = arith.constant 1 : index
    %c1_77 = arith.constant 1 : index
    %c0_78 = arith.constant 0 : index
    %c0_79 = arith.constant 0 : index
    %64 = vector.load %arg4[%c1_76, %c1_77, %c0_78, %c0_79] : memref<3x3x128x128xbf16, #tpu.memory_space<vmem>>, vector<1x1x128x128xbf16>
    %65 = vector.shape_cast %64 : vector<1x1x128x128xbf16> to vector<128x128xbf16>
    %cst_80 = arith.constant dense<0.000000e+00> : vector<512x128xf32>
    %66 = tpu.matmul %63, %65, %cst_80 {dimension_numbers = #tpu.dot_dimension_numbers<[1], [0], [0], [1], [0, 0, 1, 1], [], []>} : vector<512x128xbf16>, vector<128x128xbf16>, vector<512x128xf32> -> vector<512x128xf32>
    %67 = arith.addf %61, %66 : vector<512x128xf32>
    %c0_81 = arith.constant 0 : index
    %c1_82 = arith.constant 1 : index
    %c2_83 = arith.constant 2 : index
    %c0_84 = arith.constant 0 : index
    %68 = vector.load %arg10[%c0_81, %c1_82, %c2_83, %c0_84] : memref<2x18x18x128xbf16, #tpu.memory_space<vmem>>, vector<2x16x16x128xbf16>
    %69 = vector.shape_cast %68 : vector<2x16x16x128xbf16> to vector<512x128xbf16>
    %c1_85 = arith.constant 1 : index
    %c2_86 = arith.constant 2 : index
    %c0_87 = arith.constant 0 : index
    %c0_88 = arith.constant 0 : index
    %70 = vector.load %arg4[%c1_85, %c2_86, %c0_87, %c0_88] : memref<3x3x128x128xbf16, #tpu.memory_space<vmem>>, vector<1x1x128x128xbf16>
    %71 = vector.shape_cast %70 : vector<1x1x128x128xbf16> to vector<128x128xbf16>
    %cst_89 = arith.constant dense<0.000000e+00> : vector<512x128xf32>
    %72 = tpu.matmul %69, %71, %cst_89 {dimension_numbers = #tpu.dot_dimension_numbers<[1], [0], [0], [1], [0, 0, 1, 1], [], []>} : vector<512x128xbf16>, vector<128x128xbf16>, vector<512x128xf32> -> vector<512x128xf32>
    %73 = arith.addf %67, %72 : vector<512x128xf32>
    %c0_90 = arith.constant 0 : index
    %c2_91 = arith.constant 2 : index
    %c0_92 = arith.constant 0 : index
    %c0_93 = arith.constant 0 : index
    %74 = vector.load %arg10[%c0_90, %c2_91, %c0_92, %c0_93] : memref<2x18x18x128xbf16, #tpu.memory_space<vmem>>, vector<2x16x16x128xbf16>
    %75 = vector.shape_cast %74 : vector<2x16x16x128xbf16> to vector<512x128xbf16>
    %c2_94 = arith.constant 2 : index
    %c0_95 = arith.constant 0 : index
    %c0_96 = arith.constant 0 : index
    %c0_97 = arith.constant 0 : index
    %76 = vector.load %arg4[%c2_94, %c0_95, %c0_96, %c0_97] : memref<3x3x128x128xbf16, #tpu.memory_space<vmem>>, vector<1x1x128x128xbf16>
    %77 = vector.shape_cast %76 : vector<1x1x128x128xbf16> to vector<128x128xbf16>
    %cst_98 = arith.constant dense<0.000000e+00> : vector<512x128xf32>
    %78 = tpu.matmul %75, %77, %cst_98 {dimension_numbers = #tpu.dot_dimension_numbers<[1], [0], [0], [1], [0, 0, 1, 1], [], []>} : vector<512x128xbf16>, vector<128x128xbf16>, vector<512x128xf32> -> vector<512x128xf32>
    %79 = arith.addf %73, %78 : vector<512x128xf32>
    %c0_99 = arith.constant 0 : index
    %c2_100 = arith.constant 2 : index
    %c1_101 = arith.constant 1 : index
    %c0_102 = arith.constant 0 : index
    %80 = vector.load %arg10[%c0_99, %c2_100, %c1_101, %c0_102] : memref<2x18x18x128xbf16, #tpu.memory_space<vmem>>, vector<2x16x16x128xbf16>
    %81 = vector.shape_cast %80 : vector<2x16x16x128xbf16> to vector<512x128xbf16>
    %c2_103 = arith.constant 2 : index
    %c1_104 = arith.constant 1 : index
    %c0_105 = arith.constant 0 : index
    %c0_106 = arith.constant 0 : index
    %82 = vector.load %arg4[%c2_103, %c1_104, %c0_105, %c0_106] : memref<3x3x128x128xbf16, #tpu.memory_space<vmem>>, vector<1x1x128x128xbf16>
    %83 = vector.shape_cast %82 : vector<1x1x128x128xbf16> to vector<128x128xbf16>
    %cst_107 = arith.constant dense<0.000000e+00> : vector<512x128xf32>
    %84 = tpu.matmul %81, %83, %cst_107 {dimension_numbers = #tpu.dot_dimension_numbers<[1], [0], [0], [1], [0, 0, 1, 1], [], []>} : vector<512x128xbf16>, vector<128x128xbf16>, vector<512x128xf32> -> vector<512x128xf32>
    %85 = arith.addf %79, %84 : vector<512x128xf32>
    %c0_108 = arith.constant 0 : index
    %c2_109 = arith.constant 2 : index
    %c2_110 = arith.constant 2 : index
    %c0_111 = arith.constant 0 : index
    %86 = vector.load %arg10[%c0_108, %c2_109, %c2_110, %c0_111] : memref<2x18x18x128xbf16, #tpu.memory_space<vmem>>, vector<2x16x16x128xbf16>
    %87 = vector.shape_cast %86 : vector<2x16x16x128xbf16> to vector<512x128xbf16>
    %c2_112 = arith.constant 2 : index
    %c2_113 = arith.constant 2 : index
    %c0_114 = arith.constant 0 : index
    %c0_115 = arith.constant 0 : index
    %88 = vector.load %arg4[%c2_112, %c2_113, %c0_114, %c0_115] : memref<3x3x128x128xbf16, #tpu.memory_space<vmem>>, vector<1x1x128x128xbf16>
    %89 = vector.shape_cast %88 : vector<1x1x128x128xbf16> to vector<128x128xbf16>
    %cst_116 = arith.constant dense<0.000000e+00> : vector<512x128xf32>
    %90 = tpu.matmul %87, %89, %cst_116 {dimension_numbers = #tpu.dot_dimension_numbers<[1], [0], [0], [1], [0, 0, 1, 1], [], []>} : vector<512x128xbf16>, vector<128x128xbf16>, vector<512x128xf32> -> vector<512x128xf32>
    %91 = arith.addf %85, %90 : vector<512x128xf32>
    %c0_117 = arith.constant 0 : index
    %c0_118 = arith.constant 0 : index
    %92 = vector.load %arg5[%c0_117, %c0_118] : memref<1x128xf32, #tpu.memory_space<vmem>>, vector<1x128xf32>
    %c0_119 = arith.constant 0 : index
    %c0_120 = arith.constant 0 : index
    %93 = vector.load %arg6[%c0_119, %c0_120] : memref<1x128xf32, #tpu.memory_space<vmem>>, vector<1x128xf32>
    %cst_121 = arith.constant dense<0.000000e+00> : vector<128xf32>
    %94 = vector.multi_reduction <add>, %91, %cst_121 [0] : vector<512x128xf32> to vector<128xf32>
    %95 = vector.shape_cast %94 : vector<128xf32> to vector<1x128xf32>
    %cst_122 = arith.constant 0.001953125 : f32
    %96 = vector.broadcast %cst_122 : f32 to vector<1x128xf32>
    %97 = arith.mulf %95, %96 : vector<1x128xf32>
    %98 = vector.broadcast %97 : vector<1x128xf32> to vector<512x128xf32>
    %99 = arith.subf %91, %98 : vector<512x128xf32>
    %100 = arith.mulf %99, %99 : vector<512x128xf32>
    %cst_123 = arith.constant dense<0.000000e+00> : vector<128xf32>
    %101 = vector.multi_reduction <add>, %100, %cst_123 [0] : vector<512x128xf32> to vector<128xf32>
    %102 = vector.shape_cast %101 : vector<128xf32> to vector<1x128xf32>
    %cst_124 = arith.constant 0.001953125 : f32
    %103 = vector.broadcast %cst_124 : f32 to vector<1x128xf32>
    %104 = arith.mulf %102, %103 : vector<1x128xf32>
    %cst_125 = arith.constant 9.99999974E-6 : f32
    %105 = vector.broadcast %cst_125 : f32 to vector<1x128xf32>
    %106 = arith.addf %104, %105 : vector<1x128xf32>
    %107 = math.rsqrt %106 : vector<1x128xf32>
    %108 = vector.broadcast %107 : vector<1x128xf32> to vector<512x128xf32>
    %109 = arith.mulf %99, %108 : vector<512x128xf32>
    %110 = vector.broadcast %92 : vector<1x128xf32> to vector<512x128xf32>
    %111 = arith.mulf %109, %110 : vector<512x128xf32>
    %112 = vector.broadcast %93 : vector<1x128xf32> to vector<512x128xf32>
    %113 = arith.addf %111, %112 : vector<512x128xf32>
    %c0_126 = arith.constant 0 : index
    %c0_127 = arith.constant 0 : index
    %114 = vector.load %arg7[%c0_126, %c0_127] : memref<128x128xbf16, #tpu.memory_space<vmem>>, vector<128x128xbf16>
    %cst_128 = arith.constant dense<0.000000e+00> : vector<512x128xf32>
    %115 = tpu.matmul %1, %114, %cst_128 {dimension_numbers = #tpu.dot_dimension_numbers<[1], [0], [0], [1], [0, 0, 1, 1], [], []>} : vector<512x128xbf16>, vector<128x128xbf16>, vector<512x128xf32> -> vector<512x128xf32>
    %c0_129 = arith.constant 0 : index
    %c0_130 = arith.constant 0 : index
    %116 = vector.load %arg8[%c0_129, %c0_130] : memref<1x128xf32, #tpu.memory_space<vmem>>, vector<1x128xf32>
    %117 = vector.broadcast %116 : vector<1x128xf32> to vector<512x128xf32>
    %118 = arith.addf %115, %117 : vector<512x128xf32>
    %119 = arith.addf %113, %118 : vector<512x128xf32>
    %cst_131 = arith.constant 0.000000e+00 : f32
    %120 = vector.broadcast %cst_131 : f32 to vector<512x128xf32>
    %121 = arith.maximumf %119, %120 : vector<512x128xf32>
    %122 = vector.shape_cast %121 : vector<512x128xf32> to vector<2x16x16x128xf32>
    %c0_132 = arith.constant 0 : index
    %c0_133 = arith.constant 0 : index
    %c0_134 = arith.constant 0 : index
    %c0_135 = arith.constant 0 : index
    %123 = vector.load %arg9[%c0_132, %c0_133, %c0_134, %c0_135] : memref<2x16x16x128xf32, #tpu.memory_space<vmem>>, vector<2x16x16x128xf32>
    tpu.vector_store %arg9[%c0_132, %c0_133, %c0_134, %c0_135], %122 {strides = array<i32>} : memref<2x16x16x128xf32, #tpu.memory_space<vmem>>, vector<2x16x16x128xf32>,
    return
  }
}

</mosaic_0001>

<bundles_post_ra>
// kernel: residual_block.1
= control target key start
LH: loop header
LB: loop body
LE: loop exit
PB: predicated region body
PF: predicated region fallthrough
CT: control target
= control target key end

     0   :  { %vm1196_vm0 = vcmask 1040384   ;;  %vm1197_vm1 = vsmask.f32 256  ;;  %v1202_v33 = vld [vmem:[#allocation2 + $0x18] sm:$0x1]  ;;  %v21724_v34 = vmov 0  ;;  %s21514_s1 = inlined_call_operand.vmem [shape: bf16[128,128], index: 1, kind: input, shape index: {}]   ;;  %s21515_s0 = inlined_call_operand.vmem [shape: bf16[2,16,16,128], index: 0, kind: input, shape index: {}]   ;;  %s21516_s4 = inlined_call_operand.vmem [shape: bf16[3,3,128,128], index: 4, kind: input, shape index: {}]   ;;  %s21517_s2 = inlined_call_operand.vmem [shape: f32[1,128], index: 2, kind: input, shape index: {}]   ;;  %s21518_s3 = inlined_call_operand.vmem [shape: f32[1,128], index: 3, kind: input, shape index: {}]   ;;  %s21519_s7 = inlined_call_operand.vmem [shape: bf16[128,128], index: 7, kind: input, shape index: {}]   ;;  %s21520_s8 = inlined_call_operand.vmem [shape: f32[1,128], index: 8, kind: input, shape index: {}]   ;;  %s21521_s5 = inlined_call_operand.vmem [shape: f32[1,128], index: 5, kind: input, shape index: {}]   ;;  %s21522_s6 = inlined_call_operand.vmem [shape: f32[1,128], index: 6, kind: input, shape index: {}]   ;;  %s21523_s9 = inlined_call_operand.vmem [shape: f32[2,16,16,128], index: 9, kind: output, shape index: {}]  }
   0x1   :  { %v14827_v0 = vld [vmem:[%s21514_s1] sm:$0xff]   ;;  %v14828_v1 = vld [vmem:[%s21514_s1 + $0x8] sm:$0xff]   ;;  %v14829_v2 = vld [vmem:[%s21514_s1 + $0x10] sm:$0xff]   ;;  %vm1295_vm2 = vsmask.f32 7938  ;;  %v21727_v39 = vmov 0 }
   0x2   :  { %13418 = vmatprep.subr.bf16.mxu0 %v14827_v0  ;;  %v14830_v3 = vld [vmem:[%s21514_s1 + $0x18] sm:$0xff]   ;;  %v14835_v4 = vld [vmem:[%s21515_s0] sm:$0xff]   ;;  %v14832_v6 = vld [vmem:[%s21514_s1 + $0x28] sm:$0xff]   ;;  %vm1585_vm5 = vsmask.f32 4368  ;;  %vm2227_vm7 = vcmask 1043456  }
   0x3   :  { %13419 = vmatpush3.bf16.msra.mxu0 %v14827_v0  ;;  %13434 = vmatprep.mubr.bf16.mxu0 %v14835_v4  ;;  %v14831_v5 = vld [vmem:[%s21514_s1 + $0x20] sm:$0xff]   ;;  %v14833_v7 = vld [vmem:[%s21514_s1 + $0x30] sm:$0xff]   ;;  %v14834_v8 = vld [vmem:[%s21514_s1 + $0x38] sm:$0xff]   ;;  %vm2565_vm9 = vsmask.f32 3328  ;;  %vm4443_vm12 = vcmask 1042432  }
   0x4   :  { %13420 = vmatprep.subr.bf16.mxu0 %v14828_v1  ;;  %v14836_v9 = vld [vmem:[%s21515_s0 + $0x8] sm:$0xff]   ;;  %v14837_v10 = vld [vmem:[%s21515_s0 + $0x10] sm:$0xff]   ;;  %v14838_v11 = vld [vmem:[%s21515_s0 + $0x18] sm:$0xff]   ;;  %vm2566_vm10 = vsmask.f32 7440  ;;  %vm4444_vm13 = vcmask 1046532  }
   0x5   :  { %v14839_v12 = vld [vmem:[%s21515_s0 + $0x20] sm:$0xff]   ;;  %v14840_v13 = vld [vmem:[%s21515_s0 + $0x28] sm:$0xff]   ;;  %v14841_v14 = vld [vmem:[%s21515_s0 + $0x30] sm:$0xff]  }
   0x6   :  { %v14842_v15 = vld [vmem:[%s21515_s0 + $0x38] sm:$0xff]   ;;  %v14843_v16 = vld [vmem:[%s21515_s0 + $0x40] sm:$0xff]   ;;  %v14844_v17 = vld [vmem:[%s21515_s0 + $0x48] sm:$0xff]  }
   0x7   :  { %13421 = vmatpush3.bf16.msra.mxu0 %v14828_v1  ;;  %v14845_v18 = vld [vmem:[%s21515_s0 + $0x50] sm:$0xff]   ;;  %v14846_v19 = vld [vmem:[%s21515_s0 + $0x58] sm:$0xff]   ;;  %v14847_v20 = vld [vmem:[%s21515_s0 + $0x60] sm:$0xff]  }
   0x8   :  { %13422 = vmatprep.subr.bf16.mxu0 %v14829_v2  ;;  %v14848_v21 = vld [vmem:[%s21515_s0 + $0x68] sm:$0xff]   ;;  %v14849_v22 = vld [vmem:[%s21515_s0 + $0x70] sm:$0xff]   ;;  %v14850_v23 = vld [vmem:[%s21515_s0 + $0x78] sm:$0xff]  }
   0x9   :  { %v14851_v24 = vld [vmem:[%s21515_s0 + $0x80] sm:$0xff]   ;;  %v14852_v25 = vld [vmem:[%s21515_s0 + $0x88] sm:$0xff]   ;;  %v14853_v26 = vld [vmem:[%s21515_s0 + $0x90] sm:$0xff]  }
   0xa   :  { %v14854_v27 = vld [vmem:[%s21515_s0 + $0x98] sm:$0xff]   ;;  %v14855_v28 = vld [vmem:[%s21515_s0 + $0xa0] sm:$0xff]   ;;  %v14856_v29 = vld [vmem:[%s21515_s0 + $0xa8] sm:$0xff]  }
   0xb   :  { %13423 = vmatpush3.bf16.msra.mxu0 %v14829_v2  ;;  %v14857_v30 = vld [vmem:[%s21515_s0 + $0xb0] sm:$0xff]   ;;  %v14858_v31 = vld [vmem:[%s21515_s0 + $0xb8] sm:$0xff]   ;;  %v14859_v32 = vld [vmem:[%s21515_s0 + $0xc0] sm:$0xff]  }
   0xc   :  { %13424 = vmatprep.subr.bf16.mxu0 %v14830_v3  ;;  %vm15455_vm3 = vmand %vm1196_vm0, %vm1197_vm1  ;;  %v1199_v35 = vld [vmem:[#allocation2 + $0xc] sm:$0x1]  ;;  %v1300_v36 = vld [vmem:[#allocation2 + $0x20] sm:$0x1] }
   0xd   :  { %v21725_v34 = vsel %vm15455_vm3, 4294967295, %v21724_v34  ;;  %v1203_v37 = vsel %vm15455_vm3, 0, %v1202_v33  ;;  %v1200_v38 = vsel %vm15455_vm3, 0, %v1199_v35  ;;  %vm15464_vm4 = vmand %vm1196_vm0, %vm1295_vm2  ;;  %v1297_v41 = vld [vmem:[#allocation2 + $0x14] sm:$0x1]  ;;  %v14860_v44 = vld [vmem:[%s21515_s0 + $0xc8] sm:$0xff]  }
   0xe   :  { %21726 = vst [vmem:[#allocation3_spill] sm:$0xff] %v21725_v34  ;;  %1204 = vst [vmem:[#allocation2 + $0x18] sm:$0x1] %v1203_v37  ;;  %v21728_v39 = vsel %vm15464_vm4, 4294967295, %v21727_v39  ;;  %v1301_v40 = vsel %vm15464_vm4, 0, %v1300_v36  ;;  %v1298_v42 = vsel %vm15464_vm4, 0, %v1297_v41 }
   0xf   :  { %13425 = vmatpush3.bf16.msra.mxu0 %v14830_v3  ;;  %1201 = vst [vmem:[#allocation2 + $0xc] sm:$0x1] %v1200_v38  ;;  %21729 = vst [vmem:[#allocation4_spill] sm:$0xff] %v21728_v39  ;;  %v1208_v43 = vld [vmem:[#allocation2 + $0x30] sm:$0x1]  ;;  %v14862_v54 = vld [vmem:[%s21515_s0 + $0xd8] sm:$0xff]  }
  0x10   :  { %13426 = vmatprep.subr.bf16.mxu0 %v14831_v5  ;;  %1302 = vst [vmem:[#allocation2 + $0x20] sm:$0x1] %v1301_v40  ;;  %1299 = vst [vmem:[#allocation2 + $0x14] sm:$0x1] %v1298_v42  ;;  %v1209_v45 = vsel %vm15455_vm3, 0, %v1208_v43  ;;  %v14861_v46 = vld [vmem:[%s21515_s0 + $0xd0] sm:$0xff]  }
  0x11   :  { %1210 = vst [vmem:[#allocation2 + $0x30] sm:$0x1] %v1209_v45  ;;  %v1205_v47 = vld [vmem:[#allocation2 + $0x24] sm:$0x1]  ;;  %v1306_v48 = vld [vmem:[#allocation2 + $0x38] sm:$0x1]  ;;  %vm16375_vm6 = vmor %vm1197_vm1, %vm1585_vm5 }
  0x12   :  { %v1206_v49 = vsel %vm15455_vm3, 0, %v1205_v47  ;;  %v1307_v50 = vsel %vm15464_vm4, 0, %v1306_v48  ;;  %v1303_v51 = vld [vmem:[#allocation2 + $0x2c] sm:$0x1]  ;;  %v1214_v53 = vld [vmem:[#allocation2 + $0x48] sm:$0x1]  ;;  %vm16952_vm8 = vmand %vm2227_vm7, %vm1295_vm2 }
  0x13   :  { %13427 = vmatpush3.bf16.msra.mxu0 %v14831_v5  ;;  %1207 = vst [vmem:[#allocation2 + $0x24] sm:$0x1] %v1206_v49  ;;  %1308 = vst [vmem:[#allocation2 + $0x38] sm:$0x1] %v1307_v50  ;;  %v1304_v52 = vsel %vm15464_vm4, 0, %v1303_v51  ;;  %v1215_v55 = vsel %vm15455_vm3, 0, %v1214_v53 }
  0x14   :  { %13428 = vmatprep.subr.bf16.mxu0 %v14832_v6  ;;  %1305 = vst [vmem:[#allocation2 + $0x2c] sm:$0x1] %v1304_v52  ;;  %v14863_v56 = vld [vmem:[%s21515_s0 + $0xe0] sm:$0xff]   ;;  %1216 = vst [vmem:[#allocation2 + $0x48] sm:$0x1] %v1215_v55  ;;  %v14864_v0 = vld [vmem:[%s21515_s0 + $0xe8] sm:$0xff]  }
  0x15   :  { %v1211_v57 = vld [vmem:[#allocation2 + $0x3c] sm:$0x1]  ;;  %v1312_v58 = vld [vmem:[#allocation2 + $0x50] sm:$0x1]  ;;  %v1309_v61 = vld [vmem:[#allocation2 + $0x44] sm:$0x1] }
  0x16   :  { %v1212_v59 = vsel %vm15455_vm3, 0, %v1211_v57  ;;  %v1313_v60 = vsel %vm15464_vm4, 0, %v1312_v58  ;;  %v1310_v62 = vsel %vm15464_vm4, 0, %v1309_v61  ;;  %v1220_v63 = vld [vmem:[#allocation2 + $0x60] sm:$0x1]  ;;  %v14865_v2 = vld [vmem:[%s21515_s0 + $0xf0] sm:$0xff]   ;;  %vm18356_vm11 = vmor %vm2565_vm9, %vm2566_vm10 }
  0x17   :  { %13429 = vmatpush3.bf16.msra.mxu0 %v14832_v6  ;;  %1213 = vst [vmem:[#allocation2 + $0x3c] sm:$0x1] %v1212_v59  ;;  %1314 = vst [vmem:[#allocation2 + $0x50] sm:$0x1] %v1313_v60  ;;  %v1221_v1 = vsel %vm15455_vm3, 0, %v1220_v63 }
  0x18   :  { %13430 = vmatprep.subr.bf16.mxu0 %v14833_v7  ;;  %1311 = vst [vmem:[#allocation2 + $0x44] sm:$0x1] %v1310_v62  ;;  %1222 = vst [vmem:[#allocation2 + $0x60] sm:$0x1] %v1221_v1  ;;  %v1217_v3 = vld [vmem:[#allocation2 + $0x54] sm:$0x1] }
  0x19   :  { %v1318_v4 = vld [vmem:[#allocation2 + $0x68] sm:$0x1]  ;;  %v1218_v5 = vsel %vm15455_vm3, 0, %v1217_v3  ;;  %v1244_v35 = vld [vmem:[#allocation2 + $0xc0] sm:$0x1]  ;;  %vm18745_vm14 = vmor %vm4443_vm12, %vm4444_vm13 }
  0x1a   :  { %v1319_v6 = vsel %vm15464_vm4, 0, %v1318_v4  ;;  %1219 = vst [vmem:[#allocation2 + $0x54] sm:$0x1] %v1218_v5  ;;  %v1245_v36 = vsel %vm15455_vm3, 0, %v1244_v35  ;;  %v1241_v37 = vld [vmem:[#allocation2 + $0xb4] sm:$0x1] }
  0x1b   :  { %13431 = vmatpush3.bf16.msra.mxu0 %v14833_v7  ;;  %1320 = vst [vmem:[#allocation2 + $0x68] sm:$0x1] %v1319_v6  ;;  %v1315_v7 = vld [vmem:[#allocation2 + $0x5c] sm:$0x1]  ;;  %1246 = vst [vmem:[#allocation2 + $0xc0] sm:$0x1] %v1245_v36 }
  0x1c   :  { %13432 = vmatprep.subr.bf16.mxu0 %v14834_v8  ;;  %v1342_v38 = vld [vmem:[#allocation2 + $0xc8] sm:$0x1]  ;;  %v1242_v40 = vsel %vm15455_vm3, 0, %v1241_v37  ;;  %v1339_v42 = vld [vmem:[#allocation2 + $0xbc] sm:$0x1] }
  0x1d   :  { %v1343_v41 = vsel %vm15464_vm4, 0, %v1342_v38  ;;  %1243 = vst [vmem:[#allocation2 + $0xb4] sm:$0x1] %v1242_v40  ;;  %v1340_v43 = vsel %vm15464_vm4, 0, %v1339_v42  ;;  %v1348_v47 = vld [vmem:[#allocation2 + $0xf8] sm:$0x1] }
  0x1e   :  { %1344 = vst [vmem:[#allocation2 + $0xc8] sm:$0x1] %v1343_v41  ;;  %1341 = vst [vmem:[#allocation2 + $0xbc] sm:$0x1] %v1340_v43  ;;  %v1349_v49 = vsel %vm15464_vm4, 0, %v1348_v47 }
  0x1f   :  { %13433 = vmatpush3.bf16.msra.mxu0 %v14834_v8  ;;  %v1316_v8 = vsel %vm15464_vm4, 0, %v1315_v7  ;;  %1350 = vst [vmem:[#allocation2 + $0xf8] sm:$0x1] %v1349_v49  ;;  %v1345_v50 = vld [vmem:[#allocation2 + $0xec] sm:$0x1] }
  0x20   :  { %1317 = vst [vmem:[#allocation2 + $0x5c] sm:$0x1] %v1316_v8  ;;  %v1346_v51 = vsel %vm15464_vm4, 0, %v1345_v50  ;;  %v1256_v52 = vld [vmem:[#allocation2 + $0x108] sm:$0x1] }
  0x21   :  { %1347 = vst [vmem:[#allocation2 + $0xec] sm:$0x1] %v1346_v51  ;;  %v1257_v53 = vsel %vm15455_vm3, 0, %v1256_v52  ;;  %v1354_v55 = vld [vmem:[#allocation2 + $0x110] sm:$0x1] }
  0x22   :  { %13435 = vmatmul.mubr.bf16.vlgmr.msra.gmra.mrb[0].mxu0 %v14836_v9  ;;  %v1226_v9 = vld [vmem:[#allocation2 + $0x78] sm:$0x1]  ;;  %1258 = vst [vmem:[#allocation2 + $0x108] sm:$0x1] %v1257_v53  ;;  %v1355_v57 = vsel %vm15464_vm4, 0, %v1354_v55 }
  0x23   :  { %13438 = vmatprep.mubr.bf16.mxu0 %v14837_v10  ;;  %v14866_v10 = vld [vmem:[%s21515_s0 + $0xf8] sm:$0xff]   ;;  %1356 = vst [vmem:[#allocation2 + $0x110] sm:$0x1] %v1355_v57  ;;  %v1351_v58 = vld [vmem:[#allocation2 + $0x104] sm:$0x1] }
  0x24   :  { %v1352_v59 = vsel %vm15464_vm4, 0, %v1351_v58  ;;  %v1262_v60 = vld [vmem:[#allocation2 + $0x120] sm:$0x1]  ;;  %v1259_v62 = vld [vmem:[#allocation2 + $0x114] sm:$0x1] }
  0x25   :  { %1353 = vst [vmem:[#allocation2 + $0x104] sm:$0x1] %v1352_v59  ;;  %v1263_v61 = vsel %vm15455_vm3, 0, %v1262_v60  ;;  %v1360_v63 = vld [vmem:[#allocation2 + $0x128] sm:$0x1] }
  0x26   :  { %1264 = vst [vmem:[#allocation2 + $0x120] sm:$0x1] %v1263_v61  ;;  %v1361_v1 = vsel %vm15464_vm4, 0, %v1360_v63  ;;  %v1268_v4 = vld [vmem:[#allocation2 + $0x138] sm:$0x1] }
  0x27   :  { %1362 = vst [vmem:[#allocation2 + $0x128] sm:$0x1] %v1361_v1  ;;  %v1269_v5 = vsel %vm15455_vm3, 0, %v1268_v4  ;;  %v1265_v6 = vld [vmem:[#allocation2 + $0x12c] sm:$0x1] }
  0x28   :  { %1270 = vst [vmem:[#allocation2 + $0x138] sm:$0x1] %v1269_v5  ;;  %v1366_v7 = vld [vmem:[#allocation2 + $0x140] sm:$0x1]  ;;  %v1266_v8 = vsel %vm15455_vm3, 0, %v1265_v6 }
  0x29   :  { %1267 = vst [vmem:[#allocation2 + $0x12c] sm:$0x1] %v1266_v8  ;;  %v1381_v35 = vld [vmem:[#allocation2 + $0x17c] sm:$0x1]  ;;  %v1292_v37 = vld [vmem:[#allocation2 + $0x198] sm:$0x1] }
  0x2a   :  { %13439 = vmatmul.mubr.bf16.gmra.mrb[4].mxu0 %v14838_v11  ;;  %v1227_v11 = vsel %vm15455_vm3, 0, %v1226_v9  ;;  %v1367_v9 = vsel %vm15464_vm4, 0, %v1366_v7  ;;  %v1382_v36 = vsel %vm15464_vm4, 0, %v1381_v35  ;;  %v1293_v38 = vsel %vm15455_vm3, 0, %v1292_v37  ;;  %v1289_v40 = vld [vmem:[#allocation2 + $0x18c] sm:$0x1] }
  0x2b   :  { %13442 = vmatprep.mubr.bf16.mxu0 %v14839_v12  ;;  %1228 = vst [vmem:[#allocation2 + $0x78] sm:$0x1] %v1227_v11  ;;  %v1223_v12 = vld [vmem:[#allocation2 + $0x6c] sm:$0x1]  ;;  %1368 = vst [vmem:[#allocation2 + $0x140] sm:$0x1] %v1367_v9 }
  0x2c   :  { %1383 = vst [vmem:[#allocation2 + $0x17c] sm:$0x1] %v1382_v36  ;;  %1294 = vst [vmem:[#allocation2 + $0x198] sm:$0x1] %v1293_v38  ;;  %v1390_v41 = vld [vmem:[#allocation2 + $0x1a0] sm:$0x1] }
  0x2d   :  { %v1290_v42 = vsel %vm15455_vm3, 0, %v1289_v40  ;;  %v1391_v43 = vsel %vm15464_vm4, 0, %v1390_v41 }
  0x2e   :  { %1291 = vst [vmem:[#allocation2 + $0x18c] sm:$0x1] %v1290_v42  ;;  %1392 = vst [vmem:[#allocation2 + $0x1a0] sm:$0x1] %v1391_v43 }
  0x32   :  { %13443 = vmatmul.mubr.bf16.gmra.mrb[8].mxu0 %v14840_v13  ;;  %v1324_v13 = vld [vmem:[#allocation2 + $0x80] sm:$0x1] }
  0x33   :  { %13446 = vmatprep.mubr.bf16.mxu0 %v14841_v14  ;;  %v1224_v14 = vsel %vm15455_vm3, 0, %v1223_v12  ;;  %v1274_v12 = vld [vmem:[#allocation2 + $0x150] sm:$0x1] }
  0x34   :  { %1225 = vst [vmem:[#allocation2 + $0x6c] sm:$0x1] %v1224_v14  ;;  %v1271_v14 = vld [vmem:[#allocation2 + $0x144] sm:$0x1] }
  0x3a   :  { %13447 = vmatmul.mubr.bf16.gmra.mrb[12].mxu0 %v14842_v15  ;;  %v1325_v15 = vsel %vm15464_vm4, 0, %v1324_v13  ;;  %v1275_v13 = vsel %vm15455_vm3, 0, %v1274_v12 }
  0x3b   :  { %13450 = vmatprep.mubr.bf16.mxu0 %v14843_v16  ;;  %1326 = vst [vmem:[#allocation2 + $0x80] sm:$0x1] %v1325_v15  ;;  %v1321_v16 = vld [vmem:[#allocation2 + $0x74] sm:$0x1]  ;;  %1276 = vst [vmem:[#allocation2 + $0x150] sm:$0x1] %v1275_v13 }
  0x3c   :  { %v1372_v15 = vld [vmem:[#allocation2 + $0x158] sm:$0x1] }
  0x42   :  { %13451 = vmatmul.mubr.bf16.gmra.mrb[16].mxu0 %v14844_v17  ;;  %v1322_v17 = vsel %vm15464_vm4, 0, %v1321_v16  ;;  %v1272_v16 = vsel %vm15455_vm3, 0, %v1271_v14 }
  0x43   :  { %13454 = vmatprep.mubr.bf16.mxu0 %v14845_v18  ;;  %1323 = vst [vmem:[#allocation2 + $0x74] sm:$0x1] %v1322_v17  ;;  %v1232_v18 = vld [vmem:[#allocation2 + $0x90] sm:$0x1]  ;;  %v1373_v17 = vsel %vm15464_vm4, 0, %v1372_v15 }
  0x44   :  { %1273 = vst [vmem:[#allocation2 + $0x144] sm:$0x1] %v1272_v16  ;;  %1374 = vst [vmem:[#allocation2 + $0x158] sm:$0x1] %v1373_v17 }
  0x4a   :  { %13455 = vmatmul.mubr.bf16.gmra.mrb[20].mxu0 %v14846_v19  ;;  %v1233_v19 = vsel %vm15455_vm3, 0, %v1232_v18  ;;  %v1369_v18 = vld [vmem:[#allocation2 + $0x14c] sm:$0x1] }
  0x4b   :  { %13458 = vmatprep.mubr.bf16.mxu0 %v14847_v20  ;;  %1234 = vst [vmem:[#allocation2 + $0x90] sm:$0x1] %v1233_v19  ;;  %v1229_v20 = vld [vmem:[#allocation2 + $0x84] sm:$0x1]  ;;  %v1370_v19 = vsel %vm15464_vm4, 0, %v1369_v18 }
  0x4c   :  { %1371 = vst [vmem:[#allocation2 + $0x14c] sm:$0x1] %v1370_v19 }
  0x52   :  { %13459 = vmatmul.mubr.bf16.gmra.mrb[24].mxu0 %v14848_v21  ;;  %v1330_v21 = vld [vmem:[#allocation2 + $0x98] sm:$0x1] }
  0x53   :  { %13462 = vmatprep.mubr.bf16.mxu0 %v14849_v22  ;;  %v1230_v22 = vsel %vm15455_vm3, 0, %v1229_v20  ;;  %v1280_v20 = vld [vmem:[#allocation2 + $0x168] sm:$0x1] }
  0x54   :  { %1231 = vst [vmem:[#allocation2 + $0x84] sm:$0x1] %v1230_v22  ;;  %v1277_v22 = vld [vmem:[#allocation2 + $0x15c] sm:$0x1] }
  0x5a   :  { %13463 = vmatmul.mubr.bf16.gmra.mrb[28].mxu0 %v14850_v23  ;;  %v1331_v23 = vsel %vm15464_vm4, 0, %v1330_v21  ;;  %v1281_v21 = vsel %vm15455_vm3, 0, %v1280_v20 }
  0x5b   :  { %13466 = vmatprep.mubr.bf16.mxu0 %v14851_v24  ;;  %1332 = vst [vmem:[#allocation2 + $0x98] sm:$0x1] %v1331_v23  ;;  %v1327_v24 = vld [vmem:[#allocation2 + $0x8c] sm:$0x1]  ;;  %1282 = vst [vmem:[#allocation2 + $0x168] sm:$0x1] %v1281_v21 }
  0x5c   :  { %v1378_v23 = vld [vmem:[#allocation2 + $0x170] sm:$0x1] }
  0x62   :  { %13467 = vmatmul.mubr.bf16.gmra.mrb[32].mxu0 %v14852_v25  ;;  %v1328_v25 = vsel %vm15464_vm4, 0, %v1327_v24  ;;  %v1278_v24 = vsel %vm15455_vm3, 0, %v1277_v22 }
  0x63   :  { %13470 = vmatprep.mubr.bf16.mxu0 %v14853_v26  ;;  %1329 = vst [vmem:[#allocation2 + $0x8c] sm:$0x1] %v1328_v25  ;;  %v1238_v26 = vld [vmem:[#allocation2 + $0xa8] sm:$0x1]  ;;  %v1379_v25 = vsel %vm15464_vm4, 0, %v1378_v23 }
  0x64   :  { %1279 = vst [vmem:[#allocation2 + $0x15c] sm:$0x1] %v1278_v24  ;;  %1380 = vst [vmem:[#allocation2 + $0x170] sm:$0x1] %v1379_v25 }
  0x6a   :  { %13471 = vmatmul.mubr.bf16.gmra.mrb[36].mxu0 %v14854_v27  ;;  %v1239_v27 = vsel %vm15455_vm3, 0, %v1238_v26  ;;  %v1375_v26 = vld [vmem:[#allocation2 + $0x164] sm:$0x1] }
  0x6b   :  { %13474 = vmatprep.mubr.bf16.mxu0 %v14855_v28  ;;  %1240 = vst [vmem:[#allocation2 + $0xa8] sm:$0x1] %v1239_v27  ;;  %v1235_v28 = vld [vmem:[#allocation2 + $0x9c] sm:$0x1]  ;;  %v1376_v27 = vsel %vm15464_vm4, 0, %v1375_v26 }
  0x6c   :  { %1377 = vst [vmem:[#allocation2 + $0x164] sm:$0x1] %v1376_v27 }
  0x72   :  { %13475 = vmatmul.mubr.bf16.gmra.mrb[40].mxu0 %v14856_v29  ;;  %v1336_v29 = vld [vmem:[#allocation2 + $0xb0] sm:$0x1] }
  0x73   :  { %13478 = vmatprep.mubr.bf16.mxu0 %v14857_v30  ;;  %v1236_v30 = vsel %vm15455_vm3, 0, %v1235_v28  ;;  %v1286_v28 = vld [vmem:[#allocation2 + $0x180] sm:$0x1] }
  0x74   :  { %1237 = vst [vmem:[#allocation2 + $0x9c] sm:$0x1] %v1236_v30  ;;  %v1283_v30 = vld [vmem:[#allocation2 + $0x174] sm:$0x1] }
  0x7a   :  { %13479 = vmatmul.mubr.bf16.gmra.mrb[44].mxu0 %v14858_v31  ;;  %v1337_v31 = vsel %vm15464_vm4, 0, %v1336_v29  ;;  %v1287_v29 = vsel %vm15455_vm3, 0, %v1286_v28 }
  0x7b   :  { %13482 = vmatprep.mubr.bf16.mxu0 %v14859_v32  ;;  %1338 = vst [vmem:[#allocation2 + $0xb0] sm:$0x1] %v1337_v31  ;;  %v1333_v32 = vld [vmem:[#allocation2 + $0xa4] sm:$0x1]  ;;  %1288 = vst [vmem:[#allocation2 + $0x180] sm:$0x1] %v1287_v29 }
  0x7c   :  { %v1334_v33 = vsel %vm15464_vm4, 0, %v1333_v32  ;;  %v1384_v31 = vld [vmem:[#allocation2 + $0x188] sm:$0x1]  ;;  %v1284_v32 = vsel %vm15455_vm3, 0, %v1283_v30 }
  0x7d   :  { %1335 = vst [vmem:[#allocation2 + $0xa4] sm:$0x1] %v1334_v33  ;;  %v1385_v33 = vsel %vm15464_vm4, 0, %v1384_v31  ;;  %1285 = vst [vmem:[#allocation2 + $0x174] sm:$0x1] %v1284_v32 }
  0x7e   :  { %1386 = vst [vmem:[#allocation2 + $0x188] sm:$0x1] %v1385_v33 }
  0x82   :  { %13483 = vmatmul.mubr.bf16.gmra.mrb[48].mxu0 %v14860_v44  ;;  %v1250_v44 = vld [vmem:[#allocation2 + $0xf0] sm:$0x1] }
  0x83   :  { %13486 = vmatprep.mubr.bf16.mxu0 %v14861_v46  ;;  %v1251_v45 = vsel %vm15455_vm3, 0, %v1250_v44  ;;  %v1247_v46 = vld [vmem:[#allocation2 + $0xe4] sm:$0x1] }
  0x84   :  { %1252 = vst [vmem:[#allocation2 + $0xf0] sm:$0x1] %v1251_v45  ;;  %v1248_v48 = vsel %vm15455_vm3, 0, %v1247_v46 }
  0x85   :  { %1249 = vst [vmem:[#allocation2 + $0xe4] sm:$0x1] %v1248_v48 }
  0x8a   :  { %13487 = vmatmul.mubr.bf16.gmra.mrb[52].mxu0 %v14862_v54  ;;  %v1253_v54 = vld [vmem:[#allocation2 + $0xfc] sm:$0x1] }
  0x8b   :  { %13490 = vmatprep.mubr.bf16.mxu0 %v14863_v56  ;;  %v1254_v56 = vsel %vm15455_vm3, 0, %v1253_v54 }
  0x8c   :  { %1255 = vst [vmem:[#allocation2 + $0xfc] sm:$0x1] %v1254_v56 }
  0x92   :  { %13491 = vmatmul.mubr.bf16.gmra.mrb[56].mxu0 %v14864_v0  ;;  %v1260_v0 = vsel %vm15455_vm3, 0, %v1259_v62 }
  0x93   :  { %13494 = vmatprep.mubr.bf16.mxu0 %v14865_v2  ;;  %1261 = vst [vmem:[#allocation2 + $0x114] sm:$0x1] %v1260_v0  ;;  %v1357_v2 = vld [vmem:[#allocation2 + $0x11c] sm:$0x1] }
  0x94   :  { %v1358_v3 = vsel %vm15464_vm4, 0, %v1357_v2 }
  0x95   :  { %1359 = vst [vmem:[#allocation2 + $0x11c] sm:$0x1] %v1358_v3 }
  0x9a   :  { %13495 = vmatmul.mubr.bf16.gmra.mrb[60].mxu0 %v14866_v10  ;;  %v1363_v10 = vld [vmem:[#allocation2 + $0x134] sm:$0x1] }
  0x9b   :  { %v1364_v11 = vsel %vm15464_vm4, 0, %v1363_v10 }
  0x9c   :  { %1365 = vst [vmem:[#allocation2 + $0x134] sm:$0x1] %v1364_v11 }
  0xf5   :  { %v15611_v44 = vpop.f32.mrb[0].mxu0 }
  0xf6   :  { %v15613_v45 = vpop.f32.mrb[1].mxu0 }
  0xf7   :  { %v15615_v46 = vpop.f32.mrb[2].mxu0 }
  0xf8   :  { %v15617_v47 = vpop.f32.mrb[3].mxu0 }
  0xf9   :  { %v644_v48 = vadd.f32 %v15617_v47, %v15613_v45 }
  0xfb   :  { %v645_v49 = vadd.f32 %v15611_v44, %v644_v48 }
  0xfd   :  { %v15622_v50 = vpop.f32.mrb[4].mxu0  ;;  %v646_v51 = vadd.f32 %v15615_v46, %v645_v49 }
  0xfe   :  { %v15625_v52 = vpop.f32.mrb[5].mxu0 }
  0xff   :  { %v647_v53 = vadd.f32 %v646_v51, %v15625_v52  ;;  %v15628_v54 = vpop.f32.mrb[6].mxu0 }
 0x100   :  { %v15630_v55 = vpop.f32.mrb[7].mxu0 }
 0x101   :  { %v648_v56 = vadd.f32 %v647_v53, %v15630_v55 }
 0x103   :  { %v649_v57 = vadd.f32 %v15622_v50, %v648_v56 }
 0x105   :  { %v15634_v58 = vpop.f32.mrb[8].mxu0  ;;  %v650_v59 = vadd.f32 %v15628_v54, %v649_v57 }
 0x106   :  { %v15637_v60 = vpop.f32.mrb[9].mxu0 }
 0x107   :  { %v651_v61 = vadd.f32 %v650_v59, %v15637_v60  ;;  %v15640_v62 = vpop.f32.mrb[10].mxu0 }
 0x108   :  { %v15642_v63 = vpop.f32.mrb[11].mxu0 }
 0x109   :  { %v652_v0 = vadd.f32 %v651_v61, %v15642_v63 }
 0x10b   :  { %v653_v1 = vadd.f32 %v15634_v58, %v652_v0 }
 0x10d   :  { %v15646_v2 = vpop.f32.mrb[12].mxu0  ;;  %v654_v3 = vadd.f32 %v15640_v62, %v653_v1 }
 0x10e   :  { %v15649_v4 = vpop.f32.mrb[13].mxu0 }
 0x10f   :  { %v655_v5 = vadd.f32 %v654_v3, %v15649_v4  ;;  %v15652_v6 = vpop.f32.mrb[14].mxu0 }
 0x110   :  { %v15654_v7 = vpop.f32.mrb[15].mxu0 }
 0x111   :  { %v656_v8 = vadd.f32 %v655_v5, %v15654_v7 }
 0x113   :  { %v657_v9 = vadd.f32 %v15646_v2, %v656_v8 }
 0x115   :  { %v15658_v10 = vpop.f32.mrb[16].mxu0  ;;  %v658_v11 = vadd.f32 %v15652_v6, %v657_v9 }
 0x116   :  { %v15661_v12 = vpop.f32.mrb[17].mxu0 }
 0x117   :  { %v659_v13 = vadd.f32 %v658_v11, %v15661_v12  ;;  %v15664_v14 = vpop.f32.mrb[18].mxu0 }
 0x118   :  { %v15666_v15 = vpop.f32.mrb[19].mxu0 }
 0x119   :  { %v660_v16 = vadd.f32 %v659_v13, %v15666_v15 }
 0x11b   :  { %v661_v17 = vadd.f32 %v15658_v10, %v660_v16 }
 0x11d   :  { %v15670_v18 = vpop.f32.mrb[20].mxu0  ;;  %v662_v19 = vadd.f32 %v15664_v14, %v661_v17 }
 0x11e   :  { %v15673_v20 = vpop.f32.mrb[21].mxu0 }
 0x11f   :  { %v663_v21 = vadd.f32 %v662_v19, %v15673_v20  ;;  %v15676_v22 = vpop.f32.mrb[22].mxu0 }
 0x120   :  { %v15678_v23 = vpop.f32.mrb[23].mxu0 }
 0x121   :  { %v664_v24 = vadd.f32 %v663_v21, %v15678_v23 }
 0x123   :  { %v665_v25 = vadd.f32 %v15670_v18, %v664_v24 }
 0x125   :  { %v15682_v26 = vpop.f32.mrb[24].mxu0  ;;  %v666_v27 = vadd.f32 %v15676_v22, %v665_v25 }
 0x126   :  { %v15685_v28 = vpop.f32.mrb[25].mxu0 }
 0x127   :  { %v667_v29 = vadd.f32 %v666_v27, %v15685_v28  ;;  %v15688_v30 = vpop.f32.mrb[26].mxu0 }
 0x128   :  { %v15690_v31 = vpop.f32.mrb[27].mxu0 }
 0x129   :  { %v668_v32 = vadd.f32 %v667_v29, %v15690_v31 }
 0x12b   :  { %v669_v33 = vadd.f32 %v15682_v26, %v668_v32 }
 0x12d   :  { %v15694_v35 = vpop.f32.mrb[28].mxu0  ;;  %v670_v36 = vadd.f32 %v15688_v30, %v669_v33 }
 0x12e   :  { %v15697_v37 = vpop.f32.mrb[29].mxu0 }
 0x12f   :  { %v671_v38 = vadd.f32 %v670_v36, %v15697_v37  ;;  %v15700_v40 = vpop.f32.mrb[30].mxu0 }
 0x130   :  { %v15702_v41 = vpop.f32.mrb[31].mxu0 }
 0x131   :  { %v672_v42 = vadd.f32 %v671_v38, %v15702_v41 }
 0x133   :  { %v673_v43 = vadd.f32 %v15694_v35, %v672_v42 }
 0x135   :  { %v15706_v48 = vpop.f32.mrb[32].mxu0  ;;  %v674_v49 = vadd.f32 %v15700_v40, %v673_v43 }
 0x136   :  { %v15709_v51 = vpop.f32.mrb[33].mxu0 }
 0x137   :  { %v675_v53 = vadd.f32 %v674_v49, %v15709_v51  ;;  %v15712_v56 = vpop.f32.mrb[34].mxu0 }
 0x138   :  { %v15714_v57 = vpop.f32.mrb[35].mxu0 }
 0x139   :  { %v676_v59 = vadd.f32 %v675_v53, %v15714_v57 }
 0x13b   :  { %v677_v61 = vadd.f32 %v15706_v48, %v676_v59 }
 0x13d   :  { %v15718_v0 = vpop.f32.mrb[36].mxu0  ;;  %v678_v1 = vadd.f32 %v15712_v56, %v677_v61 }
 0x13e   :  { %v15721_v3 = vpop.f32.mrb[37].mxu0 }
 0x13f   :  { %v679_v5 = vadd.f32 %v678_v1, %v15721_v3  ;;  %v15724_v8 = vpop.f32.mrb[38].mxu0 }
 0x140   :  { %v15726_v9 = vpop.f32.mrb[39].mxu0 }
 0x141   :  { %v680_v11 = vadd.f32 %v679_v5, %v15726_v9 }
 0x143   :  { %v681_v13 = vadd.f32 %v15718_v0, %v680_v11 }
 0x145   :  { %v15730_v16 = vpop.f32.mrb[40].mxu0  ;;  %v682_v17 = vadd.f32 %v15724_v8, %v681_v13 }
 0x146   :  { %v15733_v19 = vpop.f32.mrb[41].mxu0 }
 0x147   :  { %v683_v21 = vadd.f32 %v682_v17, %v15733_v19  ;;  %v15736_v24 = vpop.f32.mrb[42].mxu0 }
 0x148   :  { %v15738_v25 = vpop.f32.mrb[43].mxu0 }
 0x149   :  { %v684_v27 = vadd.f32 %v683_v21, %v15738_v25 }
 0x14b   :  { %v685_v29 = vadd.f32 %v15730_v16, %v684_v27 }
 0x14d   :  { %v15742_v32 = vpop.f32.mrb[44].mxu0  ;;  %v686_v33 = vadd.f32 %v15736_v24, %v685_v29 }
 0x14e   :  { %v15745_v36 = vpop.f32.mrb[45].mxu0 }
 0x14f   :  { %v687_v38 = vadd.f32 %v686_v33, %v15745_v36  ;;  %v15748_v42 = vpop.f32.mrb[46].mxu0 }
 0x150   :  { %v15750_v43 = vpop.f32.mrb[47].mxu0 }
 0x151   :  { %v688_v49 = vadd.f32 %v687_v38, %v15750_v43 }
 0x153   :  { %v689_v53 = vadd.f32 %v15742_v32, %v688_v49 }
 0x155   :  { %v15754_v59 = vpop.f32.mrb[48].mxu0  ;;  %v690_v61 = vadd.f32 %v15748_v42, %v689_v53 }
 0x156   :  { %21730 = vst [vmem:[#allocation5_spill] sm:$0xff] %v15754_v59  ;;  %v15757_v1 = vpop.f32.mrb[49].mxu0 }
 0x157   :  { %21731 = vst [vmem:[#allocation6_spill] sm:$0xff] %v15757_v1  ;;  %v691_v5 = vadd.f32 %v690_v61, %v15757_v1  ;;  %v15760_v11 = vpop.f32.mrb[50].mxu0 }
 0x158   :  { %21732 = vst [vmem:[#allocation7_spill] sm:$0xff] %v15760_v11  ;;  %v15762_v13 = vpop.f32.mrb[51].mxu0 }
 0x159   :  { %21733 = vst [vmem:[#allocation8_spill] sm:$0xff] %v15762_v13  ;;  %v692_v17 = vadd.f32 %v691_v5, %v15762_v13 }
 0x15b   :  { %v693_v21 = vadd.f32 %v15754_v59, %v692_v17 }
 0x15d   :  { %v15766_v27 = vpop.f32.mrb[52].mxu0  ;;  %v694_v29 = vadd.f32 %v15760_v11, %v693_v21 }
 0x15e   :  { %21734 = vst [vmem:[#allocation9_spill] sm:$0xff] %v15766_v27  ;;  %v15769_v33 = vpop.f32.mrb[53].mxu0 }
 0x15f   :  { %21735 = vst [vmem:[#allocation10_spill] sm:$0xff] %v15769_v33  ;;  %v695_v38 = vadd.f32 %v694_v29, %v15769_v33  ;;  %v15772_v49 = vpop.f32.mrb[54].mxu0 }
 0x160   :  { %21736 = vst [vmem:[#allocation11_spill] sm:$0xff] %v15772_v49  ;;  %v15774_v53 = vpop.f32.mrb[55].mxu0 }
 0x161   :  { %21737 = vst [vmem:[#allocation12_spill] sm:$0xff] %v15774_v53  ;;  %v696_v61 = vadd.f32 %v695_v38, %v15774_v53 }
 0x163   :  { %v697_v34 = vadd.f32 %v15766_v27, %v696_v61 }
 0x165   :  { %v15778_v39 = vpop.f32.mrb[56].mxu0  ;;  %v698_v5 = vadd.f32 %v15772_v49, %v697_v34 }
 0x166   :  { %21738 = vst [vmem:[#allocation13_spill] sm:$0xff] %v15778_v39  ;;  %v15781_v17 = vpop.f32.mrb[57].mxu0 }
 0x167   :  { %21739 = vst [vmem:[#allocation14_spill] sm:$0xff] %v15781_v17  ;;  %v699_v21 = vadd.f32 %v698_v5, %v15781_v17  ;;  %v15784_v11 = vpop.f32.mrb[58].mxu0 }
 0x168   :  { %21740 = vst [vmem:[#allocation15_spill] sm:$0xff] %v15784_v11  ;;  %v15786_v59 = vpop.f32.mrb[59].mxu0 }
 0x169   :  { %21741 = vst [vmem:[#allocation16_spill] sm:$0xff] %v15786_v59  ;;  %v700_v29 = vadd.f32 %v699_v21, %v15786_v59 }
 0x16b   :  { %v701_v33 = vadd.f32 %v15778_v39, %v700_v29 }
 0x16d   :  { %v15790_v13 = vpop.f32.mrb[60].mxu0  ;;  %v702_v38 = vadd.f32 %v15784_v11, %v701_v33 }
 0x16e   :  { %v15793_v61 = vpop.f32.mrb[61].mxu0 }
 0x16f   :  { %21742 = vst [vmem:[#allocation17_spill] sm:$0xff] %v15793_v61  ;;  %v703_v34 = vadd.f32 %v702_v38, %v15793_v61  ;;  %v15796_v49 = vpop.f32.mrb[62].mxu0 }
 0x170   :  { %v15798_v27 = vpop.f32.mrb[63].mxu0 }
 0x171   :  { %v704_v5 = vadd.f32 %v703_v34, %v15798_v27 }
 0x173   :  { %v705_v17 = vadd.f32 %v15790_v13, %v704_v5  ;;  %v21755_v5 = vld [vmem:[#allocation7_spill] sm:$0xff] }
 0x175   :  { %v706_v21 = vadd.f32 %v15796_v49, %v705_v17  ;;  %v21753_v17 = vld [vmem:[#allocation5_spill] sm:$0xff] }
 0x177   :  { %v707_v59 = vrot.slane %v706_v21, 4 }
 0x179   :  { %v708_v29 = vadd.f32 %v707_v59, %v706_v21  ;;  %v21757_v21 = vld [vmem:[#allocation10_spill] sm:$0xff] }
 0x17b   :  { %v709_v39 = vrot.slane %v708_v29, 2 }
 0x17d   :  { %v710_v53 = vadd.f32 %v709_v39, %v708_v29  ;;  %v21759_v29 = vld [vmem:[#allocation12_spill] sm:$0xff] }
 0x17f   :  { %v711_v1 = vrot.slane %v710_v53, 1 }
 0x181   :  { %v712_v33 = vadd.f32 %v711_v1, %v710_v53  ;;  %v21750_v1 = vld [vmem:[#allocation6_spill] sm:$0xff]  ;;  %v21751_v53 = vld [vmem:[#allocation8_spill] sm:$0xff] }
 0x183   :  { %v15803_v11 = vmul.f32 0.001953125, %v712_v33 }
 0x185   :  { %v15807_v38 = vsub.f32 %v15613_v45, %v15803_v11  ;;  %v15811_v61 = vsub.f32 %v15617_v47, %v15803_v11  ;;  %v15815_v34 = vsub.f32 %v15611_v44, %v15803_v11  ;;  %v15819_v59 = vsub.f32 %v15615_v46, %v15803_v11 }
 0x186   :  { %v15823_v39 = vsub.f32 %v15625_v52, %v15803_v11  ;;  %v15827_v45 = vsub.f32 %v15630_v55, %v15803_v11  ;;  %v15831_v47 = vsub.f32 %v15622_v50, %v15803_v11  ;;  %v15835_v44 = vsub.f32 %v15628_v54, %v15803_v11 }
 0x187   :  { %21743 = vst [vmem:[#allocation18_spill] sm:$0xff] %v15807_v38  ;;  %21744 = vst [vmem:[#allocation19_spill] sm:$0xff] %v15811_v61  ;;  %v15839_v46 = vsub.f32 %v15637_v60, %v15803_v11  ;;  %v15843_v52 = vsub.f32 %v15642_v63, %v15803_v11  ;;  %v15847_v55 = vsub.f32 %v15634_v58, %v15803_v11 }
 0x188   :  { %21745 = vst [vmem:[#allocation20_spill] sm:$0xff] %v15815_v34  ;;  %v15851_v50 = vsub.f32 %v15640_v62, %v15803_v11  ;;  %v15855_v54 = vsub.f32 %v15649_v4, %v15803_v11  ;;  %v15859_v60 = vsub.f32 %v15654_v7, %v15803_v11  ;;  %v15863_v63 = vsub.f32 %v15646_v2, %v15803_v11 }
 0x189   :  { %v15867_v58 = vsub.f32 %v15652_v6, %v15803_v11  ;;  %v15871_v62 = vsub.f32 %v15661_v12, %v15803_v11  ;;  %v15875_v4 = vsub.f32 %v15666_v15, %v15803_v11  ;;  %v15879_v7 = vsub.f32 %v15658_v10, %v15803_v11 }
 0x18a   :  { %21746 = vst [vmem:[#allocation21_spill] sm:$0xff] %v15859_v60  ;;  %v15883_v2 = vsub.f32 %v15664_v14, %v15803_v11  ;;  %v15887_v6 = vsub.f32 %v15673_v20, %v15803_v11  ;;  %v15891_v12 = vsub.f32 %v15678_v23, %v15803_v11  ;;  %v15895_v15 = vsub.f32 %v15670_v18, %v15803_v11 }
 0x18b   :  { %v15899_v10 = vsub.f32 %v15676_v22, %v15803_v11  ;;  %v15903_v14 = vsub.f32 %v15685_v28, %v15803_v11  ;;  %v15907_v20 = vsub.f32 %v15690_v31, %v15803_v11  ;;  %v15911_v23 = vsub.f32 %v15682_v26, %v15803_v11 }
 0x18c   :  { %v15915_v18 = vsub.f32 %v15688_v30, %v15803_v11  ;;  %v15919_v22 = vsub.f32 %v15697_v37, %v15803_v11  ;;  %v15923_v28 = vsub.f32 %v15702_v41, %v15803_v11  ;;  %v15927_v31 = vsub.f32 %v15694_v35, %v15803_v11 }
 0x18d   :  { %v15931_v26 = vsub.f32 %v15700_v40, %v15803_v11  ;;  %v15935_v30 = vsub.f32 %v15709_v51, %v15803_v11  ;;  %v15939_v37 = vsub.f32 %v15714_v57, %v15803_v11  ;;  %v15943_v41 = vsub.f32 %v15706_v48, %v15803_v11 }
 0x18e   :  { %v15947_v35 = vsub.f32 %v15712_v56, %v15803_v11  ;;  %v15951_v40 = vsub.f32 %v15721_v3, %v15803_v11  ;;  %v15955_v51 = vsub.f32 %v15726_v9, %v15803_v11  ;;  %v15959_v57 = vsub.f32 %v15718_v0, %v15803_v11 }
 0x18f   :  { %v15963_v48 = vsub.f32 %v15724_v8, %v15803_v11  ;;  %v15967_v56 = vsub.f32 %v15733_v19, %v15803_v11  ;;  %v15971_v3 = vsub.f32 %v15738_v25, %v15803_v11  ;;  %v15975_v9 = vsub.f32 %v15730_v16, %v15803_v11 }
 0x190   :  { %v15979_v0 = vsub.f32 %v15736_v24, %v15803_v11  ;;  %v15983_v8 = vsub.f32 %v15745_v36, %v15803_v11  ;;  %v15987_v19 = vsub.f32 %v15750_v43, %v15803_v11  ;;  %v15991_v25 = vsub.f32 %v15742_v32, %v15803_v11 }
 0x191   :  { %v15995_v16 = vsub.f32 %v15748_v42, %v15803_v11  ;;  %v15999_v24 = vsub.f32 %v21750_v1, %v15803_v11  ;;  %v16003_v36 = vsub.f32 %v21751_v53, %v15803_v11  ;;  %v16007_v43 = vsub.f32 %v21753_v17, %v15803_v11  ;;  %v21761_v1 = vld [vmem:[#allocation9_spill] sm:$0xff] }
 0x192   :  { %21747 = vst [vmem:[#allocation22_spill] sm:$0xff] %v15987_v19  ;;  %21748 = vst [vmem:[#allocation23_spill] sm:$0xff] %v15991_v25  ;;  %v16011_v32 = vsub.f32 %v21755_v5, %v15803_v11  ;;  %v16015_v42 = vsub.f32 %v21757_v21, %v15803_v11  ;;  %v16019_v33 = vsub.f32 %v21759_v29, %v15803_v11 }
 0x193   :  { %21749 = vst [vmem:[#allocation24_spill] sm:$0xff] %v15995_v16  ;;  %21752 = vst [vmem:[#allocation6_spill] sm:$0xff] %v16003_v36  ;;  %v16023_v53 = vsub.f32 %v21761_v1, %v15803_v11  ;;  %v21763_v36 = vld [vmem:[#allocation11_spill] sm:$0xff] }
 0x194   :  { %21754 = vst [vmem:[#allocation8_spill] sm:$0xff] %v16007_v43  ;;  %21756 = vst [vmem:[#allocation5_spill] sm:$0xff] %v16011_v32  ;;  %v16027_v17 = vsub.f32 %v21763_v36, %v15803_v11  ;;  %v21765_v43 = vld [vmem:[#allocation14_spill] sm:$0xff]  ;;  %v21767_v32 = vld [vmem:[#allocation16_spill] sm:$0xff] }
 0x195   :  { %21758 = vst [vmem:[#allocation7_spill] sm:$0xff] %v16015_v42  ;;  %21760 = vst [vmem:[#allocation10_spill] sm:$0xff] %v16019_v33  ;;  %v16031_v5 = vsub.f32 %v21765_v43, %v15803_v11  ;;  %v16035_v21 = vsub.f32 %v21767_v32, %v15803_v11  ;;  %v21769_v42 = vld [vmem:[#allocation13_spill] sm:$0xff]  ;;  %v21771_v33 = vld [vmem:[#allocation15_spill] sm:$0xff]  ;;  %v16051_v43 = vsub.f32 %v15798_v27, %v15803_v11 }
 0x196   :  { %21762 = vst [vmem:[#allocation12_spill] sm:$0xff] %v16023_v53  ;;  %21764 = vst [vmem:[#allocation9_spill] sm:$0xff] %v16027_v17  ;;  %v16039_v29 = vsub.f32 %v21769_v42, %v15803_v11  ;;  %v16043_v1 = vsub.f32 %v21771_v33, %v15803_v11  ;;  %v21773_v53 = vld [vmem:[#allocation17_spill] sm:$0xff]  ;;  %v16055_v32 = vsub.f32 %v15790_v13, %v15803_v11 }
 0x197   :  { %21766 = vst [vmem:[#allocation11_spill] sm:$0xff] %v16031_v5  ;;  %21768 = vst [vmem:[#allocation14_spill] sm:$0xff] %v16035_v21  ;;  %v16047_v36 = vsub.f32 %v21773_v53, %v15803_v11  ;;  %v16059_v42 = vsub.f32 %v15796_v49, %v15803_v11  ;;  %v778_v33 = vmul.f32 %v15807_v38, %v15807_v38 }
 0x198   :  { %21770 = vst [vmem:[#allocation16_spill] sm:$0xff] %v16039_v29  ;;  %21772 = vst [vmem:[#allocation13_spill] sm:$0xff] %v16043_v1  ;;  %v779_v1 = vmul.f32 %v15811_v61, %v15811_v61  ;;  %v780_v53 = vmul.f32 %v15815_v34, %v15815_v34  ;;  %v781_v27 = vmul.f32 %v15819_v59, %v15819_v59 }
 0x199   :  { %21774 = vst [vmem:[#allocation15_spill] sm:$0xff] %v16047_v36  ;;  %21775 = vst [vmem:[#allocation17_spill] sm:$0xff] %v16051_v43  ;;  %v782_v13 = vmul.f32 %v15823_v39, %v15823_v39  ;;  %v783_v11 = vmul.f32 %v15827_v45, %v15827_v45  ;;  %v784_v38 = vmul.f32 %v15831_v47, %v15831_v47 }
 0x19a   :  { %21776 = vst [vmem:[#allocation25_spill] sm:$0xff] %v16055_v32  ;;  %v842_v36 = vadd.f32 %v779_v1, %v778_v33  ;;  %v785_v34 = vmul.f32 %v15835_v44, %v15835_v44  ;;  %v786_v33 = vmul.f32 %v15839_v46, %v15839_v46 }
 0x19c   :  { %v843_v43 = vadd.f32 %v842_v36, %v780_v53  ;;  %v787_v53 = vmul.f32 %v15843_v52, %v15843_v52 }
 0x19e   :  { %v844_v32 = vadd.f32 %v843_v43, %v781_v27  ;;  %v788_v27 = vmul.f32 %v15847_v55, %v15847_v55 }
 0x1a0   :  { %v845_v49 = vadd.f32 %v844_v32, %v782_v13  ;;  %v789_v13 = vmul.f32 %v15851_v50, %v15851_v50 }
 0x1a2   :  { %v846_v61 = vadd.f32 %v845_v49, %v783_v11  ;;  %v790_v49 = vmul.f32 %v15855_v54, %v15855_v54 }
 0x1a4   :  { %v847_v1 = vadd.f32 %v846_v61, %v784_v38  ;;  %v791_v38 = vmul.f32 %v15859_v60, %v15859_v60  ;;  %v800_v60 = vmul.f32 %v15895_v15, %v15895_v15 }
 0x1a6   :  { %v848_v36 = vadd.f32 %v847_v1, %v785_v34  ;;  %v792_v1 = vmul.f32 %v15863_v63, %v15863_v63 }
 0x1a8   :  { %v849_v43 = vadd.f32 %v848_v36, %v786_v33  ;;  %v793_v36 = vmul.f32 %v15867_v58, %v15867_v58 }
 0x1aa   :  { %v850_v32 = vadd.f32 %v849_v43, %v787_v53  ;;  %v794_v43 = vmul.f32 %v15871_v62, %v15871_v62 }
 0x1ac   :  { %v851_v11 = vadd.f32 %v850_v32, %v788_v27  ;;  %v795_v32 = vmul.f32 %v15875_v4, %v15875_v4 }
 0x1ae   :  { %v852_v61 = vadd.f32 %v851_v11, %v789_v13  ;;  %v1387_v11 = vld [vmem:[#allocation2 + $0x194] sm:$0x1] }
 0x1b0   :  { %v853_v34 = vadd.f32 %v852_v61, %v790_v49  ;;  %v796_v49 = vmul.f32 %v15879_v7, %v15879_v7 }
 0x1b2   :  { %v854_v33 = vadd.f32 %v853_v34, %v791_v38  ;;  %v1388_v38 = vsel %vm15464_vm4, 0, %v1387_v11  ;;  %v797_v34 = vmul.f32 %v15883_v2, %v15883_v2 }
 0x1b3   :  { %1389 = vst [vmem:[#allocation2 + $0x194] sm:$0x1] %v1388_v38  ;;  %v803_v38 = vmul.f32 %v15907_v20, %v15907_v20 }
 0x1b4   :  { %v855_v53 = vadd.f32 %v854_v33, %v792_v1  ;;  %v798_v33 = vmul.f32 %v15887_v6, %v15887_v6 }
 0x1b6   :  { %v856_v27 = vadd.f32 %v855_v53, %v793_v36  ;;  %v799_v53 = vmul.f32 %v15891_v12, %v15891_v12 }
 0x1b8   :  { %v857_v13 = vadd.f32 %v856_v27, %v794_v43  ;;  %v14867_v27 = vld [vmem:[%s21516_s4 + $0xc0] sm:$0xff]  }
 0x1b9   :  { %14298 = vmatprep.subr.bf16.mxu1 %v14867_v27 }
 0x1ba   :  { %v858_v61 = vadd.f32 %v857_v13, %v795_v32  ;;  %14306 = vmatpush3.bf16.msra.mxu1 %v14867_v27  ;;  %v801_v13 = vmul.f32 %v15899_v10, %v15899_v10 }
 0x1bc   :  { %v859_v1 = vadd.f32 %v858_v61, %v796_v49  ;;  %v802_v49 = vmul.f32 %v15903_v14, %v15903_v14 }
 0x1be   :  { %v860_v36 = vadd.f32 %v859_v1, %v797_v34  ;;  %v804_v1 = vmul.f32 %v15911_v23, %v15911_v23 }
 0x1c0   :  { %v861_v43 = vadd.f32 %v860_v36, %v798_v33  ;;  %v805_v36 = vmul.f32 %v15915_v18, %v15915_v18 }
 0x1c2   :  { %v862_v32 = vadd.f32 %v861_v43, %v799_v53  ;;  %v806_v43 = vmul.f32 %v15919_v22, %v15919_v22 }
 0x1c4   :  { %v863_v11 = vadd.f32 %v862_v32, %v800_v60  ;;  %v807_v60 = vmul.f32 %v15923_v28, %v15923_v28 }
 0x1c6   :  { %v864_v61 = vadd.f32 %v863_v11, %v801_v13  ;;  %v808_v13 = vmul.f32 %v15927_v31, %v15927_v31 }
 0x1c8   :  { %v865_v34 = vadd.f32 %v864_v61, %v802_v49  ;;  %v809_v49 = vmul.f32 %v15931_v26, %v15931_v26 }
 0x1ca   :  { %v866_v33 = vadd.f32 %v865_v34, %v803_v38  ;;  %v810_v38 = vmul.f32 %v15935_v30, %v15935_v30 }
 0x1cc   :  { %v867_v53 = vadd.f32 %v866_v33, %v804_v1  ;;  %v811_v1 = vmul.f32 %v15939_v37, %v15939_v37 }
 0x1ce   :  { %v868_v27 = vadd.f32 %v867_v53, %v805_v36  ;;  %v812_v36 = vmul.f32 %v15943_v41, %v15943_v41 }
 0x1d0   :  { %v869_v32 = vadd.f32 %v868_v27, %v806_v43  ;;  %v813_v43 = vmul.f32 %v15947_v35, %v15947_v35 }
 0x1d2   :  { %v870_v11 = vadd.f32 %v869_v32, %v807_v60  ;;  %v814_v60 = vmul.f32 %v15951_v40, %v15951_v40 }
 0x1d4   :  { %v871_v61 = vadd.f32 %v870_v11, %v808_v13  ;;  %v14868_v13 = vld [vmem:[%s21516_s4 + $0xc8] sm:$0xff]   ;;  %v815_v11 = vmul.f32 %v15955_v51, %v15955_v51 }
 0x1d5   :  { %14299 = vmatprep.subr.bf16.mxu1 %v14868_v13 }
 0x1d6   :  { %v872_v34 = vadd.f32 %v871_v61, %v809_v49  ;;  %v816_v61 = vmul.f32 %v15959_v57, %v15959_v57  ;;  %14307 = vmatpush3.bf16.msra.mxu1 %v14868_v13 }
 0x1d8   :  { %v873_v33 = vadd.f32 %v872_v34, %v810_v38  ;;  %v817_v34 = vmul.f32 %v15963_v48, %v15963_v48 }
 0x1da   :  { %v874_v53 = vadd.f32 %v873_v33, %v811_v1  ;;  %v818_v33 = vmul.f32 %v15967_v56, %v15967_v56 }
 0x1dc   :  { %v875_v27 = vadd.f32 %v874_v53, %v812_v36  ;;  %v819_v53 = vmul.f32 %v15971_v3, %v15971_v3 }
 0x1de   :  { %v876_v32 = vadd.f32 %v875_v27, %v813_v43  ;;  %v820_v27 = vmul.f32 %v15975_v9, %v15975_v9 }
 0x1e0   :  { %v877_v49 = vadd.f32 %v876_v32, %v814_v60  ;;  %v821_v32 = vmul.f32 %v15979_v0, %v15979_v0 }
 0x1e2   :  { %v878_v38 = vadd.f32 %v877_v49, %v815_v11  ;;  %v822_v11 = vmul.f32 %v15983_v8, %v15983_v8 }
 0x1e4   :  { %v879_v1 = vadd.f32 %v878_v38, %v816_v61  ;;  %v823_v61 = vmul.f32 %v15987_v19, %v15987_v19 }
 0x1e6   :  { %v880_v36 = vadd.f32 %v879_v1, %v817_v34  ;;  %v824_v34 = vmul.f32 %v15991_v25, %v15991_v25 }
 0x1e8   :  { %v881_v43 = vadd.f32 %v880_v36, %v818_v33  ;;  %v825_v33 = vmul.f32 %v15995_v16, %v15995_v16 }
 0x1ea   :  { %v882_v60 = vadd.f32 %v881_v43, %v819_v53  ;;  %v826_v53 = vmul.f32 %v15999_v24, %v15999_v24 }
 0x1ec   :  { %v883_v13 = vadd.f32 %v882_v60, %v820_v27  ;;  %v21778_v27 = vld [vmem:[#allocation6_spill] sm:$0xff] }
 0x1ed   :  { %v827_v60 = vmul.f32 %v21778_v27, %v21778_v27 }
 0x1ee   :  { %v884_v49 = vadd.f32 %v883_v13, %v821_v32  ;;  %v21779_v13 = vld [vmem:[#allocation8_spill] sm:$0xff] }
 0x1ef   :  { %v828_v19 = vmul.f32 %v21779_v13, %v21779_v13 }
 0x1f0   :  { %v885_v38 = vadd.f32 %v884_v49, %v822_v11  ;;  %v21780_v49 = vld [vmem:[#allocation5_spill] sm:$0xff] }
 0x1f1   :  { %v829_v25 = vmul.f32 %v21780_v49, %v21780_v49 }
 0x1f2   :  { %v886_v1 = vadd.f32 %v885_v38, %v823_v61  ;;  %v21781_v38 = vld [vmem:[#allocation7_spill] sm:$0xff] }
 0x1f3   :  { %v830_v16 = vmul.f32 %v21781_v38, %v21781_v38  ;;  %v835_v38 = vmul.f32 %v16035_v21, %v16035_v21 }
 0x1f4   :  { %v887_v36 = vadd.f32 %v886_v1, %v824_v34  ;;  %v14869_v1 = vld [vmem:[%s21516_s4 + $0xd0] sm:$0xff]  }
 0x1f5   :  { %14300 = vmatprep.subr.bf16.mxu1 %v14869_v1 }
 0x1f6   :  { %v888_v43 = vadd.f32 %v887_v36, %v825_v33  ;;  %v21782_v33 = vld [vmem:[#allocation10_spill] sm:$0xff]  ;;  %14308 = vmatpush3.bf16.msra.mxu1 %v14869_v1 }
 0x1f7   :  { %v831_v36 = vmul.f32 %v21782_v33, %v21782_v33  ;;  %v21784_v33 = vld [vmem:[#allocation13_spill] sm:$0xff] }
 0x1f8   :  { %v889_v32 = vadd.f32 %v888_v43, %v826_v53  ;;  %v21783_v43 = vld [vmem:[#allocation12_spill] sm:$0xff] }
 0x1fa   :  { %v890_v11 = vadd.f32 %v889_v32, %v827_v60  ;;  %v832_v60 = vmul.f32 %v21783_v43, %v21783_v43 }
 0x1fc   :  { %v891_v61 = vadd.f32 %v890_v11, %v828_v19  ;;  %v833_v19 = vmul.f32 %v16027_v17, %v16027_v17 }
 0x1fe   :  { %v892_v34 = vadd.f32 %v891_v61, %v829_v25  ;;  %v834_v25 = vmul.f32 %v16031_v5, %v16031_v5 }
 0x200   :  { %v893_v53 = vadd.f32 %v892_v34, %v830_v16  ;;  %v836_v16 = vmul.f32 %v16039_v29, %v16039_v29 }
 0x202   :  { %v894_v32 = vadd.f32 %v893_v53, %v831_v36  ;;  %v837_v36 = vmul.f32 %v21784_v33, %v21784_v33  ;;  %v21785_v53 = vld [vmem:[#allocation15_spill] sm:$0xff] }
 0x203   :  { %v838_v17 = vmul.f32 %v21785_v53, %v21785_v53 }
 0x204   :  { %v895_v11 = vadd.f32 %v894_v32, %v832_v60  ;;  %v21786_v32 = vld [vmem:[#allocation17_spill] sm:$0xff] }
 0x205   :  { %v839_v5 = vmul.f32 %v21786_v32, %v21786_v32 }
 0x206   :  { %v896_v61 = vadd.f32 %v895_v11, %v833_v19  ;;  %v21787_v11 = vld [vmem:[#allocation25_spill] sm:$0xff] }
 0x207   :  { %v840_v21 = vmul.f32 %v21787_v11, %v21787_v11 }
 0x208   :  { %v897_v49 = vadd.f32 %v896_v61, %v834_v25  ;;  %v841_v61 = vmul.f32 %v16059_v42, %v16059_v42 }
 0x20a   :  { %v898_v34 = vadd.f32 %v897_v49, %v835_v38 }
 0x20c   :  { %v899_v1 = vadd.f32 %v898_v34, %v836_v16 }
 0x20e   :  { %v900_v60 = vadd.f32 %v899_v1, %v837_v36 }
 0x210   :  { %v901_v19 = vadd.f32 %v900_v60, %v838_v17  ;;  %v16205_v17 = vld [vmem:[%s21517_s2] ss:$0 sm:$0xff] }
 0x211   :  { %v16222_v60 = vld [vmem:[%s21518_s3] ss:$0 sm:$0xff] }
 0x212   :  { %v902_v25 = vadd.f32 %v901_v19, %v839_v5  ;;  %21790 = vst [vmem:[#allocation4_spill] sm:$0xff] %v16222_v60  ;;  %v21791_v19 = vld [vmem:[#allocation20_spill] sm:$0xff] }
 0x214   :  { %v903_v49 = vadd.f32 %v902_v25, %v840_v21 }
 0x216   :  { %v904_v38 = vadd.f32 %v903_v49, %v841_v61 }
 0x218   :  { %v905_v29 = vrot.slane %v904_v38, 4 }
 0x21a   :  { %v906_v33 = vadd.f32 %v905_v29, %v904_v38  ;;  %v21788_v29 = vld [vmem:[#allocation18_spill] sm:$0xff] }
 0x21c   :  { %v907_v16 = vrot.slane %v906_v33, 2 }
 0x21e   :  { %v908_v34 = vadd.f32 %v907_v16, %v906_v33 }
 0x220   :  { %v909_v43 = vrot.slane %v908_v34, 1 }
 0x222   :  { %v910_v13 = vadd.f32 %v909_v43, %v908_v34 }
 0x224   :  { %v911_v36 = vmul.f32 0.001953125, %v910_v13  ;;  %v21789_v13 = vld [vmem:[#allocation19_spill] sm:$0xff] }
 0x226   :  { %v912_v1 = vadd.f32 1e-05, %v911_v36 }
 0x228   :  { %15043 = vrsqrt.f32 %v912_v1  ;;  %v21792_v1 = vld [vmem:[#allocation21_spill] sm:$0xff] }
 0x232   :  { %v16200_v27 = vpop.eup %15043 }
 0x233   :  { %v974_v5 = vmul.f32 %v16200_v27, %v21785_v53  ;;  %v975_v21 = vmul.f32 %v16200_v27, %v21786_v32  ;;  %v16213_v33 = vmul.f32 %v16200_v27, %v21788_v29  ;;  %v16217_v43 = vmul.f32 %v16200_v27, %v21789_v13 }
 0x234   :  { %v16226_v25 = vmul.f32 %v16200_v27, %v21791_v19  ;;  %v16230_v53 = vmul.f32 %v16200_v27, %v15819_v59  ;;  %v16234_v32 = vmul.f32 %v16200_v27, %v15823_v39  ;;  %v16238_v61 = vmul.f32 %v16200_v27, %v15827_v45 }
 0x235   :  { %v1044_v49 = vmul.f32 %v16205_v17, %v974_v5  ;;  %v1045_v38 = vmul.f32 %v16205_v17, %v975_v21  ;;  %v16244_v16 = vmul.f32 %v16200_v27, %v15831_v47  ;;  %v16248_v59 = vmul.f32 %v16200_v27, %v15835_v44 }
 0x236   :  { %v16252_v39 = vmul.f32 %v16200_v27, %v15839_v46  ;;  %v16256_v45 = vmul.f32 %v16200_v27, %v15843_v52  ;;  %v16260_v34 = vmul.f32 %v16200_v27, %v15847_v55  ;;  %v16264_v47 = vmul.f32 %v16200_v27, %v15851_v50 }
 0x237   :  { %v1114_v36 = vadd.f32 %v16222_v60, %v1044_v49  ;;  %v1115_v44 = vadd.f32 %v16222_v60, %v1045_v38  ;;  %v16270_v46 = vmul.f32 %v16200_v27, %v15855_v54  ;;  %v16274_v52 = vmul.f32 %v16200_v27, %v21792_v1  ;;  %v21799_v60 = vld [vmem:[#allocation22_spill] sm:$0xff] }
 0x238   :  { %v16278_v55 = vmul.f32 %v16200_v27, %v15863_v63  ;;  %v16282_v50 = vmul.f32 %v16200_v27, %v15867_v58  ;;  %v16286_v5 = vmul.f32 %v16200_v27, %v15871_v62  ;;  %v16290_v54 = vmul.f32 %v16200_v27, %v15875_v4 }
 0x239   :  { %v1178_v21 = vmax.f32 %v1114_v36, 0.0  ;;  %v1179_v29 = vmax.f32 %v1115_v44, 0.0  ;;  %v16294_v13 = vmul.f32 %v16200_v27, %v15879_v7  ;;  %v16298_v63 = vmul.f32 %v16200_v27, %v15883_v2 }
 0x23a   :  { %v16302_v58 = vmul.f32 %v16200_v27, %v15887_v6  ;;  %v16306_v62 = vmul.f32 %v16200_v27, %v15891_v12  ;;  %v16310_v4 = vmul.f32 %v16200_v27, %v15895_v15  ;;  %v16314_v7 = vmul.f32 %v16200_v27, %v15899_v10 }
 0x23b   :  { %v16316_v19 = vpack.c.bf16 %v1178_v21, %v1178_v21  ;;  %v12975_v2 = vpack.c.bf16 %v1179_v29, %v1179_v29  ;;  %v16320_v49 = vmul.f32 %v16200_v27, %v15903_v14  ;;  %v16324_v6 = vmul.f32 %v16200_v27, %v15907_v20 }
 0x23c   :  { %v16328_v12 = vmul.f32 %v16200_v27, %v15911_v23  ;;  %v16332_v15 = vmul.f32 %v16200_v27, %v15915_v18  ;;  %v16336_v10 = vmul.f32 %v16200_v27, %v15919_v22  ;;  %v16340_v14 = vmul.f32 %v16200_v27, %v15923_v28 }
 0x23d   :  { %v2098_v38 = vshrl.u32 %v16316_v19, 16  ;;  %v2106_v20 = vshrl.u32 %v12975_v2, 16  ;;  %v2109_v36 = vshll.u32 %v12975_v2, 16  ;;  %v16345_v23 = vmul.f32 %v16200_v27, %v15927_v31 }
 0x23e   :  { %v16349_v18 = vmul.f32 %v16200_v27, %v15931_v26  ;;  %v16353_v22 = vmul.f32 %v16200_v27, %v15935_v30  ;;  %v16357_v28 = vmul.f32 %v16200_v27, %v15939_v37  ;;  %v16361_v44 = vmul.f32 %v16200_v27, %v15943_v41  ;;  %v2443_v37 = vld [vmem:[#allocation2 + $0x194] sm:$0x1] }
 0x23f   :  { %v16363_v1 = vrot.slane %v2098_v38, 7  ;;  %v2108_v31 = vrot.slane %v2106_v20, 7  ;;  %v16367_v21 = vmul.f32 %v16200_v27, %v15947_v35  ;;  %v16371_v26 = vmul.f32 %v16200_v27, %v15951_v40 }
 0x240   :  { %v21794_v30 = vmov 0  ;;  %v16381_v41 = vmul.f32 %v16200_v27, %v15955_v51  ;;  %v16385_v29 = vmul.f32 %v16200_v27, %v15959_v57  ;;  %v16389_v35 = vmul.f32 %v16200_v27, %v15963_v48 }
 0x241   :  { %21793 = vst [vmem:[#allocation15_spill] sm:$0xff] %v16363_v1  ;;  %v21795_v30 = vsel %vm16375_vm6, 4294967295, %v21794_v30  ;;  %v16393_v40 = vmul.f32 %v16200_v27, %v15967_v56  ;;  %v2104_v2 = vrot.slane %v16363_v1, 4  ;;  %v2111_v38 = vor.u32 %v2109_v36, %v2108_v31 }
 0x242   :  { %21796 = vst [vmem:[#allocation17_spill] sm:$0xff] %v21795_v30  ;;  %v2113_v20 = vrot.slane %v2108_v31, 4  ;;  %v16398_v51 = vmul.f32 %v16200_v27, %v15971_v3  ;;  %v16402_v57 = vmul.f32 %v16200_v27, %v15975_v9  ;;  %v16406_v48 = vmul.f32 %v16200_v27, %v15979_v0  ;;  %v21801_v9 = vld [vmem:[#allocation23_spill] sm:$0xff]  ;;  %v21802_v0 = vld [vmem:[#allocation24_spill] sm:$0xff]  ;;  %v21813_v30 = vld [vmem:[#allocation9_spill] sm:$0xff] }
 0x243   :  { %v16410_v56 = vmul.f32 %v16200_v27, %v15983_v8  ;;  %v16414_v36 = vmul.f32 %v16200_v27, %v21799_v60  ;;  %v2112_v3 = vsel %vm16375_vm6, %v2104_v2, %v2111_v38  ;;  %v16430_v8 = vmul.f32 %v16200_v27, %v15999_v24  ;;  %v21803_v60 = vld [vmem:[#allocation6_spill] sm:$0xff]  ;;  %v21804_v38 = vld [vmem:[#allocation8_spill] sm:$0xff] }
 0x244   :  { %21797 = vst [vmem:[#allocation25_spill] sm:$0xff] %v16402_v57  ;;  %21798 = vst [vmem:[#allocation18_spill] sm:$0xff] %v16406_v48  ;;  %v2444_v1 = vsel %vm15455_vm3, %v2113_v20, %v2443_v37  ;;  %v16422_v57 = vmul.f32 %v16200_v27, %v21801_v9  ;;  %v16426_v48 = vmul.f32 %v16200_v27, %v21802_v0  ;;  %v21806_v20 = vld [vmem:[#allocation5_spill] sm:$0xff]  ;;  %v21808_v0 = vld [vmem:[#allocation7_spill] sm:$0xff] }
 0x245   :  { %2442 = vst [vmem:[#allocation2 + $0x190] sm:$0xf] %v2112_v3  ;;  %2445 = vst [vmem:[#allocation2 + $0x194] sm:$0x1] %v2444_v1  ;;  %v16434_v2 = vmul.f32 %v16200_v27, %v21803_v60  ;;  %v16438_v37 = vmul.f32 %v16200_v27, %v21804_v38  ;;  %v16442_v9 = vmul.f32 %v16200_v27, %v21806_v20  ;;  %v21810_v1 = vld [vmem:[#allocation10_spill] sm:$0xff]  ;;  %v21812_v31 = vld [vmem:[#allocation12_spill] sm:$0xff] }
 0x246   :  { %v16446_v3 = vmul.f32 %v16200_v27, %v21808_v0  ;;  %v16450_v24 = vmul.f32 %v16200_v27, %v21810_v1  ;;  %v16454_v60 = vmul.f32 %v16200_v27, %v21812_v31  ;;  %v16458_v38 = vmul.f32 %v16200_v27, %v21813_v30 }
 0x247   :  { %21805 = vst [vmem:[#allocation19_spill] sm:$0xff] %v16438_v37  ;;  %21807 = vst [vmem:[#allocation20_spill] sm:$0xff] %v16442_v9  ;;  %v21814_v37 = vld [vmem:[#allocation11_spill] sm:$0xff]  ;;  %v21816_v9 = vld [vmem:[#allocation14_spill] sm:$0xff]  ;;  %v16478_v30 = vmul.f32 %v16200_v27, %v21787_v11  ;;  %v16499_v11 = vmul.f32 %v16205_v17, %v16230_v53  ;;  %v16523_v53 = vmul.f32 %v16205_v17, %v16256_v45 }
 0x248   :  { %21809 = vst [vmem:[#allocation21_spill] sm:$0xff] %v16446_v3  ;;  %21811 = vst [vmem:[#allocation22_spill] sm:$0xff] %v16450_v24  ;;  %v16462_v20 = vmul.f32 %v16200_v27, %v21814_v37  ;;  %v16466_v0 = vmul.f32 %v16200_v27, %v21816_v9  ;;  %v21817_v3 = vld [vmem:[#allocation16_spill] sm:$0xff]  ;;  %v21818_v24 = vld [vmem:[#allocation13_spill] sm:$0xff]  ;;  %v16482_v37 = vmul.f32 %v16200_v27, %v16059_v42 }
 0x249   :  { %v16470_v1 = vmul.f32 %v16200_v27, %v21817_v3  ;;  %v16474_v31 = vmul.f32 %v16200_v27, %v21818_v24  ;;  %v16487_v9 = vmul.f32 %v16205_v17, %v16213_v33  ;;  %v16491_v3 = vmul.f32 %v16205_v17, %v16217_v43 }
 0x24a   :  { %21815 = vst [vmem:[#allocation23_spill] sm:$0xff] %v16462_v20  ;;  %v16495_v24 = vmul.f32 %v16205_v17, %v16226_v25  ;;  %v16503_v42 = vmul.f32 %v16205_v17, %v16234_v32  ;;  %v16507_v27 = vmul.f32 %v16205_v17, %v16238_v61  ;;  %v16511_v33 = vmul.f32 %v16205_v17, %v16244_v16 }
 0x24b   :  { %v16515_v43 = vmul.f32 %v16205_v17, %v16248_v59  ;;  %v16519_v25 = vmul.f32 %v16205_v17, %v16252_v39  ;;  %v16527_v32 = vmul.f32 %v16205_v17, %v16260_v34  ;;  %v16531_v61 = vmul.f32 %v16205_v17, %v16264_v47  ;;  %v21820_v20 = vld [vmem:[#allocation18_spill] sm:$0xff] }
 0x24c   :  { %v16535_v16 = vmul.f32 %v16205_v17, %v16270_v46  ;;  %v16539_v59 = vmul.f32 %v16205_v17, %v16274_v52  ;;  %v16543_v39 = vmul.f32 %v16205_v17, %v16278_v55  ;;  %v16547_v45 = vmul.f32 %v16205_v17, %v16282_v50 }
 0x24d   :  { %v16551_v34 = vmul.f32 %v16205_v17, %v16286_v5  ;;  %v16555_v47 = vmul.f32 %v16205_v17, %v16290_v54  ;;  %v16559_v46 = vmul.f32 %v16205_v17, %v16294_v13  ;;  %v16563_v52 = vmul.f32 %v16205_v17, %v16298_v63 }
 0x24e   :  { %v16567_v55 = vmul.f32 %v16205_v17, %v16302_v58  ;;  %v16571_v50 = vmul.f32 %v16205_v17, %v16306_v62  ;;  %v16575_v5 = vmul.f32 %v16205_v17, %v16310_v4  ;;  %v16579_v54 = vmul.f32 %v16205_v17, %v16314_v7 }
 0x24f   :  { %v16583_v13 = vmul.f32 %v16205_v17, %v16320_v49  ;;  %v16587_v63 = vmul.f32 %v16205_v17, %v16324_v6  ;;  %v16591_v58 = vmul.f32 %v16205_v17, %v16328_v12  ;;  %v16595_v62 = vmul.f32 %v16205_v17, %v16332_v15 }
 0x250   :  { %v16599_v4 = vmul.f32 %v16205_v17, %v16336_v10  ;;  %v16603_v7 = vmul.f32 %v16205_v17, %v16340_v14  ;;  %v16607_v49 = vmul.f32 %v16205_v17, %v16345_v23  ;;  %v16611_v6 = vmul.f32 %v16205_v17, %v16349_v18 }
 0x251   :  { %v16615_v12 = vmul.f32 %v16205_v17, %v16353_v22  ;;  %v16619_v15 = vmul.f32 %v16205_v17, %v16357_v28  ;;  %v16623_v10 = vmul.f32 %v16205_v17, %v16361_v44  ;;  %v16627_v14 = vmul.f32 %v16205_v17, %v16367_v21 }
 0x252   :  { %v16631_v23 = vmul.f32 %v16205_v17, %v16371_v26  ;;  %v16635_v18 = vmul.f32 %v16205_v17, %v16381_v41  ;;  %v16639_v22 = vmul.f32 %v16205_v17, %v16385_v29  ;;  %v16643_v28 = vmul.f32 %v16205_v17, %v16389_v35  ;;  %v21819_v26 = vld [vmem:[#allocation25_spill] sm:$0xff] }
 0x253   :  { %v16647_v44 = vmul.f32 %v16205_v17, %v16393_v40  ;;  %v16651_v21 = vmul.f32 %v16205_v17, %v16398_v51  ;;  %v16655_v41 = vmul.f32 %v16205_v17, %v21819_v26  ;;  %v16659_v29 = vmul.f32 %v16205_v17, %v21820_v20 }
 0x254   :  { %v16663_v35 = vmul.f32 %v16205_v17, %v16410_v56  ;;  %v16667_v40 = vmul.f32 %v16205_v17, %v16414_v36  ;;  %v16671_v51 = vmul.f32 %v16205_v17, %v16422_v57  ;;  %v16675_v26 = vmul.f32 %v16205_v17, %v16426_v48 }
 0x255   :  { %v16679_v20 = vmul.f32 %v16205_v17, %v16430_v8  ;;  %v16683_v56 = vmul.f32 %v16205_v17, %v16434_v2  ;;  %v16703_v2 = vmul.f32 %v16205_v17, %v16454_v60  ;;  %v16723_v60 = vmul.f32 %v16205_v17, %v16474_v31 }
 0x256   :  { %21821 = vst [vmem:[#allocation24_spill] sm:$0xff] %v16663_v35  ;;  %21822 = vst [vmem:[#allocation6_spill] sm:$0xff] %v16667_v40  ;;  %v21825_v35 = vld [vmem:[#allocation19_spill] sm:$0xff]  ;;  %v21827_v40 = vld [vmem:[#allocation20_spill] sm:$0xff] }
 0x257   :  { %21823 = vst [vmem:[#allocation8_spill] sm:$0xff] %v16671_v51  ;;  %21824 = vst [vmem:[#allocation5_spill] sm:$0xff] %v16675_v26  ;;  %v16687_v36 = vmul.f32 %v16205_v17, %v21825_v35  ;;  %v16691_v57 = vmul.f32 %v16205_v17, %v21827_v40  ;;  %v21828_v51 = vld [vmem:[#allocation21_spill] sm:$0xff]  ;;  %v21829_v26 = vld [vmem:[#allocation22_spill] sm:$0xff]  ;;  %v16707_v35 = vmul.f32 %v16205_v17, %v16458_v38 }
 0x258   :  { %v16695_v48 = vmul.f32 %v16205_v17, %v21828_v51  ;;  %v16699_v8 = vmul.f32 %v16205_v17, %v21829_v26  ;;  %v16715_v51 = vmul.f32 %v16205_v17, %v16466_v0  ;;  %v16719_v26 = vmul.f32 %v16205_v17, %v16470_v1  ;;  %v21836_v1 = vld [vmem:[#allocation4_spill] sm:$0xff] }
 0x259   :  { %21826 = vst [vmem:[#allocation7_spill] sm:$0xff] %v16687_v36  ;;  %v21830_v36 = vld [vmem:[#allocation23_spill] sm:$0xff]  ;;  %v16727_v38 = vmul.f32 %v16205_v17, %v16478_v30  ;;  %v21835_v0 = vshll.u32 %v16316_v19, 16  ;;  %v16744_v31 = vadd.f32 %v21836_v1, %v16491_v3  ;;  %v16748_v30 = vadd.f32 %v21836_v1, %v16495_v24 }
 0x25a   :  { %v16711_v40 = vmul.f32 %v16205_v17, %v21830_v36  ;;  %21832 = vst [vmem:[#allocation12_spill] sm:$0xff] %v16715_v51  ;;  %21833 = vst [vmem:[#allocation9_spill] sm:$0xff] %v16719_v26  ;;  %v16731_v36 = vmul.f32 %v16205_v17, %v16482_v37  ;;  %v16740_v26 = vadd.f32 %v21836_v1, %v16487_v9 }
 0x25b   :  { %v16752_v17 = vadd.f32 %v21836_v1, %v16499_v11  ;;  %v16756_v19 = vadd.f32 %v21836_v1, %v16503_v42  ;;  %v16760_v37 = vadd.f32 %v21836_v1, %v16507_v27  ;;  %v16764_v9 = vadd.f32 %v21836_v1, %v16511_v33 }
 0x25c   :  { %21831 = vst [vmem:[#allocation10_spill] sm:$0xff] %v16711_v40  ;;  %v21834_v40 = vld [vmem:[#allocation15_spill] sm:$0xff]  ;;  %v16768_v3 = vadd.f32 %v21836_v1, %v16515_v43  ;;  %v16772_v24 = vadd.f32 %v21836_v1, %v16519_v25  ;;  %v16776_v11 = vadd.f32 %v21836_v1, %v16523_v53  ;;  %v16780_v42 = vadd.f32 %v21836_v1, %v16527_v32 }
 0x25d   :  { %v16736_v51 = vor.u32 %v21835_v0, %v21834_v40  ;;  %v16784_v27 = vadd.f32 %v21836_v1, %v16531_v61  ;;  %v16788_v33 = vadd.f32 %v21836_v1, %v16535_v16  ;;  %v16792_v43 = vadd.f32 %v21836_v1, %v16539_v59  ;;  %v14872_v40 = vld [vmem:[%s21516_s4 + $0x48] sm:$0xff]  }
 0x25e   :  { %v16796_v25 = vadd.f32 %v21836_v1, %v16543_v39  ;;  %v16800_v53 = vadd.f32 %v21836_v1, %v16547_v45  ;;  %v16804_v32 = vadd.f32 %v21836_v1, %v16551_v34  ;;  %v16808_v61 = vadd.f32 %v21836_v1, %v16555_v47  ;;  %v14870_v34 = vld [vmem:[%s21516_s4 + $0x40] sm:$0xff]  }
 0x25f   :  { %v16812_v16 = vadd.f32 %v21836_v1, %v16559_v46  ;;  %v16816_v59 = vadd.f32 %v21836_v1, %v16563_v52  ;;  %v16820_v39 = vadd.f32 %v21836_v1, %v16567_v55  ;;  %v16824_v45 = vadd.f32 %v21836_v1, %v16571_v50  ;;  %13498 = vmatprep.subr.bf16.mxu0 %v14870_v34 }
 0x260   :  { %v16831_v47 = vadd.f32 %v21836_v1, %v16575_v5  ;;  %v16835_v46 = vadd.f32 %v21836_v1, %v16579_v54  ;;  %v16839_v52 = vadd.f32 %v21836_v1, %v16583_v13  ;;  %v16843_v55 = vadd.f32 %v21836_v1, %v16587_v63  ;;  %13499 = vmatpush3.bf16.msra.mxu0 %v14870_v34  ;;  %v21848_v34 = vld [vmem:[#allocation24_spill] sm:$0xff] }
 0x261   :  { %v16847_v50 = vadd.f32 %v21836_v1, %v16591_v58  ;;  %v16851_v5 = vadd.f32 %v21836_v1, %v16595_v62  ;;  %v16855_v54 = vadd.f32 %v21836_v1, %v16599_v4  ;;  %v16859_v13 = vadd.f32 %v21836_v1, %v16603_v7  ;;  %v14871_v7 = vld [vmem:[%s21516_s4 + $0xd8] sm:$0xff]   ;;  %13500 = vmatprep.subr.bf16.mxu0 %v14872_v40 }
 0x262   :  { %v16863_v63 = vadd.f32 %v21836_v1, %v16607_v49  ;;  %v16867_v58 = vadd.f32 %v21836_v1, %v16611_v6  ;;  %v16871_v62 = vadd.f32 %v21836_v1, %v16615_v12  ;;  %v16875_v4 = vadd.f32 %v21836_v1, %v16619_v15  ;;  %14301 = vmatprep.subr.bf16.mxu1 %v14871_v7 }
 0x263   :  { %v16882_v49 = vadd.f32 %v21836_v1, %v16623_v10  ;;  %v16886_v6 = vadd.f32 %v21836_v1, %v16627_v14  ;;  %v16890_v12 = vadd.f32 %v21836_v1, %v16631_v23  ;;  %v16894_v15 = vadd.f32 %v21836_v1, %v16635_v18  ;;  %14309 = vmatpush3.bf16.msra.mxu1 %v14871_v7 }
 0x264   :  { %21837 = vst [vmem:[#allocation11_spill] sm:$0xff] %v16867_v58  ;;  %21838 = vst [vmem:[#allocation14_spill] sm:$0xff] %v16871_v62  ;;  %v16901_v10 = vadd.f32 %v21836_v1, %v16639_v22  ;;  %v16905_v14 = vadd.f32 %v21836_v1, %v16643_v28  ;;  %v16909_v23 = vadd.f32 %v21836_v1, %v16647_v44  ;;  %13501 = vmatpush3.bf16.msra.mxu0 %v14872_v40  ;;  %v21864_v40 = vld [vmem:[#allocation9_spill] sm:$0xff] }
 0x265   :  { %21839 = vst [vmem:[#allocation16_spill] sm:$0xff] %v16875_v4  ;;  %21840 = vst [vmem:[#allocation13_spill] sm:$0xff] %v16882_v49  ;;  %v16913_v18 = vadd.f32 %v21836_v1, %v16651_v21  ;;  %v16917_v0 = vadd.f32 %v21836_v1, %v16655_v41  ;;  %v16921_v22 = vadd.f32 %v21836_v1, %v16659_v29  ;;  %v21850_v21 = vld [vmem:[#allocation8_spill] sm:$0xff]  ;;  %v21881_v49 = vmax.f32 %v16752_v17, 0.0 }
 0x266   :  { %21841 = vst [vmem:[#allocation25_spill] sm:$0xff] %v16894_v15  ;;  %21842 = vst [vmem:[#allocation18_spill] sm:$0xff] %v16901_v10  ;;  %v16925_v28 = vadd.f32 %v21836_v1, %v21848_v34  ;;  %v16941_v29 = vadd.f32 %v21836_v1, %v16679_v20  ;;  %v16945_v34 = vadd.f32 %v21836_v1, %v16683_v56  ;;  %v21879_v15 = vmax.f32 %v16744_v31, 0.0 }
 0x267   :  { %21843 = vst [vmem:[#allocation19_spill] sm:$0xff] %v16905_v14  ;;  %21844 = vst [vmem:[#allocation20_spill] sm:$0xff] %v16909_v23  ;;  %v21849_v14 = vld [vmem:[#allocation6_spill] sm:$0xff]  ;;  %v21851_v23 = vld [vmem:[#allocation5_spill] sm:$0xff]  ;;  %v16962_v56 = vadd.f32 %v21836_v1, %v16691_v57  ;;  %v16966_v7 = vadd.f32 %v21836_v1, %v16695_v48  ;;  %v16981_v57 = vadd.f32 %v21836_v1, %v16707_v35  ;;  %v21883_v31 = vmax.f32 %v16760_v37, 0.0 }
 0x268   :  { %21845 = vst [vmem:[#allocation21_spill] sm:$0xff] %v16913_v18  ;;  %21846 = vst [vmem:[#allocation22_spill] sm:$0xff] %v16917_v0  ;;  %v16929_v44 = vadd.f32 %v21836_v1, %v21849_v14  ;;  %v16933_v18 = vadd.f32 %v21836_v1, %v21850_v21  ;;  %v16937_v41 = vadd.f32 %v21836_v1, %v21851_v23  ;;  %v14873_v14 = vld [vmem:[%s21516_s4 + $0xe0] sm:$0xff]   ;;  %v21855_v21 = vmov 0  ;;  %v2439_v23 = vld [vmem:[#allocation2 + $0x18c] sm:$0xf] }
 0x269   :  { %21847 = vst [vmem:[#allocation23_spill] sm:$0xff] %v16921_v22  ;;  %21853 = vst [vmem:[#allocation4_spill] sm:$0xff] %v16941_v29  ;;  %v21856_v21 = vsel %vm16952_vm8, 4294967295, %v21855_v21  ;;  %v14874_v29 = vld [vmem:[%s21516_s4 + $0x50] sm:$0xff]   ;;  %14302 = vmatprep.subr.bf16.mxu1 %v14873_v14  ;;  %v17001_v35 = vadd.f32 %v21836_v1, %v16727_v38  ;;  %v14875_v38 = vld [vmem:[%s21516_s4 + $0xe8] sm:$0xff]   ;;  %v17117_v62 = vpack.c.bf16 %v21881_v49, %v21881_v49  ;;  %v21885_v17 = vmax.f32 %v16768_v3, 0.0 }
 0x26a   :  { %21852 = vst [vmem:[#allocation15_spill] sm:$0xff] %v16937_v41  ;;  %21854 = vst [vmem:[#allocation24_spill] sm:$0xff] %v16945_v34  ;;  %v21858_v41 = vld [vmem:[#allocation7_spill] sm:$0xff]  ;;  %v16970_v34 = vadd.f32 %v21836_v1, %v16699_v8  ;;  %13502 = vmatprep.subr.bf16.mxu0 %v14874_v29  ;;  %14310 = vmatpush3.bf16.msra.mxu1 %v14873_v14  ;;  %v21887_v37 = vmax.f32 %v16776_v11, 0.0  ;;  %v21889_v3 = vmax.f32 %v16784_v27, 0.0  ;;  %v21891_v11 = vmax.f32 %v16792_v43, 0.0 }
 0x26b   :  { %21857 = vst [vmem:[#allocation6_spill] sm:$0xff] %v21856_v21  ;;  %v16958_v20 = vadd.f32 %v21836_v1, %v21858_v41  ;;  %21859 = vst [vmem:[#allocation8_spill] sm:$0xff] %v16962_v56  ;;  %v16977_v41 = vadd.f32 %v21836_v1, %v16703_v2  ;;  %v21862_v56 = vld [vmem:[#allocation10_spill] sm:$0xff]  ;;  %v16997_v2 = vadd.f32 %v21836_v1, %v16723_v60  ;;  %13503 = vmatpush3.bf16.msra.mxu0 %v14874_v29  ;;  %v14883_v14 = vld [vmem:[%s21516_s4 + $0x70] sm:$0xff]  }
 0x26c   :  { %21860 = vst [vmem:[#allocation5_spill] sm:$0xff] %v16966_v7  ;;  %21861 = vst [vmem:[#allocation7_spill] sm:$0xff] %v16970_v34  ;;  %v16985_v48 = vadd.f32 %v21836_v1, %v21862_v56  ;;  %v21863_v7 = vld [vmem:[#allocation12_spill] sm:$0xff]  ;;  %v16993_v34 = vadd.f32 %v21836_v1, %v21864_v40  ;;  %v17005_v56 = vadd.f32 %v21836_v1, %v16731_v36  ;;  %14303 = vmatprep.subr.bf16.mxu1 %v14875_v38  ;;  %v14877_v36 = vld [vmem:[%s21516_s4 + $0xf0] sm:$0xff]  }
 0x26d   :  { %v16989_v8 = vadd.f32 %v21836_v1, %v21863_v7  ;;  %21866 = vst [vmem:[#allocation12_spill] sm:$0xff] %v17001_v35  ;;  %v2440_v7 = vsel %vm16952_vm8, %v16736_v51, %v2439_v23  ;;  %v14876_v51 = vld [vmem:[%s21516_s4 + $0x58] sm:$0xff]   ;;  %v14880_v21 = vld [vmem:[%s21516_s4 + $0x68] sm:$0xff]   ;;  %v14882_v40 = vld [vmem:[%s21516_s4 + $0x100] sm:$0xff]   ;;  %v17107_v60 = vpack.c.bf16 %v21879_v15, %v21879_v15  ;;  %v17127_v15 = vpack.c.bf16 %v21883_v31, %v21883_v31 }
 0x26e   :  { %21865 = vst [vmem:[#allocation10_spill] sm:$0xff] %v16993_v34  ;;  %2441 = vst [vmem:[#allocation2 + $0x18c] sm:$0xf] %v2440_v7  ;;  %13504 = vmatprep.subr.bf16.mxu0 %v14876_v51  ;;  %14311 = vmatpush3.bf16.msra.mxu1 %v14875_v38  ;;  %v14878_v7 = vld [vmem:[%s21516_s4 + $0x60] sm:$0xff]   ;;  %v14879_v38 = vld [vmem:[%s21516_s4 + $0xf8] sm:$0xff]   ;;  %v17137_v49 = vpack.c.bf16 %v21885_v17, %v21885_v17  ;;  %v17147_v31 = vpack.c.bf16 %v21887_v37, %v21887_v37  ;;  %v21893_v27 = vmax.f32 %v16800_v53, 0.0 }
 0x26f   :  { %13505 = vmatpush3.bf16.msra.mxu0 %v14876_v51  ;;  %14304 = vmatprep.subr.bf16.mxu1 %v14877_v36  ;;  %v21868_v34 = vld [vmem:[#allocation20_spill] sm:$0xff]  ;;  %v17157_v17 = vpack.c.bf16 %v21889_v3, %v21889_v3  ;;  %v21895_v43 = vmax.f32 %v16808_v61, 0.0  ;;  %v21897_v53 = vmax.f32 %v16816_v59, 0.0  ;;  %v21899_v61 = vmax.f32 %v16824_v45, 0.0  ;;  %v21922_v51 = vld [vmem:[#allocation13_spill] sm:$0xff] }
 0x270   :  { %13506 = vmatprep.subr.bf16.mxu0 %v14878_v7  ;;  %v21871_v10 = vld [vmem:[#allocation4_spill] sm:$0xff]  ;;  %v21901_v59 = vmax.f32 %v16835_v46, 0.0  ;;  %v21903_v45 = vmax.f32 %v16843_v55, 0.0  ;;  %v21906_v46 = vmax.f32 %v16851_v5, 0.0  ;;  %v21910_v55 = vmax.f32 %v16859_v13, 0.0 }
 0x271   :  { %v21870_v35 = vld [vmem:[#allocation15_spill] sm:$0xff] }
 0x272   :  { %14312 = vmatpush3.bf16.msra.mxu1 %v14877_v36  ;;  %v21872_v36 = vld [vmem:[#allocation24_spill] sm:$0xff] }
 0x273   :  { %13507 = vmatpush3.bf16.msra.mxu0 %v14878_v7  ;;  %14305 = vmatprep.subr.bf16.mxu1 %v14879_v38  ;;  %v21873_v4 = vld [vmem:[#allocation8_spill] sm:$0xff]  ;;  %v21874_v0 = vld [vmem:[#allocation5_spill] sm:$0xff]  ;;  %v21875_v58 = vld [vmem:[#allocation7_spill] sm:$0xff]  ;;  %v21880_v7 = vmax.f32 %v16748_v30, 0.0  ;;  %v21884_v30 = vmax.f32 %v16764_v9, 0.0  ;;  %v21888_v9 = vmax.f32 %v16780_v42, 0.0 }
 0x274   :  { %13508 = vmatprep.subr.bf16.mxu0 %v14880_v21  ;;  %v21877_v22 = vld [vmem:[#allocation12_spill] sm:$0xff]  ;;  %v21892_v42 = vmax.f32 %v16796_v25, 0.0  ;;  %v21896_v25 = vmax.f32 %v16812_v16, 0.0  ;;  %v21900_v16 = vmax.f32 %v16831_v47, 0.0  ;;  %v21904_v47 = vmax.f32 %v16847_v50, 0.0 }
 0x275   :  { %v21876_v29 = vld [vmem:[#allocation10_spill] sm:$0xff]  ;;  %v17112_v1 = vpack.c.bf16 %v21880_v7, %v21880_v7  ;;  %v17132_v7 = vpack.c.bf16 %v21884_v30, %v21884_v30  ;;  %v17152_v30 = vpack.c.bf16 %v21888_v9, %v21888_v9  ;;  %v17177_v9 = vpack.c.bf16 %v21893_v27, %v21893_v27 }
 0x276   :  { %14313 = vmatpush3.bf16.msra.mxu1 %v14879_v38  ;;  %v14886_v38 = vld [vmem:[%s21516_s4 + $0x78] sm:$0xff]   ;;  %v17172_v37 = vpack.c.bf16 %v21892_v42, %v21892_v42  ;;  %v17197_v42 = vpack.c.bf16 %v21897_v53, %v21897_v53  ;;  %v21911_v50 = vmax.f32 %v16863_v63, 0.0  ;;  %v21923_v63 = vmax.f32 %v21922_v51, 0.0 }
 0x277   :  { %13509 = vmatpush3.bf16.msra.mxu0 %v14880_v21  ;;  %13818 = vmatprep.subr.bf16.mxu1 %v14882_v40  ;;  %v21878_v40 = vmax.f32 %v16740_v26, 0.0  ;;  %v21882_v26 = vmax.f32 %v16756_v19, 0.0  ;;  %v21886_v19 = vmax.f32 %v16772_v24, 0.0  ;;  %v21890_v24 = vmax.f32 %v16788_v33, 0.0  ;;  %v21919_v21 = vld [vmem:[#allocation16_spill] sm:$0xff] }
 0x278   :  { %13510 = vmatprep.subr.bf16.mxu0 %v14883_v14  ;;  %v21894_v33 = vmax.f32 %v16804_v32, 0.0  ;;  %v21898_v32 = vmax.f32 %v16820_v39, 0.0  ;;  %v21902_v39 = vmax.f32 %v16839_v52, 0.0  ;;  %v21908_v52 = vmax.f32 %v16855_v54, 0.0 }
 0x279   :  { %v17102_v23 = vpack.c.bf16 %v21878_v40, %v21878_v40  ;;  %v17122_v40 = vpack.c.bf16 %v21882_v26, %v21882_v26  ;;  %v17142_v26 = vpack.c.bf16 %v21886_v19, %v21886_v19  ;;  %v17162_v19 = vpack.c.bf16 %v21890_v24, %v21890_v24 }
 0x27a   :  { %v17182_v3 = vpack.c.bf16 %v21894_v33, %v21894_v33  ;;  %v17187_v24 = vpack.c.bf16 %v21895_v43, %v21895_v43  ;;  %v17202_v27 = vpack.c.bf16 %v21898_v32, %v21898_v32  ;;  %v17207_v33 = vpack.c.bf16 %v21899_v61, %v21899_v61 }
 0x27b   :  { %13511 = vmatpush3.bf16.msra.mxu0 %v14883_v14  ;;  %v17167_v14 = vpack.c.bf16 %v21891_v11, %v21891_v11  ;;  %v17192_v11 = vpack.c.bf16 %v21896_v25, %v21896_v25  ;;  %v17212_v43 = vpack.c.bf16 %v21900_v16, %v21900_v16  ;;  %v17217_v25 = vpack.c.bf16 %v21901_v59, %v21901_v59 }
 0x27c   :  { %13512 = vmatprep.subr.bf16.mxu0 %v14886_v38  ;;  %v17222_v53 = vpack.c.bf16 %v21902_v39, %v21902_v39  ;;  %v17227_v32 = vpack.c.bf16 %v21903_v45, %v21903_v45  ;;  %v17232_v61 = vpack.c.bf16 %v21904_v47, %v21904_v47  ;;  %v17237_v16 = vpack.c.bf16 %v21906_v46, %v21906_v46  ;;  %v21913_v45 = vld [vmem:[#allocation11_spill] sm:$0xff]  ;;  %v21916_v46 = vld [vmem:[#allocation14_spill] sm:$0xff] }
 0x27d   :  { %v17242_v59 = vpack.c.bf16 %v21908_v52, %v21908_v52  ;;  %v17252_v39 = vpack.c.bf16 %v21911_v50, %v21911_v50  ;;  %v21914_v5 = vmax.f32 %v21913_v45, 0.0  ;;  %v21917_v54 = vmax.f32 %v21916_v46, 0.0 }
 0x27e   :  { %21905 = vst [vmem:[#allocation9_spill] sm:$0xff] %v17232_v61  ;;  %21907 = vst [vmem:[#allocation20_spill] sm:$0xff] %v17237_v16  ;;  %v21920_v13 = vmax.f32 %v21919_v21, 0.0  ;;  %v17272_v50 = vpack.c.bf16 %v21923_v63, %v21923_v63  ;;  %v21925_v45 = vmax.f32 %v16886_v6, 0.0  ;;  %v21926_v46 = vmax.f32 %v16890_v12, 0.0 }
 0x27f   :  { %13513 = vmatpush3.bf16.msra.mxu0 %v14886_v38  ;;  %21909 = vst [vmem:[#allocation15_spill] sm:$0xff] %v17242_v59  ;;  %v17247_v38 = vpack.c.bf16 %v21910_v55, %v21910_v55  ;;  %21912 = vst [vmem:[#allocation4_spill] sm:$0xff] %v17252_v39  ;;  %v17257_v47 = vpack.c.bf16 %v21914_v5, %v21914_v5  ;;  %v17262_v52 = vpack.c.bf16 %v21917_v54, %v21917_v54 }
 0x280   :  { %v17267_v55 = vpack.c.bf16 %v21920_v13, %v21920_v13  ;;  %21924 = vst [vmem:[#allocation7_spill] sm:$0xff] %v17272_v50  ;;  %v17277_v5 = vpack.c.bf16 %v21925_v45, %v21925_v45  ;;  %v17282_v54 = vpack.c.bf16 %v21926_v46, %v21926_v46  ;;  %v21934_v50 = vld [vmem:[#allocation19_spill] sm:$0xff]  ;;  %v21936_v12 = vmax.f32 %v21868_v34, 0.0 }
 0x281   :  { %21915 = vst [vmem:[#allocation24_spill] sm:$0xff] %v17257_v47  ;;  %21918 = vst [vmem:[#allocation8_spill] sm:$0xff] %v17262_v52  ;;  %v21928_v52 = vld [vmem:[#allocation25_spill] sm:$0xff]  ;;  %v21935_v6 = vmax.f32 %v21934_v50, 0.0  ;;  %v21943_v34 = vmax.f32 %v16925_v28, 0.0  ;;  %v21947_v28 = vmax.f32 %v21871_v10, 0.0 }
 0x282   :  { %21921 = vst [vmem:[#allocation5_spill] sm:$0xff] %v17267_v55  ;;  %21927 = vst [vmem:[#allocation10_spill] sm:$0xff] %v17282_v54  ;;  %v21929_v21 = vmax.f32 %v21928_v52, 0.0  ;;  %v21931_v55 = vld [vmem:[#allocation18_spill] sm:$0xff]  ;;  %v17302_v46 = vpack.c.bf16 %v21936_v12, %v21936_v12  ;;  %v21937_v54 = vld [vmem:[#allocation21_spill] sm:$0xff]  ;;  %v21951_v10 = vmax.f32 %v21874_v0, 0.0 }
 0x283   :  { %v21932_v51 = vmax.f32 %v21931_v55, 0.0  ;;  %v17297_v45 = vpack.c.bf16 %v21935_v6, %v21935_v6  ;;  %v21938_v52 = vmax.f32 %v21937_v54, 0.0  ;;  %v17322_v12 = vpack.c.bf16 %v21943_v34, %v21943_v34 }
 0x284   :  { %v17287_v13 = vpack.c.bf16 %v21929_v21, %v21929_v21  ;;  %v21944_v54 = vmax.f32 %v16929_v44, 0.0  ;;  %v17342_v34 = vpack.c.bf16 %v21947_v28, %v21947_v28  ;;  %v21948_v44 = vmax.f32 %v21872_v36, 0.0 }
 0x285   :  { %v17292_v63 = vpack.c.bf16 %v21932_v51, %v21932_v51  ;;  %v17307_v21 = vpack.c.bf16 %v21938_v52, %v21938_v52  ;;  %v17362_v28 = vpack.c.bf16 %v21951_v10, %v21951_v10  ;;  %v21953_v36 = vmax.f32 %v21875_v58, 0.0 }
 0x286   :  { %21930 = vst [vmem:[#allocation12_spill] sm:$0xff] %v17287_v13  ;;  %v21939_v13 = vld [vmem:[#allocation22_spill] sm:$0xff]  ;;  %v17327_v52 = vpack.c.bf16 %v21944_v54, %v21944_v54  ;;  %v17347_v54 = vpack.c.bf16 %v21948_v44, %v21948_v44  ;;  %v21959_v0 = vmax.f32 %v16985_v48, 0.0  ;;  %v21961_v58 = vmax.f32 %v16989_v8, 0.0 }
 0x287   :  { %21933 = vst [vmem:[#allocation11_spill] sm:$0xff] %v17292_v63  ;;  %v21940_v55 = vmax.f32 %v21939_v13, 0.0  ;;  %v21941_v63 = vld [vmem:[#allocation23_spill] sm:$0xff]  ;;  %v21945_v13 = vmax.f32 %v16933_v18, 0.0  ;;  %v21949_v18 = vmax.f32 %v16958_v20, 0.0  ;;  %21952 = vst [vmem:[#allocation14_spill] sm:$0xff] %v17362_v28  ;;  %v17367_v44 = vpack.c.bf16 %v21953_v36, %v21953_v36 }
 0x288   :  { %v21942_v50 = vmax.f32 %v21941_v63, 0.0  ;;  %v21946_v63 = vmax.f32 %v21870_v35, 0.0  ;;  %v21950_v35 = vmax.f32 %v21873_v4, 0.0  ;;  %v21955_v20 = vmax.f32 %v16977_v41, 0.0  ;;  %v21973_v59 = vld [vmem:[#allocation7_spill] sm:$0xff] }
 0x289   :  { %v17312_v51 = vpack.c.bf16 %v21940_v55, %v21940_v55  ;;  %v17332_v55 = vpack.c.bf16 %v21945_v13, %v21945_v13  ;;  %v17352_v13 = vpack.c.bf16 %v21949_v18, %v21949_v18  ;;  %21954 = vst [vmem:[#allocation16_spill] sm:$0xff] %v17367_v44  ;;  %v21957_v4 = vmax.f32 %v16981_v57, 0.0  ;;  %v21972_v16 = vld [vmem:[#allocation5_spill] sm:$0xff]  ;;  %v21974_v39 = vld [vmem:[#allocation10_spill] sm:$0xff] }
 0x28a   :  { %v17317_v6 = vpack.c.bf16 %v21942_v50, %v21942_v50  ;;  %v17337_v50 = vpack.c.bf16 %v21946_v63, %v21946_v63  ;;  %v17357_v63 = vpack.c.bf16 %v21950_v35, %v21950_v35  ;;  %v17372_v18 = vpack.c.bf16 %v21955_v20, %v21955_v20 }
 0x28b   :  { %v17377_v35 = vpack.c.bf16 %v21957_v4, %v21957_v4  ;;  %v17382_v10 = vpack.c.bf16 %v21959_v0, %v21959_v0  ;;  %v17387_v36 = vpack.c.bf16 %v21961_v58, %v21961_v58  ;;  %v21963_v41 = vmax.f32 %v21876_v29, 0.0 }
 0x28c   :  { %21956 = vst [vmem:[#allocation13_spill] sm:$0xff] %v17372_v18  ;;  %v21965_v57 = vmax.f32 %v16997_v2, 0.0  ;;  %v21967_v48 = vmax.f32 %v21877_v22, 0.0  ;;  %v21969_v8 = vmax.f32 %v17005_v56, 0.0  ;;  %v21980_v22 = vshrl.u32 %v17107_v60, 16 }
 0x28d   :  { %21958 = vst [vmem:[#allocation25_spill] sm:$0xff] %v17377_v35  ;;  %21960 = vst [vmem:[#allocation18_spill] sm:$0xff] %v17382_v10  ;;  %v17392_v20 = vpack.c.bf16 %v21963_v41, %v21963_v41  ;;  %v21975_v47 = vld [vmem:[#allocation12_spill] sm:$0xff]  ;;  %v21983_v41 = vshrl.u32 %v17122_v40, 16  ;;  %v21991_v44 = vshll.u32 %v17117_v62, 16 }
 0x28e   :  { %21962 = vst [vmem:[#allocation19_spill] sm:$0xff] %v17387_v36  ;;  %v17397_v4 = vpack.c.bf16 %v21965_v57, %v21965_v57  ;;  %v17402_v0 = vpack.c.bf16 %v21967_v48, %v21967_v48  ;;  %v17407_v58 = vpack.c.bf16 %v21969_v8, %v21969_v8  ;;  %v21976_v61 = vld [vmem:[#allocation11_spill] sm:$0xff]  ;;  %v21979_v57 = vshrl.u32 %v17102_v23, 16 }
 0x28f   :  { %21964 = vst [vmem:[#allocation21_spill] sm:$0xff] %v17392_v20  ;;  %v17537_v48 = vrot.slane %v21980_v22, 7  ;;  %v21982_v8 = vshrl.u32 %v17117_v62, 16  ;;  %v1624_v29 = vrot.slane %v21983_v41, 7  ;;  %v21984_v20 = vshrl.u32 %v17127_v15, 16 }
 0x290   :  { %21966 = vst [vmem:[#allocation22_spill] sm:$0xff] %v17397_v4  ;;  %21968 = vst [vmem:[#allocation23_spill] sm:$0xff] %v17402_v0  ;;  %v1590_v10 = vrot.slane %v21979_v57, 7  ;;  %v21981_v0 = vshrl.u32 %v17112_v1, 16  ;;  %v21986_v57 = vshrl.u32 %v17132_v7, 16  ;;  %v21987_v22 = vshll.u32 %v17102_v23, 16 }
 0x291   :  { %21970 = vst [vmem:[#allocation26_spill] sm:$0xff] %v17407_v58  ;;  %v17543_v4 = vrot.slane %v21982_v8, 7  ;;  %v17549_v2 = vrot.slane %v21984_v20, 7  ;;  %v21990_v41 = vshll.u32 %v17112_v1, 16  ;;  %v21994_v1 = vshll.u32 %v17127_v15, 16 }
 0x292   :  { %v1607_v56 = vrot.slane %v21981_v0, 7  ;;  %v1641_v58 = vrot.slane %v21986_v57, 7  ;;  %v17555_v18 = vor.u32 %v21987_v22, %v1590_v10  ;;  %v1594_v28 = vrot.slane %v1590_v10, 4  ;;  %v18074_v22 = vld [vmem:[#allocation2 + $0xa8] sm:$0xf] }
 0x293   :  { %21985 = vst [vmem:[#allocation5_spill] sm:$0xff] %v17549_v2  ;;  %v21989_v0 = vshll.u32 %v17107_v60, 16  ;;  %v1618_v57 = vor.u32 %v21991_v44, %v17543_v4  ;;  %v21995_v44 = vshll.u32 %v17132_v7, 16  ;;  %v21998_v15 = vshrl.u32 %v17142_v26, 16 }
 0x294   :  { %21988 = vst [vmem:[#allocation7_spill] sm:$0xff] %v17555_v18  ;;  %v17563_v35 = vor.u32 %v21990_v41, %v1607_v56  ;;  %v1611_v20 = vrot.slane %v1607_v56, 4  ;;  %v21993_v18 = vshll.u32 %v17122_v40, 16  ;;  %v1635_v41 = vor.u32 %v21994_v1, %v17549_v2 }
 0x295   :  { %v1601_v8 = vor.u32 %v21989_v0, %v17537_v48  ;;  %v1628_v0 = vrot.slane %v1624_v29, 4  ;;  %v17583_v23 = vor.u32 %v21995_v44, %v1641_v58  ;;  %v1645_v36 = vrot.slane %v1641_v58, 4 }
 0x296   :  { %v17573_v60 = vor.u32 %v21993_v18, %v1624_v29  ;;  %v1619_v56 = vsel %vm16375_vm6, %v1611_v20, %v1618_v57  ;;  %v1658_v29 = vrot.slane %v21998_v15, 7  ;;  %v22000_v7 = vshrl.u32 %v17152_v30, 16 }
 0x297   :  { %v1602_v10 = vsel %vm16375_vm6, %v1594_v28, %v1601_v8  ;;  %21996 = vst [vmem:[#allocation10_spill] sm:$0xff] %v17583_v23  ;;  %v1636_v40 = vsel %vm16375_vm6, %v1628_v0, %v1635_v41  ;;  %v21997_v28 = vshrl.u32 %v17137_v49, 16  ;;  %v21999_v8 = vshrl.u32 %v17147_v31, 16  ;;  %2239 = vst [vmem:[#allocation2 + $0x1c] sm:$0xf] %v1619_v56 }
 0x298   :  { %2232 = vst [vmem:[#allocation2 + $0x10] sm:$0xf] %v1602_v10  ;;  %v1675_v57 = vrot.slane %v22000_v7, 7  ;;  %v22001_v58 = vshrl.u32 %v17157_v17, 16  ;;  %v22002_v0 = vshrl.u32 %v17162_v19, 16  ;;  %v22003_v41 = vshrl.u32 %v17167_v14, 16 }
 0x299   :  { %v17589_v18 = vrot.slane %v21997_v28, 7  ;;  %v17595_v20 = vrot.slane %v21999_v8, 7  ;;  %2246 = vst [vmem:[#allocation2 + $0x28] sm:$0xf] %v1636_v40  ;;  %v22004_v28 = vshll.u32 %v17137_v49, 16  ;;  %v22005_v8 = vshll.u32 %v17142_v26, 16 }
 0x29a   :  { %v17601_v10 = vrot.slane %v22001_v58, 7  ;;  %v1692_v1 = vrot.slane %v22002_v0, 7  ;;  %v17607_v44 = vrot.slane %v22003_v41, 7  ;;  %v1662_v58 = vrot.slane %v1658_v29, 4 }
 0x29b   :  { %v1652_v15 = vor.u32 %v22004_v28, %v17589_v18  ;;  %v17615_v7 = vor.u32 %v22005_v8, %v1658_v29  ;;  %v22006_v62 = vshll.u32 %v17147_v31, 16  ;;  %v22007_v41 = vshll.u32 %v17152_v30, 16 }
 0x29c   :  { %v1679_v2 = vrot.slane %v1675_v57, 4  ;;  %v22008_v26 = vshll.u32 %v17157_v17, 16  ;;  %v22009_v8 = vshll.u32 %v17162_v19, 16  ;;  %v1696_v30 = vrot.slane %v1692_v1, 4 }
 0x29d   :  { %v1669_v0 = vor.u32 %v22006_v62, %v17595_v20  ;;  %v17623_v40 = vor.u32 %v22007_v41, %v1675_v57  ;;  %v1653_v49 = vsel %vm16375_vm6, %v1645_v36, %v1652_v15  ;;  %v22010_v57 = vshll.u32 %v17167_v14, 16 }
 0x29e   :  { %v1686_v28 = vor.u32 %v22008_v26, %v17601_v10  ;;  %v17633_v31 = vor.u32 %v22009_v8, %v1692_v1  ;;  %2253 = vst [vmem:[#allocation2 + $0x34] sm:$0xf] %v1653_v49  ;;  %v22011_v15 = vshrl.u32 %v17172_v37, 16  ;;  %v22012_v19 = vshrl.u32 %v17177_v9, 16 }
 0x29f   :  { %v1670_v62 = vsel %vm16375_vm6, %v1662_v58, %v1669_v0  ;;  %v1703_v41 = vor.u32 %v22010_v57, %v17607_v44  ;;  %v22013_v58 = vshrl.u32 %v17182_v3, 16  ;;  %v22014_v0 = vshrl.u32 %v17187_v24, 16 }
 0x2a0   :  { %v1687_v17 = vsel %vm16375_vm6, %v1679_v2, %v1686_v28  ;;  %v1709_v26 = vrot.slane %v22011_v15, 7  ;;  %v17647_v8 = vrot.slane %v22012_v19, 7  ;;  %2260 = vst [vmem:[#allocation2 + $0x40] sm:$0xf] %v1670_v62  ;;  %v22015_v2 = vshrl.u32 %v17192_v11, 16 }
 0x2a1   :  { %v1726_v1 = vrot.slane %v22013_v58, 7  ;;  %v1704_v14 = vsel %vm16375_vm6, %v1696_v30, %v1703_v41  ;;  %v17655_v49 = vrot.slane %v22014_v0, 7  ;;  %v22016_v57 = vshrl.u32 %v17197_v42, 16  ;;  %2267 = vst [vmem:[#allocation2 + $0x4c] sm:$0xf] %v1687_v17 }
 0x2a2   :  { %v1743_v28 = vrot.slane %v22015_v2, 7  ;;  %v22017_v19 = vshll.u32 %v17172_v37, 16  ;;  %v1713_v62 = vrot.slane %v1709_v26, 4  ;;  %v22018_v30 = vshll.u32 %v17177_v9, 16  ;;  %2274 = vst [vmem:[#allocation2 + $0x58] sm:$0xf] %v1704_v14 }
 0x2a3   :  { %v17661_v15 = vrot.slane %v22016_v57, 7  ;;  %v22019_v0 = vshll.u32 %v17182_v3, 16  ;;  %v1730_v29 = vrot.slane %v1726_v1, 4  ;;  %v22020_v17 = vshll.u32 %v17187_v24, 16 }
 0x2a4   :  { %v17665_v36 = vor.u32 %v22017_v19, %v1709_v26  ;;  %v1720_v41 = vor.u32 %v22018_v30, %v17647_v8  ;;  %v22021_v9 = vshll.u32 %v17192_v11, 16  ;;  %v1747_v30 = vrot.slane %v1743_v28, 4 }
 0x2a5   :  { %v17673_v2 = vor.u32 %v22019_v0, %v1726_v1  ;;  %v1737_v57 = vor.u32 %v22020_v17, %v17655_v49  ;;  %v22022_v3 = vshll.u32 %v17197_v42, 16  ;;  %v22023_v0 = vshrl.u32 %v17202_v27, 16 }
 0x2a6   :  { %v1721_v26 = vsel %vm16375_vm6, %v1713_v62, %v1720_v41  ;;  %v17683_v19 = vor.u32 %v22021_v9, %v1743_v28  ;;  %v22024_v37 = vshrl.u32 %v17207_v33, 16  ;;  %v22025_v28 = vshrl.u32 %v17212_v43, 16 }
 0x2a7   :  { %v1754_v14 = vor.u32 %v22022_v3, %v17661_v15  ;;  %v1738_v1 = vsel %vm16375_vm6, %v1730_v29, %v1737_v57  ;;  %v1760_v17 = vrot.slane %v22023_v0, 7  ;;  %2281 = vst [vmem:[#allocation2 + $0x64] sm:$0xf] %v1721_v26  ;;  %v22026_v41 = vshrl.u32 %v17217_v25, 16 }
 0x2a8   :  { %v17695_v62 = vrot.slane %v22024_v37, 7  ;;  %v1777_v42 = vrot.slane %v22025_v28, 7  ;;  %v22027_v29 = vshrl.u32 %v17222_v53, 16  ;;  %2288 = vst [vmem:[#allocation2 + $0x70] sm:$0xf] %v1738_v1  ;;  %v22028_v3 = vshll.u32 %v17202_v27, 16 }
 0x2a9   :  { %v1755_v11 = vsel %vm16375_vm6, %v1747_v30, %v1754_v14  ;;  %v17703_v9 = vrot.slane %v22026_v41, 7  ;;  %v1764_v37 = vrot.slane %v1760_v17, 4  ;;  %v22029_v26 = vshll.u32 %v17207_v33, 16  ;;  %v22038_v14 = vld [vmem:[#allocation20_spill] sm:$0xff] }
 0x2aa   :  { %v1794_v57 = vrot.slane %v22027_v29, 7  ;;  %v17709_v0 = vor.u32 %v22028_v3, %v1760_v17  ;;  %2295 = vst [vmem:[#allocation2 + $0x7c] sm:$0xf] %v1755_v11  ;;  %v22030_v28 = vshll.u32 %v17212_v43, 16  ;;  %v1781_v24 = vrot.slane %v1777_v42, 4 }
 0x2ab   :  { %v1771_v30 = vor.u32 %v22029_v26, %v17695_v62  ;;  %v22031_v1 = vshll.u32 %v17217_v25, 16  ;;  %v22032_v33 = vshll.u32 %v17222_v53, 16  ;;  %v22034_v11 = vshrl.u32 %v17227_v32, 16 }
 0x2ac   :  { %v17717_v41 = vor.u32 %v22030_v28, %v1777_v42  ;;  %v1798_v26 = vrot.slane %v1794_v57, 4  ;;  %v22036_v28 = vld [vmem:[#allocation9_spill] sm:$0xff]  ;;  %v22039_v27 = vshrl.u32 %v22038_v14, 16  ;;  %v22044_v23 = vshrl.u32 %v17247_v38, 16 }
 0x2ad   :  { %v1788_v29 = vor.u32 %v22031_v1, %v17703_v9  ;;  %v1772_v17 = vsel %vm16375_vm6, %v1764_v37, %v1771_v30  ;;  %v17727_v3 = vor.u32 %v22032_v33, %v1794_v57  ;;  %v17731_v43 = vrot.slane %v22034_v11, 7  ;;  %v22041_v37 = vld [vmem:[#allocation15_spill] sm:$0xff] }
 0x2ae   :  { %v22037_v25 = vshrl.u32 %v22036_v28, 16  ;;  %v17739_v58 = vrot.slane %v22039_v27, 7  ;;  %v22042_v30 = vshrl.u32 %v22041_v37, 16  ;;  %2302 = vst [vmem:[#allocation2 + $0x88] sm:$0xf] %v1772_v17  ;;  %v22043_v57 = vshll.u32 %v17227_v32, 16 }
 0x2af   :  { %22033 = vst [vmem:[#allocation12_spill] sm:$0xff] %v17727_v3  ;;  %22035 = vst [vmem:[#allocation11_spill] sm:$0xff] %v17731_v43  ;;  %v1789_v42 = vsel %vm16375_vm6, %v1781_v24, %v1788_v29  ;;  %v17749_v24 = vrot.slane %v22044_v23, 7  ;;  %v22046_v29 = vld [vmem:[#allocation4_spill] sm:$0xff]  ;;  %v22048_v27 = vshll.u32 %v22036_v28, 16  ;;  %v22049_v17 = vshll.u32 %v22038_v14, 16 }
 0x2b0   :  { %v1811_v1 = vrot.slane %v22037_v25, 7  ;;  %22040 = vst [vmem:[#allocation17_spill] sm:$0xff] %v17739_v58  ;;  %v1828_v53 = vrot.slane %v22042_v30, 7  ;;  %v1805_v33 = vor.u32 %v22043_v57, %v17731_v43  ;;  %v22047_v25 = vshrl.u32 %v22046_v29, 16  ;;  %2309 = vst [vmem:[#allocation2 + $0x94] sm:$0xf] %v1789_v42 }
 0x2b1   :  { %22045 = vst [vmem:[#allocation9_spill] sm:$0xff] %v17749_v24  ;;  %v1822_v32 = vor.u32 %v22049_v17, %v17739_v58  ;;  %v22050_v23 = vshll.u32 %v22041_v37, 16  ;;  %v22052_v42 = vshll.u32 %v17247_v38, 16  ;;  %v22055_v37 = vld [vmem:[#allocation24_spill] sm:$0xff] }
 0x2b2   :  { %v1845_v56 = vrot.slane %v22047_v25, 7  ;;  %v17755_v3 = vor.u32 %v22048_v27, %v1811_v1  ;;  %v1815_v30 = vrot.slane %v1811_v1, 4  ;;  %v1806_v11 = vsel %vm16375_vm6, %v1798_v26, %v1805_v33  ;;  %v22057_v38 = vld [vmem:[#allocation8_spill] sm:$0xff] }
 0x2b3   :  { %v17765_v43 = vor.u32 %v22050_v23, %v1828_v53  ;;  %v1832_v25 = vrot.slane %v1828_v53, 4  ;;  %v1839_v28 = vor.u32 %v22052_v42, %v17749_v24  ;;  %v22053_v27 = vshll.u32 %v22046_v29, 16  ;;  %2316 = vst [vmem:[#allocation2 + $0xa0] sm:$0xf] %v1806_v11 }
 0x2b4   :  { %v1823_v1 = vsel %vm16375_vm6, %v1815_v30, %v1822_v32  ;;  %v1849_v57 = vrot.slane %v1845_v56, 4  ;;  %v22056_v53 = vshrl.u32 %v22055_v37, 16  ;;  %v22058_v23 = vshrl.u32 %v22057_v38, 16 }
 0x2b5   :  { %22051 = vst [vmem:[#allocation20_spill] sm:$0xff] %v17765_v43  ;;  %v17775_v17 = vor.u32 %v22053_v27, %v1845_v56  ;;  %v1840_v26 = vsel %vm16375_vm6, %v1832_v25, %v1839_v28  ;;  %v22059_v30 = vshrl.u32 %v21972_v16, 16  ;;  %2323 = vst [vmem:[#allocation2 + $0xac] sm:$0xf] %v1823_v1  ;;  %v22060_v29 = vshrl.u32 %v21973_v59, 16 }
 0x2b6   :  { %v17781_v33 = vrot.slane %v22056_v53, 7  ;;  %v1862_v42 = vrot.slane %v22058_v23, 7  ;;  %v22061_v56 = vshrl.u32 %v17277_v5, 16  ;;  %v22063_v25 = vshrl.u32 %v21974_v39, 16  ;;  %2330 = vst [vmem:[#allocation2 + $0xb8] sm:$0xf] %v1840_v26 }
 0x2b7   :  { %22054 = vst [vmem:[#allocation15_spill] sm:$0xff] %v17775_v17  ;;  %v17787_v32 = vrot.slane %v22059_v30, 7  ;;  %v1879_v27 = vrot.slane %v22060_v29, 7  ;;  %v22064_v53 = vshrl.u32 %v21975_v47, 16  ;;  %v22066_v23 = vshll.u32 %v22055_v37, 16 }
 0x2b8   :  { %v17793_v11 = vrot.slane %v22061_v56, 7  ;;  %v1896_v28 = vrot.slane %v22063_v25, 7  ;;  %v22067_v29 = vshll.u32 %v22057_v38, 16  ;;  %v1866_v56 = vrot.slane %v1862_v42, 4 }
 0x2b9   :  { %v17799_v14 = vrot.slane %v22064_v53, 7  ;;  %v1856_v30 = vor.u32 %v22066_v23, %v17781_v33  ;;  %v22068_v24 = vshll.u32 %v21972_v16, 16  ;;  %v22069_v53 = vshll.u32 %v21973_v59, 16 }
 0x2ba   :  { %22062 = vst [vmem:[#allocation4_spill] sm:$0xff] %v17793_v11  ;;  %v17807_v17 = vor.u32 %v22067_v29, %v1862_v42  ;;  %v1883_v58 = vrot.slane %v1879_v27, 4  ;;  %v22071_v38 = vshll.u32 %v17277_v5, 16  ;;  %v22072_v29 = vshll.u32 %v21974_v39, 16 }
 0x2bb   :  { %22065 = vst [vmem:[#allocation24_spill] sm:$0xff] %v17799_v14  ;;  %v1873_v25 = vor.u32 %v22068_v24, %v17787_v32  ;;  %v17815_v26 = vor.u32 %v22069_v53, %v1879_v27  ;;  %v1857_v37 = vsel %vm16375_vm6, %v1849_v57, %v1856_v30  ;;  %v1900_v59 = vrot.slane %v1896_v28, 4 }
 0x2bc   :  { %v1890_v23 = vor.u32 %v22071_v38, %v17793_v11  ;;  %v17825_v16 = vor.u32 %v22072_v29, %v1896_v28  ;;  %v22074_v27 = vshll.u32 %v21975_v47, 16  ;;  %2337 = vst [vmem:[#allocation2 + $0xc4] sm:$0xf] %v1857_v37  ;;  %v22075_v30 = vshrl.u32 %v21976_v61, 16  ;;  %v18055_v11 = vld [vmem:[#allocation2 + $0x98] sm:$0x1] }
 0x2bd   :  { %22070 = vst [vmem:[#allocation8_spill] sm:$0xff] %v17815_v26  ;;  %v1874_v24 = vsel %vm16375_vm6, %v1866_v56, %v1873_v25  ;;  %v22076_v39 = vshrl.u32 %v17297_v45, 16  ;;  %v22078_v56 = vshrl.u32 %v17302_v46, 16  ;;  %v22079_v25 = vshrl.u32 %v17307_v21, 16  ;;  %v18057_v26 = vld [vmem:[#allocation2 + $0x9c] sm:$0xf] }
 0x2be   :  { %22073 = vst [vmem:[#allocation27_spill] sm:$0xff] %v17825_v16  ;;  %v1907_v53 = vor.u32 %v22074_v27, %v17799_v14  ;;  %v1891_v5 = vsel %vm16375_vm6, %v1883_v58, %v1890_v23  ;;  %v1913_v38 = vrot.slane %v22075_v30, 7  ;;  %2344 = vst [vmem:[#allocation2 + $0xe8] sm:$0xf] %v1874_v24  ;;  %v22081_v58 = vshrl.u32 %v17312_v51, 16 }
 0x2bf   :  { %v17839_v29 = vrot.slane %v22076_v39, 7  ;;  %v1930_v28 = vrot.slane %v22078_v56, 7  ;;  %v17847_v37 = vrot.slane %v22079_v25, 7  ;;  %v22082_v27 = vshrl.u32 %v17317_v6, 16  ;;  %2351 = vst [vmem:[#allocation2 + $0xf4] sm:$0xf] %v1891_v5 }
 0x2c0   :  { %v1908_v47 = vsel %vm16375_vm6, %v1900_v59, %v1907_v53  ;;  %v1947_v23 = vrot.slane %v22081_v58, 7  ;;  %v22084_v39 = vshll.u32 %v21976_v61, 16  ;;  %v1917_v24 = vrot.slane %v1913_v38, 4  ;;  %v2289_v14 = vld [vmem:[#allocation2 + $0x74] sm:$0x1] }
 0x2c1   :  { %22077 = vst [vmem:[#allocation28_spill] sm:$0xff] %v17839_v29  ;;  %22080 = vst [vmem:[#allocation29_spill] sm:$0xff] %v17847_v37  ;;  %v17853_v30 = vrot.slane %v22082_v27, 7  ;;  %v22086_v59 = vshll.u32 %v17297_v45, 16  ;;  %v22087_v25 = vshll.u32 %v17302_v46, 16  ;;  %v1934_v42 = vrot.slane %v1930_v28, 4 }
 0x2c2   :  { %v17857_v57 = vor.u32 %v22084_v39, %v1913_v38  ;;  %2358 = vst [vmem:[#allocation2 + $0x100] sm:$0xf] %v1908_v47  ;;  %v22089_v5 = vshll.u32 %v17307_v21, 16  ;;  %v22090_v45 = vshll.u32 %v17312_v51, 16  ;;  %v22092_v46 = vshll.u32 %v17317_v6, 16 }
 0x2c3   :  { %22083 = vst [vmem:[#allocation30_spill] sm:$0xff] %v17853_v30  ;;  %v1924_v53 = vor.u32 %v22086_v59, %v17839_v29  ;;  %v17865_v58 = vor.u32 %v22087_v25, %v1930_v28  ;;  %v1951_v59 = vrot.slane %v1947_v23, 4  ;;  %v22093_v25 = vshrl.u32 %v17322_v12, 16 }
 0x2c4   :  { %22085 = vst [vmem:[#allocation31_spill] sm:$0xff] %v17857_v57  ;;  %v1941_v27 = vor.u32 %v22089_v5, %v17847_v37  ;;  %v17875_v39 = vor.u32 %v22090_v45, %v1947_v23  ;;  %v1958_v47 = vor.u32 %v22092_v46, %v17853_v30  ;;  %v22094_v61 = vshrl.u32 %v17327_v52, 16  ;;  %v2254_v37 = vld [vmem:[#allocation2 + $0x38] sm:$0x1]  ;;  %v18037_v57 = vld [vmem:[#allocation2 + $0x84] sm:$0xf] }
 0x2c5   :  { %22088 = vst [vmem:[#allocation32_spill] sm:$0xff] %v17865_v58  ;;  %v1925_v38 = vsel %vm16375_vm6, %v1917_v24, %v1924_v53  ;;  %v1964_v5 = vrot.slane %v22093_v25, 7  ;;  %v22096_v23 = vshrl.u32 %v17332_v55, 16  ;;  %v22097_v53 = vshrl.u32 %v17337_v50, 16  ;;  %v2257_v58 = vld [vmem:[#allocation2 + $0x3c] sm:$0xf] }
 0x2c6   :  { %22091 = vst [vmem:[#allocation33_spill] sm:$0xff] %v17875_v39  ;;  %v1942_v28 = vsel %vm16375_vm6, %v1934_v42, %v1941_v27  ;;  %v17887_v24 = vrot.slane %v22094_v61, 7  ;;  %2365 = vst [vmem:[#allocation2 + $0x10c] sm:$0xf] %v1925_v38  ;;  %v1959_v51 = vsel %vm16375_vm6, %v1951_v59, %v1958_v47  ;;  %v22099_v42 = vshrl.u32 %v17342_v34, 16  ;;  %v22116_v47 = vld [vmem:[#allocation16_spill] sm:$0xff] }
 0x2c7   :  { %v1981_v6 = vrot.slane %v22096_v23, 7  ;;  %v17895_v45 = vrot.slane %v22097_v53, 7  ;;  %2372 = vst [vmem:[#allocation2 + $0x118] sm:$0xf] %v1942_v28  ;;  %v22100_v46 = vshll.u32 %v17322_v12, 16  ;;  %v1968_v61 = vrot.slane %v1964_v5, 4 }
 0x2c8   :  { %22095 = vst [vmem:[#allocation34_spill] sm:$0xff] %v17887_v24  ;;  %v1998_v27 = vrot.slane %v22099_v42, 7  ;;  %v22102_v38 = vshll.u32 %v17327_v52, 16  ;;  %2379 = vst [vmem:[#allocation2 + $0x124] sm:$0xf] %v1959_v51  ;;  %v22103_v23 = vshll.u32 %v17332_v55, 16 }
 0x2c9   :  { %22098 = vst [vmem:[#allocation35_spill] sm:$0xff] %v17895_v45  ;;  %v17901_v25 = vor.u32 %v22100_v46, %v1964_v5  ;;  %v1985_v21 = vrot.slane %v1981_v6, 4  ;;  %v22105_v28 = vshll.u32 %v17337_v50, 16  ;;  %v22106_v52 = vshll.u32 %v17342_v34, 16 }
 0x2ca   :  { %v1975_v59 = vor.u32 %v22102_v38, %v17887_v24  ;;  %v17909_v53 = vor.u32 %v22103_v23, %v1981_v6  ;;  %v2002_v38 = vrot.slane %v1998_v27, 4  ;;  %v22108_v51 = vshrl.u32 %v17347_v54, 16 }
 0x2cb   :  { %22101 = vst [vmem:[#allocation36_spill] sm:$0xff] %v17901_v25  ;;  %v1992_v42 = vor.u32 %v22105_v28, %v17895_v45  ;;  %v17919_v46 = vor.u32 %v22106_v52, %v1998_v27  ;;  %v22110_v50 = vshrl.u32 %v17352_v13, 16  ;;  %v22111_v28 = vshrl.u32 %v17357_v63, 16 }
 0x2cc   :  { %22104 = vst [vmem:[#allocation37_spill] sm:$0xff] %v17909_v53  ;;  %v1976_v5 = vsel %vm16375_vm6, %v1968_v61, %v1975_v59  ;;  %v17923_v55 = vrot.slane %v22108_v51, 7  ;;  %v22113_v61 = vld [vmem:[#allocation14_spill] sm:$0xff]  ;;  %v22115_v27 = vshll.u32 %v17347_v54, 16  ;;  %v22117_v56 = vshrl.u32 %v22116_v47, 16 }
 0x2cd   :  { %22107 = vst [vmem:[#allocation38_spill] sm:$0xff] %v17919_v46  ;;  %v1993_v6 = vsel %vm16375_vm6, %v1985_v21, %v1992_v42  ;;  %v2015_v23 = vrot.slane %v22110_v50, 7  ;;  %v17931_v12 = vrot.slane %v22111_v28, 7  ;;  %v22114_v59 = vshrl.u32 %v22113_v61, 16  ;;  %2386 = vst [vmem:[#allocation2 + $0x130] sm:$0xf] %v1976_v5 }
 0x2ce   :  { %22109 = vst [vmem:[#allocation39_spill] sm:$0xff] %v17923_v55  ;;  %v2009_v52 = vor.u32 %v22115_v27, %v17923_v55  ;;  %v17941_v21 = vrot.slane %v22117_v56, 7  ;;  %v22119_v42 = vld [vmem:[#allocation13_spill] sm:$0xff]  ;;  %2393 = vst [vmem:[#allocation2 + $0x13c] sm:$0xf] %v1993_v6  ;;  %v22121_v28 = vshll.u32 %v17352_v13, 16 }
 0x2cf   :  { %22112 = vst [vmem:[#allocation40_spill] sm:$0xff] %v17931_v12  ;;  %v2032_v34 = vrot.slane %v22114_v59, 7  ;;  %v22120_v50 = vshrl.u32 %v22119_v42, 16  ;;  %v2019_v59 = vrot.slane %v2015_v23, 4  ;;  %v22123_v5 = vshll.u32 %v17357_v63, 16  ;;  %v22144_v46 = vld [vmem:[#allocation26_spill] sm:$0xff] }
 0x2d0   :  { %22118 = vst [vmem:[#allocation14_spill] sm:$0xff] %v17941_v21  ;;  %v17947_v1 = vor.u32 %v22121_v28, %v2015_v23  ;;  %v2010_v51 = vsel %vm16375_vm6, %v2002_v38, %v2009_v52  ;;  %v22124_v56 = vshll.u32 %v22113_v61, 16  ;;  %v22126_v13 = vshll.u32 %v22116_v47, 16  ;;  %v22129_v61 = vld [vmem:[#allocation25_spill] sm:$0xff]  ;;  %v22132_v47 = vld [vmem:[#allocation18_spill] sm:$0xff] }
 0x2d1   :  { %v2049_v43 = vrot.slane %v22120_v50, 7  ;;  %v2026_v54 = vor.u32 %v22123_v5, %v17931_v12  ;;  %v2036_v50 = vrot.slane %v2032_v34, 4  ;;  %v22127_v28 = vshll.u32 %v22119_v42, 16  ;;  %2400 = vst [vmem:[#allocation2 + $0x148] sm:$0xf] %v2010_v51 }
 0x2d2   :  { %22122 = vst [vmem:[#allocation16_spill] sm:$0xff] %v17947_v1  ;;  %v17957_v55 = vor.u32 %v22124_v56, %v2032_v34  ;;  %v2043_v6 = vor.u32 %v22126_v13, %v17941_v21  ;;  %v22130_v34 = vshrl.u32 %v22129_v61, 16  ;;  %v22133_v56 = vshrl.u32 %v22132_v47, 16  ;;  %v2236_v42 = vld [vmem:[#allocation2 + $0x18] sm:$0xf]  ;;  %v22139_v21 = vld [vmem:[#allocation22_spill] sm:$0xff] }
 0x2d3   :  { %v2027_v23 = vsel %vm16375_vm6, %v2019_v59, %v2026_v54  ;;  %v17967_v5 = vor.u32 %v22127_v28, %v2049_v43  ;;  %v2053_v27 = vrot.slane %v2049_v43, 4  ;;  %v2229_v28 = vld [vmem:[#allocation2 + $0xc] sm:$0xf]  ;;  %v2233_v63 = vld [vmem:[#allocation2 + $0x14] sm:$0x1]  ;;  %v22137_v43 = vld [vmem:[#allocation21_spill] sm:$0xff] }
 0x2d4   :  { %22125 = vst [vmem:[#allocation13_spill] sm:$0xff] %v17957_v55  ;;  %v2044_v38 = vsel %vm16375_vm6, %v2036_v50, %v2043_v6  ;;  %v17973_v52 = vrot.slane %v22130_v34, 7  ;;  %v2066_v13 = vrot.slane %v22133_v56, 7  ;;  %v22134_v55 = vld [vmem:[#allocation19_spill] sm:$0xff]  ;;  %2407 = vst [vmem:[#allocation2 + $0x154] sm:$0xf] %v2027_v23 }
 0x2d5   :  { %22128 = vst [vmem:[#allocation41_spill] sm:$0xff] %v17967_v5  ;;  %v22135_v59 = vshrl.u32 %v22134_v55, 16  ;;  %v22138_v51 = vshrl.u32 %v22137_v43, 16  ;;  %v22140_v50 = vshrl.u32 %v22139_v21, 16  ;;  %v22142_v34 = vld [vmem:[#allocation23_spill] sm:$0xff]  ;;  %v22145_v56 = vshrl.u32 %v22144_v46, 16 }
 0x2d6   :  { %22131 = vst [vmem:[#allocation25_spill] sm:$0xff] %v17973_v52  ;;  %v22143_v12 = vshrl.u32 %v22142_v34, 16  ;;  %2414 = vst [vmem:[#allocation2 + $0x160] sm:$0xf] %v2044_v38  ;;  %v2243_v23 = vld [vmem:[#allocation2 + $0x24] sm:$0xf] }
 0x2d7   :  { %v17979_v54 = vrot.slane %v22135_v59, 7  ;;  %v2083_v5 = vrot.slane %v22138_v51, 7  ;;  %v17985_v6 = vrot.slane %v22140_v50, 7  ;;  %v17991_v45 = vrot.slane %v22145_v56, 7  ;;  %v2240_v59 = vld [vmem:[#allocation2 + $0x20] sm:$0x1] }
 0x2d8   :  { %v2117_v1 = vrot.slane %v22143_v12, 7  ;;  %v2247_v53 = vld [vmem:[#allocation2 + $0x2c] sm:$0x1]  ;;  %v22147_v24 = vshll.u32 %v22129_v61, 16  ;;  %v22148_v50 = vshll.u32 %v22132_v47, 16  ;;  %v2070_v39 = vrot.slane %v2066_v13, 4 }
 0x2d9   :  { %22136 = vst [vmem:[#allocation18_spill] sm:$0xff] %v17979_v54  ;;  %22141 = vst [vmem:[#allocation19_spill] sm:$0xff] %v17985_v6  ;;  %v2250_v12 = vld [vmem:[#allocation2 + $0x30] sm:$0xf]  ;;  %v2261_v56 = vld [vmem:[#allocation2 + $0x44] sm:$0x1] }
 0x2da   :  { %22146 = vst [vmem:[#allocation21_spill] sm:$0xff] %v17991_v45  ;;  %v2060_v25 = vor.u32 %v22147_v24, %v17973_v52  ;;  %v17999_v30 = vor.u32 %v22148_v50, %v2066_v13  ;;  %v22150_v38 = vshll.u32 %v22134_v55, 16  ;;  %v22151_v61 = vshll.u32 %v22137_v43, 16  ;;  %v18009_v52 = vld [vmem:[#allocation2 + $0x48] sm:$0xf] }
 0x2db   :  { %v2087_v51 = vrot.slane %v2083_v5, 4  ;;  %v2268_v47 = vld [vmem:[#allocation2 + $0x50] sm:$0x1]  ;;  %v18011_v50 = vld [vmem:[#allocation2 + $0x54] sm:$0xf]  ;;  %v22153_v55 = vshll.u32 %v22139_v21, 16 }
 0x2dc   :  { %22149 = vst [vmem:[#allocation22_spill] sm:$0xff] %v17999_v30  ;;  %v2077_v29 = vor.u32 %v22150_v38, %v17979_v54  ;;  %v18007_v24 = vor.u32 %v22151_v61, %v2083_v5  ;;  %v2275_v13 = vld [vmem:[#allocation2 + $0x5c] sm:$0x1]  ;;  %v2061_v30 = vsel %vm16375_vm6, %v2053_v27, %v2060_v25  ;;  %v22154_v43 = vshll.u32 %v22142_v34, 16  ;;  %v18023_v5 = vld [vmem:[#allocation2 + $0x60] sm:$0xf] }
 0x2dd   :  { %v2094_v38 = vor.u32 %v22153_v55, %v17985_v6  ;;  %v18025_v54 = vld [vmem:[#allocation2 + $0x6c] sm:$0xf]  ;;  %v2121_v25 = vrot.slane %v2117_v1, 4  ;;  %v22156_v21 = vshll.u32 %v22144_v46, 16  ;;  %2421 = vst [vmem:[#allocation2 + $0x16c] sm:$0xf] %v2061_v30  ;;  %v2237_v55 = vsel %vm16952_vm8, %v17563_v35, %v2236_v42 }
 0x2de   :  { %22152 = vst [vmem:[#allocation23_spill] sm:$0xff] %v18007_v24  ;;  %v18021_v61 = vor.u32 %v22154_v43, %v2117_v1  ;;  %v2282_v24 = vld [vmem:[#allocation2 + $0x68] sm:$0x1]  ;;  %v2078_v16 = vsel %vm16375_vm6, %v2070_v39, %v2077_v29  ;;  %v18033_v34 = vld [vmem:[#allocation2 + $0x78] sm:$0xf]  ;;  %v22157_v29 = vld [vmem:[#allocation7_spill] sm:$0xff] }
 0x2df   :  { %v2128_v27 = vor.u32 %v22156_v21, %v17991_v45  ;;  %v18035_v43 = vld [vmem:[#allocation2 + $0x80] sm:$0x1]  ;;  %v2095_v6 = vsel %vm16375_vm6, %v2087_v51, %v2094_v38  ;;  %v2230_v39 = vsel %vm16952_vm8, %v22157_v29, %v2229_v28  ;;  %v22159_v46 = vrot.slane %v17537_v48, 4  ;;  %2428 = vst [vmem:[#allocation2 + $0x178] sm:$0xf] %v2078_v16 }
 0x2e0   :  { %22155 = vst [vmem:[#allocation26_spill] sm:$0xff] %v18021_v61  ;;  %v18039_v61 = vld [vmem:[#allocation2 + $0x8c] sm:$0x1]  ;;  %v18053_v45 = vld [vmem:[#allocation2 + $0x90] sm:$0xf]  ;;  %v22161_v48 = vrot.slane %v17543_v4, 4  ;;  %v2244_v16 = vsel %vm16952_vm8, %v17573_v60, %v2243_v23 }
 0x2e1   :  { %v2234_v30 = vsel %vm15455_vm3, %v22159_v46, %v2233_v63  ;;  %v18059_v51 = vld [vmem:[#allocation2 + $0xa4] sm:$0x1]  ;;  %v2129_v28 = vsel %vm16375_vm6, %v2121_v25, %v2128_v27  ;;  %2231 = vst [vmem:[#allocation2 + $0xc] sm:$0xf] %v2230_v39  ;;  %2238 = vst [vmem:[#allocation2 + $0x18] sm:$0xf] %v2237_v55 }
 0x2e2   :  { %2235 = vst [vmem:[#allocation2 + $0x14] sm:$0x1] %v2234_v30  ;;  %v2241_v35 = vsel %vm15455_vm3, %v22161_v48, %v2240_v59  ;;  %v22162_v63 = vld [vmem:[#allocation5_spill] sm:$0xff]  ;;  %2435 = vst [vmem:[#allocation2 + $0x184] sm:$0xf] %v2095_v6  ;;  %v22164_v4 = vld [vmem:[#allocation10_spill] sm:$0xff] }
 0x2e3   :  { %v22163_v42 = vrot.slane %v22162_v63, 4  ;;  %v18076_v25 = vld [vmem:[#allocation2 + $0xb0] sm:$0x1]  ;;  %v18078_v27 = vld [vmem:[#allocation2 + $0xb4] sm:$0xf]  ;;  %v2251_v59 = vsel %vm16952_vm8, %v22164_v4, %v2250_v12  ;;  %v22165_v60 = vrot.slane %v17589_v18, 4  ;;  %v2265_v18 = vsel %vm16952_vm8, %v17623_v40, %v18009_v52 }
 0x2e4   :  { %2242 = vst [vmem:[#allocation2 + $0x20] sm:$0x1] %v2241_v35  ;;  %2245 = vst [vmem:[#allocation2 + $0x24] sm:$0xf] %v2244_v16  ;;  %v22166_v6 = vrot.slane %v17595_v20, 4  ;;  %v22167_v20 = vrot.slane %v17601_v10, 4  ;;  %v2279_v10 = vsel %vm16952_vm8, %v17665_v36, %v18023_v5 }
 0x2e5   :  { %v2248_v38 = vsel %vm15455_vm3, %v22163_v42, %v2247_v53  ;;  %v2255_v23 = vsel %vm15455_vm3, %v22165_v60, %v2254_v37  ;;  %v2258_v53 = vsel %vm16952_vm8, %v17615_v7, %v2257_v58  ;;  %2449 = vst [vmem:[#allocation2 + $0x19c] sm:$0xf] %v2129_v28  ;;  %v18094_v29 = vld [vmem:[#allocation2 + $0xc0] sm:$0xf]  ;;  %v18096_v39 = vld [vmem:[#allocation2 + $0xc8] sm:$0x1]  ;;  %v2272_v37 = vsel %vm16952_vm8, %v17633_v31, %v18011_v50 }
 0x2e6   :  { %2249 = vst [vmem:[#allocation2 + $0x2c] sm:$0x1] %v2248_v38  ;;  %v2262_v55 = vsel %vm15455_vm3, %v22166_v6, %v2261_v56  ;;  %v2331_v12 = vld [vmem:[#allocation2 + $0xbc] sm:$0x1]  ;;  %v18098_v46 = vld [vmem:[#allocation2 + $0xe4] sm:$0xf]  ;;  %v2269_v7 = vsel %vm15455_vm3, %v22167_v20, %v2268_v47  ;;  %v2286_v47 = vsel %vm16952_vm8, %v17673_v2, %v18025_v54  ;;  %v2300_v54 = vsel %vm16952_vm8, %v17709_v0, %v18037_v57 }
 0x2e7   :  { %2252 = vst [vmem:[#allocation2 + $0x30] sm:$0xf] %v2251_v59  ;;  %2256 = vst [vmem:[#allocation2 + $0x38] sm:$0x1] %v2255_v23  ;;  %v22168_v58 = vrot.slane %v17607_v44, 4  ;;  %v22169_v44 = vrot.slane %v17647_v8, 4 }
 0x2e8   :  { %2259 = vst [vmem:[#allocation2 + $0x3c] sm:$0xf] %v2258_v53  ;;  %2263 = vst [vmem:[#allocation2 + $0x44] sm:$0x1] %v2262_v55  ;;  %v18116_v30 = vld [vmem:[#allocation2 + $0xf0] sm:$0xf] }
 0x2e9   :  { %v2276_v56 = vsel %vm15455_vm3, %v22168_v58, %v2275_v13  ;;  %v18118_v28 = vld [vmem:[#allocation2 + $0xf8] sm:$0x1]  ;;  %v2345_v40 = vld [vmem:[#allocation2 + $0xec] sm:$0x1]  ;;  %v18120_v52 = vld [vmem:[#allocation2 + $0xfc] sm:$0xf]  ;;  %v2283_v31 = vsel %vm15455_vm3, %v22169_v44, %v2282_v24 }
 0x2ea   :  { %2266 = vst [vmem:[#allocation2 + $0x48] sm:$0xf] %v2265_v18  ;;  %2270 = vst [vmem:[#allocation2 + $0x50] sm:$0x1] %v2269_v7  ;;  %v22170_v50 = vrot.slane %v17655_v49, 4  ;;  %v2293_v49 = vsel %vm16952_vm8, %v17683_v19, %v18033_v34  ;;  %v22171_v2 = vrot.slane %v17661_v15, 4  ;;  %v2307_v15 = vsel %vm16952_vm8, %v17717_v41, %v18053_v45 }
 0x2eb   :  { %2273 = vst [vmem:[#allocation2 + $0x54] sm:$0xf] %v2272_v37  ;;  %2277 = vst [vmem:[#allocation2 + $0x5c] sm:$0x1] %v2276_v56  ;;  %v18138_v48 = vld [vmem:[#allocation2 + $0x108] sm:$0xf] }
 0x2ec   :  { %v2290_v13 = vsel %vm15455_vm3, %v22170_v50, %v2289_v14  ;;  %v18140_v35 = vld [vmem:[#allocation2 + $0x110] sm:$0x1]  ;;  %v2359_v36 = vld [vmem:[#allocation2 + $0x104] sm:$0x1]  ;;  %v18142_v5 = vld [vmem:[#allocation2 + $0x114] sm:$0xf]  ;;  %v2297_v14 = vsel %vm15455_vm3, %v22171_v2, %v18035_v43 }
 0x2ed   :  { %v18144_v8 = vld [vmem:[#allocation2 + $0x11c] sm:$0x1]  ;;  %2280 = vst [vmem:[#allocation2 + $0x60] sm:$0xf] %v2279_v10  ;;  %2284 = vst [vmem:[#allocation2 + $0x68] sm:$0x1] %v2283_v31 }
 0x2ee   :  { %2287 = vst [vmem:[#allocation2 + $0x6c] sm:$0xf] %v2286_v47  ;;  %2291 = vst [vmem:[#allocation2 + $0x74] sm:$0x1] %v2290_v13  ;;  %v22172_v24 = vrot.slane %v17695_v62, 4  ;;  %v22173_v62 = vrot.slane %v17703_v9, 4  ;;  %v2321_v9 = vsel %vm16952_vm8, %v17755_v3, %v18074_v22 }
 0x2ef   :  { %v18164_v63 = vld [vmem:[#allocation2 + $0x120] sm:$0xf]  ;;  %v2380_v19 = vld [vmem:[#allocation2 + $0x128] sm:$0x1]  ;;  %v18166_v34 = vld [vmem:[#allocation2 + $0x12c] sm:$0xf] }
 0x2f0   :  { %v2304_v16 = vsel %vm15455_vm3, %v22172_v24, %v18039_v61  ;;  %2294 = vst [vmem:[#allocation2 + $0x78] sm:$0xf] %v2293_v49  ;;  %2298 = vst [vmem:[#allocation2 + $0x80] sm:$0x1] %v2297_v14  ;;  %v2311_v0 = vsel %vm15455_vm3, %v22173_v62, %v18055_v11  ;;  %v22174_v57 = vld [vmem:[#allocation12_spill] sm:$0xff]  ;;  %v22175_v43 = vld [vmem:[#allocation11_spill] sm:$0xff] }
 0x2f1   :  { %2301 = vst [vmem:[#allocation2 + $0x84] sm:$0xf] %v2300_v54  ;;  %2305 = vst [vmem:[#allocation2 + $0x8c] sm:$0x1] %v2304_v16  ;;  %v2314_v61 = vsel %vm16952_vm8, %v22174_v57, %v18057_v26  ;;  %v22176_v42 = vrot.slane %v22175_v43, 4  ;;  %v22177_v11 = vld [vmem:[#allocation17_spill] sm:$0xff] }
 0x2f2   :  { %v18186_v4 = vld [vmem:[#allocation2 + $0x138] sm:$0xf]  ;;  %v2394_v41 = vld [vmem:[#allocation2 + $0x140] sm:$0x1]  ;;  %2308 = vst [vmem:[#allocation2 + $0x90] sm:$0xf] %v2307_v15 }
 0x2f3   :  { %v2318_v38 = vsel %vm15455_vm3, %v22176_v42, %v18059_v51  ;;  %2312 = vst [vmem:[#allocation2 + $0x98] sm:$0x1] %v2311_v0  ;;  %2315 = vst [vmem:[#allocation2 + $0x9c] sm:$0xf] %v2314_v61  ;;  %v22178_v26 = vrot.slane %v22177_v11, 4  ;;  %v22179_v51 = vld [vmem:[#allocation20_spill] sm:$0xff] }
 0x2f4   :  { %2319 = vst [vmem:[#allocation2 + $0xa4] sm:$0x1] %v2318_v38  ;;  %v2328_v59 = vsel %vm16952_vm8, %v22179_v51, %v18078_v27  ;;  %v22180_v60 = vld [vmem:[#allocation9_spill] sm:$0xff]  ;;  %v2387_v6 = vld [vmem:[#allocation2 + $0x134] sm:$0x1]  ;;  %v22183_v27 = vrot.slane %v17781_v33, 4 }
 0x2f5   :  { %v2325_v45 = vsel %vm15455_vm3, %v22178_v26, %v18076_v25  ;;  %v22181_v23 = vrot.slane %v22180_v60, 4  ;;  %v18205_v55 = vld [vmem:[#allocation2 + $0x150] sm:$0xf]  ;;  %v2397_v3 = vld [vmem:[#allocation2 + $0x144] sm:$0xf]  ;;  %v22184_v20 = vrot.slane %v17787_v32, 4 }
 0x2f6   :  { %2322 = vst [vmem:[#allocation2 + $0xa8] sm:$0xf] %v2321_v9  ;;  %2326 = vst [vmem:[#allocation2 + $0xb0] sm:$0x1] %v2325_v45  ;;  %v22182_v22 = vld [vmem:[#allocation15_spill] sm:$0xff]  ;;  %v2339_v18 = vsel %vm15455_vm3, %v22183_v27, %v18096_v39  ;;  %v22185_v33 = vld [vmem:[#allocation8_spill] sm:$0xff] }
 0x2f7   :  { %v2332_v53 = vsel %vm15455_vm3, %v22181_v23, %v2331_v12  ;;  %2329 = vst [vmem:[#allocation2 + $0xb4] sm:$0xf] %v2328_v59  ;;  %v2335_v25 = vsel %vm16952_vm8, %v22182_v22, %v18094_v29  ;;  %v2342_v12 = vsel %vm16952_vm8, %v17807_v17, %v18098_v46  ;;  %v2346_v7 = vsel %vm15455_vm3, %v22184_v20, %v2345_v40  ;;  %v2408_v37 = vld [vmem:[#allocation2 + $0x158] sm:$0x1]  ;;  %v2401_v58 = vld [vmem:[#allocation2 + $0x14c] sm:$0x1] }
 0x2f8   :  { %2333 = vst [vmem:[#allocation2 + $0xbc] sm:$0x1] %v2332_v53  ;;  %v2418_v56 = vld [vmem:[#allocation2 + $0x168] sm:$0xf]  ;;  %2336 = vst [vmem:[#allocation2 + $0xc0] sm:$0xf] %v2335_v25  ;;  %v2349_v29 = vsel %vm16952_vm8, %v22185_v33, %v18116_v30 }
 0x2f9   :  { %2340 = vst [vmem:[#allocation2 + $0xc8] sm:$0x1] %v2339_v18  ;;  %2343 = vst [vmem:[#allocation2 + $0xe4] sm:$0xf] %v2342_v12  ;;  %v22186_v39 = vld [vmem:[#allocation4_spill] sm:$0xff]  ;;  %v22188_v46 = vld [vmem:[#allocation27_spill] sm:$0xff] }
 0x2fa   :  { %2347 = vst [vmem:[#allocation2 + $0xec] sm:$0x1] %v2346_v7  ;;  %v22187_v17 = vrot.slane %v22186_v39, 4  ;;  %v2356_v40 = vsel %vm16952_vm8, %v22188_v46, %v18120_v52  ;;  %v22189_v10 = vld [vmem:[#allocation24_spill] sm:$0xff]  ;;  %v2422_v50 = vld [vmem:[#allocation2 + $0x170] sm:$0x1] }
 0x2fb   :  { %v22190_v44 = vrot.slane %v22189_v10, 4  ;;  %v2411_v47 = vld [vmem:[#allocation2 + $0x15c] sm:$0xf]  ;;  %v2415_v13 = vld [vmem:[#allocation2 + $0x164] sm:$0x1]  ;;  %v22191_v30 = vld [vmem:[#allocation31_spill] sm:$0xff] }
 0x2fc   :  { %v2353_v32 = vsel %vm15455_vm3, %v22187_v17, %v18118_v28  ;;  %2350 = vst [vmem:[#allocation2 + $0xf0] sm:$0xf] %v2349_v29  ;;  %2357 = vst [vmem:[#allocation2 + $0xfc] sm:$0xf] %v2356_v40  ;;  %v2363_v28 = vsel %vm16952_vm8, %v22191_v30, %v18138_v48  ;;  %v22192_v49 = vld [vmem:[#allocation28_spill] sm:$0xff]  ;;  %v22195_v54 = vld [vmem:[#allocation29_spill] sm:$0xff] }
 0x2fd   :  { %v2360_v31 = vsel %vm15455_vm3, %v22190_v44, %v2359_v36  ;;  %2354 = vst [vmem:[#allocation2 + $0xf8] sm:$0x1] %v2353_v32  ;;  %v22193_v52 = vrot.slane %v22192_v49, 4  ;;  %v22194_v36 = vld [vmem:[#allocation32_spill] sm:$0xff]  ;;  %v22196_v24 = vrot.slane %v22195_v54, 4  ;;  %v22198_v57 = vld [vmem:[#allocation30_spill] sm:$0xff] }
 0x2fe   :  { %2361 = vst [vmem:[#allocation2 + $0x104] sm:$0x1] %v2360_v31  ;;  %v2370_v14 = vsel %vm16952_vm8, %v22194_v36, %v18142_v5  ;;  %v2432_v15 = vld [vmem:[#allocation2 + $0x180] sm:$0xf]  ;;  %v2425_v62 = vld [vmem:[#allocation2 + $0x174] sm:$0xf] }
 0x2ff   :  { %v2367_v2 = vsel %vm15455_vm3, %v22193_v52, %v18140_v35  ;;  %v2374_v16 = vsel %vm15455_vm3, %v22196_v24, %v18144_v8  ;;  %v2429_v48 = vld [vmem:[#allocation2 + $0x17c] sm:$0x1]  ;;  %2364 = vst [vmem:[#allocation2 + $0x108] sm:$0xf] %v2363_v28  ;;  %2371 = vst [vmem:[#allocation2 + $0x114] sm:$0xf] %v2370_v14 }
 0x300   :  { %2368 = vst [vmem:[#allocation2 + $0x110] sm:$0x1] %v2367_v2  ;;  %2375 = vst [vmem:[#allocation2 + $0x11c] sm:$0x1] %v2374_v16  ;;  %v22197_v35 = vld [vmem:[#allocation33_spill] sm:$0xff]  ;;  %v22199_v5 = vrot.slane %v22198_v57, 4 }
 0x301   :  { %v2377_v0 = vsel %vm16952_vm8, %v22197_v35, %v18164_v63  ;;  %v22200_v43 = vld [vmem:[#allocation36_spill] sm:$0xff]  ;;  %v22201_v42 = vld [vmem:[#allocation34_spill] sm:$0xff]  ;;  %v2450_v45 = vld [vmem:[#allocation2 + $0x1a0] sm:$0x1] }
 0x302   :  { %v2381_v61 = vsel %vm15455_vm3, %v22199_v5, %v2380_v19  ;;  %v2384_v8 = vsel %vm16952_vm8, %v22200_v43, %v18166_v34  ;;  %v22202_v38 = vrot.slane %v22201_v42, 4  ;;  %v2436_v11 = vld [vmem:[#allocation2 + $0x188] sm:$0x1]  ;;  %v2446_v26 = vld [vmem:[#allocation2 + $0x198] sm:$0xf]  ;;  %v22203_v63 = vld [vmem:[#allocation37_spill] sm:$0xff] }
 0x303   :  { %2378 = vst [vmem:[#allocation2 + $0x120] sm:$0xf] %v2377_v0  ;;  %2382 = vst [vmem:[#allocation2 + $0x128] sm:$0x1] %v2381_v61  ;;  %v2391_v19 = vsel %vm16952_vm8, %v22203_v63, %v18186_v4  ;;  %v22204_v51 = vld [vmem:[#allocation35_spill] sm:$0xff]  ;;  %v22206_v60 = vld [vmem:[#allocation38_spill] sm:$0xff] }
 0x304   :  { %v2388_v9 = vsel %vm15455_vm3, %v22202_v38, %v2387_v6  ;;  %2385 = vst [vmem:[#allocation2 + $0x12c] sm:$0xf] %v2384_v8  ;;  %v22205_v59 = vrot.slane %v22204_v51, 4  ;;  %v2398_v23 = vsel %vm16952_vm8, %v22206_v60, %v2397_v3  ;;  %v22207_v53 = vld [vmem:[#allocation39_spill] sm:$0xff]  ;;  %2392 = vst [vmem:[#allocation2 + $0x138] sm:$0xf] %v2391_v19 }
 0x305   :  { %2389 = vst [vmem:[#allocation2 + $0x134] sm:$0x1] %v2388_v9  ;;  %v22208_v6 = vrot.slane %v22207_v53, 4  ;;  %2399 = vst [vmem:[#allocation2 + $0x144] sm:$0xf] %v2398_v23  ;;  %v22209_v4 = vld [vmem:[#allocation16_spill] sm:$0xff] }
 0x306   :  { %v2395_v34 = vsel %vm15455_vm3, %v22205_v59, %v2394_v41  ;;  %v2405_v25 = vsel %vm16952_vm8, %v22209_v4, %v18205_v55  ;;  %v22210_v27 = vld [vmem:[#allocation40_spill] sm:$0xff]  ;;  %v22212_v3 = vld [vmem:[#allocation13_spill] sm:$0xff]  ;;  %v22213_v20 = vld [vmem:[#allocation14_spill] sm:$0xff] }
 0x307   :  { %v2402_v22 = vsel %vm15455_vm3, %v22208_v6, %v2401_v58  ;;  %2396 = vst [vmem:[#allocation2 + $0x140] sm:$0x1] %v2395_v34  ;;  %v22211_v41 = vrot.slane %v22210_v27, 4  ;;  %v2412_v12 = vsel %vm16952_vm8, %v22212_v3, %v2411_v47  ;;  %v22214_v7 = vrot.slane %v22213_v20, 4  ;;  %2406 = vst [vmem:[#allocation2 + $0x150] sm:$0xf] %v2405_v25 }
 0x308   :  { %2403 = vst [vmem:[#allocation2 + $0x14c] sm:$0x1] %v2402_v22  ;;  %2413 = vst [vmem:[#allocation2 + $0x15c] sm:$0xf] %v2412_v12  ;;  %v22215_v33 = vld [vmem:[#allocation41_spill] sm:$0xff]  ;;  %v22218_v17 = vld [vmem:[#allocation22_spill] sm:$0xff] }
 0x309   :  { %v2409_v18 = vsel %vm15455_vm3, %v22211_v41, %v2408_v37  ;;  %v2416_v58 = vsel %vm15455_vm3, %v22214_v7, %v2415_v13  ;;  %v2419_v55 = vsel %vm16952_vm8, %v22215_v33, %v2418_v56  ;;  %v22216_v29 = vld [vmem:[#allocation25_spill] sm:$0xff]  ;;  %v2426_v32 = vsel %vm16952_vm8, %v22218_v17, %v2425_v62  ;;  %v22219_v46 = vld [vmem:[#allocation18_spill] sm:$0xff]  ;;  %v2456_v31 = vld [vmem:[#allocation2 + $0x10] sm:$0xf] }
 0x30a   :  { %2410 = vst [vmem:[#allocation2 + $0x158] sm:$0x1] %v2409_v18  ;;  %2417 = vst [vmem:[#allocation2 + $0x164] sm:$0x1] %v2416_v58  ;;  %v22217_v39 = vrot.slane %v22216_v29, 4  ;;  %v22220_v40 = vrot.slane %v22219_v46, 4 }
 0x30b   :  { %v2455_v44 = vld [vmem:[#allocation2 + $0xc] sm:$0xf]  ;;  %2420 = vst [vmem:[#allocation2 + $0x168] sm:$0xf] %v2419_v55  ;;  %2427 = vst [vmem:[#allocation2 + $0x174] sm:$0xf] %v2426_v32 }
 0x30c   :  { %v2423_v37 = vsel %vm15455_vm3, %v22217_v39, %v2422_v50  ;;  %v2430_v10 = vsel %vm15455_vm3, %v22220_v40, %v2429_v48  ;;  %v22221_v56 = vld [vmem:[#allocation23_spill] sm:$0xff]  ;;  %v22224_v28 = vld [vmem:[#allocation26_spill] sm:$0xff]  ;;  %v22225_v52 = vld [vmem:[#allocation21_spill] sm:$0xff]  ;;  %v15304_v62 = vmov 0   ;;  %v2593_v21 = vshrl.u32 %v2455_v44, 16 }
 0x30d   :  { %2424 = vst [vmem:[#allocation2 + $0x170] sm:$0x1] %v2423_v37  ;;  %2431 = vst [vmem:[#allocation2 + $0x17c] sm:$0x1] %v2430_v10  ;;  %v2433_v47 = vsel %vm16952_vm8, %v22221_v56, %v2432_v15  ;;  %v22222_v50 = vld [vmem:[#allocation19_spill] sm:$0xff]  ;;  %v2447_v49 = vsel %vm16952_vm8, %v22224_v28, %v2446_v26  ;;  %v22226_v2 = vrot.slane %v22225_v52, 4 }
 0x30e   :  { %v22223_v13 = vrot.slane %v22222_v50, 4  ;;  %v14887_v14 = vld [vmem:[%s21516_s4 + $0x108] sm:$0xff]   ;;  %v2534_v54 = vld [vmem:[#allocation2 + $0x14] sm:$0x1]  ;;  %v2457_v24 = vld [vmem:[#allocation2 + $0x18] sm:$0xf] }
 0x30f   :  { %v2451_v36 = vsel %vm15455_vm3, %v22226_v2, %v2450_v45  ;;  %2434 = vst [vmem:[#allocation2 + $0x180] sm:$0xf] %v2433_v47  ;;  %2448 = vst [vmem:[#allocation2 + $0x198] sm:$0xf] %v2447_v49  ;;  %v14881_v16 = vld [vmem:[#allocation2 + $0xe4] sm:$0xff]   ;;  %v14884_v1 = vld [vmem:[#allocation2 + $0xf0] sm:$0xff]  }
 0x310   :  { %v2437_v30 = vsel %vm15455_vm3, %v22223_v13, %v2436_v11  ;;  %2452 = vst [vmem:[#allocation2 + $0x1a0] sm:$0x1] %v2451_v36  ;;  %v2458_v15 = vld [vmem:[#allocation2 + $0x1c] sm:$0xf]  ;;  %1182 = vst [vmem:[#allocation2] sm:$0xf] %v15304_v62  ;;  %13786 = vmatprep.mubr.bf16.mxu1 %v14881_v16 }
 0x311   :  { %2438 = vst [vmem:[#allocation2 + $0x188] sm:$0x1] %v2437_v30  ;;  %1183 = vst [vmem:[#allocation2 + $0x4] sm:$0xf] %v15304_v62  ;;  %v18336_v48 = vld [vmem:[#allocation2 + $0x20] sm:$0x1]  ;;  %13787 = vmatmul.mubr.bf16.vlgmr.msra.gmra.mrb[0].mxu1 %v14884_v1 }
 0x312   :  { %1184 = vst [vmem:[#allocation2 + $0x8] sm:$0x1] %v15304_v62  ;;  %1185 = vst [vmem:[#allocation2 + $0xd8] sm:$0xf] %v15304_v62  ;;  %v14885_v35 = vld [vmem:[#allocation2 + $0xfc] sm:$0xff]   ;;  %v2596_v0 = vshll.u32 %v2455_v44, 16 }
 0x313   :  { %1186 = vst [vmem:[#allocation2 + $0xdc] sm:$0xf] %v15304_v62  ;;  %1187 = vst [vmem:[#allocation2 + $0xe0] sm:$0x1] %v15304_v62  ;;  %v2602_v57 = vshll.u32 %v2456_v31, 16  ;;  %v2606_v5 = vshrl.u32 %v2456_v31, 16  ;;  %13790 = vmatprep.mubr.bf16.mxu1 %v14885_v35 }
 0x314   :  { %1189 = vst [vmem:[#allocation2 + $0xcc] sm:$0xf] %v15304_v62  ;;  %1190 = vst [vmem:[#allocation2 + $0xd0] sm:$0xf] %v15304_v62  ;;  %v18338_v61 = vld [vmem:[#allocation2 + $0x24] sm:$0xf] }
 0x315   :  { %1191 = vst [vmem:[#allocation2 + $0xd4] sm:$0x1] %v15304_v62  ;;  %1192 = vst [vmem:[#allocation2 + $0x1a4] sm:$0xf] %v15304_v62  ;;  %v2595_v43 = vrot.slane %v2593_v21, 4  ;;  %v2612_v8 = vshll.u32 %v2534_v54, 16 }
 0x316   :  { %1193 = vst [vmem:[#allocation2 + $0x1a8] sm:$0xf] %v15304_v62  ;;  %1194 = vst [vmem:[#allocation2 + $0x1ac] sm:$0x1] %v15304_v62  ;;  %v2617_v42 = vshrl.u32 %v2457_v24, 16  ;;  %v15047_v38 = vld [vmem:[%s21516_s4 + $0x100] sm:$0xff]  }
 0x317   :  { %13819 = vmatpush3.bf16.msra.mxu1 %v15047_v38  ;;  %v2598_v9 = vrot.slane %v2596_v0, 5  ;;  %v2604_v11 = vrot.slane %v2602_v57, 5  ;;  %v2608_v26 = vrot.slane %v2606_v5, 4  ;;  %v2620_v45 = vshll.u32 %v2457_v24, 16  ;;  %v14890_v34 = vld [vmem:[%s21516_s4 + $0x110] sm:$0xff]   ;;  %v14888_v22 = vld [vmem:[#allocation2 + $0x108] sm:$0xff]  }
 0x318   :  { %13820 = vmatprep.subr.bf16.mxu1 %v14887_v14  ;;  %v2614_v63 = vrot.slane %v2612_v8, 5  ;;  %v2619_v19 = vrot.slane %v2617_v42, 4  ;;  %v2626_v51 = vshll.u32 %v2458_v15, 16  ;;  %v2630_v59 = vshrl.u32 %v2458_v15, 16  ;;  %v14893_v18 = vld [vmem:[%s21516_s4 + $0x118] sm:$0xff]   ;;  %v14896_v52 = vld [vmem:[%s21516_s4 + $0x120] sm:$0xff]  }
 0x319   :  { %v2599_v60 = vor.u32 %v2598_v9, %v2595_v43  ;;  %v2609_v23 = vor.u32 %v2608_v26, %v2604_v11  ;;  %v2622_v53 = vrot.slane %v2620_v45, 5  ;;  %v2636_v6 = vshll.u32 %v18336_v48, 16  ;;  %v2453_v3 = vld [vmem:[#allocation2] sm:$0xf]  ;;  %v2454_v12 = vld [vmem:[#allocation2 + $0x4] sm:$0xf]  ;;  %13791 = vmatmul.mubr.bf16.gmra.mrb[4].mxu1 %v14888_v22 }
 0x31a   :  { %v18347_v4 = vrot.slane %v2626_v51, 5  ;;  %v2632_v25 = vrot.slane %v2630_v59, 4  ;;  %v2641_v27 = vshrl.u32 %v18338_v61, 16  ;;  %v2644_v41 = vshll.u32 %v18338_v61, 16  ;;  %v2533_v20 = vld [vmem:[#allocation2 + $0x8] sm:$0x1] }
 0x31b   :  { %13821 = vmatpush3.bf16.msra.mxu1 %v14887_v14  ;;  %v2623_v7 = vor.u32 %v2622_v53, %v2619_v19  ;;  %v14889_v58 = vld [vmem:[#allocation2 + $0x114] sm:$0xff]   ;;  %v2569_v55 = vshrl.u32 %v2453_v3, 16  ;;  %v2572_v29 = vshll.u32 %v2453_v3, 16  ;;  %v2578_v39 = vshll.u32 %v2454_v12, 16  ;;  %v2460_v17 = vld [vmem:[#allocation2 + $0x28] sm:$0xf] }
 0x31c   :  { %v2582_v37 = vshrl.u32 %v2454_v12, 16  ;;  %13822 = vmatprep.subr.bf16.mxu1 %v14890_v34  ;;  %v2588_v32 = vshll.u32 %v2533_v20, 16  ;;  %v2600_v46 = vrot.slane %v2599_v60, 4  ;;  %v2610_v40 = vrot.slane %v2609_v23, 4  ;;  %v2536_v50 = vld [vmem:[#allocation2 + $0x2c] sm:$0x1]  ;;  %13794 = vmatprep.mubr.bf16.mxu1 %v14889_v58 }
 0x31d   :  { %v2624_v10 = vrot.slane %v2623_v7, 4  ;;  %v2571_v44 = vrot.slane %v2569_v55, 4  ;;  %v2574_v31 = vrot.slane %v2572_v29, 5  ;;  %v2580_v56 = vrot.slane %v2578_v39, 5  ;;  %v2461_v24 = vld [vmem:[#allocation2 + $0x30] sm:$0xf] }
 0x31e   :  { %v2584_v47 = vrot.slane %v2582_v37, 4  ;;  %v2590_v13 = vrot.slane %v2588_v32, 5  ;;  %v2605_v30 = vsel %vm18356_vm11, %v2600_v46, %v2604_v11  ;;  %v2615_v28 = vsel %vm18356_vm11, %v2610_v40, %v2614_v63  ;;  %v2462_v21 = vld [vmem:[#allocation2 + $0x34] sm:$0xf]  ;;  %v2537_v8 = vld [vmem:[#allocation2 + $0x38] sm:$0x1] }
 0x31f   :  { %v2629_v49 = vsel %vm18356_vm11, %v2624_v10, %v18347_v4  ;;  %13823 = vmatpush3.bf16.msra.mxu1 %v14890_v34  ;;  %v2575_v2 = vor.u32 %v2574_v31, %v2571_v44  ;;  %v12336_v14 = vcombine.low %v2605_v30, %v2615_v28  ;;  %v2633_v54 = vor.u32 %v2632_v25, %v18347_v4  ;;  %v14899_v38 = vld [vmem:[%s21516_s4 + $0x128] sm:$0xff]   ;;  %v14891_v63 = vld [vmem:[#allocation2 + $0x120] sm:$0xff]   ;;  %v2463_v51 = vld [vmem:[#allocation2 + $0x3c] sm:$0xf] }
 0x320   :  { %v2585_v36 = vor.u32 %v2584_v47, %v2580_v56  ;;  %13824 = vmatprep.subr.bf16.mxu1 %v14893_v18  ;;  %v2638_v16 = vrot.slane %v2636_v6, 5  ;;  %v2643_v15 = vrot.slane %v2641_v27, 4  ;;  %v2646_v1 = vrot.slane %v2644_v41, 5  ;;  %v14892_v19 = vld [vmem:[#allocation2 + $0x12c] sm:$0xff]   ;;  %v2464_v25 = vld [vmem:[#allocation2 + $0x40] sm:$0xf] }
 0x321   :  { %v2650_v62 = vshll.u32 %v2460_v17, 16  ;;  %v2576_v48 = vrot.slane %v2575_v2, 4  ;;  %v2634_v0 = vrot.slane %v2633_v54, 4  ;;  %v2654_v57 = vshrl.u32 %v2460_v17, 16  ;;  %13795 = vmatmul.mubr.bf16.gmra.mrb[8].mxu1 %v14891_v63  ;;  %v14902_v12 = vld [vmem:[%s21516_s4 + $0x130] sm:$0xff]   ;;  %v14894_v2 = vld [vmem:[#allocation2 + $0x138] sm:$0xff]  }
 0x322   :  { %v2586_v35 = vrot.slane %v2585_v36, 4  ;;  %v2647_v5 = vor.u32 %v2646_v1, %v2643_v15  ;;  %v2660_v43 = vshll.u32 %v2536_v50, 16  ;;  %v2665_v42 = vshrl.u32 %v2461_v24, 16  ;;  %13798 = vmatprep.mubr.bf16.mxu1 %v14892_v19  ;;  %v2538_v55 = vld [vmem:[#allocation2 + $0x44] sm:$0x1] }
 0x323   :  { %v2652_v61 = vrot.slane %v2650_v62, 5  ;;  %13825 = vmatpush3.bf16.msra.mxu1 %v14893_v18  ;;  %v2581_v9 = vsel %vm18356_vm11, %v2576_v48, %v2580_v56  ;;  %v2639_v26 = vsel %vm18356_vm11, %v2634_v0, %v2638_v16  ;;  %v2656_v45 = vrot.slane %v2654_v57, 4  ;;  %v2465_v46 = vld [vmem:[#allocation2 + $0x48] sm:$0xf]  ;;  %v2466_v56 = vld [vmem:[#allocation2 + $0x4c] sm:$0xf] }
 0x324   :  { %v2591_v11 = vsel %vm18356_vm11, %v2586_v35, %v2590_v13  ;;  %13826 = vmatprep.subr.bf16.mxu1 %v14896_v52  ;;  %v12337_v34 = vcombine.low %v2629_v49, %v2639_v26  ;;  %v2648_v60 = vrot.slane %v2647_v5, 4  ;;  %v2662_v23 = vrot.slane %v2660_v43, 5  ;;  %v2539_v36 = vld [vmem:[#allocation2 + $0x50] sm:$0x1]  ;;  %v14895_v1 = vld [vmem:[#allocation2 + $0x144] sm:$0xff]   ;;  %v14905_v62 = vld [vmem:[%s21516_s4 + $0x138] sm:$0xff]  }
 0x325   :  { %v12335_v59 = vcombine.low %v2581_v9, %v2591_v11  ;;  %v2657_v53 = vor.u32 %v2656_v45, %v2652_v61  ;;  %v2667_v6 = vrot.slane %v2665_v42, 4  ;;  %v2668_v22 = vshll.u32 %v2461_v24, 16  ;;  %v2467_v57 = vld [vmem:[#allocation2 + $0x54] sm:$0xf]  ;;  %v2468_v42 = vld [vmem:[#allocation2 + $0x58] sm:$0xf] }
 0x326   :  { %v2674_v4 = vshll.u32 %v2462_v21, 16  ;;  %v2653_v27 = vsel %vm18356_vm11, %v2648_v60, %v2652_v61  ;;  %v2678_v41 = vshrl.u32 %v2462_v21, 16  ;;  %v2684_v18 = vshll.u32 %v2537_v8, 16  ;;  %v2540_v19 = vld [vmem:[#allocation2 + $0x5c] sm:$0x1] }
 0x327   :  { %13514 = vmatprep.mubr.bf16.mxu0 %v12335_v59  ;;  %v2689_v3 = vshrl.u32 %v2463_v51, 16  ;;  %v2658_v20 = vrot.slane %v2657_v53, 4  ;;  %v2670_v7 = vrot.slane %v2668_v22, 5  ;;  %v2692_v29 = vshll.u32 %v2463_v51, 16  ;;  %13827 = vmatpush3.bf16.msra.mxu1 %v14896_v52  ;;  %v2469_v22 = vld [vmem:[#allocation2 + $0x60] sm:$0xf] }
 0x328   :  { %13515 = vmatmul.mubr.bf16.vlgmr.msra.gmra.mrb[64].mxu0 %v12336_v14  ;;  %v2676_v58 = vrot.slane %v2674_v4, 5  ;;  %v2680_v39 = vrot.slane %v2678_v41, 4  ;;  %v2686_v37 = vrot.slane %v2684_v18, 5  ;;  %v2698_v32 = vshll.u32 %v2464_v25, 16  ;;  %13828 = vmatprep.subr.bf16.mxu1 %v14899_v38  ;;  %v2470_v18 = vld [vmem:[#allocation2 + $0x64] sm:$0xf] }
 0x329   :  { %13518 = vmatprep.mubr.bf16.mxu0 %v12337_v34  ;;  %v2691_v17 = vrot.slane %v2689_v3, 4  ;;  %v2663_v40 = vsel %vm18356_vm11, %v2658_v20, %v2662_v23  ;;  %v2671_v10 = vor.u32 %v2670_v7, %v2667_v6  ;;  %v2694_v44 = vrot.slane %v2692_v29, 5  ;;  %13799 = vmatmul.mubr.bf16.gmra.mrb[12].mxu1 %v14894_v2  ;;  %v18399_v34 = vld [vmem:[%s21516_s4 + $0x140] sm:$0xff]  }
 0x32a   :  { %v2702_v31 = vshrl.u32 %v2464_v25, 16  ;;  %v12338_v47 = vcombine.low %v2653_v27, %v2663_v40  ;;  %v2681_v50 = vor.u32 %v2680_v39, %v2676_v58  ;;  %v2700_v13 = vrot.slane %v2698_v32, 5  ;;  %13802 = vmatprep.mubr.bf16.mxu1 %v14895_v1  ;;  %v2542_v1 = vld [vmem:[#allocation2 + $0x74] sm:$0x1] }
 0x32b   :  { %v2708_v30 = vshll.u32 %v2538_v55, 16  ;;  %v2672_v28 = vrot.slane %v2671_v10, 4  ;;  %v2695_v49 = vor.u32 %v2694_v44, %v2691_v17  ;;  %v2713_v14 = vshrl.u32 %v2465_v46, 16  ;;  %13829 = vmatpush3.bf16.msra.mxu1 %v14899_v38  ;;  %v14898_v17 = vld [vmem:[#allocation2 + $0x15c] sm:$0xff]   ;;  %v2541_v10 = vld [vmem:[#allocation2 + $0x68] sm:$0x1] }
 0x32c   :  { %v2704_v52 = vrot.slane %v2702_v31, 4  ;;  %v2682_v54 = vrot.slane %v2681_v50, 4  ;;  %v2716_v16 = vshll.u32 %v2465_v46, 16  ;;  %v2722_v15 = vshll.u32 %v2466_v56, 16  ;;  %13830 = vmatprep.subr.bf16.mxu1 %v14902_v12  ;;  %v2471_v31 = vld [vmem:[#allocation2 + $0x6c] sm:$0xf] }
 0x32d   :  { %v2710_v24 = vrot.slane %v2708_v30, 5  ;;  %v2677_v21 = vsel %vm18356_vm11, %v2672_v28, %v2676_v58  ;;  %v2696_v48 = vrot.slane %v2695_v49, 4  ;;  %v2715_v0 = vrot.slane %v2713_v14, 4  ;;  %v14897_v58 = vld [vmem:[#allocation2 + $0x150] sm:$0xff]  }
 0x32e   :  { %v2705_v35 = vor.u32 %v2704_v52, %v2700_v13  ;;  %v2687_v5 = vsel %vm18356_vm11, %v2682_v54, %v2686_v37  ;;  %v2718_v61 = vrot.slane %v2716_v16, 5  ;;  %v2724_v43 = vrot.slane %v2722_v15, 5  ;;  %v2472_v30 = vld [vmem:[#allocation2 + $0x70] sm:$0xf] }
 0x32f   :  { %v2726_v8 = vshrl.u32 %v2466_v56, 16  ;;  %v12339_v38 = vcombine.low %v2677_v21, %v2687_v5  ;;  %v2701_v9 = vsel %vm18356_vm11, %v2696_v48, %v2700_v13  ;;  %v2732_v26 = vshll.u32 %v2539_v36, 16  ;;  %13831 = vmatpush3.bf16.msra.mxu1 %v14902_v12  ;;  %v2473_v48 = vld [vmem:[#allocation2 + $0x78] sm:$0xf] }
 0x330   :  { %13519 = vmatmul.mubr.bf16.gmra.mrb[68].mxu0 %v12338_v47  ;;  %v2706_v11 = vrot.slane %v2705_v35, 4  ;;  %v2719_v45 = vor.u32 %v2718_v61, %v2715_v0  ;;  %v2737_v51 = vshrl.u32 %v2467_v57, 16  ;;  %v2740_v59 = vshll.u32 %v2467_v57, 16  ;;  %13832 = vmatprep.subr.bf16.mxu1 %v14905_v62  ;;  %v2474_v61 = vld [vmem:[#allocation2 + $0x7c] sm:$0xf] }
 0x331   :  { %v2728_v63 = vrot.slane %v2726_v8, 4  ;;  %13522 = vmatprep.mubr.bf16.mxu0 %v12339_v38  ;;  %v2734_v23 = vrot.slane %v2732_v26, 5  ;;  %v2746_v53 = vshll.u32 %v2468_v42, 16  ;;  %v2750_v6 = vshrl.u32 %v2468_v42, 16  ;;  %13803 = vmatmul.mubr.bf16.gmra.mrb[16].mxu1 %v14897_v58 }
 0x332   :  { %v2711_v60 = vsel %vm18356_vm11, %v2706_v11, %v2710_v24  ;;  %v2720_v25 = vrot.slane %v2719_v45, 4  ;;  %v2739_v41 = vrot.slane %v2737_v51, 4  ;;  %v2742_v3 = vrot.slane %v2740_v59, 5  ;;  %13806 = vmatprep.mubr.bf16.mxu1 %v14898_v17  ;;  %v2543_v11 = vld [vmem:[#allocation2 + $0x80] sm:$0x1]  ;;  %v14901_v51 = vld [vmem:[#allocation2 + $0x174] sm:$0xff]  }
 0x333   :  { %v12340_v4 = vcombine.low %v2701_v9, %v2711_v60  ;;  %v2729_v27 = vor.u32 %v2728_v63, %v2724_v43  ;;  %v2748_v12 = vrot.slane %v2746_v53, 5  ;;  %v2752_v20 = vrot.slane %v2750_v6, 4  ;;  %13833 = vmatpush3.bf16.msra.mxu1 %v14905_v62  ;;  %v14900_v9 = vld [vmem:[#allocation2 + $0x168] sm:$0xff]   ;;  %v14910_v59 = vld [vmem:[%s21516_s4] sm:$0xff]  }
 0x334   :  { %v2756_v7 = vshll.u32 %v2540_v19, 16  ;;  %v2725_v55 = vsel %vm18356_vm11, %v2720_v25, %v2724_v43  ;;  %v2761_v39 = vshrl.u32 %v2469_v22, 16  ;;  %v2764_v37 = vshll.u32 %v2469_v22, 16  ;;  %13898 = vmatprep.subr.bf16.mxu1 %v18399_v34  ;;  %v2475_v22 = vld [vmem:[#allocation2 + $0x84] sm:$0xf]  ;;  %13578 = vmatprep.subr.bf16.mxu0 %v14910_v59 }
 0x335   :  { %v2730_v29 = vrot.slane %v2729_v27, 4  ;;  %v2743_v32 = vor.u32 %v2742_v3, %v2739_v41  ;;  %v2753_v46 = vor.u32 %v2752_v20, %v2748_v12  ;;  %v2770_v44 = vshll.u32 %v2470_v18, 16  ;;  %13579 = vmatpush3.bf16.msra.mxu0 %v14910_v59  ;;  %v2546_v59 = vld [vmem:[#allocation2 + $0xa4] sm:$0x1] }
 0x336   :  { %v2758_v40 = vrot.slane %v2756_v7, 5  ;;  %v2763_v47 = vrot.slane %v2761_v39, 4  ;;  %v2766_v50 = vrot.slane %v2764_v37, 5  ;;  %v2774_v13 = vshrl.u32 %v2470_v18, 16  ;;  %v2476_v7 = vld [vmem:[#allocation2 + $0x88] sm:$0xf] }
 0x337   :  { %v2735_v56 = vsel %vm18356_vm11, %v2730_v29, %v2734_v23  ;;  %v2744_v49 = vrot.slane %v2743_v32, 4  ;;  %v2754_v52 = vrot.slane %v2753_v46, 4  ;;  %v2772_v2 = vrot.slane %v2770_v44, 5  ;;  %v2544_v46 = vld [vmem:[#allocation2 + $0x8c] sm:$0x1] }
 0x338   :  { %13523 = vmatmul.mubr.bf16.gmra.mrb[72].mxu0 %v12340_v4  ;;  %v12341_v28 = vcombine.low %v2725_v55, %v2735_v56  ;;  %v2767_v36 = vor.u32 %v2766_v50, %v2763_v47  ;;  %v2776_v14 = vrot.slane %v2774_v13, 4  ;;  %v2780_v54 = vshll.u32 %v2541_v10, 16  ;;  %v2477_v47 = vld [vmem:[#allocation2 + $0x90] sm:$0xf] }
 0x339   :  { %v2785_v24 = vshrl.u32 %v2471_v31, 16  ;;  %v2749_v16 = vsel %vm18356_vm11, %v2744_v49, %v2748_v12  ;;  %v2759_v15 = vsel %vm18356_vm11, %v2754_v52, %v2758_v40  ;;  %v2788_v62 = vshll.u32 %v2471_v31, 16  ;;  %13807 = vmatmul.mubr.bf16.gmra.mrb[20].mxu1 %v14900_v9  ;;  %v14903_v49 = vld [vmem:[#allocation2 + $0x180] sm:$0xff]   ;;  %v2478_v52 = vld [vmem:[#allocation2 + $0x94] sm:$0xf] }
 0x33a   :  { %13526 = vmatprep.mubr.bf16.mxu0 %v12341_v28  ;;  %v2794_v21 = vshll.u32 %v2472_v30, 16  ;;  %v12342_v35 = vcombine.low %v2749_v16, %v2759_v15  ;;  %v2768_v0 = vrot.slane %v2767_v36, 4  ;;  %v2777_v57 = vor.u32 %v2776_v14, %v2772_v2  ;;  %13810 = vmatprep.mubr.bf16.mxu1 %v14901_v51  ;;  %v14911_v16 = vld [vmem:[%s21516_s4 + $0x8] sm:$0xff]   ;;  %v2480_v9 = vld [vmem:[#allocation2 + $0xa0] sm:$0xf] }
 0x33b   :  { %v2782_v5 = vrot.slane %v2780_v54, 5  ;;  %v2787_v43 = vrot.slane %v2785_v24, 4  ;;  %v2790_v8 = vrot.slane %v2788_v62, 5  ;;  %v2798_v38 = vshrl.u32 %v2472_v30, 16  ;;  %v14904_v24 = vld [vmem:[#allocation2 + $0x18c] sm:$0xff]   ;;  %13580 = vmatprep.subr.bf16.mxu0 %v14911_v16 }
 0x33c   :  { %v2796_v42 = vrot.slane %v2794_v21, 5  ;;  %v2773_v26 = vsel %vm18356_vm11, %v2768_v0, %v2772_v2  ;;  %v2778_v45 = vrot.slane %v2777_v57, 4  ;;  %v2804_v63 = vshll.u32 %v2542_v1, 16  ;;  %v2545_v21 = vld [vmem:[#allocation2 + $0x98] sm:$0x1]  ;;  %13581 = vmatpush3.bf16.msra.mxu0 %v14911_v16 }
 0x33d   :  { %v2809_v19 = vshrl.u32 %v2473_v48, 16  ;;  %v2791_v60 = vor.u32 %v2790_v8, %v2787_v43  ;;  %v2800_v23 = vrot.slane %v2798_v38, 4  ;;  %v2812_v53 = vshll.u32 %v2473_v48, 16 }
 0x33e   :  { %v2818_v6 = vshll.u32 %v2474_v61, 16  ;;  %v2783_v4 = vsel %vm18356_vm11, %v2778_v45, %v2782_v5  ;;  %v2806_v25 = vrot.slane %v2804_v63, 5  ;;  %v2822_v41 = vshrl.u32 %v2474_v61, 16  ;;  %v2479_v61 = vld [vmem:[#allocation2 + $0x9c] sm:$0xf] }
 0x33f   :  { %v2811_v27 = vrot.slane %v2809_v19, 4  ;;  %v12343_v18 = vcombine.low %v2773_v26, %v2783_v4  ;;  %v2792_v3 = vrot.slane %v2791_v60, 4  ;;  %v2801_v12 = vor.u32 %v2800_v23, %v2796_v42 }
 0x340   :  { %13527 = vmatmul.mubr.bf16.gmra.mrb[76].mxu0 %v12342_v35  ;;  %v2814_v20 = vrot.slane %v2812_v53, 5  ;;  %v2820_v58 = vrot.slane %v2818_v6, 5  ;;  %v2824_v55 = vrot.slane %v2822_v41, 4  ;;  %v2828_v29 = vshll.u32 %v2543_v11, 16  ;;  %v14913_v53 = vld [vmem:[%s21516_s4 + $0x10] sm:$0xff]  }
 0x341   :  { %v2833_v39 = vshrl.u32 %v2475_v22, 16  ;;  %13530 = vmatprep.mubr.bf16.mxu0 %v12343_v18  ;;  %v2797_v37 = vsel %vm18356_vm11, %v2792_v3, %v2796_v42  ;;  %v2802_v17 = vrot.slane %v2801_v12, 4  ;;  %v2836_v40 = vshll.u32 %v2475_v22, 16  ;;  %13811 = vmatmul.mubr.bf16.gmra.mrb[24].mxu1 %v14903_v49 }
 0x342   :  { %v2815_v32 = vor.u32 %v2814_v20, %v2811_v27  ;;  %v2825_v10 = vor.u32 %v2824_v55, %v2820_v58  ;;  %v2830_v44 = vrot.slane %v2828_v29, 5  ;;  %v2842_v56 = vshll.u32 %v2476_v7, 16  ;;  %13814 = vmatprep.mubr.bf16.mxu1 %v14904_v24  ;;  %v2481_v27 = vld [vmem:[#allocation2 + $0xa8] sm:$0xf]  ;;  %v14906_v20 = vld [vmem:[#allocation2 + $0x198] sm:$0xff]   ;;  %13582 = vmatprep.subr.bf16.mxu0 %v14913_v53 }
 0x343   :  { %v2835_v31 = vrot.slane %v2833_v39, 4  ;;  %v2807_v50 = vsel %vm18356_vm11, %v2802_v17, %v2806_v25  ;;  %v2838_v30 = vrot.slane %v2836_v40, 5  ;;  %v2846_v28 = vshrl.u32 %v2476_v7, 16  ;;  %v2482_v7 = vld [vmem:[#allocation2 + $0xac] sm:$0xf]  ;;  %13583 = vmatpush3.bf16.msra.mxu0 %v14913_v53  ;;  %v14914_v53 = vld [vmem:[%s21516_s4 + $0x18] sm:$0xff]  }
 0x344   :  { %v2816_v13 = vrot.slane %v2815_v32, 4  ;;  %v12344_v2 = vcombine.low %v2797_v37, %v2807_v50  ;;  %v2826_v36 = vrot.slane %v2825_v10, 4  ;;  %v2844_v14 = vrot.slane %v2842_v56, 5  ;;  %13584 = vmatprep.subr.bf16.mxu0 %v14914_v53 }
 0x345   :  { %v2852_v54 = vshll.u32 %v2544_v46, 16  ;;  %v2839_v1 = vor.u32 %v2838_v30, %v2835_v31  ;;  %v2848_v62 = vrot.slane %v2846_v28, 4  ;;  %v2857_v48 = vshrl.u32 %v2477_v47, 16  ;;  %v5890_v28 = vld [vmem:[#allocation2 + $0xc] sm:$0xf] }
 0x346   :  { %v2821_v15 = vsel %vm18356_vm11, %v2816_v13, %v2820_v58  ;;  %v2831_v35 = vsel %vm18356_vm11, %v2826_v36, %v2830_v44  ;;  %v2860_v57 = vshll.u32 %v2477_v47, 16  ;;  %v2866_v5 = vshll.u32 %v2478_v52, 16  ;;  %v2547_v44 = vld [vmem:[#allocation2 + $0xb0] sm:$0x1] }
 0x347   :  { %v2854_v0 = vrot.slane %v2852_v54, 5  ;;  %v12345_v43 = vcombine.low %v2821_v15, %v2831_v35  ;;  %v2840_v8 = vrot.slane %v2839_v1, 4  ;;  %v2849_v42 = vor.u32 %v2848_v62, %v2844_v14  ;;  %13585 = vmatpush3.bf16.msra.mxu0 %v14914_v53  ;;  %v2549_v53 = vld [vmem:[#allocation2 + $0xe0] sm:$0x1] }
 0x348   :  { %13531 = vmatmul.mubr.bf16.gmra.mrb[80].mxu0 %v12344_v2  ;;  %v2859_v38 = vrot.slane %v2857_v48, 4  ;;  %v2862_v11 = vrot.slane %v2860_v57, 5  ;;  %v2868_v26 = vrot.slane %v2866_v5, 5  ;;  %v2870_v45 = vshrl.u32 %v2478_v52, 16 }
 0x349   :  { %v2876_v63 = vshll.u32 %v2545_v21, 16  ;;  %13534 = vmatprep.mubr.bf16.mxu0 %v12345_v43  ;;  %v2845_v19 = vsel %vm18356_vm11, %v2840_v8, %v2844_v14  ;;  %v2850_v51 = vrot.slane %v2849_v42, 4  ;;  %v2881_v60 = vshrl.u32 %v2479_v61, 16  ;;  %13815 = vmatmul.mubr.bf16.gmra.mrb[28].mxu1 %v14906_v20  ;;  %v5891_v14 = vld [vmem:[#allocation2 + $0x10] sm:$0xf] }
 0x34a   :  { %v2884_v23 = vshll.u32 %v2479_v61, 16  ;;  %v2863_v6 = vor.u32 %v2862_v11, %v2859_v38  ;;  %v2872_v22 = vrot.slane %v2870_v45, 4  ;;  %v2890_v25 = vshll.u32 %v2480_v9, 16  ;;  %v5892_v21 = vld [vmem:[#allocation2 + $0x14] sm:$0x1] }
 0x34b   :  { %v2878_v4 = vrot.slane %v2876_v63, 5  ;;  %v2855_v41 = vsel %vm18356_vm11, %v2850_v51, %v2854_v0  ;;  %v2883_v18 = vrot.slane %v2881_v60, 4  ;;  %v2894_v12 = vshrl.u32 %v2480_v9, 16  ;;  %v2483_v43 = vld [vmem:[#allocation2 + $0xb4] sm:$0xf] }
 0x34c   :  { %v2886_v3 = vrot.slane %v2884_v23, 5  ;;  %v12346_v58 = vcombine.low %v2845_v19, %v2855_v41  ;;  %v2864_v55 = vrot.slane %v2863_v6, 4  ;;  %v2873_v29 = vor.u32 %v2872_v22, %v2868_v26  ;;  %v2484_v11 = vld [vmem:[#allocation2 + $0xb8] sm:$0xf] }
 0x34d   :  { %v2892_v39 = vrot.slane %v2890_v25, 5  ;;  %v2896_v17 = vrot.slane %v2894_v12, 4  ;;  %v2900_v32 = vshll.u32 %v2546_v59, 16  ;;  %v2905_v46 = vshrl.u32 %v2481_v27, 16  ;;  %v2548_v25 = vld [vmem:[#allocation2 + $0xbc] sm:$0x1] }
 0x34e   :  { %v2887_v37 = vor.u32 %v2886_v3, %v2883_v18  ;;  %v2869_v40 = vsel %vm18356_vm11, %v2864_v55, %v2868_v26  ;;  %v2874_v10 = vrot.slane %v2873_v29, 4  ;;  %v2908_v31 = vshll.u32 %v2481_v27, 16  ;;  %v5893_v41 = vld [vmem:[#allocation2 + $0x18] sm:$0xf] }
 0x34f   :  { %v2914_v56 = vshll.u32 %v2482_v7, 16  ;;  %v2897_v50 = vor.u32 %v2896_v17, %v2892_v39  ;;  %v2902_v13 = vrot.slane %v2900_v32, 5  ;;  %v2907_v30 = vrot.slane %v2905_v46, 4 }
 0x350   :  { %13535 = vmatmul.mubr.bf16.gmra.mrb[84].mxu0 %v12346_v58  ;;  %v2888_v47 = vrot.slane %v2887_v37, 4  ;;  %v2879_v49 = vsel %vm18356_vm11, %v2874_v10, %v2878_v4  ;;  %v2910_v52 = vrot.slane %v2908_v31, 5  ;;  %v2918_v36 = vshrl.u32 %v2482_v7, 16  ;;  %v5894_v7 = vld [vmem:[#allocation2 + $0x1c] sm:$0xf] }
 0x351   :  { %v2916_v2 = vrot.slane %v2914_v56, 5  ;;  %v12347_v54 = vcombine.low %v2869_v40, %v2879_v49  ;;  %v2898_v16 = vrot.slane %v2897_v50, 4  ;;  %v2924_v15 = vshll.u32 %v2547_v44, 16  ;;  %v5895_v44 = vld [vmem:[#allocation2 + $0x20] sm:$0x1] }
 0x352   :  { %v2893_v24 = vsel %vm18356_vm11, %v2888_v47, %v2892_v39  ;;  %v2911_v1 = vor.u32 %v2910_v52, %v2907_v30  ;;  %v2920_v62 = vrot.slane %v2918_v36, 4  ;;  %v5987_v48 = vshrl.u32 %v5890_v28, 16  ;;  %v5896_v47 = vld [vmem:[#allocation2 + $0x24] sm:$0xf]  ;;  %v5897_v49 = vld [vmem:[#allocation2 + $0x28] sm:$0xf] }
 0x353   :  { %v5990_v35 = vshll.u32 %v5890_v28, 16  ;;  %13538 = vmatprep.mubr.bf16.mxu0 %v12347_v54  ;;  %v2903_v0 = vsel %vm18356_vm11, %v2898_v16, %v2902_v13  ;;  %v2926_v57 = vrot.slane %v2924_v15, 5  ;;  %v5996_v5 = vshll.u32 %v5891_v14, 16  ;;  %v5898_v15 = vld [vmem:[#allocation2 + $0x2c] sm:$0x1] }
 0x354   :  { %v6000_v61 = vshrl.u32 %v5891_v14, 16  ;;  %v12348_v8 = vcombine.low %v2893_v24, %v2903_v0  ;;  %v2912_v42 = vrot.slane %v2911_v1, 4  ;;  %v2921_v38 = vor.u32 %v2920_v62, %v2916_v2  ;;  %v14915_v62 = vld [vmem:[%s21516_s4 + $0x20] sm:$0xff]  }
 0x355   :  { %v5989_v9 = vrot.slane %v5987_v48, 4  ;;  %v5992_v26 = vrot.slane %v5990_v35, 5  ;;  %v5998_v45 = vrot.slane %v5996_v5, 5  ;;  %v6006_v19 = vshll.u32 %v5892_v21, 16  ;;  %13586 = vmatprep.subr.bf16.mxu0 %v14915_v62 }
 0x356   :  { %v6002_v63 = vrot.slane %v6000_v61, 4  ;;  %v2917_v51 = vsel %vm18356_vm11, %v2912_v42, %v2916_v2  ;;  %v2922_v59 = vrot.slane %v2921_v38, 4  ;;  %v2929_v60 = vshrl.u32 %v2483_v43, 16  ;;  %13587 = vmatpush3.bf16.msra.mxu0 %v14915_v62 }
 0x357   :  { %v2932_v23 = vshll.u32 %v2483_v43, 16  ;;  %v5993_v6 = vor.u32 %v5992_v26, %v5989_v9  ;;  %v6008_v4 = vrot.slane %v6006_v19, 5  ;;  %v2938_v27 = vshll.u32 %v2484_v11, 16  ;;  %v2486_v26 = vld [vmem:[#allocation2 + $0xdc] sm:$0xf] }
 0x358   :  { %13539 = vmatmul.mubr.bf16.gmra.mrb[88].mxu0 %v12348_v8  ;;  %v6003_v22 = vor.u32 %v6002_v63, %v5998_v45  ;;  %v2927_v18 = vsel %vm18356_vm11, %v2922_v59, %v2926_v57  ;;  %v2931_v3 = vrot.slane %v2929_v60, 4  ;;  %v2942_v20 = vshrl.u32 %v2484_v11, 16  ;;  %v2485_v57 = vld [vmem:[#allocation2 + $0xd8] sm:$0xf] }
 0x359   :  { %v2934_v12 = vrot.slane %v2932_v23, 5  ;;  %v12349_v58 = vcombine.low %v2917_v51, %v2927_v18  ;;  %v5994_v55 = vrot.slane %v5993_v6, 4  ;;  %v2940_v39 = vrot.slane %v2938_v27, 5 }
 0x35a   :  { %v6004_v29 = vrot.slane %v6003_v22, 4  ;;  %v2944_v17 = vrot.slane %v2942_v20, 4  ;;  %v2948_v32 = vshll.u32 %v2548_v25, 16  ;;  %v6011_v46 = vshrl.u32 %v5893_v41, 16 }
 0x35b   :  { %v2935_v37 = vor.u32 %v2934_v12, %v2931_v3  ;;  %13542 = vmatprep.mubr.bf16.mxu0 %v12349_v58  ;;  %v5999_v40 = vsel %vm18356_vm11, %v5994_v55, %v5998_v45  ;;  %v6014_v31 = vshll.u32 %v5893_v41, 16  ;;  %v6020_v56 = vshll.u32 %v5894_v7, 16  ;;  %v2487_v41 = vld [vmem:[#allocation2 + $0xe4] sm:$0xf] }
 0x35c   :  { %v6009_v10 = vsel %vm18356_vm11, %v6004_v29, %v6008_v4  ;;  %v2945_v30 = vor.u32 %v2944_v17, %v2940_v39  ;;  %v2950_v28 = vrot.slane %v2948_v32, 5  ;;  %v6013_v52 = vrot.slane %v6011_v46, 4  ;;  %v14916_v17 = vld [vmem:[%s21516_s4 + $0x28] sm:$0xff]  }
 0x35d   :  { %v12575_v50 = vcombine.low %v5999_v40, %v6009_v10  ;;  %v2936_v13 = vrot.slane %v2935_v37, 4  ;;  %v6016_v2 = vrot.slane %v6014_v31, 5  ;;  %v6022_v36 = vrot.slane %v6020_v56, 5  ;;  %v14908_v37 = vld [vmem:[%s21516_s4 + $0x148] sm:$0xff]   ;;  %13588 = vmatprep.subr.bf16.mxu0 %v14916_v17 }
 0x35e   :  { %v6024_v14 = vshrl.u32 %v5894_v7, 16  ;;  %v2946_v24 = vrot.slane %v2945_v30, 4  ;;  %v6030_v16 = vshll.u32 %v5895_v44, 16  ;;  %v6035_v1 = vshrl.u32 %v5896_v47, 16  ;;  %v2488_v7 = vld [vmem:[#allocation2 + $0xe8] sm:$0xf]  ;;  %13589 = vmatpush3.bf16.msra.mxu0 %v14916_v17 }
 0x35f   :  { %13834 = vmatprep.mubr.bf16.mxu1 %v12575_v50  ;;  %v2941_v54 = vsel %vm18356_vm11, %v2936_v13, %v2940_v39  ;;  %v6017_v21 = vor.u32 %v6016_v2, %v6013_v52  ;;  %v6038_v35 = vshll.u32 %v5896_v47, 16  ;;  %v6044_v0 = vshll.u32 %v5897_v49, 16  ;;  %v2550_v10 = vld [vmem:[#allocation2 + $0xec] sm:$0x1]  ;;  %v5899_v13 = vld [vmem:[#allocation2 + $0x30] sm:$0xf] }
 0x360   :  { %v6026_v48 = vrot.slane %v6024_v14, 4  ;;  %v2951_v5 = vsel %vm18356_vm11, %v2946_v24, %v2950_v28  ;;  %v6032_v61 = vrot.slane %v6030_v16, 5  ;;  %v6037_v43 = vrot.slane %v6035_v1, 4  ;;  %v5900_v2 = vld [vmem:[#allocation2 + $0x34] sm:$0xf] }
 0x361   :  { %v6048_v8 = vshrl.u32 %v5897_v49, 16  ;;  %v12350_v42 = vcombine.low %v2941_v54, %v2951_v5  ;;  %v6018_v38 = vrot.slane %v6017_v21, 4  ;;  %v6040_v11 = vrot.slane %v6038_v35, 5  ;;  %v14909_v16 = vld [vmem:[%s21516_s4 + $0x150] sm:$0xff]   ;;  %v5901_v1 = vld [vmem:[#allocation2 + $0x38] sm:$0x1] }
 0x362   :  { %v6027_v9 = vor.u32 %v6026_v48, %v6022_v36  ;;  %v6046_v45 = vrot.slane %v6044_v0, 5  ;;  %v6054_v19 = vshll.u32 %v5898_v15, 16  ;;  %v2953_v51 = vshrl.u32 %v2485_v57, 16  ;;  %v14918_v48 = vld [vmem:[%s21516_s4 + $0x30] sm:$0xff]  }
 0x363   :  { %v6050_v63 = vrot.slane %v6048_v8, 4  ;;  %13543 = vmatmul.mubr.bf16.gmra.mrb[92].mxu0 %v12350_v42  ;;  %v6023_v59 = vsel %vm18356_vm11, %v6018_v38, %v6022_v36  ;;  %v6041_v23 = vor.u32 %v6040_v11, %v6037_v43  ;;  %v2956_v6 = vshll.u32 %v2485_v57, 16  ;;  %13590 = vmatprep.subr.bf16.mxu0 %v14918_v48 }
 0x364   :  { %v6028_v60 = vrot.slane %v6027_v9, 4  ;;  %v6056_v4 = vrot.slane %v6054_v19, 5  ;;  %v2955_v25 = vrot.slane %v2953_v51, 4  ;;  %v2962_v27 = vshll.u32 %v2486_v26, 16  ;;  %v2490_v9 = vld [vmem:[#allocation2 + $0xf4] sm:$0xf]  ;;  %13591 = vmatpush3.bf16.msra.mxu0 %v14918_v48 }
 0x365   :  { %v6051_v22 = vor.u32 %v6050_v63, %v6046_v45  ;;  %v6042_v3 = vrot.slane %v6041_v23, 4  ;;  %v2958_v12 = vrot.slane %v2956_v6, 5  ;;  %v2966_v20 = vshrl.u32 %v2486_v26, 16  ;;  %v14912_v19 = vld [vmem:[%s21516_s4 + $0x158] sm:$0xff]  }
 0x366   :  { %v6033_v18 = vsel %vm18356_vm11, %v6028_v60, %v6032_v61  ;;  %v2964_v29 = vrot.slane %v2962_v27, 5  ;;  %v2972_v39 = vshll.u32 %v2549_v53, 16  ;;  %v2977_v44 = vshrl.u32 %v2487_v41, 16  ;;  %v2489_v61 = vld [vmem:[#allocation2 + $0xf0] sm:$0xf] }
 0x367   :  { %v12576_v58 = vcombine.low %v6023_v59, %v6033_v18  ;;  %v6052_v55 = vrot.slane %v6051_v22, 4  ;;  %v6047_v32 = vsel %vm18356_vm11, %v6042_v3, %v6046_v45  ;;  %v2959_v46 = vor.u32 %v2958_v12, %v2955_v25  ;;  %v2551_v22 = vld [vmem:[#allocation2 + $0xf8] sm:$0x1]  ;;  %v5902_v12 = vld [vmem:[#allocation2 + $0x3c] sm:$0xf] }
 0x368   :  { %v2968_v40 = vrot.slane %v2966_v20, 4  ;;  %v2974_v56 = vrot.slane %v2972_v39, 5  ;;  %v2980_v47 = vshll.u32 %v2487_v41, 16  ;;  %v2986_v50 = vshll.u32 %v2488_v7, 16  ;;  %v14917_v39 = vld [vmem:[%s21516_s4 + $0x160] sm:$0xff]  }
 0x369   :  { %13835 = vmatmul.mubr.bf16.vlgmr.msra.gmra.mrb[32].mxu1 %v12576_v58  ;;  %v6057_v31 = vsel %vm18356_vm11, %v6052_v55, %v6056_v4  ;;  %v2960_v28 = vrot.slane %v2959_v46, 4  ;;  %v2979_v52 = vrot.slane %v2977_v44, 4  ;;  %v2990_v54 = vshrl.u32 %v2488_v7, 16 }
 0x36a   :  { %13899 = vmatpush3.bf16.msra.mxu1 %v18399_v34  ;;  %v12577_v30 = vcombine.low %v6047_v32, %v6057_v31  ;;  %v2969_v49 = vor.u32 %v2968_v40, %v2964_v29  ;;  %v2982_v36 = vrot.slane %v2980_v47, 5  ;;  %v2988_v14 = vrot.slane %v2986_v50, 5  ;;  %v14919_v40 = vld [vmem:[%s21516_s4 + $0x38] sm:$0xff]   ;;  %v5904_v31 = vld [vmem:[#allocation2 + $0x44] sm:$0x1] }
 0x36b   :  { %v2996_v24 = vshll.u32 %v2550_v10, 16  ;;  %13900 = vmatprep.subr.bf16.mxu1 %v14908_v37  ;;  %v2965_v15 = vsel %vm18356_vm11, %v2960_v28, %v2964_v29  ;;  %v6059_v62 = vshrl.u32 %v5899_v13, 16  ;;  %v6062_v21 = vshll.u32 %v5899_v13, 16  ;;  %v5903_v29 = vld [vmem:[#allocation2 + $0x40] sm:$0xf]  ;;  %13592 = vmatprep.subr.bf16.mxu0 %v14919_v40 }
 0x36c   :  { %13838 = vmatprep.mubr.bf16.mxu1 %v12577_v30  ;;  %v2970_v34 = vrot.slane %v2969_v49, 4  ;;  %v2983_v35 = vor.u32 %v2982_v36, %v2979_v52  ;;  %v2992_v0 = vrot.slane %v2990_v54, 4  ;;  %v6068_v5 = vshll.u32 %v5900_v2, 16  ;;  %v2491_v49 = vld [vmem:[#allocation2 + $0xfc] sm:$0xf]  ;;  %13593 = vmatpush3.bf16.msra.mxu0 %v14919_v40 }
 0x36d   :  { %v2998_v57 = vrot.slane %v2996_v24, 5  ;;  %v6061_v8 = vrot.slane %v6059_v62, 4  ;;  %v6064_v42 = vrot.slane %v6062_v21, 5  ;;  %v6072_v38 = vshrl.u32 %v5900_v2, 16  ;;  %v2492_v54 = vld [vmem:[#allocation2 + $0x100] sm:$0xf] }
 0x36e   :  { %v2975_v43 = vsel %vm18356_vm11, %v2970_v34, %v2974_v56  ;;  %13901 = vmatpush3.bf16.msra.mxu1 %v14908_v37  ;;  %v2984_v26 = vrot.slane %v2983_v35, 4  ;;  %v2993_v45 = vor.u32 %v2992_v0, %v2988_v14  ;;  %v6070_v63 = vrot.slane %v6068_v5, 5  ;;  %v2552_v21 = vld [vmem:[#allocation2 + $0x104] sm:$0x1]  ;;  %v5906_v0 = vld [vmem:[#allocation2 + $0x4c] sm:$0xf] }
 0x36f   :  { %v12351_v11 = vcombine.low %v2965_v15, %v2975_v43  ;;  %13902 = vmatprep.subr.bf16.mxu1 %v14909_v16  ;;  %v6065_v51 = vor.u32 %v6064_v42, %v6061_v8  ;;  %v6074_v59 = vrot.slane %v6072_v38, 4  ;;  %v6078_v60 = vshll.u32 %v5901_v1, 16  ;;  %v5905_v8 = vld [vmem:[#allocation2 + $0x48] sm:$0xf] }
 0x370   :  { %v3001_v23 = vshrl.u32 %v2489_v61, 16  ;;  %v2989_v53 = vsel %vm18356_vm11, %v2984_v26, %v2988_v14  ;;  %v2994_v6 = vrot.slane %v2993_v45, 4  ;;  %v3004_v4 = vshll.u32 %v2489_v61, 16 }
 0x371   :  { %13546 = vmatprep.mubr.bf16.mxu0 %v12351_v11  ;;  %v3010_v25 = vshll.u32 %v2490_v9, 16  ;;  %v6066_v27 = vrot.slane %v6065_v51, 4  ;;  %v6075_v41 = vor.u32 %v6074_v59, %v6070_v63  ;;  %v6080_v18 = vrot.slane %v6078_v60, 5 }
 0x372   :  { %v3003_v3 = vrot.slane %v3001_v23, 4  ;;  %13903 = vmatpush3.bf16.msra.mxu1 %v14909_v16  ;;  %v2999_v20 = vsel %vm18356_vm11, %v2994_v6, %v2998_v57  ;;  %v3006_v7 = vrot.slane %v3004_v4, 5  ;;  %v3014_v55 = vshrl.u32 %v2490_v9, 16  ;;  %v5907_v23 = vld [vmem:[#allocation2 + $0x50] sm:$0x1] }
 0x373   :  { %v3012_v58 = vrot.slane %v3010_v25, 5  ;;  %13904 = vmatprep.subr.bf16.mxu1 %v14912_v19  ;;  %v12352_v37 = vcombine.low %v2989_v53, %v2999_v20  ;;  %v6071_v17 = vsel %vm18356_vm11, %v6066_v27, %v6070_v63  ;;  %v6076_v32 = vrot.slane %v6075_v41, 4  ;;  %v2494_v6 = vld [vmem:[#allocation2 + $0x10c] sm:$0xf]  ;;  %v2493_v41 = vld [vmem:[#allocation2 + $0x108] sm:$0xf] }
 0x374   :  { %v3020_v46 = vshll.u32 %v2551_v22, 16  ;;  %v3007_v10 = vor.u32 %v3006_v7, %v3003_v3  ;;  %v3016_v44 = vrot.slane %v3014_v55, 4  ;;  %v6083_v56 = vshrl.u32 %v5902_v12, 16 }
 0x375   :  { %v6086_v47 = vshll.u32 %v5902_v12, 16  ;;  %13547 = vmatmul.mubr.bf16.gmra.mrb[96].mxu0 %v12352_v37  ;;  %v6081_v50 = vsel %vm18356_vm11, %v6076_v32, %v6080_v18  ;;  %v6092_v30 = vshll.u32 %v5903_v29, 16  ;;  %v6096_v28 = vshrl.u32 %v5903_v29, 16  ;;  %v14923_v18 = vld [vmem:[%s21516_s4 + $0x168] sm:$0xff]  }
 0x376   :  { %v3022_v13 = vrot.slane %v3020_v46, 5  ;;  %13905 = vmatpush3.bf16.msra.mxu1 %v14912_v19  ;;  %v12578_v52 = vcombine.low %v6071_v17, %v6081_v50  ;;  %v3008_v2 = vrot.slane %v3007_v10, 4  ;;  %v3017_v36 = vor.u32 %v3016_v44, %v3012_v58  ;;  %v2553_v46 = vld [vmem:[#allocation2 + $0x110] sm:$0x1] }
 0x377   :  { %v6085_v14 = vrot.slane %v6083_v56, 4  ;;  %13906 = vmatprep.subr.bf16.mxu1 %v14917_v39  ;;  %v6088_v24 = vrot.slane %v6086_v47, 5  ;;  %v6094_v16 = vrot.slane %v6092_v30, 5  ;;  %v6098_v15 = vrot.slane %v6096_v28, 4  ;;  %v5908_v47 = vld [vmem:[#allocation2 + $0x54] sm:$0xf] }
 0x378   :  { %v6102_v34 = vshll.u32 %v5904_v31, 16  ;;  %13839 = vmatmul.mubr.bf16.gmra.mrb[36].mxu1 %v12578_v52  ;;  %v3013_v1 = vsel %vm18356_vm11, %v3008_v2, %v3012_v58  ;;  %v3018_v62 = vrot.slane %v3017_v36, 4  ;;  %v3025_v48 = vshrl.u32 %v2491_v49, 16 }
 0x379   :  { %v3028_v35 = vshll.u32 %v2491_v49, 16  ;;  %v6089_v57 = vor.u32 %v6088_v24, %v6085_v14  ;;  %v6099_v5 = vor.u32 %v6098_v15, %v6094_v16  ;;  %v3034_v43 = vshll.u32 %v2492_v54, 16  ;;  %v5909_v49 = vld [vmem:[#allocation2 + $0x58] sm:$0xf] }
 0x37a   :  { %v6104_v61 = vrot.slane %v6102_v34, 5  ;;  %13907 = vmatpush3.bf16.msra.mxu1 %v14917_v39  ;;  %v3023_v42 = vsel %vm18356_vm11, %v3018_v62, %v3022_v13  ;;  %v3027_v38 = vrot.slane %v3025_v48, 4  ;;  %v3038_v11 = vshrl.u32 %v2492_v54, 16 }
 0x37b   :  { %v3030_v9 = vrot.slane %v3028_v35, 5  ;;  %v12353_v26 = vcombine.low %v3013_v1, %v3023_v42  ;;  %v6090_v45 = vrot.slane %v6089_v57, 4  ;;  %v6100_v63 = vrot.slane %v6099_v5, 4  ;;  %13908 = vmatprep.subr.bf16.mxu1 %v14923_v18  ;;  %v2496_v35 = vld [vmem:[#allocation2 + $0x118] sm:$0xf] }
 0x37c   :  { %v3036_v19 = vrot.slane %v3034_v43, 5  ;;  %v3040_v59 = vrot.slane %v3038_v11, 4  ;;  %v3044_v60 = vshll.u32 %v2552_v21, 16  ;;  %v6107_v53 = vshrl.u32 %v5905_v8, 16  ;;  %v5910_v21 = vld [vmem:[#allocation2 + $0x5c] sm:$0x1] }
 0x37d   :  { %v3031_v51 = vor.u32 %v3030_v9, %v3027_v38  ;;  %13550 = vmatprep.mubr.bf16.mxu0 %v12353_v26  ;;  %v6095_v22 = vsel %vm18356_vm11, %v6090_v45, %v6094_v16  ;;  %v6105_v4 = vsel %vm18356_vm11, %v6100_v63, %v6104_v61  ;;  %v6110_v25 = vshll.u32 %v5905_v8, 16  ;;  %v2495_v43 = vld [vmem:[#allocation2 + $0x114] sm:$0xf] }
 0x37e   :  { %v6116_v27 = vshll.u32 %v5906_v0, 16  ;;  %v12579_v3 = vcombine.low %v6095_v22, %v6105_v4  ;;  %v3041_v20 = vor.u32 %v3040_v59, %v3036_v19  ;;  %v3046_v7 = vrot.slane %v3044_v60, 5  ;;  %13909 = vmatpush3.bf16.msra.mxu1 %v14923_v18  ;;  %v2554_v60 = vld [vmem:[#allocation2 + $0x11c] sm:$0x1] }
 0x37f   :  { %v3032_v12 = vrot.slane %v3031_v51, 4  ;;  %v6109_v58 = vrot.slane %v6107_v53, 4  ;;  %v6112_v55 = vrot.slane %v6110_v25, 5  ;;  %v6120_v39 = vshrl.u32 %v5906_v0, 16  ;;  %v5911_v53 = vld [vmem:[#allocation2 + $0x60] sm:$0xf] }
 0x380   :  { %v6118_v29 = vrot.slane %v6116_v27, 5  ;;  %13842 = vmatprep.mubr.bf16.mxu1 %v12579_v3  ;;  %v3042_v17 = vrot.slane %v3041_v20, 4  ;;  %v6126_v32 = vshll.u32 %v5907_v23, 16  ;;  %v3049_v40 = vshrl.u32 %v2493_v41, 16  ;;  %v5912_v27 = vld [vmem:[#allocation2 + $0x64] sm:$0xf] }
 0x381   :  { %v3037_v37 = vsel %vm18356_vm11, %v3032_v12, %v3036_v19  ;;  %v6113_v10 = vor.u32 %v6112_v55, %v6109_v58  ;;  %v6122_v44 = vrot.slane %v6120_v39, 4  ;;  %v3052_v31 = vshll.u32 %v2493_v41, 16 }
 0x382   :  { %v3058_v56 = vshll.u32 %v2494_v6, 16  ;;  %v3047_v50 = vsel %vm18356_vm11, %v3042_v17, %v3046_v7  ;;  %v6128_v13 = vrot.slane %v6126_v32, 5  ;;  %v3051_v30 = vrot.slane %v3049_v40, 4 }
 0x383   :  { %v3062_v28 = vshrl.u32 %v2494_v6, 16  ;;  %v12354_v52 = vcombine.low %v3037_v37, %v3047_v50  ;;  %v6114_v2 = vrot.slane %v6113_v10, 4  ;;  %v6123_v36 = vor.u32 %v6122_v44, %v6118_v29 }
 0x384   :  { %v3054_v14 = vrot.slane %v3052_v31, 5  ;;  %v3060_v54 = vrot.slane %v3058_v56, 5  ;;  %v3068_v16 = vshll.u32 %v2553_v46, 16  ;;  %v6131_v15 = vshrl.u32 %v5908_v47, 16  ;;  %v2497_v31 = vld [vmem:[#allocation2 + $0x120] sm:$0xf] }
 0x385   :  { %v3064_v24 = vrot.slane %v3062_v28, 4  ;;  %13551 = vmatmul.mubr.bf16.gmra.mrb[100].mxu0 %v12354_v52  ;;  %v6119_v34 = vsel %vm18356_vm11, %v6114_v2, %v6118_v29  ;;  %v6124_v1 = vrot.slane %v6123_v36, 4  ;;  %v6134_v48 = vshll.u32 %v5908_v47, 16  ;;  %v5913_v29 = vld [vmem:[#allocation2 + $0x68] sm:$0x1] }
 0x386   :  { %v3055_v62 = vor.u32 %v3054_v14, %v3051_v30  ;;  %v3070_v57 = vrot.slane %v3068_v16, 5  ;;  %v6133_v5 = vrot.slane %v6131_v15, 4  ;;  %v6140_v61 = vshll.u32 %v5909_v49, 16  ;;  %v2498_v30 = vld [vmem:[#allocation2 + $0x124] sm:$0xf]  ;;  %v14928_v14 = vld [vmem:[%s21516_s4 + $0x170] sm:$0xff]  }
 0x387   :  { %v3065_v0 = vor.u32 %v3064_v24, %v3060_v54  ;;  %v6129_v8 = vsel %vm18356_vm11, %v6124_v1, %v6128_v13  ;;  %v6136_v38 = vrot.slane %v6134_v48, 5  ;;  %v6144_v9 = vshrl.u32 %v5909_v49, 16  ;;  %v2555_v36 = vld [vmem:[#allocation2 + $0x128] sm:$0x1]  ;;  %13910 = vmatprep.subr.bf16.mxu1 %v14928_v14 }
 0x388   :  { %v3056_v42 = vrot.slane %v3055_v62, 4  ;;  %v12580_v11 = vcombine.low %v6119_v34, %v6129_v8  ;;  %v6142_v45 = vrot.slane %v6140_v61, 5  ;;  %v6150_v63 = vshll.u32 %v5910_v21, 16  ;;  %13911 = vmatpush3.bf16.msra.mxu1 %v14928_v14 }
 0x389   :  { %v3066_v26 = vrot.slane %v3065_v0, 4  ;;  %v6137_v51 = vor.u32 %v6136_v38, %v6133_v5  ;;  %v6146_v59 = vrot.slane %v6144_v9, 4  ;;  %v3073_v23 = vshrl.u32 %v2495_v43, 16  ;;  %v5914_v5 = vld [vmem:[#allocation2 + $0x6c] sm:$0xf] }
 0x38a   :  { %v3061_v19 = vsel %vm18356_vm11, %v3056_v42, %v3060_v54  ;;  %13843 = vmatmul.mubr.bf16.gmra.mrb[40].mxu1 %v12580_v11  ;;  %v6152_v22 = vrot.slane %v6150_v63, 5  ;;  %v3076_v4 = vshll.u32 %v2495_v43, 16  ;;  %v3082_v25 = vshll.u32 %v2496_v35, 16  ;;  %v5915_v38 = vld [vmem:[#allocation2 + $0x70] sm:$0xf] }
 0x38b   :  { %v3071_v6 = vsel %vm18356_vm11, %v3066_v26, %v3070_v57  ;;  %v6138_v18 = vrot.slane %v6137_v51, 4  ;;  %v6147_v3 = vor.u32 %v6146_v59, %v6142_v45  ;;  %v3075_v12 = vrot.slane %v3073_v23, 4  ;;  %v5916_v51 = vld [vmem:[#allocation2 + $0x74] sm:$0x1] }
 0x38c   :  { %v12355_v41 = vcombine.low %v3061_v19, %v3071_v6  ;;  %v3078_v20 = vrot.slane %v3076_v4, 5  ;;  %v3084_v7 = vrot.slane %v3082_v25, 5  ;;  %v3086_v58 = vshrl.u32 %v2496_v35, 16  ;;  %v2499_v4 = vld [vmem:[#allocation2 + $0x12c] sm:$0xf] }
 0x38d   :  { %v3092_v55 = vshll.u32 %v2554_v60, 16  ;;  %v6143_v39 = vsel %vm18356_vm11, %v6138_v18, %v6142_v45  ;;  %v6148_v37 = vrot.slane %v6147_v3, 4  ;;  %v6155_v17 = vshrl.u32 %v5911_v53, 16  ;;  %v2500_v3 = vld [vmem:[#allocation2 + $0x130] sm:$0xf] }
 0x38e   :  { %13554 = vmatprep.mubr.bf16.mxu0 %v12355_v41  ;;  %v6158_v32 = vshll.u32 %v5911_v53, 16  ;;  %v3079_v46 = vor.u32 %v3078_v20, %v3075_v12  ;;  %v3088_v40 = vrot.slane %v3086_v58, 4  ;;  %v6164_v44 = vshll.u32 %v5912_v27, 16 }
 0x38f   :  { %v3094_v10 = vrot.slane %v3092_v55, 5  ;;  %v6153_v56 = vsel %vm18356_vm11, %v6148_v37, %v6152_v22  ;;  %v6157_v47 = vrot.slane %v6155_v17, 4  ;;  %v6168_v13 = vshrl.u32 %v5912_v27, 16 }
 0x390   :  { %v6160_v50 = vrot.slane %v6158_v32, 5  ;;  %v12581_v28 = vcombine.low %v6143_v39, %v6153_v56  ;;  %v3080_v49 = vrot.slane %v3079_v46, 4  ;;  %v3089_v52 = vor.u32 %v3088_v40, %v3084_v7  ;;  %v2556_v40 = vld [vmem:[#allocation2 + $0x134] sm:$0x1] }
 0x391   :  { %v6166_v2 = vrot.slane %v6164_v44, 5  ;;  %v6170_v24 = vrot.slane %v6168_v13, 4  ;;  %v6174_v16 = vshll.u32 %v5913_v29, 16  ;;  %v3097_v15 = vshrl.u32 %v2497_v31, 16  ;;  %v5917_v44 = vld [vmem:[#allocation2 + $0x78] sm:$0xf] }
 0x392   :  { %v6161_v54 = vor.u32 %v6160_v50, %v6157_v47  ;;  %13846 = vmatprep.mubr.bf16.mxu1 %v12581_v28  ;;  %v3085_v34 = vsel %vm18356_vm11, %v3080_v49, %v3084_v7  ;;  %v3090_v1 = vrot.slane %v3089_v52, 4  ;;  %v3100_v62 = vshll.u32 %v2497_v31, 16  ;;  %v5918_v13 = vld [vmem:[#allocation2 + $0x7c] sm:$0xf] }
 0x393   :  { %v3106_v21 = vshll.u32 %v2498_v30, 16  ;;  %v6171_v35 = vor.u32 %v6170_v24, %v6166_v2  ;;  %v6176_v0 = vrot.slane %v6174_v16, 5  ;;  %v3099_v57 = vrot.slane %v3097_v15, 4  ;;  %v5919_v15 = vld [vmem:[#allocation2 + $0x80] sm:$0x1] }
 0x394   :  { %v6162_v48 = vrot.slane %v6161_v54, 4  ;;  %v3095_v61 = vsel %vm18356_vm11, %v3090_v1, %v3094_v10  ;;  %v3102_v43 = vrot.slane %v3100_v62, 5  ;;  %v3110_v42 = vshrl.u32 %v2498_v30, 16  ;;  %v2501_v62 = vld [vmem:[#allocation2 + $0x138] sm:$0xf] }
 0x395   :  { %v3108_v8 = vrot.slane %v3106_v21, 5  ;;  %v12356_v9 = vcombine.low %v3085_v34, %v3095_v61  ;;  %v6172_v26 = vrot.slane %v6171_v35, 4  ;;  %v3116_v45 = vshll.u32 %v2555_v36, 16 }
 0x396   :  { %v6167_v11 = vsel %vm18356_vm11, %v6162_v48, %v6166_v2  ;;  %v3103_v63 = vor.u32 %v3102_v43, %v3099_v57  ;;  %v3112_v19 = vrot.slane %v3110_v42, 4  ;;  %v6179_v59 = vshrl.u32 %v5914_v5, 16  ;;  %v2502_v57 = vld [vmem:[#allocation2 + $0x13c] sm:$0xf]  ;;  %v2557_v42 = vld [vmem:[#allocation2 + $0x140] sm:$0x1] }
 0x397   :  { %v6182_v60 = vshll.u32 %v5914_v5, 16  ;;  %13555 = vmatmul.mubr.bf16.gmra.mrb[104].mxu0 %v12356_v9  ;;  %v6177_v23 = vsel %vm18356_vm11, %v6172_v26, %v6176_v0  ;;  %v3118_v53 = vrot.slane %v3116_v45, 5  ;;  %v6188_v6 = vshll.u32 %v5915_v38, 16  ;;  %v14933_v9 = vld [vmem:[%s21516_s4 + $0x178] sm:$0xff]  }
 0x398   :  { %v6192_v22 = vshrl.u32 %v5915_v38, 16  ;;  %v12582_v25 = vcombine.low %v6167_v11, %v6177_v23  ;;  %v3104_v27 = vrot.slane %v3103_v63, 4  ;;  %v3113_v41 = vor.u32 %v3112_v19, %v3108_v8  ;;  %v5920_v38 = vld [vmem:[#allocation2 + $0x84] sm:$0xf]  ;;  %v5921_v23 = vld [vmem:[#allocation2 + $0x88] sm:$0xf]  ;;  %13912 = vmatprep.subr.bf16.mxu1 %v14933_v9 }
 0x399   :  { %v6181_v18 = vrot.slane %v6179_v59, 4  ;;  %v6184_v12 = vrot.slane %v6182_v60, 5  ;;  %v6190_v20 = vrot.slane %v6188_v6, 5  ;;  %v6198_v58 = vshll.u32 %v5916_v51, 16  ;;  %13913 = vmatpush3.bf16.msra.mxu1 %v14933_v9 }
 0x39a   :  { %v6194_v7 = vrot.slane %v6192_v22, 4  ;;  %13847 = vmatmul.mubr.bf16.gmra.mrb[44].mxu1 %v12582_v25  ;;  %v3109_v55 = vsel %vm18356_vm11, %v3104_v27, %v3108_v8  ;;  %v3114_v29 = vrot.slane %v3113_v41, 4  ;;  %v3121_v39 = vshrl.u32 %v2499_v4, 16 }
 0x39b   :  { %v3124_v37 = vshll.u32 %v2499_v4, 16  ;;  %v6185_v17 = vor.u32 %v6184_v12, %v6181_v18  ;;  %v6200_v46 = vrot.slane %v6198_v58, 5  ;;  %v3130_v10 = vshll.u32 %v2500_v3, 16 }
 0x39c   :  { %v6195_v32 = vor.u32 %v6194_v7, %v6190_v20  ;;  %v3119_v31 = vsel %vm18356_vm11, %v3114_v29, %v3118_v53  ;;  %v3123_v56 = vrot.slane %v3121_v39, 4  ;;  %v3134_v50 = vshrl.u32 %v2500_v3, 16  ;;  %v5922_v3 = vld [vmem:[#allocation2 + $0x8c] sm:$0x1] }
 0x39d   :  { %v3126_v47 = vrot.slane %v3124_v37, 5  ;;  %v12357_v30 = vcombine.low %v3109_v55, %v3119_v31  ;;  %v6186_v28 = vrot.slane %v6185_v17, 4  ;;  %v3132_v52 = vrot.slane %v3130_v10, 5  ;;  %v2503_v55 = vld [vmem:[#allocation2 + $0x144] sm:$0xf] }
 0x39e   :  { %v6196_v49 = vrot.slane %v6195_v32, 4  ;;  %v3136_v36 = vrot.slane %v3134_v50, 4  ;;  %v3140_v14 = vshll.u32 %v2556_v40, 16  ;;  %v6203_v54 = vshrl.u32 %v5917_v44, 16 }
 0x39f   :  { %v3127_v2 = vor.u32 %v3126_v47, %v3123_v56  ;;  %13558 = vmatprep.mubr.bf16.mxu0 %v12357_v30  ;;  %v6191_v24 = vsel %vm18356_vm11, %v6186_v28, %v6190_v20  ;;  %v6206_v34 = vshll.u32 %v5917_v44, 16  ;;  %v6212_v1 = vshll.u32 %v5918_v13, 16  ;;  %v2504_v44 = vld [vmem:[#allocation2 + $0x148] sm:$0xf] }
 0x3a0   :  { %v6201_v16 = vsel %vm18356_vm11, %v6196_v49, %v6200_v46  ;;  %v3137_v35 = vor.u32 %v3136_v36, %v3132_v52  ;;  %v3142_v0 = vrot.slane %v3140_v14, 5  ;;  %v6205_v5 = vrot.slane %v6203_v54, 4 }
 0x3a1   :  { %v12583_v21 = vcombine.low %v6191_v24, %v6201_v16  ;;  %v3128_v48 = vrot.slane %v3127_v2, 4  ;;  %v6208_v61 = vrot.slane %v6206_v34, 5  ;;  %v6214_v43 = vrot.slane %v6212_v1, 5  ;;  %v5923_v2 = vld [vmem:[#allocation2 + $0x90] sm:$0xf] }
 0x3a2   :  { %v6216_v8 = vshrl.u32 %v5918_v13, 16  ;;  %v3138_v26 = vrot.slane %v3137_v35, 4  ;;  %v6222_v45 = vshll.u32 %v5919_v15, 16  ;;  %v3145_v63 = vshrl.u32 %v2501_v62, 16  ;;  %v2558_v13 = vld [vmem:[#allocation2 + $0x14c] sm:$0x1] }
 0x3a3   :  { %13850 = vmatprep.mubr.bf16.mxu1 %v12583_v21  ;;  %v3133_v11 = vsel %vm18356_vm11, %v3128_v48, %v3132_v52  ;;  %v6209_v19 = vor.u32 %v6208_v61, %v6205_v5  ;;  %v3148_v59 = vshll.u32 %v2501_v62, 16  ;;  %v3154_v60 = vshll.u32 %v2502_v57, 16  ;;  %v5924_v62 = vld [vmem:[#allocation2 + $0x94] sm:$0xf] }
 0x3a4   :  { %v6218_v51 = vrot.slane %v6216_v8, 4  ;;  %v3143_v53 = vsel %vm18356_vm11, %v3138_v26, %v3142_v0  ;;  %v6224_v6 = vrot.slane %v6222_v45, 5  ;;  %v3147_v22 = vrot.slane %v3145_v63, 4  ;;  %v5925_v8 = vld [vmem:[#allocation2 + $0x98] sm:$0x1]  ;;  %v14938_v63 = vld [vmem:[%s21516_s4 + $0x180] sm:$0xff]  }
 0x3a5   :  { %v3158_v4 = vshrl.u32 %v2502_v57, 16  ;;  %v12358_v25 = vcombine.low %v3133_v11, %v3143_v53  ;;  %v6210_v27 = vrot.slane %v6209_v19, 4  ;;  %v3150_v18 = vrot.slane %v3148_v59, 5  ;;  %v2506_v45 = vld [vmem:[#allocation2 + $0x154] sm:$0xf]  ;;  %13978 = vmatprep.subr.bf16.mxu1 %v14938_v63 }
 0x3a6   :  { %v6219_v41 = vor.u32 %v6218_v51, %v6214_v43  ;;  %v3156_v12 = vrot.slane %v3154_v60, 5  ;;  %v3164_v7 = vshll.u32 %v2557_v42, 16  ;;  %v6227_v58 = vshrl.u32 %v5920_v38, 16  ;;  %v2505_v42 = vld [vmem:[#allocation2 + $0x150] sm:$0xf] }
 0x3a7   :  { %v3160_v20 = vrot.slane %v3158_v4, 4  ;;  %13559 = vmatmul.mubr.bf16.gmra.mrb[108].mxu0 %v12358_v25  ;;  %v6215_v29 = vsel %vm18356_vm11, %v6210_v27, %v6214_v43  ;;  %v3151_v37 = vor.u32 %v3150_v18, %v3147_v22  ;;  %v6230_v17 = vshll.u32 %v5920_v38, 16  ;;  %v2559_v18 = vld [vmem:[#allocation2 + $0x158] sm:$0x1] }
 0x3a8   :  { %v6220_v39 = vrot.slane %v6219_v41, 4  ;;  %v3166_v46 = vrot.slane %v3164_v7, 5  ;;  %v6229_v40 = vrot.slane %v6227_v58, 4  ;;  %v6236_v10 = vshll.u32 %v5921_v23, 16  ;;  %v5926_v58 = vld [vmem:[#allocation2 + $0x9c] sm:$0xf] }
 0x3a9   :  { %v3161_v32 = vor.u32 %v3160_v20, %v3156_v12  ;;  %v3152_v56 = vrot.slane %v3151_v37, 4  ;;  %v6232_v47 = vrot.slane %v6230_v17, 5  ;;  %v6240_v50 = vshrl.u32 %v5921_v23, 16 }
 0x3aa   :  { %v6225_v31 = vsel %vm18356_vm11, %v6220_v39, %v6224_v6  ;;  %v6238_v49 = vrot.slane %v6236_v10, 5  ;;  %v6246_v52 = vshll.u32 %v5922_v3, 16  ;;  %v3169_v24 = vshrl.u32 %v2503_v55, 16  ;;  %v5927_v10 = vld [vmem:[#allocation2 + $0xa0] sm:$0xf] }
 0x3ab   :  { %v12584_v30 = vcombine.low %v6215_v29, %v6225_v31  ;;  %v3162_v28 = vrot.slane %v3161_v32, 4  ;;  %v3157_v36 = vsel %vm18356_vm11, %v3152_v56, %v3156_v12  ;;  %v6233_v14 = vor.u32 %v6232_v47, %v6229_v40 }
 0x3ac   :  { %v6242_v54 = vrot.slane %v6240_v50, 4  ;;  %v6248_v15 = vrot.slane %v6246_v52, 5  ;;  %v3172_v34 = vshll.u32 %v2503_v55, 16  ;;  %v3178_v1 = vshll.u32 %v2504_v44, 16  ;;  %v5928_v50 = vld [vmem:[#allocation2 + $0xa4] sm:$0x1] }
 0x3ad   :  { %13851 = vmatmul.mubr.bf16.gmra.mrb[48].mxu1 %v12584_v30  ;;  %v3167_v16 = vsel %vm18356_vm11, %v3162_v28, %v3166_v46  ;;  %v6234_v48 = vrot.slane %v6233_v14, 4  ;;  %v3171_v0 = vrot.slane %v3169_v24, 4  ;;  %v3182_v61 = vshrl.u32 %v2504_v44, 16 }
 0x3ae   :  { %v12359_v21 = vcombine.low %v3157_v36, %v3167_v16  ;;  %v6243_v35 = vor.u32 %v6242_v54, %v6238_v49  ;;  %v3174_v57 = vrot.slane %v3172_v34, 5  ;;  %v3180_v5 = vrot.slane %v3178_v1, 5  ;;  %v2507_v54 = vld [vmem:[#allocation2 + $0x15c] sm:$0xf]  ;;  %v2508_v1 = vld [vmem:[#allocation2 + $0x160] sm:$0xf] }
 0x3af   :  { %v3188_v43 = vshll.u32 %v2558_v13, 16  ;;  %v6239_v38 = vsel %vm18356_vm11, %v6234_v48, %v6238_v49  ;;  %v6251_v11 = vshrl.u32 %v5923_v2, 16  ;;  %v6254_v26 = vshll.u32 %v5923_v2, 16 }
 0x3b0   :  { %13562 = vmatprep.mubr.bf16.mxu0 %v12359_v21  ;;  %v6244_v9 = vrot.slane %v6243_v35, 4  ;;  %v3175_v19 = vor.u32 %v3174_v57, %v3171_v0  ;;  %v3184_v51 = vrot.slane %v3182_v61, 4  ;;  %v6260_v60 = vshll.u32 %v5924_v62, 16 }
 0x3b1   :  { %v3190_v59 = vrot.slane %v3188_v43, 5  ;;  %v6253_v53 = vrot.slane %v6251_v11, 4  ;;  %v6256_v6 = vrot.slane %v6254_v26, 5  ;;  %v6264_v22 = vshrl.u32 %v5924_v62, 16  ;;  %v2560_v43 = vld [vmem:[#allocation2 + $0x164] sm:$0x1] }
 0x3b2   :  { %v6249_v23 = vsel %vm18356_vm11, %v6244_v9, %v6248_v15  ;;  %v3176_v25 = vrot.slane %v3175_v19, 4  ;;  %v3185_v27 = vor.u32 %v3184_v51, %v3180_v5  ;;  %v6262_v41 = vrot.slane %v6260_v60, 5  ;;  %v5930_v26 = vld [vmem:[#allocation2 + $0xac] sm:$0xf] }
 0x3b3   :  { %v12585_v4 = vcombine.low %v6239_v38, %v6249_v23  ;;  %v6257_v3 = vor.u32 %v6256_v6, %v6253_v53  ;;  %v6266_v12 = vrot.slane %v6264_v22, 4  ;;  %v6270_v20 = vshll.u32 %v5925_v8, 16  ;;  %v5929_v8 = vld [vmem:[#allocation2 + $0xa8] sm:$0xf] }
 0x3b4   :  { %v3193_v7 = vshrl.u32 %v2505_v42, 16  ;;  %v3181_v55 = vsel %vm18356_vm11, %v3176_v25, %v3180_v5  ;;  %v3186_v29 = vrot.slane %v3185_v27, 4  ;;  %v3196_v39 = vshll.u32 %v2505_v42, 16  ;;  %v5931_v27 = vld [vmem:[#allocation2 + $0xb0] sm:$0x1] }
 0x3b5   :  { %13854 = vmatprep.mubr.bf16.mxu1 %v12585_v4  ;;  %v3202_v37 = vshll.u32 %v2506_v45, 16  ;;  %v6258_v17 = vrot.slane %v6257_v3, 4  ;;  %v6267_v32 = vor.u32 %v6266_v12, %v6262_v41  ;;  %v6272_v46 = vrot.slane %v6270_v20, 5  ;;  %v2509_v20 = vld [vmem:[#allocation2 + $0x168] sm:$0xf] }
 0x3b6   :  { %v3195_v40 = vrot.slane %v3193_v7, 4  ;;  %v3191_v44 = vsel %vm18356_vm11, %v3186_v29, %v3190_v59  ;;  %v3198_v31 = vrot.slane %v3196_v39, 5  ;;  %v3206_v47 = vshrl.u32 %v2506_v45, 16 }
 0x3b7   :  { %v3204_v56 = vrot.slane %v3202_v37, 5  ;;  %v12360_v13 = vcombine.low %v3181_v55, %v3191_v44  ;;  %v6263_v30 = vsel %vm18356_vm11, %v6258_v17, %v6262_v41  ;;  %v6268_v28 = vrot.slane %v6267_v32, 4 }
 0x3b8   :  { %v3212_v49 = vshll.u32 %v2559_v18, 16  ;;  %v3199_v52 = vor.u32 %v3198_v31, %v3195_v40  ;;  %v3208_v2 = vrot.slane %v3206_v47, 4  ;;  %v6275_v36 = vshrl.u32 %v5926_v58, 16 }
 0x3b9   :  { %v6278_v14 = vshll.u32 %v5926_v58, 16  ;;  %13563 = vmatmul.mubr.bf16.gmra.mrb[112].mxu0 %v12360_v13  ;;  %v6273_v24 = vsel %vm18356_vm11, %v6268_v28, %v6272_v46  ;;  %v6284_v15 = vshll.u32 %v5927_v10, 16  ;;  %v6288_v34 = vshrl.u32 %v5927_v10, 16  ;;  %v2510_v46 = vld [vmem:[#allocation2 + $0x16c] sm:$0xf] }
 0x3ba   :  { %v3214_v16 = vrot.slane %v3212_v49, 5  ;;  %v12586_v62 = vcombine.low %v6263_v30, %v6273_v24  ;;  %v3200_v21 = vrot.slane %v3199_v52, 4  ;;  %v3209_v48 = vor.u32 %v3208_v2, %v3204_v56  ;;  %v2561_v13 = vld [vmem:[#allocation2 + $0x170] sm:$0x1] }
 0x3bb   :  { %v6277_v35 = vrot.slane %v6275_v36, 4  ;;  %v6280_v0 = vrot.slane %v6278_v14, 5  ;;  %v6286_v57 = vrot.slane %v6284_v15, 5  ;;  %v6290_v5 = vrot.slane %v6288_v34, 4  ;;  %v5932_v36 = vld [vmem:[#allocation2 + $0xb4] sm:$0xf] }
 0x3bc   :  { %v6294_v61 = vshll.u32 %v5928_v50, 16  ;;  %13855 = vmatmul.mubr.bf16.gmra.mrb[52].mxu1 %v12586_v62  ;;  %v3205_v42 = vsel %vm18356_vm11, %v3200_v21, %v3204_v56  ;;  %v3210_v38 = vrot.slane %v3209_v48, 4  ;;  %v3217_v9 = vshrl.u32 %v2507_v54, 16  ;;  %v5933_v21 = vld [vmem:[#allocation2 + $0xb8] sm:$0xf] }
 0x3bd   :  { %v3220_v11 = vshll.u32 %v2507_v54, 16  ;;  %v6281_v45 = vor.u32 %v6280_v0, %v6277_v35  ;;  %v6291_v63 = vor.u32 %v6290_v5, %v6286_v57  ;;  %v3226_v51 = vshll.u32 %v2508_v1, 16 }
 0x3be   :  { %v6296_v19 = vrot.slane %v6294_v61, 5  ;;  %v3215_v59 = vsel %vm18356_vm11, %v3210_v38, %v3214_v16  ;;  %v3219_v60 = vrot.slane %v3217_v9, 4  ;;  %v3230_v53 = vshrl.u32 %v2508_v1, 16 }
 0x3bf   :  { %v3222_v23 = vrot.slane %v3220_v11, 5  ;;  %v12361_v6 = vcombine.low %v3205_v42, %v3215_v59  ;;  %v6282_v22 = vrot.slane %v6281_v45, 4  ;;  %v6292_v4 = vrot.slane %v6291_v63, 4  ;;  %v2511_v45 = vld [vmem:[#allocation2 + $0x174] sm:$0xf] }
 0x3c0   :  { %v3228_v25 = vrot.slane %v3226_v51, 5  ;;  %v3232_v18 = vrot.slane %v3230_v53, 4  ;;  %v3236_v3 = vshll.u32 %v2560_v43, 16  ;;  %v6299_v12 = vshrl.u32 %v5929_v8, 16 }
 0x3c1   :  { %v3223_v41 = vor.u32 %v3222_v23, %v3219_v60  ;;  %13566 = vmatprep.mubr.bf16.mxu0 %v12361_v6  ;;  %v6287_v7 = vsel %vm18356_vm11, %v6282_v22, %v6286_v57  ;;  %v6297_v58 = vsel %vm18356_vm11, %v6292_v4, %v6296_v19  ;;  %v6302_v55 = vshll.u32 %v5929_v8, 16  ;;  %v5934_v8 = vld [vmem:[#allocation2 + $0xbc] sm:$0x1]  ;;  %v2512_v60 = vld [vmem:[#allocation2 + $0x178] sm:$0xf] }
 0x3c2   :  { %v6308_v29 = vshll.u32 %v5930_v26, 16  ;;  %v12587_v39 = vcombine.low %v6287_v7, %v6297_v58  ;;  %v3233_v17 = vor.u32 %v3232_v18, %v3228_v25  ;;  %v3238_v32 = vrot.slane %v3236_v3, 5  ;;  %v5935_v58 = vld [vmem:[#allocation2 + $0xc0] sm:$0xf] }
 0x3c3   :  { %v3224_v37 = vrot.slane %v3223_v41, 4  ;;  %v6301_v40 = vrot.slane %v6299_v12, 4  ;;  %v6304_v10 = vrot.slane %v6302_v55, 5  ;;  %v6312_v31 = vshrl.u32 %v5930_v26, 16  ;;  %v2562_v41 = vld [vmem:[#allocation2 + $0x17c] sm:$0x1] }
 0x3c4   :  { %v6310_v44 = vrot.slane %v6308_v29, 5  ;;  %13858 = vmatprep.mubr.bf16.mxu1 %v12587_v39  ;;  %v3234_v47 = vrot.slane %v3233_v17, 4  ;;  %v6318_v50 = vshll.u32 %v5931_v27, 16  ;;  %v3241_v30 = vshrl.u32 %v2509_v20, 16  ;;  %v5936_v17 = vld [vmem:[#allocation2 + $0xc4] sm:$0xf] }
 0x3c5   :  { %v3229_v56 = vsel %vm18356_vm11, %v3224_v37, %v3228_v25  ;;  %v6305_v28 = vor.u32 %v6304_v10, %v6301_v40  ;;  %v6314_v49 = vrot.slane %v6312_v31, 4  ;;  %v3244_v52 = vshll.u32 %v2509_v20, 16 }
 0x3c6   :  { %v3250_v2 = vshll.u32 %v2510_v46, 16  ;;  %v3239_v14 = vsel %vm18356_vm11, %v3234_v47, %v3238_v32  ;;  %v6320_v54 = vrot.slane %v6318_v50, 5  ;;  %v3243_v24 = vrot.slane %v3241_v30, 4 }
 0x3c7   :  { %v3254_v16 = vshrl.u32 %v2510_v46, 16  ;;  %v12362_v15 = vcombine.low %v3229_v56, %v3239_v14  ;;  %v6306_v34 = vrot.slane %v6305_v28, 4  ;;  %v6315_v1 = vor.u32 %v6314_v49, %v6310_v44  ;;  %v5937_v56 = vld [vmem:[#allocation2 + $0xc8] sm:$0x1] }
 0x3c8   :  { %v3246_v62 = vrot.slane %v3244_v52, 5  ;;  %v3252_v48 = vrot.slane %v3250_v2, 5  ;;  %v3260_v0 = vshll.u32 %v2561_v13, 16  ;;  %v6323_v57 = vshrl.u32 %v5932_v36, 16  ;;  %v2513_v52 = vld [vmem:[#allocation2 + $0x180] sm:$0xf] }
 0x3c9   :  { %v3256_v35 = vrot.slane %v3254_v16, 4  ;;  %13567 = vmatmul.mubr.bf16.gmra.mrb[116].mxu0 %v12362_v15  ;;  %v6311_v5 = vsel %vm18356_vm11, %v6306_v34, %v6310_v44  ;;  %v6316_v61 = vrot.slane %v6315_v1, 4  ;;  %v6326_v42 = vshll.u32 %v5932_v36, 16 }
 0x3ca   :  { %v3247_v43 = vor.u32 %v3246_v62, %v3243_v24  ;;  %v3262_v9 = vrot.slane %v3260_v0, 5  ;;  %v6325_v11 = vrot.slane %v6323_v57, 4  ;;  %v6332_v26 = vshll.u32 %v5933_v21, 16  ;;  %v2514_v24 = vld [vmem:[#allocation2 + $0x184] sm:$0xf] }
 0x3cb   :  { %v3257_v38 = vor.u32 %v3256_v35, %v3252_v48  ;;  %v6321_v63 = vsel %vm18356_vm11, %v6316_v61, %v6320_v54  ;;  %v6328_v51 = vrot.slane %v6326_v42, 5  ;;  %v6336_v59 = vshrl.u32 %v5933_v21, 16 }
 0x3cc   :  { %v3248_v19 = vrot.slane %v3247_v43, 4  ;;  %v12588_v23 = vcombine.low %v6311_v5, %v6321_v63  ;;  %v6334_v6 = vrot.slane %v6332_v26, 5  ;;  %v6342_v22 = vshll.u32 %v5934_v8, 16  ;;  %v2563_v5 = vld [vmem:[#allocation2 + $0x188] sm:$0x1]  ;;  %v18610_v26 = vld [vmem:[%s21516_s4 + $0x80] sm:$0xff]  }
 0x3cd   :  { %v3258_v53 = vrot.slane %v3257_v38, 4  ;;  %v6329_v25 = vor.u32 %v6328_v51, %v6325_v11  ;;  %v6338_v27 = vrot.slane %v6336_v59, 4  ;;  %v3265_v18 = vshrl.u32 %v2511_v45, 16  ;;  %v5938_v11 = vld [vmem:[#allocation2 + $0xe4] sm:$0xf]  ;;  %13658 = vmatprep.subr.bf16.mxu0 %v18610_v26 }
 0x3ce   :  { %v3253_v4 = vsel %vm18356_vm11, %v3248_v19, %v3252_v48  ;;  %13859 = vmatmul.mubr.bf16.gmra.mrb[56].mxu1 %v12588_v23  ;;  %v6344_v12 = vrot.slane %v6342_v22, 5  ;;  %v3268_v20 = vshll.u32 %v2511_v45, 16  ;;  %v3274_v7 = vshll.u32 %v2512_v60, 16  ;;  %v5939_v59 = vld [vmem:[#allocation2 + $0xe8] sm:$0xf] }
 0x3cf   :  { %v3263_v3 = vsel %vm18356_vm11, %v3258_v53, %v3262_v9  ;;  %v6330_v29 = vrot.slane %v6329_v25, 4  ;;  %v6339_v39 = vor.u32 %v6338_v27, %v6334_v6  ;;  %v3267_v37 = vrot.slane %v3265_v18, 4  ;;  %v5940_v25 = vld [vmem:[#allocation2 + $0xec] sm:$0x1] }
 0x3d0   :  { %v12363_v55 = vcombine.low %v3253_v4, %v3263_v3  ;;  %v3270_v32 = vrot.slane %v3268_v20, 5  ;;  %v3276_v46 = vrot.slane %v3274_v7, 5  ;;  %v3278_v40 = vshrl.u32 %v2512_v60, 16  ;;  %v2515_v7 = vld [vmem:[#allocation2 + $0x18c] sm:$0xf] }
 0x3d1   :  { %v3284_v10 = vshll.u32 %v2562_v41, 16  ;;  %v6335_v44 = vsel %vm18356_vm11, %v6330_v29, %v6334_v6  ;;  %v6340_v31 = vrot.slane %v6339_v39, 4  ;;  %v6347_v47 = vshrl.u32 %v5935_v58, 16 }
 0x3d2   :  { %13570 = vmatprep.mubr.bf16.mxu0 %v12363_v55  ;;  %v6350_v50 = vshll.u32 %v5935_v58, 16  ;;  %v3271_v13 = vor.u32 %v3270_v32, %v3267_v37  ;;  %v3280_v30 = vrot.slane %v3278_v40, 4  ;;  %v6356_v49 = vshll.u32 %v5936_v17, 16  ;;  %v2516_v37 = vld [vmem:[#allocation2 + $0x190] sm:$0xf] }
 0x3d3   :  { %v3286_v28 = vrot.slane %v3284_v10, 5  ;;  %v6345_v2 = vsel %vm18356_vm11, %v6340_v31, %v6344_v12  ;;  %v6349_v36 = vrot.slane %v6347_v47, 4  ;;  %v6360_v54 = vshrl.u32 %v5936_v17, 16 }
 0x3d4   :  { %v6352_v14 = vrot.slane %v6350_v50, 5  ;;  %v12589_v16 = vcombine.low %v6335_v44, %v6345_v2  ;;  %v3272_v15 = vrot.slane %v3271_v13, 4  ;;  %v3281_v34 = vor.u32 %v3280_v30, %v3276_v46  ;;  %v2564_v30 = vld [vmem:[#allocation2 + $0x194] sm:$0x1] }
 0x3d5   :  { %v6358_v1 = vrot.slane %v6356_v49, 5  ;;  %v6362_v21 = vrot.slane %v6360_v54, 4  ;;  %v6366_v48 = vshll.u32 %v5937_v56, 16  ;;  %v3289_v35 = vshrl.u32 %v2513_v52, 16  ;;  %v5941_v49 = vld [vmem:[#allocation2 + $0xf0] sm:$0xf] }
 0x3d6   :  { %v6353_v62 = vor.u32 %v6352_v14, %v6349_v36  ;;  %13862 = vmatprep.mubr.bf16.mxu1 %v12589_v16  ;;  %v3277_v0 = vsel %vm18356_vm11, %v3272_v15, %v3276_v46  ;;  %v3282_v57 = vrot.slane %v3281_v34, 4  ;;  %v3292_v61 = vshll.u32 %v2513_v52, 16  ;;  %v5942_v54 = vld [vmem:[#allocation2 + $0xf4] sm:$0xf] }
 0x3d7   :  { %v3298_v43 = vshll.u32 %v2514_v24, 16  ;;  %v6363_v42 = vor.u32 %v6362_v21, %v6358_v1  ;;  %v6368_v38 = vrot.slane %v6366_v48, 5  ;;  %v3291_v9 = vrot.slane %v3289_v35, 4 }
 0x3d8   :  { %v6354_v8 = vrot.slane %v6353_v62, 4  ;;  %v3287_v45 = vsel %vm18356_vm11, %v3282_v57, %v3286_v28  ;;  %v3294_v63 = vrot.slane %v3292_v61, 5  ;;  %v3302_v51 = vshrl.u32 %v2514_v24, 16  ;;  %v5943_v57 = vld [vmem:[#allocation2 + $0xf8] sm:$0x1] }
 0x3d9   :  { %v3300_v19 = vrot.slane %v3298_v43, 5  ;;  %v12364_v60 = vcombine.low %v3277_v0, %v3287_v45  ;;  %v6364_v53 = vrot.slane %v6363_v42, 4  ;;  %v3308_v6 = vshll.u32 %v2563_v5, 16  ;;  %v5944_v43 = vld [vmem:[#allocation2 + $0xfc] sm:$0xf] }
 0x3da   :  { %v6359_v23 = vsel %vm18356_vm11, %v6354_v8, %v6358_v1  ;;  %v3295_v22 = vor.u32 %v3294_v63, %v3291_v9  ;;  %v3304_v4 = vrot.slane %v3302_v51, 4  ;;  %v6371_v27 = vshrl.u32 %v5938_v11, 16 }
 0x3db   :  { %v6374_v41 = vshll.u32 %v5938_v11, 16  ;;  %13571 = vmatmul.mubr.bf16.gmra.mrb[120].mxu0 %v12364_v60  ;;  %v6369_v18 = vsel %vm18356_vm11, %v6364_v53, %v6368_v38  ;;  %v3310_v3 = vrot.slane %v3308_v6, 5  ;;  %v6380_v12 = vshll.u32 %v5939_v59, 16  ;;  %v5945_v11 = vld [vmem:[#allocation2 + $0x100] sm:$0xf] }
 0x3dc   :  { %v6384_v20 = vshrl.u32 %v5939_v59, 16  ;;  %v12590_v58 = vcombine.low %v6359_v23, %v6369_v18  ;;  %v3296_v55 = vrot.slane %v3295_v22, 4  ;;  %v3305_v29 = vor.u32 %v3304_v4, %v3300_v19  ;;  %v5946_v4 = vld [vmem:[#allocation2 + $0x104] sm:$0x1] }
 0x3dd   :  { %v6373_v39 = vrot.slane %v6371_v27, 4  ;;  %v6376_v17 = vrot.slane %v6374_v41, 5  ;;  %v6382_v32 = vrot.slane %v6380_v12, 5  ;;  %v6390_v40 = vshll.u32 %v5940_v25, 16 }
 0x3de   :  { %v6386_v46 = vrot.slane %v6384_v20, 4  ;;  %13863 = vmatmul.mubr.bf16.gmra.mrb[60].mxu1 %v12590_v58  ;;  %v3301_v10 = vsel %vm18356_vm11, %v3296_v55, %v3300_v19  ;;  %v3306_v44 = vrot.slane %v3305_v29, 4  ;;  %v3313_v31 = vshrl.u32 %v2515_v7, 16  ;;  %v5947_v29 = vld [vmem:[#allocation2 + $0x108] sm:$0xf] }
 0x3df   :  { %v3316_v56 = vshll.u32 %v2515_v7, 16  ;;  %v6377_v47 = vor.u32 %v6376_v17, %v6373_v39  ;;  %v6392_v13 = vrot.slane %v6390_v40, 5  ;;  %v3322_v28 = vshll.u32 %v2516_v37, 16 }
 0x3e0   :  { %v6387_v50 = vor.u32 %v6386_v46, %v6382_v32  ;;  %v3311_v52 = vsel %vm18356_vm11, %v3306_v44, %v3310_v3  ;;  %v3315_v2 = vrot.slane %v3313_v31, 4  ;;  %v3326_v14 = vshrl.u32 %v2516_v37, 16  ;;  %v15049_v46 = vld [vmem:[#allocation2 + $0x4] sm:$0xf] }
 0x3e1   :  { %v3318_v36 = vrot.slane %v3316_v56, 5  ;;  %v12365_v24 = vcombine.low %v3301_v10, %v3311_v52  ;;  %v6378_v16 = vrot.slane %v6377_v47, 4  ;;  %v3324_v34 = vrot.slane %v3322_v28, 5  ;;  %v5948_v10 = vld [vmem:[#allocation2 + $0x10c] sm:$0xf] }
 0x3e2   :  { %v6388_v15 = vrot.slane %v6387_v50, 4  ;;  %v3328_v62 = vrot.slane %v3326_v14, 4  ;;  %v3332_v21 = vshll.u32 %v2564_v30, 16  ;;  %v6395_v48 = vshrl.u32 %v5941_v49, 16  ;;  %v15050_v47 = vld [vmem:[#allocation2 + $0xc] sm:$0xf] }
 0x3e3   :  { %v3319_v1 = vor.u32 %v3318_v36, %v3315_v2  ;;  %13574 = vmatprep.mubr.bf16.mxu0 %v12365_v24  ;;  %v6383_v35 = vsel %vm18356_vm11, %v6378_v16, %v6382_v32  ;;  %v6398_v5 = vshll.u32 %v5941_v49, 16  ;;  %v6404_v61 = vshll.u32 %v5942_v54, 16  ;;  %v15048_v32 = vld [vmem:[#allocation2] sm:$0xf]  ;;  %v15051_v50 = vld [vmem:[#allocation2 + $0x10] sm:$0xf] }
 0x3e4   :  { %v6393_v0 = vsel %vm18356_vm11, %v6388_v15, %v6392_v13  ;;  %v3329_v38 = vor.u32 %v3328_v62, %v3324_v34  ;;  %v3334_v9 = vrot.slane %v3332_v21, 5  ;;  %v6397_v45 = vrot.slane %v6395_v48, 4  ;;  %v5949_v49 = vld [vmem:[#allocation2 + $0x110] sm:$0x1]  ;;  %v5950_v16 = vld [vmem:[#allocation2 + $0x114] sm:$0xf] }
 0x3e5   :  { %v12591_v8 = vcombine.low %v6383_v35, %v6393_v0  ;;  %v3320_v42 = vrot.slane %v3319_v1, 4  ;;  %v6400_v63 = vrot.slane %v6398_v5, 5  ;;  %v6406_v19 = vrot.slane %v6404_v61, 5 }
 0x3e6   :  { %v6408_v51 = vshrl.u32 %v5942_v54, 16  ;;  %v3330_v60 = vrot.slane %v3329_v38, 4  ;;  %v6414_v23 = vshll.u32 %v5943_v57, 16  ;;  %v6419_v53 = vshrl.u32 %v5944_v43, 16  ;;  %v5951_v57 = vld [vmem:[#allocation2 + $0x118] sm:$0xf] }
 0x3e7   :  { %13866 = vmatprep.mubr.bf16.mxu1 %v12591_v8  ;;  %v3325_v59 = vsel %vm18356_vm11, %v3320_v42, %v3324_v34  ;;  %v6401_v6 = vor.u32 %v6400_v63, %v6397_v45  ;;  %v6422_v25 = vshll.u32 %v5944_v43, 16  ;;  %v6428_v27 = vshll.u32 %v5945_v11, 16  ;;  %v15052_v43 = vld [vmem:[#allocation2 + $0x18] sm:$0xf]  ;;  %v15053_v8 = vld [vmem:[#allocation2 + $0x1c] sm:$0xf] }
 0x3e8   :  { %v6410_v22 = vrot.slane %v6408_v51, 4  ;;  %v3335_v41 = vsel %vm18356_vm11, %v3330_v60, %v3334_v9  ;;  %v6416_v18 = vrot.slane %v6414_v23, 5  ;;  %v6421_v3 = vrot.slane %v6419_v53, 4  ;;  %v5952_v38 = vld [vmem:[#allocation2 + $0x11c] sm:$0x1] }
 0x3e9   :  { %v6432_v12 = vshrl.u32 %v5945_v11, 16  ;;  %v12366_v20 = vcombine.low %v3325_v59, %v3335_v41  ;;  %v6402_v7 = vrot.slane %v6401_v6, 4  ;;  %v6424_v55 = vrot.slane %v6422_v25, 5  ;;  %v5953_v51 = vld [vmem:[#allocation2 + $0x120] sm:$0xf]  ;;  %v14954_v59 = vld [vmem:[%s21516_s4 + $0x88] sm:$0xff]  }
 0x3ea   :  { %v6411_v58 = vor.u32 %v6410_v22, %v6406_v19  ;;  %v6430_v39 = vrot.slane %v6428_v27, 5  ;;  %v6438_v17 = vshll.u32 %v5946_v4, 16  ;;  %v12375_v40 = vcombine.low %v15048_v32, %v15049_v46  ;;  %v15054_v27 = vld [vmem:[#allocation2 + $0x24] sm:$0xf]  ;;  %v15055_v41 = vld [vmem:[#allocation2 + $0x28] sm:$0xf] }
 0x3eb   :  { %v6434_v37 = vrot.slane %v6432_v12, 4  ;;  %13575 = vmatmul.mubr.bf16.gmra.mrb[124].mxu0 %v12366_v20  ;;  %v6407_v44 = vsel %vm18356_vm11, %v6402_v7, %v6406_v19  ;;  %v6425_v56 = vor.u32 %v6424_v55, %v6421_v3  ;;  %v12376_v13 = vcombine.low %v15050_v47, %v15051_v50  ;;  %v5954_v3 = vld [vmem:[#allocation2 + $0x124] sm:$0xf]  ;;  %v5956_v32 = vld [vmem:[#allocation2 + $0x12c] sm:$0xf]  ;;  %v14957_v46 = vld [vmem:[%s21516_s4 + $0x90] sm:$0xff]  }
 0x3ec   :  { %v6412_v31 = vrot.slane %v6411_v58, 4  ;;  %v6440_v28 = vrot.slane %v6438_v17, 5  ;;  %13594 = vmatprep.mubr.bf16.mxu0 %v12375_v40  ;;  %v6443_v52 = vshrl.u32 %v5947_v29, 16  ;;  %v6446_v2 = vshll.u32 %v5947_v29, 16  ;;  %v5955_v58 = vld [vmem:[#allocation2 + $0x128] sm:$0x1] }
 0x3ed   :  { %v6435_v30 = vor.u32 %v6434_v37, %v6430_v39  ;;  %v6426_v14 = vrot.slane %v6425_v56, 4  ;;  %v6452_v54 = vshll.u32 %v5948_v10, 16  ;;  %v6456_v24 = vshrl.u32 %v5948_v10, 16 }
 0x3ee   :  { %v6417_v36 = vsel %vm18356_vm11, %v6412_v31, %v6416_v18  ;;  %v6445_v1 = vrot.slane %v6443_v52, 4  ;;  %v6448_v62 = vrot.slane %v6446_v2, 5  ;;  %v6462_v0 = vshll.u32 %v5949_v49, 16  ;;  %v15056_v49 = vld [vmem:[#allocation2 + $0x30] sm:$0xf] }
 0x3ef   :  { %v12592_v15 = vcombine.low %v6407_v44, %v6417_v36  ;;  %v6436_v34 = vrot.slane %v6435_v30, 4  ;;  %v6431_v21 = vsel %vm18356_vm11, %v6426_v14, %v6430_v39  ;;  %v6454_v48 = vrot.slane %v6452_v54, 5  ;;  %v18650_v52 = vld [vmem:[#allocation2 + $0x34] sm:$0xf] }
 0x3f0   :  { %v6458_v35 = vrot.slane %v6456_v24, 4  ;;  %v6449_v61 = vor.u32 %v6448_v62, %v6445_v1  ;;  %v12377_v42 = vcombine.low %v15052_v43, %v15053_v8  ;;  %v6467_v9 = vshrl.u32 %v5950_v16, 16  ;;  %v5960_v43 = vld [vmem:[#allocation2 + $0x13c] sm:$0xf] }
 0x3f1   :  { %13867 = vmatmul.mubr.bf16.gmra.mrb[0].mxu1 %v12592_v15  ;;  %v6441_v5 = vsel %vm18356_vm11, %v6436_v34, %v6440_v28  ;;  %v6464_v63 = vrot.slane %v6462_v0, 5  ;;  %v6470_v19 = vshll.u32 %v5950_v16, 16  ;;  %v6476_v53 = vshll.u32 %v5951_v57, 16  ;;  %v5958_v15 = vld [vmem:[#allocation2 + $0x134] sm:$0x1]  ;;  %v14959_v34 = vld [vmem:[%s21516_s4 + $0x98] sm:$0xff]  }
 0x3f2   :  { %v12593_v11 = vcombine.low %v6431_v21, %v6441_v5  ;;  %v6459_v45 = vor.u32 %v6458_v35, %v6454_v48  ;;  %v6450_v60 = vrot.slane %v6449_v61, 4  ;;  %v6469_v23 = vrot.slane %v6467_v9, 4  ;;  %v5959_v35 = vld [vmem:[#allocation2 + $0x138] sm:$0xf]  ;;  %v15058_v9 = vld [vmem:[#allocation2 + $0x3c] sm:$0xf] }
 0x3f3   :  { %v6480_v6 = vshrl.u32 %v5951_v57, 16  ;;  %13595 = vmatmul.mubr.bf16.vlgmr.msra.gmra.mrb[64].mxu0 %v12376_v13  ;;  %v6472_v4 = vrot.slane %v6470_v19, 5  ;;  %v6486_v25 = vshll.u32 %v5952_v38, 16  ;;  %v12378_v18 = vcombine.low %v15054_v27, %v15055_v41  ;;  %v5957_v13 = vld [vmem:[#allocation2 + $0x130] sm:$0xf] }
 0x3f4   :  { %13870 = vmatprep.mubr.bf16.mxu1 %v12593_v11  ;;  %v6460_v22 = vrot.slane %v6459_v45, 4  ;;  %v6455_v12 = vsel %vm18356_vm11, %v6450_v60, %v6454_v48  ;;  %13598 = vmatprep.mubr.bf16.mxu0 %v12377_v42  ;;  %v6478_v20 = vrot.slane %v6476_v53, 5  ;;  %v6491_v55 = vshrl.u32 %v5953_v51, 16  ;;  %v15059_v11 = vld [vmem:[#allocation2 + $0x40] sm:$0xf] }
 0x3f5   :  { %v6482_v7 = vrot.slane %v6480_v6, 4  ;;  %13659 = vmatpush3.bf16.msra.mxu0 %v18610_v26  ;;  %v6473_v39 = vor.u32 %v6472_v4, %v6469_v23  ;;  %v6488_v37 = vrot.slane %v6486_v25, 5  ;;  %v6494_v17 = vshll.u32 %v5953_v51, 16  ;;  %v14961_v60 = vld [vmem:[%s21516_s4 + $0xa0] sm:$0xff]  }
 0x3f6   :  { %v6465_v29 = vsel %vm18356_vm11, %v6460_v22, %v6464_v63  ;;  %13660 = vmatprep.subr.bf16.mxu0 %v14954_v59  ;;  %v6493_v44 = vrot.slane %v6491_v55, 4  ;;  %v6500_v31 = vshll.u32 %v5954_v3, 16  ;;  %v6504_v50 = vshrl.u32 %v5954_v3, 16  ;;  %v5961_v6 = vld [vmem:[#allocation2 + $0x140] sm:$0x1] }
 0x3f7   :  { %v12594_v40 = vcombine.low %v6455_v12, %v6465_v29  ;;  %v6483_v10 = vor.u32 %v6482_v7, %v6478_v20  ;;  %v6474_v56 = vrot.slane %v6473_v39, 4  ;;  %v6496_v47 = vrot.slane %v6494_v17, 5  ;;  %v5962_v3 = vld [vmem:[#allocation2 + $0x144] sm:$0xf]  ;;  %v5963_v55 = vld [vmem:[#allocation2 + $0x148] sm:$0xf] }
 0x3f8   :  { %v6510_v26 = vshll.u32 %v5955_v58, 16  ;;  %v6502_v28 = vrot.slane %v6500_v31, 5  ;;  %v12379_v2 = vcombine.low %v15056_v49, %v18650_v52  ;;  %v6515_v36 = vshrl.u32 %v5956_v32, 16  ;;  %v15060_v17 = vld [vmem:[#allocation2 + $0x48] sm:$0xf] }
 0x3f9   :  { %13871 = vmatmul.mubr.bf16.gmra.mrb[4].mxu1 %v12594_v40  ;;  %v6484_v30 = vrot.slane %v6483_v10, 4  ;;  %13661 = vmatpush3.bf16.msra.mxu0 %v14954_v59  ;;  %v6479_v14 = vsel %vm18356_vm11, %v6474_v56, %v6478_v20  ;;  %v6497_v54 = vor.u32 %v6496_v47, %v6493_v44  ;;  %v6506_v24 = vrot.slane %v6504_v50, 4  ;;  %v14963_v40 = vld [vmem:[%s21516_s4 + $0xa8] sm:$0xff]  }
 0x3fa   :  { %v6512_v16 = vrot.slane %v6510_v26, 5  ;;  %13662 = vmatprep.subr.bf16.mxu0 %v14957_v46  ;;  %v6517_v62 = vrot.slane %v6515_v36, 4  ;;  %v6518_v21 = vshll.u32 %v5956_v32, 16  ;;  %v6524_v48 = vshll.u32 %v5957_v13, 16  ;;  %v18667_v32 = vld [vmem:[#allocation2 + $0x4c] sm:$0xf] }
 0x3fb   :  { %v6489_v1 = vsel %vm18356_vm11, %v6484_v30, %v6488_v37  ;;  %13599 = vmatmul.mubr.bf16.gmra.mrb[68].mxu0 %v12378_v18  ;;  %v6498_v57 = vrot.slane %v6497_v54, 4  ;;  %v6507_v5 = vor.u32 %v6506_v24, %v6502_v28  ;;  %v6528_v61 = vshrl.u32 %v5957_v13, 16  ;;  %v5964_v31 = vld [vmem:[#allocation2 + $0x14c] sm:$0x1]  ;;  %v5966_v54 = vld [vmem:[#allocation2 + $0x154] sm:$0xf] }
 0x3fc   :  { %v12595_v0 = vcombine.low %v6479_v14, %v6489_v1  ;;  %13602 = vmatprep.mubr.bf16.mxu0 %v12379_v2  ;;  %v6520_v8 = vrot.slane %v6518_v21, 5  ;;  %v6526_v42 = vrot.slane %v6524_v48, 5  ;;  %v6534_v38 = vshll.u32 %v5958_v15, 16  ;;  %v14966_v1 = vld [vmem:[%s21516_s4 + $0xb0] sm:$0xff]  }
 0x3fd   :  { %v12380_v45 = vcombine.low %v15058_v9, %v15059_v11  ;;  %13663 = vmatpush3.bf16.msra.mxu0 %v14957_v46  ;;  %v6503_v63 = vsel %vm18356_vm11, %v6498_v57, %v6502_v28  ;;  %v6508_v19 = vrot.slane %v6507_v5, 4  ;;  %v6530_v51 = vrot.slane %v6528_v61, 4  ;;  %v5965_v28 = vld [vmem:[#allocation2 + $0x150] sm:$0xf]  ;;  %v15062_v48 = vld [vmem:[#allocation2 + $0x54] sm:$0xf] }
 0x3fe   :  { %13874 = vmatprep.mubr.bf16.mxu1 %v12595_v0  ;;  %v6539_v59 = vshrl.u32 %v5959_v35, 16  ;;  %13664 = vmatprep.subr.bf16.mxu0 %v14959_v34  ;;  %v6521_v23 = vor.u32 %v6520_v8, %v6517_v62  ;;  %v6536_v53 = vrot.slane %v6534_v38, 5  ;;  %v6542_v22 = vshll.u32 %v5959_v35, 16  ;;  %v18682_v35 = vld [vmem:[#allocation2 + $0x58] sm:$0xf] }
 0x3ff   :  { %v6548_v4 = vshll.u32 %v5960_v43, 16  ;;  %v6513_v25 = vsel %vm18356_vm11, %v6508_v19, %v6512_v16  ;;  %v6531_v27 = vor.u32 %v6530_v51, %v6526_v42  ;;  %v6552_v18 = vshrl.u32 %v5960_v43, 16  ;;  %v5967_v57 = vld [vmem:[#allocation2 + $0x158] sm:$0x1]  ;;  %v5968_v38 = vld [vmem:[#allocation2 + $0x15c] sm:$0xf] }
 0x400   :  { %v6541_v41 = vrot.slane %v6539_v59, 4  ;;  %v12596_v12 = vcombine.low %v6503_v63, %v6513_v25  ;;  %v6522_v20 = vrot.slane %v6521_v23, 4  ;;  %v6544_v7 = vrot.slane %v6542_v22, 5  ;;  %v5969_v23 = vld [vmem:[#allocation2 + $0x160] sm:$0xf] }
 0x401   :  { %v6550_v58 = vrot.slane %v6548_v4, 5  ;;  %13665 = vmatpush3.bf16.msra.mxu0 %v14959_v34  ;;  %v6532_v29 = vrot.slane %v6531_v27, 4  ;;  %v6554_v39 = vrot.slane %v6552_v18, 4  ;;  %v6558_v37 = vshll.u32 %v5961_v6, 16  ;;  %v15064_v4 = vld [vmem:[#allocation2 + $0x60] sm:$0xf] }
 0x402   :  { %v12381_v46 = vcombine.low %v15060_v17, %v18667_v32  ;;  %13666 = vmatprep.subr.bf16.mxu0 %v14961_v60  ;;  %13875 = vmatmul.mubr.bf16.gmra.mrb[8].mxu1 %v12596_v12  ;;  %v6527_v10 = vsel %vm18356_vm11, %v6522_v20, %v6526_v42  ;;  %v6545_v44 = vor.u32 %v6544_v7, %v6541_v41  ;;  %v6563_v56 = vshrl.u32 %v5962_v3, 16  ;;  %v18692_v25 = vld [vmem:[#allocation2 + $0x64] sm:$0xf] }
 0x403   :  { %v6566_v47 = vshll.u32 %v5962_v3, 16  ;;  %v6537_v50 = vsel %vm18356_vm11, %v6532_v29, %v6536_v53  ;;  %13603 = vmatmul.mubr.bf16.gmra.mrb[72].mxu0 %v12380_v45  ;;  %v6555_v26 = vor.u32 %v6554_v39, %v6550_v58  ;;  %v6560_v13 = vrot.slane %v6558_v37, 5  ;;  %v14967_v53 = vld [vmem:[%s21516_s4 + $0xb8] sm:$0xff]   ;;  %v5970_v41 = vld [vmem:[#allocation2 + $0x164] sm:$0x1] }
 0x404   :  { %v6572_v30 = vshll.u32 %v5963_v55, 16  ;;  %v12597_v49 = vcombine.low %v6527_v10, %v6537_v50  ;;  %v6546_v2 = vrot.slane %v6545_v44, 4  ;;  %13606 = vmatprep.mubr.bf16.mxu0 %v12381_v46  ;;  %v6565_v36 = vrot.slane %v6563_v56, 4  ;;  %v5971_v10 = vld [vmem:[#allocation2 + $0x168] sm:$0xf] }
 0x405   :  { %v6568_v14 = vrot.slane %v6566_v47, 5  ;;  %13667 = vmatpush3.bf16.msra.mxu0 %v14961_v60  ;;  %v6556_v24 = vrot.slane %v6555_v26, 4  ;;  %v6576_v15 = vshrl.u32 %v5963_v55, 16  ;;  %v6582_v34 = vshll.u32 %v5964_v31, 16  ;;  %v5972_v44 = vld [vmem:[#allocation2 + $0x16c] sm:$0xf] }
 0x406   :  { %v6574_v16 = vrot.slane %v6572_v30, 5  ;;  %13668 = vmatprep.subr.bf16.mxu0 %v14963_v40  ;;  %13878 = vmatprep.mubr.bf16.mxu1 %v12597_v49  ;;  %v6551_v62 = vsel %vm18356_vm11, %v6546_v2, %v6550_v58  ;;  %v12382_v0 = vcombine.low %v15062_v48, %v18682_v35  ;;  %v6587_v5 = vshrl.u32 %v5965_v28, 16  ;;  %v5973_v26 = vld [vmem:[#allocation2 + $0x170] sm:$0x1]  ;;  %v15066_v49 = vld [vmem:[#allocation2 + $0x6c] sm:$0xf] }
 0x407   :  { %v6569_v21 = vor.u32 %v6568_v14, %v6565_v36  ;;  %v6561_v61 = vsel %vm18356_vm11, %v6556_v24, %v6560_v13  ;;  %v6578_v43 = vrot.slane %v6576_v15, 4  ;;  %v6584_v8 = vrot.slane %v6582_v34, 5  ;;  %v18699_v2 = vld [vmem:[#allocation2 + $0x70] sm:$0xf]  ;;  %v18707_v48 = vld [vmem:[%s21516_s4 + $0xc0] sm:$0xff]  }
 0x408   :  { %v6590_v42 = vshll.u32 %v5965_v28, 16  ;;  %v12598_v9 = vcombine.low %v6551_v62, %v6561_v61  ;;  %v6589_v45 = vrot.slane %v6587_v5, 4  ;;  %v6596_v63 = vshll.u32 %v5966_v54, 16 }
 0x409   :  { %v6570_v11 = vrot.slane %v6569_v21, 4  ;;  %13669 = vmatpush3.bf16.msra.mxu0 %v14963_v40  ;;  %v6579_v19 = vor.u32 %v6578_v43, %v6574_v16  ;;  %v6600_v59 = vshrl.u32 %v5966_v54, 16  ;;  %v6606_v60 = vshll.u32 %v5967_v57, 16  ;;  %v5974_v21 = vld [vmem:[#allocation2 + $0x174] sm:$0xf] }
 0x40a   :  { %v6592_v51 = vrot.slane %v6590_v42, 5  ;;  %13670 = vmatprep.subr.bf16.mxu0 %v14966_v1  ;;  %13879 = vmatmul.mubr.bf16.gmra.mrb[12].mxu1 %v12598_v9  ;;  %v6598_v22 = vrot.slane %v6596_v63, 5  ;;  %v12383_v27 = vcombine.low %v15064_v4, %v18692_v25  ;;  %v6611_v18 = vshrl.u32 %v5968_v38, 16  ;;  %v5975_v43 = vld [vmem:[#allocation2 + $0x178] sm:$0xf] }
 0x40b   :  { %v6575_v6 = vsel %vm18356_vm11, %v6570_v11, %v6574_v16  ;;  %v6580_v3 = vrot.slane %v6579_v19, 4  ;;  %13607 = vmatmul.mubr.bf16.gmra.mrb[76].mxu0 %v12382_v0  ;;  %v6602_v20 = vrot.slane %v6600_v59, 4  ;;  %v6608_v7 = vrot.slane %v6606_v60, 5  ;;  %v5976_v11 = vld [vmem:[#allocation2 + $0x17c] sm:$0x1] }
 0x40c   :  { %v6593_v12 = vor.u32 %v6592_v51, %v6589_v45  ;;  %13610 = vmatprep.mubr.bf16.mxu0 %v12383_v27  ;;  %v6613_v58 = vrot.slane %v6611_v18, 4  ;;  %v6614_v55 = vshll.u32 %v5968_v38, 16  ;;  %v6620_v29 = vshll.u32 %v5969_v23, 16  ;;  %v15069_v19 = vld [vmem:[#allocation2 + $0x78] sm:$0xf] }
 0x40d   :  { %v6624_v39 = vshrl.u32 %v5969_v23, 16  ;;  %13671 = vmatpush3.bf16.msra.mxu0 %v14966_v1  ;;  %v6585_v37 = vsel %vm18356_vm11, %v6580_v3, %v6584_v8  ;;  %v6603_v46 = vor.u32 %v6602_v20, %v6598_v22  ;;  %v6630_v40 = vshll.u32 %v5970_v41, 16  ;;  %v18714_v51 = vld [vmem:[#allocation2 + $0x7c] sm:$0xf]  ;;  %v5977_v4 = vld [vmem:[#allocation2 + $0x180] sm:$0xf] }
 0x40e   :  { %v6594_v17 = vrot.slane %v6593_v12, 4  ;;  %13672 = vmatprep.subr.bf16.mxu0 %v14967_v53  ;;  %v12599_v31 = vcombine.low %v6575_v6, %v6585_v37  ;;  %v6616_v56 = vrot.slane %v6614_v55, 5  ;;  %v6622_v47 = vrot.slane %v6620_v29, 5  ;;  %v18717_v55 = vld [vmem:[#allocation2 + $0x88] sm:$0xf] }
 0x40f   :  { %v6626_v50 = vrot.slane %v6624_v39, 4  ;;  %v6604_v30 = vrot.slane %v6603_v46, 4  ;;  %v6632_v28 = vrot.slane %v6630_v40, 5  ;;  %v12384_v36 = vcombine.low %v15066_v49, %v18699_v2  ;;  %v5978_v39 = vld [vmem:[#allocation2 + $0x184] sm:$0xf] }
 0x410   :  { %v6599_v13 = vsel %vm18356_vm11, %v6594_v17, %v6598_v22  ;;  %13882 = vmatprep.mubr.bf16.mxu1 %v12599_v31  ;;  %v6617_v14 = vor.u32 %v6616_v56, %v6613_v58  ;;  %v6635_v24 = vshrl.u32 %v5971_v10, 16  ;;  %v6638_v16 = vshll.u32 %v5971_v10, 16  ;;  %v15071_v58 = vld [vmem:[#allocation2 + $0x84] sm:$0xf]  ;;  %v5979_v40 = vld [vmem:[#allocation2 + $0x188] sm:$0x1] }
 0x411   :  { %v6627_v54 = vor.u32 %v6626_v50, %v6622_v47  ;;  %13673 = vmatpush3.bf16.msra.mxu0 %v14967_v53  ;;  %v6609_v15 = vsel %vm18356_vm11, %v6604_v30, %v6608_v7  ;;  %v6644_v34 = vshll.u32 %v5972_v44, 16  ;;  %v6648_v1 = vshrl.u32 %v5972_v44, 16  ;;  %v5980_v50 = vld [vmem:[#allocation2 + $0x18c] sm:$0xf] }
 0x412   :  { %v6654_v62 = vshll.u32 %v5973_v26, 16  ;;  %13738 = vmatprep.subr.bf16.mxu0 %v18707_v48  ;;  %v12600_v0 = vcombine.low %v6599_v13, %v6609_v15  ;;  %v6618_v57 = vrot.slane %v6617_v14, 4  ;;  %v6637_v61 = vrot.slane %v6635_v24, 4  ;;  %v5981_v24 = vld [vmem:[#allocation2 + $0x190] sm:$0xf] }
 0x413   :  { %v6628_v5 = vrot.slane %v6627_v54, 4  ;;  %13611 = vmatmul.mubr.bf16.gmra.mrb[80].mxu0 %v12384_v36  ;;  %v6640_v8 = vrot.slane %v6638_v16, 5  ;;  %v6646_v42 = vrot.slane %v6644_v34, 5  ;;  %v6650_v38 = vrot.slane %v6648_v1, 4  ;;  %v15073_v34 = vld [vmem:[#allocation2 + $0x90] sm:$0xf] }
 0x414   :  { %v6656_v9 = vrot.slane %v6654_v62, 5  ;;  %13883 = vmatmul.mubr.bf16.gmra.mrb[16].mxu1 %v12600_v0  ;;  %v6623_v45 = vsel %vm18356_vm11, %v6618_v57, %v6622_v47  ;;  %v12385_v59 = vcombine.low %v15069_v19, %v18714_v51  ;;  %v6659_v60 = vshrl.u32 %v5974_v21, 16  ;;  %v18724_v1 = vld [vmem:[#allocation2 + $0x94] sm:$0xf] }
 0x415   :  { %v6633_v63 = vsel %vm18356_vm11, %v6628_v5, %v6632_v28  ;;  %v6641_v53 = vor.u32 %v6640_v8, %v6637_v61  ;;  %v6651_v6 = vor.u32 %v6650_v38, %v6646_v42  ;;  %v6662_v22 = vshll.u32 %v5974_v21, 16 }
 0x416   :  { %v12601_v23 = vcombine.low %v6623_v45, %v6633_v63  ;;  %13614 = vmatprep.mubr.bf16.mxu0 %v12385_v59  ;;  %v6661_v27 = vrot.slane %v6659_v60, 4  ;;  %v6668_v41 = vshll.u32 %v5975_v43, 16  ;;  %v6672_v18 = vshrl.u32 %v5975_v43, 16  ;;  %v5982_v43 = vld [vmem:[#allocation2 + $0x194] sm:$0x1] }
 0x417   :  { %v6678_v3 = vshll.u32 %v5976_v11, 16  ;;  %v6642_v12 = vrot.slane %v6641_v53, 4  ;;  %v6652_v20 = vrot.slane %v6651_v6, 4  ;;  %v6664_v7 = vrot.slane %v6662_v22, 5  ;;  %v5983_v11 = vld [vmem:[#allocation2 + $0x198] sm:$0xf] }
 0x418   :  { %13886 = vmatprep.mubr.bf16.mxu1 %v12601_v23  ;;  %v12386_v29 = vcombine.low %v15071_v58, %v18717_v55  ;;  %v6670_v37 = vrot.slane %v6668_v41, 5  ;;  %v6674_v17 = vrot.slane %v6672_v18, 4  ;;  %v6683_v10 = vshrl.u32 %v5977_v4, 16  ;;  %v5984_v60 = vld [vmem:[#allocation2 + $0x19c] sm:$0xf] }
 0x419   :  { %v6680_v46 = vrot.slane %v6678_v3, 5  ;;  %v6647_v44 = vsel %vm18356_vm11, %v6642_v12, %v6646_v42  ;;  %v6657_v31 = vsel %vm18356_vm11, %v6652_v20, %v6656_v9  ;;  %v6665_v56 = vor.u32 %v6664_v7, %v6661_v27  ;;  %v15075_v22 = vld [vmem:[#allocation2 + $0x9c] sm:$0xf]  ;;  %v5985_v58 = vld [vmem:[#allocation2 + $0x1a0] sm:$0x1] }
 0x41a   :  { %v6686_v47 = vshll.u32 %v5977_v4, 16  ;;  %v12602_v26 = vcombine.low %v6647_v44, %v6657_v31  ;;  %v6675_v13 = vor.u32 %v6674_v17, %v6670_v37  ;;  %v6685_v30 = vrot.slane %v6683_v10, 4  ;;  %v18731_v4 = vld [vmem:[#allocation2 + $0xa0] sm:$0xf] }
 0x41b   :  { %v6692_v28 = vshll.u32 %v5978_v39, 16  ;;  %v6666_v49 = vrot.slane %v6665_v56, 4  ;;  %13615 = vmatmul.mubr.bf16.gmra.mrb[84].mxu0 %v12386_v29  ;;  %v6696_v14 = vshrl.u32 %v5978_v39, 16  ;;  %v6702_v54 = vshll.u32 %v5979_v40, 16 }
 0x41c   :  { %v6688_v36 = vrot.slane %v6686_v47, 5  ;;  %13887 = vmatmul.mubr.bf16.gmra.mrb[20].mxu1 %v12602_v26  ;;  %v6676_v16 = vrot.slane %v6675_v13, 4  ;;  %v12387_v62 = vcombine.low %v15073_v34, %v18724_v1  ;;  %v6707_v21 = vshrl.u32 %v5980_v50, 16  ;;  %v15077_v13 = vld [vmem:[#allocation2 + $0xa8] sm:$0xf] }
 0x41d   :  { %v6694_v15 = vrot.slane %v6692_v28, 5  ;;  %v6671_v0 = vsel %vm18356_vm11, %v6666_v49, %v6670_v37  ;;  %v6698_v5 = vrot.slane %v6696_v14, 4  ;;  %v6704_v61 = vrot.slane %v6702_v54, 5  ;;  %v7300_v49 = vld [vmem:[#allocation2 + $0xc] sm:$0xe] }
 0x41e   :  { %v6689_v57 = vor.u32 %v6688_v36, %v6685_v30  ;;  %v6681_v8 = vsel %vm18356_vm11, %v6676_v16, %v6680_v46  ;;  %13618 = vmatprep.mubr.bf16.mxu0 %v12387_v62  ;;  %v6709_v42 = vrot.slane %v6707_v21, 4  ;;  %v6710_v38 = vshll.u32 %v5980_v50, 16  ;;  %v18738_v30 = vld [vmem:[#allocation2 + $0xac] sm:$0xf]  ;;  %v15079_v62 = vld [vmem:[#allocation2 + $0x10] sm:$0xf] }
 0x41f   :  { %v6716_v9 = vshll.u32 %v5981_v24, 16  ;;  %v12603_v45 = vcombine.low %v6671_v0, %v6681_v8  ;;  %v6699_v19 = vor.u32 %v6698_v5, %v6694_v15  ;;  %v6720_v59 = vshrl.u32 %v5981_v24, 16  ;;  %v15300_v5 = vld [vmem:[%s21515_s0 + $0xe0] sm:$0xff]  }
 0x420   :  { %v6690_v63 = vrot.slane %v6689_v57, 4  ;;  %v6712_v23 = vrot.slane %v6710_v38, 5  ;;  %v6726_v6 = vshll.u32 %v5982_v43, 16  ;;  %v12388_v27 = vcombine.low %v15075_v22, %v18731_v4  ;;  %v18749_v43 = vld [vmem:[#allocation2 + $0xb8] sm:$0xf] }
 0x421   :  { %v6718_v53 = vrot.slane %v6716_v9, 5  ;;  %13890 = vmatprep.mubr.bf16.mxu1 %v12603_v45  ;;  %v6700_v18 = vrot.slane %v6699_v19, 4  ;;  %v6722_v3 = vrot.slane %v6720_v59, 4  ;;  %v6731_v12 = vshrl.u32 %v5983_v11, 16  ;;  %v15083_v45 = vld [vmem:[#allocation2 + $0x14] sm:$0x1] }
 0x422   :  { %v6695_v41 = vsel %vm18356_vm11, %v6690_v63, %v6694_v15  ;;  %v6713_v20 = vor.u32 %v6712_v23, %v6709_v42  ;;  %v6728_v7 = vrot.slane %v6726_v6, 5  ;;  %v6734_v29 = vshll.u32 %v5983_v11, 16  ;;  %v15082_v42 = vld [vmem:[#allocation2 + $0x1c] sm:$0xf]  ;;  %v15084_v6 = vld [vmem:[#allocation2 + $0x28] sm:$0xf] }
 0x423   :  { %v6740_v39 = vshll.u32 %v5984_v60, 16  ;;  %v6705_v37 = vsel %vm18356_vm11, %v6700_v18, %v6704_v61  ;;  %v6723_v17 = vor.u32 %v6722_v3, %v6718_v53  ;;  %13619 = vmatmul.mubr.bf16.gmra.mrb[88].mxu0 %v12388_v27  ;;  %v6733_v46 = vrot.slane %v6731_v12, 4  ;;  %v15080_v61 = vld [vmem:[#allocation2 + $0xb4] sm:$0xf]  ;;  %v7302_v18 = vld [vmem:[#allocation2 + $0x24] sm:$0xe] }
 0x424   :  { %v6744_v40 = vshrl.u32 %v5984_v60, 16  ;;  %v12604_v10 = vcombine.low %v6695_v41, %v6705_v37  ;;  %v6714_v44 = vrot.slane %v6713_v20, 4  ;;  %v6736_v31 = vrot.slane %v6734_v29, 5  ;;  %v15085_v3 = vld [vmem:[#allocation2 + $0xd8] sm:$0xf] }
 0x425   :  { %v6742_v56 = vrot.slane %v6740_v39, 5  ;;  %v6724_v47 = vrot.slane %v6723_v17, 4  ;;  %v6750_v26 = vshll.u32 %v5985_v58, 16  ;;  %v12389_v28 = vcombine.low %v15077_v13, %v18738_v30  ;;  %v18760_v12 = vld [vmem:[#allocation2 + $0xdc] sm:$0xf] }
 0x426   :  { %v6746_v50 = vrot.slane %v6744_v40, 4  ;;  %13891 = vmatmul.mubr.bf16.gmra.mrb[24].mxu1 %v12604_v10  ;;  %v6719_v36 = vsel %vm18356_vm11, %v6714_v44, %v6718_v53  ;;  %v6737_v14 = vor.u32 %v6736_v31, %v6733_v46  ;;  %v12615_v34 = vrot.slane %v7300_v49, 9  ;;  %v7301_v53 = vld [vmem:[#allocation2 + $0x18] sm:$0xe]  ;;  %v15087_v29 = vld [vmem:[#allocation2 + $0x20] sm:$0x1] }
 0x427   :  { %v6729_v54 = vsel %vm18356_vm11, %v6724_v47, %v6728_v7  ;;  %13622 = vmatprep.mubr.bf16.mxu0 %v12389_v28  ;;  %v7430_v21 = vrot.slane %v15079_v62, 5  ;;  %v6752_v57 = vrot.slane %v6750_v26, 5  ;;  %v12390_v8 = vcombine.low %v15080_v61, %v18749_v43  ;;  %v15088_v17 = vld [vmem:[#allocation2 + $0x2c] sm:$0x1]  ;;  %v15089_v10 = vld [vmem:[#allocation2 + $0xe4] sm:$0xf] }
 0x428   :  { %v6747_v24 = vor.u32 %v6746_v50, %v6742_v56  ;;  %v12605_v16 = vcombine.low %v6719_v36, %v6729_v54  ;;  %v6738_v15 = vrot.slane %v6737_v14, 4  ;;  %v7437_v38 = vrot.slane %v15082_v42, 5  ;;  %v18765_v44 = vld [vmem:[#allocation2 + $0xe8] sm:$0xf]  ;;  %v15092_v26 = vld [vmem:[#allocation2 + $0xf0] sm:$0xf] }
 0x429   :  { %v7432_v11 = vrot.slane %v7430_v21, 4  ;;  %v7433_v63 = vrot.slane %v15083_v45, 5  ;;  %v7431_v60 = vsel %vm18745_vm14, %v12615_v34, %v7430_v21  ;;  %v7444_v22 = vrot.slane %v15084_v6, 5  ;;  %v18770_v13 = vld [vmem:[#allocation2 + $0xf4] sm:$0xf] }
 0x42a   :  { %v6748_v0 = vrot.slane %v6747_v24, 4  ;;  %13894 = vmatprep.mubr.bf16.mxu1 %v12605_v16  ;;  %v6743_v9 = vsel %vm18356_vm11, %v6738_v15, %v6742_v56  ;;  %v7439_v41 = vrot.slane %v7437_v38, 4  ;;  %v12391_v20 = vcombine.low %v15085_v3, %v18760_v12  ;;  %v15091_v56 = vld [vmem:[#allocation2 + $0x34] sm:$0xf]  ;;  %v15094_v49 = vld [vmem:[#allocation2 + $0x40] sm:$0xf] }
 0x42b   :  { %13623 = vmatmul.mubr.bf16.gmra.mrb[92].mxu0 %v12390_v8  ;;  %v7434_v23 = vsel %vm18745_vm14, %v7432_v11, %v7433_v63  ;;  %v7446_v7 = vrot.slane %v7444_v22, 4  ;;  %v12616_v58 = vrot.slane %v7301_v53, 9  ;;  %v7440_v39 = vrot.slane %v15087_v29, 5  ;;  %v7303_v16 = vld [vmem:[#allocation2 + $0x30] sm:$0xe]  ;;  %v14943_v15 = vld [vmem:[%s21516_s4 + $0x188] sm:$0xff]  }
 0x42c   :  { %v6753_v19 = vsel %vm18356_vm11, %v6748_v0, %v6752_v57  ;;  %v12663_v27 = vcombine.low %v7431_v60, %v7434_v23  ;;  %13626 = vmatprep.mubr.bf16.mxu0 %v12391_v20  ;;  %v12617_v37 = vrot.slane %v7302_v18, 9  ;;  %v7447_v46 = vrot.slane %v15088_v17, 5  ;;  %v7304_v21 = vld [vmem:[#allocation2 + $0x3c] sm:$0xe]  ;;  %v15095_v57 = vld [vmem:[%s21516_s4 + $0x180] sm:$0xff]   ;;  %v14948_v45 = vld [vmem:[%s21516_s4 + $0x190] sm:$0xff]  }
 0x42d   :  { %v12606_v59 = vcombine.low %v6743_v9, %v6753_v19  ;;  %v7441_v40 = vsel %vm18745_vm14, %v7439_v41, %v7440_v39  ;;  %v12392_v31 = vcombine.low %v15089_v10, %v18765_v44  ;;  %v7451_v47 = vrot.slane %v15091_v56, 5  ;;  %v15096_v8 = vld [vmem:[#allocation2 + $0x38] sm:$0x1]  ;;  %v15097_v9 = vld [vmem:[#allocation2 + $0x44] sm:$0x1] }
 0x42e   :  { %v7448_v50 = vsel %vm18745_vm14, %v7446_v7, %v7447_v46  ;;  %v12393_v28 = vcombine.low %v15092_v26, %v18770_v13  ;;  %v7458_v36 = vrot.slane %v15094_v49, 5  ;;  %v7438_v14 = vsel %vm18745_vm14, %v12616_v58, %v7437_v38  ;;  %v15098_v19 = vld [vmem:[#allocation2 + $0xfc] sm:$0xf]  ;;  %v15100_v23 = vld [vmem:[#allocation2 + $0x4c] sm:$0xf] }
 0x42f   :  { %13895 = vmatmul.mubr.bf16.gmra.mrb[28].mxu1 %v12606_v59  ;;  %v12664_v54 = vcombine.low %v7438_v14, %v7441_v40  ;;  %v7445_v24 = vsel %vm18745_vm14, %v12617_v37, %v7444_v22  ;;  %v7453_v62 = vrot.slane %v7451_v47, 4  ;;  %v12618_v61 = vrot.slane %v7303_v16, 9  ;;  %v18788_v59 = vld [vmem:[#allocation2 + $0x100] sm:$0xf]  ;;  %v18793_v22 = vld [vmem:[#allocation2 + $0x10c] sm:$0xf] }
 0x430   :  { %13914 = vmatprep.mubr.bf16.mxu1 %v12663_v27  ;;  %v12665_v34 = vcombine.low %v7445_v24, %v7448_v50  ;;  %v7460_v0 = vrot.slane %v7458_v36, 4  ;;  %v7454_v42 = vrot.slane %v15096_v8, 5  ;;  %v12619_v38 = vrot.slane %v7304_v21, 9  ;;  %v15102_v27 = vld [vmem:[#allocation2 + $0x108] sm:$0xf]  ;;  %v14955_v39 = vld [vmem:[%s21516_s4 + $0x198] sm:$0xff]  }
 0x431   :  { %v7461_v11 = vrot.slane %v15097_v9, 5  ;;  %v12394_v60 = vcombine.low %v15098_v19, %v18788_v59  ;;  %v7465_v53 = vrot.slane %v15100_v23, 5  ;;  %v12395_v41 = vcombine.low %v15102_v27, %v18793_v22  ;;  %v15103_v18 = vld [vmem:[#allocation2 + $0x58] sm:$0xf]  ;;  %v7305_v29 = vld [vmem:[#allocation2 + $0x48] sm:$0xe] }
 0x432   :  { %v7455_v63 = vsel %vm18745_vm14, %v7453_v62, %v7454_v42  ;;  %v7472_v3 = vrot.slane %v15103_v18, 5  ;;  %v7452_v20 = vsel %vm18745_vm14, %v12618_v61, %v7451_v47  ;;  %v7459_v58 = vsel %vm18745_vm14, %v12619_v38, %v7458_v36  ;;  %v7306_v46 = vld [vmem:[#allocation2 + $0x54] sm:$0xe]  ;;  %v15105_v50 = vld [vmem:[#allocation2 + $0x5c] sm:$0x1]  ;;  %v14968_v9 = vld [vmem:[%s21516_s4 + $0x1a8] sm:$0xff]  }
 0x433   :  { %13627 = vmatmul.mubr.bf16.gmra.mrb[96].mxu0 %v12392_v31  ;;  %v7462_v6 = vsel %vm18745_vm14, %v7460_v0, %v7461_v11  ;;  %v12666_v7 = vcombine.low %v7452_v20, %v7455_v63  ;;  %v7467_v17 = vrot.slane %v7465_v53, 4  ;;  %v12620_v10 = vrot.slane %v7305_v29, 9  ;;  %v15104_v31 = vld [vmem:[#allocation2 + $0x50] sm:$0x1]  ;;  %v18808_v36 = vld [vmem:[#allocation2 + $0x118] sm:$0xf] }
 0x434   :  { %13630 = vmatprep.mubr.bf16.mxu0 %v12393_v28  ;;  %v12667_v37 = vcombine.low %v7459_v58, %v7462_v6  ;;  %v7474_v40 = vrot.slane %v7472_v3, 4  ;;  %v7468_v56 = vrot.slane %v15104_v31, 5  ;;  %v12621_v47 = vrot.slane %v7306_v46, 9  ;;  %v14964_v28 = vld [vmem:[%s21516_s4 + $0x1a0] sm:$0xff]   ;;  %v15107_v14 = vld [vmem:[#allocation2 + $0x114] sm:$0xf] }
 0x435   :  { %v7475_v26 = vrot.slane %v15105_v50, 5  ;;  %v15108_v24 = vld [vmem:[#allocation2 + $0x64] sm:$0xf]  ;;  %v15111_v0 = vld [vmem:[#allocation2 + $0x70] sm:$0xf]  ;;  %v7466_v61 = vsel %vm18745_vm14, %v12620_v10, %v7465_v53 }
 0x436   :  { %v7469_v49 = vsel %vm18745_vm14, %v7467_v17, %v7468_v56  ;;  %v7479_v16 = vrot.slane %v15108_v24, 5  ;;  %v18813_v62 = vld [vmem:[#allocation2 + $0x124] sm:$0xf]  ;;  %v7473_v42 = vsel %vm18745_vm14, %v12621_v47, %v7472_v3  ;;  %v7307_v38 = vld [vmem:[#allocation2 + $0x60] sm:$0xe]  ;;  %v14969_v18 = vld [vmem:[%s21516_s4 + $0x1b0] sm:$0xff]  }
 0x437   :  { %13915 = vmatmul.mubr.bf16.vlgmr.msra.gmra.mrb[32].mxu1 %v12664_v54  ;;  %v12396_v54 = vcombine.low %v15107_v14, %v18808_v36  ;;  %v12668_v8 = vcombine.low %v7466_v61, %v7469_v49  ;;  %v7308_v63 = vld [vmem:[#allocation2 + $0x6c] sm:$0xe]  ;;  %v15112_v23 = vld [vmem:[#allocation2 + $0x68] sm:$0x1]  ;;  %v15113_v27 = vld [vmem:[#allocation2 + $0x74] sm:$0x1] }
 0x438   :  { %13979 = vmatpush3.bf16.msra.mxu1 %v15095_v57  ;;  %13918 = vmatprep.mubr.bf16.mxu1 %v12665_v34  ;;  %v15109_v34 = vld [vmem:[#allocation2 + $0x120] sm:$0xf]  ;;  %v7486_v57 = vrot.slane %v15111_v0, 5  ;;  %v7482_v53 = vrot.slane %v15112_v23, 5  ;;  %v12623_v6 = vrot.slane %v7308_v63, 9 }
 0x439   :  { %13980 = vmatprep.subr.bf16.mxu1 %v14943_v15  ;;  %v12397_v21 = vcombine.low %v15109_v34, %v18813_v62  ;;  %v15114_v20 = vld [vmem:[#allocation2 + $0x12c] sm:$0xf]  ;;  %v15116_v29 = vld [vmem:[#allocation2 + $0x7c] sm:$0xf]  ;;  %v15117_v17 = vld [vmem:[#allocation2 + $0x138] sm:$0xf] }
 0x43a   :  { %v7488_v19 = vrot.slane %v7486_v57, 4  ;;  %v18833_v46 = vld [vmem:[#allocation2 + $0x13c] sm:$0xf]  ;;  %v15119_v10 = vld [vmem:[#allocation2 + $0x88] sm:$0xf]  ;;  %v7487_v50 = vsel %vm18745_vm14, %v12623_v6, %v7486_v57  ;;  %v18846_v61 = vld [vmem:[%s21516_s4 + $0x1c0] sm:$0xff]  }
 0x43b   :  { %13631 = vmatmul.mubr.bf16.gmra.mrb[100].mxu0 %v12394_v60  ;;  %v12622_v60 = vrot.slane %v7307_v38, 9  ;;  %v7500_v31 = vrot.slane %v15119_v10, 5  ;;  %v15121_v0 = vld [vmem:[#allocation2 + $0x8c] sm:$0x1]  ;;  %v18850_v38 = vld [vmem:[#allocation2 + $0x148] sm:$0xf] }
 0x43c   :  { %13981 = vmatpush3.bf16.msra.mxu1 %v14943_v15  ;;  %13634 = vmatprep.mubr.bf16.mxu0 %v12395_v41  ;;  %v7476_v15 = vsel %vm18745_vm14, %v7474_v40, %v7475_v26  ;;  %v7489_v41 = vrot.slane %v15113_v27, 5  ;;  %v12399_v40 = vcombine.low %v15117_v17, %v18833_v46  ;;  %v7309_v26 = vld [vmem:[#allocation2 + $0x78] sm:$0xe]  ;;  %v7503_v57 = vrot.slane %v15121_v0, 5 }
 0x43d   :  { %13982 = vmatprep.subr.bf16.mxu1 %v14948_v45  ;;  %v12669_v11 = vcombine.low %v7473_v42, %v7476_v15  ;;  %v7480_v56 = vsel %vm18745_vm14, %v12622_v60, %v7479_v16  ;;  %v7502_v24 = vrot.slane %v7500_v31, 4  ;;  %v15120_v15 = vld [vmem:[#allocation2 + $0x80] sm:$0x1]  ;;  %v15122_v42 = vld [vmem:[#allocation2 + $0x144] sm:$0xf] }
 0x43e   :  { %v7496_v34 = vrot.slane %v15120_v15, 5  ;;  %v18855_v60 = vld [vmem:[#allocation2 + $0x154] sm:$0xf] }
 0x43f   :  { %13919 = vmatmul.mubr.bf16.gmra.mrb[36].mxu1 %v12666_v7  ;;  %v18828_v7 = vld [vmem:[#allocation2 + $0x130] sm:$0xf]  ;;  %v7504_v63 = vsel %vm18745_vm14, %v7502_v24, %v7503_v57  ;;  %v15133_v24 = vld [vmem:[#allocation2 + $0x168] sm:$0xf] }
 0x440   :  { %13922 = vmatprep.mubr.bf16.mxu1 %v12667_v37  ;;  %13983 = vmatpush3.bf16.msra.mxu1 %v14948_v45  ;;  %v7481_v45 = vrot.slane %v7479_v16, 4  ;;  %v12398_v58 = vcombine.low %v15114_v20, %v18828_v7  ;;  %v7490_v37 = vsel %vm18745_vm14, %v7488_v19, %v7489_v41  ;;  %v12624_v16 = vrot.slane %v7309_v26, 9  ;;  %v15125_v19 = vld [vmem:[#allocation2 + $0x150] sm:$0xf]  ;;  %v18865_v26 = vld [vmem:[#allocation2 + $0x160] sm:$0xf] }
 0x441   :  { %13984 = vmatprep.subr.bf16.mxu1 %v14955_v39  ;;  %v12671_v49 = vcombine.low %v7487_v50, %v7490_v37  ;;  %v12401_v23 = vcombine.low %v15125_v19, %v18855_v60  ;;  %v15136_v19 = vld [vmem:[#allocation2 + $0x4] sm:$0xf] }
 0x442   :  { %v7483_v3 = vsel %vm18745_vm14, %v7481_v45, %v7482_v53  ;;  %v15127_v53 = vld [vmem:[#allocation2 + $0xa0] sm:$0xf] }
 0x443   :  { %13635 = vmatmul.mubr.bf16.gmra.mrb[104].mxu0 %v12396_v54  ;;  %v12670_v47 = vcombine.low %v7480_v56, %v7483_v3  ;;  %v7310_v54 = vld [vmem:[#allocation2 + $0x84] sm:$0xe]  ;;  %v7514_v6 = vrot.slane %v15127_v53, 5  ;;  %v7311_v3 = vld [vmem:[#allocation2 + $0x90] sm:$0xe] }
 0x444   :  { %13985 = vmatpush3.bf16.msra.mxu1 %v14955_v39  ;;  %13638 = vmatprep.mubr.bf16.mxu0 %v12397_v21  ;;  %v7493_v39 = vrot.slane %v15116_v29, 5  ;;  %v12625_v21 = vrot.slane %v7310_v54, 9  ;;  %v7312_v29 = vld [vmem:[#allocation2 + $0x9c] sm:$0xe]  ;;  %v12626_v17 = vrot.slane %v7311_v3, 9 }
 0x445   :  { %13986 = vmatprep.subr.bf16.mxu1 %v14964_v28  ;;  %v7516_v37 = vrot.slane %v7514_v6, 4  ;;  %v15129_v56 = vld [vmem:[#allocation2 + $0xa4] sm:$0x1] }
 0x446   :  { %v7495_v14 = vrot.slane %v7493_v39, 4  ;;  %v7494_v27 = vsel %vm18745_vm14, %v12624_v16, %v7493_v39  ;;  %v12627_v39 = vrot.slane %v7312_v29, 9  ;;  %v18870_v16 = vld [vmem:[#allocation2 + $0x16c] sm:$0xf]  ;;  %v15139_v29 = vld [vmem:[#allocation2 + $0x174] sm:$0xf] }
 0x447   :  { %13923 = vmatmul.mubr.bf16.gmra.mrb[40].mxu1 %v12668_v8  ;;  %v12403_v15 = vcombine.low %v15133_v24, %v18870_v16  ;;  %v15145_v24 = vld [vmem:[#allocation2 + $0xe8] sm:$0xf] }
 0x448   :  { %13926 = vmatprep.mubr.bf16.mxu1 %v12669_v11  ;;  %13987 = vmatpush3.bf16.msra.mxu1 %v14964_v28  ;;  %v14970_v28 = vld [vmem:[%s21516_s4 + $0x1b8] sm:$0xff]   ;;  %v7497_v8 = vsel %vm18745_vm14, %v7495_v14, %v7496_v34  ;;  %v15124_v11 = vld [vmem:[#allocation2 + $0x94] sm:$0xf] }
 0x449   :  { %13988 = vmatprep.subr.bf16.mxu1 %v14968_v9  ;;  %v7507_v45 = vrot.slane %v15124_v11, 5  ;;  %v12672_v41 = vcombine.low %v7494_v27, %v7497_v8  ;;  %v15135_v34 = vld [vmem:[#allocation2 + $0xb8] sm:$0xf]  ;;  %v7515_v8 = vsel %vm18745_vm14, %v12627_v39, %v7514_v6  ;;  %v4347_v27 = vld [vmem:[#allocation2] sm:$0xe] }
 0x44a   :  { %v12415_v39 = vrot.slane %v4347_v27, 9  ;;  %v15146_v27 = vld [vmem:[#allocation2 + $0x10] sm:$0xf] }
 0x44b   :  { %13639 = vmatmul.mubr.bf16.gmra.mrb[108].mxu0 %v12398_v58  ;;  %v7509_v58 = vrot.slane %v7507_v45, 4  ;;  %v7508_v0 = vsel %vm18745_vm14, %v12626_v17, %v7507_v45  ;;  %v15141_v17 = vld [vmem:[#allocation2 + $0xc4] sm:$0xf] }
 0x44c   :  { %13989 = vmatpush3.bf16.msra.mxu1 %v14968_v9  ;;  %13642 = vmatprep.mubr.bf16.mxu0 %v12399_v40  ;;  %v12400_v9 = vcombine.low %v15122_v42, %v18850_v38  ;;  %v15128_v40 = vld [vmem:[#allocation2 + $0x98] sm:$0x1]  ;;  %v7313_v42 = vld [vmem:[#allocation2 + $0xa8] sm:$0xe] }
 0x44d   :  { %13990 = vmatprep.subr.bf16.mxu1 %v14969_v18  ;;  %v7510_v10 = vrot.slane %v15128_v40, 5  ;;  %v7535_v40 = vrot.slane %v15141_v17, 5  ;;  %v15150_v17 = vld [vmem:[#allocation2 + $0x18c] sm:$0xf] }
 0x44f   :  { %13927 = vmatmul.mubr.bf16.gmra.mrb[44].mxu1 %v12670_v47  ;;  %v7517_v47 = vrot.slane %v15129_v56, 5  ;;  %v7511_v50 = vsel %vm18745_vm14, %v7509_v58, %v7510_v10 }
 0x450   :  { %13930 = vmatprep.mubr.bf16.mxu1 %v12671_v49  ;;  %13991 = vmatpush3.bf16.msra.mxu1 %v14969_v18  ;;  %v7501_v18 = vsel %vm18745_vm14, %v12625_v21, %v7500_v31  ;;  %v15130_v31 = vld [vmem:[#allocation2 + $0x15c] sm:$0xf]  ;;  %v15132_v49 = vld [vmem:[#allocation2 + $0xac] sm:$0xf]  ;;  %v7528_v21 = vrot.slane %v15135_v34, 5  ;;  %v12674_v57 = vcombine.low %v7508_v0, %v7511_v50 }
 0x451   :  { %13992 = vmatprep.subr.bf16.mxu1 %v14970_v28  ;;  %v12673_v20 = vcombine.low %v7501_v18, %v7504_v63  ;;  %v7521_v14 = vrot.slane %v15132_v49, 5  ;;  %v7518_v54 = vsel %vm18745_vm14, %v7516_v37, %v7517_v47  ;;  %v7314_v63 = vld [vmem:[#allocation2 + $0xb4] sm:$0xe]  ;;  %v15137_v18 = vld [vmem:[#allocation2 + $0xb0] sm:$0x1] }
 0x452   :  { %v7530_v53 = vrot.slane %v7528_v21, 4  ;;  %v7524_v3 = vrot.slane %v15137_v18, 5  ;;  %v12629_v45 = vrot.slane %v7314_v63, 9  ;;  %v18877_v37 = vld [vmem:[#allocation2 + $0x178] sm:$0xf] }
 0x453   :  { %13643 = vmatmul.mubr.bf16.gmra.mrb[112].mxu0 %v12400_v9  ;;  %v12675_v9 = vcombine.low %v7515_v8, %v7518_v54  ;;  %v7523_v11 = vrot.slane %v7521_v14, 4  ;;  %v12404_v6 = vcombine.low %v15139_v29, %v18877_v37  ;;  %v15142_v47 = vld [vmem:[#allocation2 + $0x8] sm:$0x1]  ;;  %v18884_v49 = vld [vmem:[#allocation2 + $0x184] sm:$0xf] }
 0x454   :  { %13993 = vmatpush3.bf16.msra.mxu1 %v14970_v28  ;;  %13646 = vmatprep.mubr.bf16.mxu0 %v12401_v23  ;;  %v12402_v28 = vcombine.low %v15130_v31, %v18865_v26  ;;  %v4448_v23 = vrot.slane %v15136_v19, 5  ;;  %v4451_v50 = vrot.slane %v15142_v47, 5  ;;  %v7315_v8 = vld [vmem:[#allocation2 + $0xc0] sm:$0xe]  ;;  %v15147_v18 = vld [vmem:[#allocation2 + $0xc8] sm:$0x1] }
 0x455   :  { %14058 = vmatprep.subr.bf16.mxu1 %v18846_v61  ;;  %v7525_v10 = vsel %vm18745_vm14, %v7523_v11, %v7524_v3  ;;  %v7316_v11 = vld [vmem:[#allocation2 + $0xe4] sm:$0xe]  ;;  %v7538_v3 = vrot.slane %v15147_v18, 5  ;;  %v7318_v18 = vld [vmem:[#allocation2 + $0xfc] sm:$0xe] }
 0x456   :  { %v4450_v56 = vrot.slane %v4448_v23, 4  ;;  %v4449_v63 = vsel %vm18745_vm14, %v12415_v39, %v4448_v23 }
 0x457   :  { %13931 = vmatmul.mubr.bf16.gmra.mrb[48].mxu1 %v12672_v41  ;;  %v12628_v41 = vrot.slane %v7313_v42, 9 }
 0x458   :  { %13934 = vmatprep.mubr.bf16.mxu1 %v12673_v20  ;;  %v15138_v20 = vld [vmem:[#allocation2 + $0xbc] sm:$0x1]  ;;  %v4452_v19 = vsel %vm18745_vm14, %v4450_v56, %v4451_v50  ;;  %v15152_v56 = vld [vmem:[#allocation2 + $0xf4] sm:$0xf]  ;;  %v4348_v50 = vld [vmem:[#allocation2 + $0xc] sm:$0xe] }
 0x459   :  { %v7531_v58 = vrot.slane %v15138_v20, 5  ;;  %v7522_v34 = vsel %vm18745_vm14, %v12628_v41, %v7521_v14  ;;  %v4455_v14 = vrot.slane %v15146_v27, 5  ;;  %v12630_v41 = vrot.slane %v7315_v8, 9 }
 0x45a   :  { %v12676_v0 = vcombine.low %v7522_v34, %v7525_v10  ;;  %v12631_v20 = vrot.slane %v7316_v11, 9  ;;  %v18897_v10 = vld [vmem:[#allocation2 + $0x190] sm:$0xf]  ;;  %v7549_v47 = vrot.slane %v15152_v56, 5  ;;  %v4349_v34 = vld [vmem:[#allocation2 + $0x18] sm:$0xe] }
 0x45b   :  { %13647 = vmatmul.mubr.bf16.gmra.mrb[116].mxu0 %v12402_v28  ;;  %v7532_v31 = vsel %vm18745_vm14, %v7530_v53, %v7531_v58  ;;  %v15143_v28 = vld [vmem:[#allocation2 + $0x180] sm:$0xf]  ;;  %v15149_v58 = vld [vmem:[#allocation2 + $0xec] sm:$0x1]  ;;  %v12406_v39 = vcombine.low %v15150_v17, %v18897_v10  ;;  %v12416_v11 = vrot.slane %v4348_v50, 9  ;;  %v12633_v56 = vrot.slane %v7318_v18, 9 }
 0x45c   :  { %13650 = vmatprep.mubr.bf16.mxu0 %v12403_v15  ;;  %v12405_v54 = vcombine.low %v15143_v28, %v18884_v49  ;;  %v7542_v15 = vrot.slane %v15145_v24, 5  ;;  %v7545_v29 = vrot.slane %v15149_v58, 5  ;;  %v15153_v28 = vld [vmem:[#allocation2 + $0x100] sm:$0xf]  ;;  %v4457_v24 = vrot.slane %v4455_v14, 4 }
 0x45d   :  { %v15158_v50 = vld [vmem:[#allocation2 + $0x104] sm:$0x1]  ;;  %v4351_v18 = vld [vmem:[#allocation2 + $0x30] sm:$0xe] }
 0x45e   :  { %v7544_v53 = vrot.slane %v7542_v15, 4 }
 0x45f   :  { %13935 = vmatmul.mubr.bf16.gmra.mrb[52].mxu1 %v12674_v57  ;;  %v7529_v57 = vsel %vm18745_vm14, %v12629_v45, %v7528_v21  ;;  %v15148_v21 = vld [vmem:[#allocation2 + $0x1c] sm:$0xf] }
 0x460   :  { %13938 = vmatprep.mubr.bf16.mxu1 %v12675_v9  ;;  %v12677_v42 = vcombine.low %v7529_v57, %v7532_v31  ;;  %v7537_v9 = vrot.slane %v7535_v40, 4  ;;  %v4462_v45 = vrot.slane %v15148_v21, 5  ;;  %v7546_v31 = vsel %vm18745_vm14, %v7544_v53, %v7545_v29  ;;  %v15155_v21 = vld [vmem:[#allocation2 + $0x20] sm:$0x1] }
 0x461   :  { %v7551_v53 = vrot.slane %v7549_v47, 4  ;;  %v4465_v58 = vrot.slane %v15155_v21, 5 }
 0x462   :  { %v7539_v23 = vsel %vm18745_vm14, %v7537_v9, %v7538_v3  ;;  %v4464_v57 = vrot.slane %v4462_v45, 4  ;;  %v7317_v9 = vld [vmem:[#allocation2 + $0xf0] sm:$0xe]  ;;  %v12417_v3 = vrot.slane %v4349_v34, 9 }
 0x463   :  { %13651 = vmatmul.mubr.bf16.gmra.mrb[120].mxu0 %v12404_v6  ;;  %v12463_v6 = vcombine.low %v4449_v63, %v4452_v19  ;;  %v15154_v63 = vld [vmem:[#allocation2 + $0x14] sm:$0x1] }
 0x464   :  { %13654 = vmatprep.mubr.bf16.mxu0 %v12405_v54  ;;  %v7556_v54 = vrot.slane %v15153_v28, 5  ;;  %v4458_v19 = vrot.slane %v15154_v63, 5  ;;  %v4466_v17 = vsel %vm18745_vm14, %v4464_v57, %v4465_v58  ;;  %v4456_v28 = vsel %vm18745_vm14, %v12416_v11, %v4455_v14  ;;  %v15160_v63 = vld [vmem:[#allocation2 + $0x118] sm:$0xf]  ;;  %v7319_v58 = vld [vmem:[#allocation2 + $0x108] sm:$0xe] }
 0x466   :  { %v7558_v29 = vrot.slane %v7556_v54, 4  ;;  %v7557_v21 = vsel %vm18745_vm14, %v12633_v56, %v7556_v54  ;;  %v18929_v56 = vld [vmem:[#allocation2 + $0x40] sm:$0xf] }
 0x467   :  { %13939 = vmatmul.mubr.bf16.gmra.mrb[56].mxu1 %v12676_v0  ;;  %v7536_v0 = vsel %vm18745_vm14, %v12630_v41, %v7535_v40  ;;  %v4459_v40 = vsel %vm18745_vm14, %v4457_v24, %v4458_v19  ;;  %v15156_v41 = vld [vmem:[#allocation2 + $0x28] sm:$0xf]  ;;  %v7570_v19 = vrot.slane %v15160_v63, 5 }
 0x468   :  { %13942 = vmatprep.mubr.bf16.mxu1 %v12677_v42  ;;  %v12678_v8 = vcombine.low %v7536_v0, %v7539_v23  ;;  %v7543_v42 = vsel %vm18745_vm14, %v12631_v20, %v7542_v15  ;;  %v4469_v23 = vrot.slane %v15156_v41, 5  ;;  %v12632_v15 = vrot.slane %v7317_v9, 9  ;;  %v15157_v20 = vld [vmem:[#allocation2 + $0xf8] sm:$0x1]  ;;  %v15159_v0 = vld [vmem:[#allocation2 + $0x10c] sm:$0xf] }
 0x469   :  { %v12679_v27 = vcombine.low %v7543_v42, %v7546_v31  ;;  %v7559_v31 = vrot.slane %v15158_v50, 5  ;;  %v12464_v34 = vcombine.low %v4456_v28, %v4459_v40  ;;  %v4463_v42 = vsel %vm18745_vm14, %v12417_v3, %v4462_v45  ;;  %v4350_v9 = vld [vmem:[#allocation2 + $0x24] sm:$0xe]  ;;  %v15161_v3 = vld [vmem:[#allocation2 + $0x2c] sm:$0x1] }
 0x46a   :  { %v7550_v14 = vsel %vm18745_vm14, %v12632_v15, %v7549_v47  ;;  %v12418_v45 = vrot.slane %v4350_v9, 9  ;;  %v4472_v40 = vrot.slane %v15161_v3, 5  ;;  %v15163_v47 = vld [vmem:[%s21516_s4 + $0xc8] sm:$0xff]   ;;  %v7572_v54 = vrot.slane %v7570_v19, 4  ;;  %v15165_v28 = vld [vmem:[#allocation2 + $0x110] sm:$0x1] }
 0x46b   :  { %13655 = vmatmul.mubr.bf16.gmra.mrb[124].mxu0 %v12406_v39  ;;  %v4476_v39 = vrot.slane %v18650_v52, 5  ;;  %v7560_v57 = vsel %vm18745_vm14, %v7558_v29, %v7559_v31  ;;  %v12465_v52 = vcombine.low %v4463_v42, %v4466_v17  ;;  %v15162_v17 = vld [vmem:[#allocation2 + $0x38] sm:$0x1]  ;;  %v12634_v31 = vrot.slane %v7319_v58, 9  ;;  %v15166_v9 = vld [vmem:[#allocation2 + $0x11c] sm:$0x1] }
 0x46c   :  { %13674 = vmatprep.mubr.bf16.mxu0 %v12463_v6  ;;  %v7552_v6 = vrot.slane %v15157_v20, 5  ;;  %v12681_v29 = vcombine.low %v7557_v21, %v7560_v57  ;;  %v7320_v20 = vld [vmem:[#allocation2 + $0x114] sm:$0xe]  ;;  %v4479_v50 = vrot.slane %v15162_v17, 5  ;;  %v7573_v57 = vrot.slane %v15166_v9, 5 }
 0x46d   :  { %v4478_v11 = vrot.slane %v4476_v39, 4  ;;  %v12635_v42 = vrot.slane %v7320_v20, 9  ;;  %v4352_v21 = vld [vmem:[#allocation2 + $0x3c] sm:$0xe]  ;;  %v15169_v58 = vld [vmem:[#allocation2 + $0x130] sm:$0xf] }
 0x46e   :  { %v7553_v24 = vsel %vm18745_vm14, %v7551_v53, %v7552_v6  ;;  %v12419_v6 = vrot.slane %v4351_v18, 9  ;;  %v15167_v18 = vld [vmem:[#allocation2 + $0x124] sm:$0xf]  ;;  %v12420_v17 = vrot.slane %v4352_v21, 9 }
 0x46f   :  { %13943 = vmatmul.mubr.bf16.gmra.mrb[60].mxu1 %v12678_v8  ;;  %v7563_v8 = vrot.slane %v15159_v0, 5  ;;  %v12680_v53 = vcombine.low %v7550_v14, %v7553_v24  ;;  %v7566_v24 = vrot.slane %v15165_v28, 5  ;;  %v4490_v0 = vrot.slane %v18667_v32, 5  ;;  %v15168_v32 = vld [vmem:[%s21516_s4 + $0xd0] sm:$0xff]  }
 0x470   :  { %13946 = vmatprep.mubr.bf16.mxu1 %v12679_v27  ;;  %v4471_v27 = vrot.slane %v4469_v23, 4  ;;  %v7577_v14 = vrot.slane %v15167_v18, 5 }
 0x471   :  { %v7565_v41 = vrot.slane %v7563_v8, 4 }
 0x472   :  { %v4473_v15 = vsel %vm18745_vm14, %v4471_v27, %v4472_v40  ;;  %v4353_v40 = vld [vmem:[#allocation2 + $0x48] sm:$0xe] }
 0x473   :  { %13675 = vmatmul.mubr.bf16.vlgmr.msra.gmra.mrb[64].mxu0 %v12464_v34  ;;  %v4480_v34 = vsel %vm18745_vm14, %v4478_v11, %v4479_v50  ;;  %v7567_v63 = vsel %vm18745_vm14, %v7565_v41, %v7566_v24  ;;  %v7574_v11 = vsel %vm18745_vm14, %v7572_v54, %v7573_v57  ;;  %v7321_v41 = vld [vmem:[#allocation2 + $0x120] sm:$0xe]  ;;  %v15170_v50 = vld [vmem:[#allocation2 + $0x44] sm:$0x1]  ;;  %v12421_v28 = vrot.slane %v4353_v40, 9 }
 0x474   :  { %13678 = vmatprep.mubr.bf16.mxu0 %v12465_v52  ;;  %13739 = vmatpush3.bf16.msra.mxu0 %v18707_v48  ;;  %v4483_v48 = vrot.slane %v18929_v56, 5  ;;  %v4470_v52 = vsel %vm18745_vm14, %v12418_v45, %v4469_v23  ;;  %v7584_v45 = vrot.slane %v15169_v58, 5  ;;  %v7322_v56 = vld [vmem:[#allocation2 + $0x12c] sm:$0xe]  ;;  %v15171_v24 = vld [vmem:[#allocation2 + $0x50] sm:$0x1] }
 0x475   :  { %13740 = vmatprep.subr.bf16.mxu0 %v15163_v47  ;;  %v12466_v27 = vcombine.low %v4470_v52, %v4473_v15  ;;  %v7579_v15 = vrot.slane %v7577_v14, 4  ;;  %v15173_v57 = vld [vmem:[#allocation2 + $0x128] sm:$0x1]  ;;  %v12637_v21 = vrot.slane %v7322_v56, 9  ;;  %v4354_v40 = vld [vmem:[#allocation2 + $0x54] sm:$0xe] }
 0x476   :  { %v4485_v3 = vrot.slane %v4483_v48, 4  ;;  %v7586_v9 = vrot.slane %v7584_v45, 4  ;;  %v7580_v52 = vrot.slane %v15173_v57, 5  ;;  %v12422_v56 = vrot.slane %v4354_v40, 9 }
 0x477   :  { %13947 = vmatmul.mubr.bf16.gmra.mrb[0].mxu1 %v12680_v53  ;;  %v4477_v53 = vsel %vm18745_vm14, %v12419_v6, %v4476_v39  ;;  %v4492_v39 = vrot.slane %v4490_v0, 4  ;;  %v7571_v6 = vsel %vm18745_vm14, %v12635_v42, %v7570_v19  ;;  %v4497_v42 = vrot.slane %v18682_v35, 5 }
 0x478   :  { %13950 = vmatprep.mubr.bf16.mxu1 %v12681_v29  ;;  %13741 = vmatpush3.bf16.msra.mxu0 %v15163_v47  ;;  %v12467_v23 = vcombine.low %v4477_v53, %v4480_v34  ;;  %v7564_v29 = vsel %vm18745_vm14, %v12634_v31, %v7563_v8  ;;  %v4486_v47 = vrot.slane %v15170_v50, 5  ;;  %v12683_v54 = vcombine.low %v7571_v6, %v7574_v11  ;;  %v15172_v8 = vld [vmem:[%s21516_s4 + $0xd8] sm:$0xff]   ;;  %v4355_v6 = vld [vmem:[#allocation2 + $0x60] sm:$0xe] }
 0x479   :  { %13742 = vmatprep.subr.bf16.mxu0 %v15168_v32  ;;  %v12682_v20 = vcombine.low %v7564_v29, %v7567_v63  ;;  %v4493_v34 = vrot.slane %v15171_v24, 5  ;;  %v12636_v31 = vrot.slane %v7321_v41, 9  ;;  %v18956_v63 = vld [vmem:[#allocation2 + $0x13c] sm:$0xf]  ;;  %v4504_v53 = vrot.slane %v18692_v25, 5  ;;  %v15176_v29 = vld [vmem:[%s21516_s4 + $0xe0] sm:$0xff]  }
 0x47a   :  { %v4487_v19 = vsel %vm18745_vm14, %v4485_v3, %v4486_v47  ;;  %v7581_v35 = vsel %vm18745_vm14, %v7579_v15, %v7580_v52  ;;  %v4491_v3 = vsel %vm18745_vm14, %v12421_v28, %v4490_v0  ;;  %v7323_v50 = vld [vmem:[#allocation2 + $0x138] sm:$0xe]  ;;  %v7585_v15 = vsel %vm18745_vm14, %v12637_v21, %v7584_v45  ;;  %v15178_v28 = vld [vmem:[#allocation2 + $0x5c] sm:$0x1]  ;;  %v15181_v52 = vld [vmem:[%s21516_s4 + $0xe8] sm:$0xff]  }
 0x47b   :  { %13679 = vmatmul.mubr.bf16.gmra.mrb[68].mxu0 %v12466_v27  ;;  %v7591_v27 = vrot.slane %v18956_v63, 5  ;;  %v4494_v18 = vsel %vm18745_vm14, %v4492_v39, %v4493_v34  ;;  %v15177_v39 = vld [vmem:[#allocation2 + $0x148] sm:$0xf]  ;;  %v4506_v47 = vrot.slane %v4504_v53, 4  ;;  %v4500_v24 = vrot.slane %v15178_v28, 5 }
 0x47c   :  { %13682 = vmatprep.mubr.bf16.mxu0 %v12467_v23  ;;  %13743 = vmatpush3.bf16.msra.mxu0 %v15168_v32  ;;  %v15175_v32 = vld [vmem:[#allocation2 + $0x134] sm:$0x1]  ;;  %v4484_v23 = vsel %vm18745_vm14, %v12420_v17, %v4483_v48  ;;  %v12469_v41 = vcombine.low %v4491_v3, %v4494_v18  ;;  %v7598_v48 = vrot.slane %v15177_v39, 5  ;;  %v7578_v17 = vsel %vm18745_vm14, %v12636_v31, %v7577_v14  ;;  %v15180_v31 = vld [vmem:[#allocation2 + $0x68] sm:$0x1] }
 0x47d   :  { %13744 = vmatprep.subr.bf16.mxu0 %v15172_v8  ;;  %v7587_v11 = vrot.slane %v15175_v32, 5  ;;  %v12468_v58 = vcombine.low %v4484_v23, %v4487_v19  ;;  %v7593_v0 = vrot.slane %v7591_v27, 4  ;;  %v7324_v19 = vld [vmem:[#allocation2 + $0x144] sm:$0xe]  ;;  %v12423_v14 = vrot.slane %v4355_v6, 9 }
 0x47e   :  { %v4507_v57 = vrot.slane %v15180_v31, 5  ;;  %v12638_v18 = vrot.slane %v7323_v50, 9  ;;  %v7600_v45 = vrot.slane %v7598_v48, 4  ;;  %v4511_v32 = vrot.slane %v18699_v2, 5  ;;  %v15182_v3 = vld [vmem:[#allocation2 + $0x14c] sm:$0x1] }
 0x47f   :  { %13951 = vmatmul.mubr.bf16.gmra.mrb[4].mxu1 %v12682_v20  ;;  %v7588_v25 = vsel %vm18745_vm14, %v7586_v9, %v7587_v11  ;;  %v4499_v20 = vrot.slane %v4497_v42, 4  ;;  %v7601_v40 = vrot.slane %v15182_v3, 5  ;;  %v4505_v2 = vsel %vm18745_vm14, %v12423_v14, %v4504_v53  ;;  %v15187_v31 = vld [vmem:[#allocation2 + $0x80] sm:$0x1] }
 0x480   :  { %13954 = vmatprep.mubr.bf16.mxu1 %v12683_v54  ;;  %13745 = vmatpush3.bf16.msra.mxu0 %v15172_v8  ;;  %v12684_v54 = vcombine.low %v7578_v17, %v7581_v35  ;;  %v12685_v34 = vcombine.low %v7585_v15, %v7588_v25  ;;  %v15179_v8 = vld [vmem:[#allocation2 + $0x140] sm:$0x1]  ;;  %v4508_v23 = vsel %vm18745_vm14, %v4506_v47, %v4507_v57  ;;  %v4518_v35 = vrot.slane %v18714_v51, 5  ;;  %v15183_v25 = vld [vmem:[#allocation2 + $0x154] sm:$0xf] }
 0x481   :  { %13746 = vmatprep.subr.bf16.mxu0 %v15176_v29  ;;  %v7594_v9 = vrot.slane %v15179_v8, 5  ;;  %v4501_v21 = vsel %vm18745_vm14, %v4499_v20, %v4500_v24  ;;  %v15184_v20 = vld [vmem:[#allocation2 + $0x160] sm:$0xf]  ;;  %v4356_v17 = vld [vmem:[#allocation2 + $0x6c] sm:$0xe]  ;;  %v15185_v51 = vld [vmem:[%s21516_s4 + $0xf0] sm:$0xff]   ;;  %v7602_v50 = vsel %vm18745_vm14, %v7600_v45, %v7601_v40 }
 0x482   :  { %v7612_v6 = vrot.slane %v15184_v20, 5  ;;  %v4513_v47 = vrot.slane %v4511_v32, 4  ;;  %v7325_v15 = vld [vmem:[#allocation2 + $0x150] sm:$0xe]  ;;  %v12424_v63 = vrot.slane %v4356_v17, 9  ;;  %v4521_v57 = vrot.slane %v15187_v31, 5 }
 0x483   :  { %13683 = vmatmul.mubr.bf16.gmra.mrb[72].mxu0 %v12468_v58  ;;  %v7595_v11 = vsel %vm18745_vm14, %v7593_v0, %v7594_v9  ;;  %v12639_v58 = vrot.slane %v7324_v19, 9  ;;  %v12471_v0 = vcombine.low %v4505_v2, %v4508_v23  ;;  %v15186_v8 = vld [vmem:[#allocation2 + $0x74] sm:$0x1]  ;;  %v15191_v2 = vld [vmem:[#allocation2 + $0x16c] sm:$0xf]  ;;  %v4539_v31 = vrot.slane %v18731_v4, 5 }
 0x484   :  { %13686 = vmatprep.mubr.bf16.mxu0 %v12469_v41  ;;  %13747 = vmatpush3.bf16.msra.mxu0 %v15176_v29  ;;  %v4498_v29 = vsel %vm18745_vm14, %v12422_v56, %v4497_v42  ;;  %v7605_v41 = vrot.slane %v15183_v25, 5  ;;  %v7592_v42 = vsel %vm18745_vm14, %v12638_v18, %v7591_v27  ;;  %v4520_v56 = vrot.slane %v4518_v35, 4 }
 0x485   :  { %13748 = vmatprep.subr.bf16.mxu0 %v15181_v52  ;;  %v12470_v39 = vcombine.low %v4498_v29, %v4501_v21  ;;  %v12686_v53 = vcombine.low %v7592_v42, %v7595_v11  ;;  %v7599_v28 = vsel %vm18745_vm14, %v12639_v58, %v7598_v48  ;;  %v4514_v9 = vrot.slane %v15186_v8, 5  ;;  %v15189_v48 = vld [vmem:[#allocation2 + $0x158] sm:$0x1]  ;;  %v15190_v58 = vld [vmem:[#allocation2 + $0x164] sm:$0x1] }
 0x486   :  { %v7607_v24 = vrot.slane %v7605_v41, 4  ;;  %v12687_v27 = vcombine.low %v7599_v28, %v7602_v50  ;;  %v7614_v19 = vrot.slane %v7612_v6, 4  ;;  %v12640_v18 = vrot.slane %v7325_v15, 9  ;;  %v15192_v42 = vld [vmem:[#allocation2 + $0x178] sm:$0xf] }
 0x487   :  { %13955 = vmatmul.mubr.bf16.gmra.mrb[8].mxu1 %v12684_v54  ;;  %v4357_v54 = vld [vmem:[#allocation2 + $0x78] sm:$0xe]  ;;  %v7608_v45 = vrot.slane %v15189_v48, 5  ;;  %v4515_v21 = vsel %vm18745_vm14, %v4513_v47, %v4514_v9  ;;  %v4525_v11 = vrot.slane %v18717_v55, 5  ;;  %v7615_v3 = vrot.slane %v15190_v58, 5 }
 0x488   :  { %13958 = vmatprep.mubr.bf16.mxu1 %v12685_v34  ;;  %13749 = vmatpush3.bf16.msra.mxu0 %v15181_v52  ;;  %v7326_v34 = vld [vmem:[#allocation2 + $0x15c] sm:$0xe]  ;;  %v12425_v14 = vrot.slane %v4357_v54, 9  ;;  %v4522_v40 = vsel %vm18745_vm14, %v4520_v56, %v4521_v57  ;;  %v4532_v29 = vrot.slane %v18724_v1, 5  ;;  %v7619_v20 = vrot.slane %v15191_v2, 5 }
 0x489   :  { %13750 = vmatprep.subr.bf16.mxu0 %v15185_v51  ;;  %v15188_v52 = vld [vmem:[%s21516_s4 + $0xf8] sm:$0xff]   ;;  %v12641_v23 = vrot.slane %v7326_v34, 9  ;;  %v7609_v25 = vsel %vm18745_vm14, %v7607_v24, %v7608_v45  ;;  %v7616_v55 = vsel %vm18745_vm14, %v7614_v19, %v7615_v3  ;;  %v7626_v50 = vrot.slane %v15192_v42, 5  ;;  %v7327_v56 = vld [vmem:[#allocation2 + $0x168] sm:$0xe] }
 0x48a   :  { %v7606_v1 = vsel %vm18745_vm14, %v12640_v18, %v7605_v41  ;;  %v4527_v54 = vrot.slane %v4525_v11, 4  ;;  %v7328_v28 = vld [vmem:[#allocation2 + $0x174] sm:$0xe]  ;;  %v4534_v24 = vrot.slane %v4532_v29, 4  ;;  %v15193_v8 = vld [vmem:[#allocation2 + $0x8c] sm:$0x1] }
 0x48b   :  { %13687 = vmatmul.mubr.bf16.gmra.mrb[76].mxu0 %v12470_v39  ;;  %v4512_v39 = vsel %vm18745_vm14, %v12424_v63, %v4511_v32  ;;  %v12688_v32 = vcombine.low %v7606_v1, %v7609_v25  ;;  %v7613_v15 = vsel %vm18745_vm14, %v12641_v23, %v7612_v6  ;;  %v7621_v63 = vrot.slane %v7619_v20, 4  ;;  %v15194_v41 = vld [vmem:[#allocation2 + $0x98] sm:$0x1]  ;;  %v15196_v45 = vld [vmem:[#allocation2 + $0x17c] sm:$0x1] }
 0x48c   :  { %13690 = vmatprep.mubr.bf16.mxu0 %v12471_v0  ;;  %13751 = vmatpush3.bf16.msra.mxu0 %v15185_v51  ;;  %v12472_v17 = vcombine.low %v4512_v39, %v4515_v21  ;;  %v4519_v51 = vsel %vm18745_vm14, %v12425_v14, %v4518_v35  ;;  %v4358_v0 = vld [vmem:[#allocation2 + $0x84] sm:$0xe]  ;;  %v12689_v34 = vcombine.low %v7613_v15, %v7616_v55  ;;  %v4528_v9 = vrot.slane %v15193_v8, 5  ;;  %v4360_v39 = vld [vmem:[#allocation2 + $0x9c] sm:$0xe] }
 0x48d   :  { %13752 = vmatprep.subr.bf16.mxu0 %v15188_v52  ;;  %v12473_v47 = vcombine.low %v4519_v51, %v4522_v40  ;;  %v12426_v35 = vrot.slane %v4358_v0, 9  ;;  %v4535_v14 = vrot.slane %v15194_v41, 5  ;;  %v12642_v57 = vrot.slane %v7327_v56, 9  ;;  %v15197_v23 = vld [vmem:[#allocation2 + $0x184] sm:$0xf] }
 0x48e   :  { %v12643_v18 = vrot.slane %v7328_v28, 9  ;;  %v4529_v48 = vsel %vm18745_vm14, %v4527_v54, %v4528_v9  ;;  %v7629_v21 = vrot.slane %v15196_v45, 5  ;;  %v7633_v58 = vrot.slane %v15197_v23, 5  ;;  %v15198_v1 = vld [vmem:[#allocation2 + $0x190] sm:$0xf] }
 0x48f   :  { %13959 = vmatmul.mubr.bf16.gmra.mrb[12].mxu1 %v12686_v53  ;;  %v4359_v53 = vld [vmem:[#allocation2 + $0x90] sm:$0xe]  ;;  %v4536_v3 = vsel %vm18745_vm14, %v4534_v24, %v4535_v14  ;;  %v4546_v40 = vrot.slane %v18738_v30, 5  ;;  %v4526_v25 = vsel %vm18745_vm14, %v12426_v35, %v4525_v11  ;;  %v4541_v51 = vrot.slane %v4539_v31, 4  ;;  %v4361_v54 = vld [vmem:[#allocation2 + $0xa8] sm:$0xe] }
 0x490   :  { %13962 = vmatprep.mubr.bf16.mxu1 %v12687_v27  ;;  %13753 = vmatpush3.bf16.msra.mxu0 %v15188_v52  ;;  %v7628_v27 = vrot.slane %v7626_v50, 4  ;;  %v12427_v19 = vrot.slane %v4359_v53, 9  ;;  %v15195_v52 = vld [vmem:[#allocation2 + $0x170] sm:$0x1]  ;;  %v12474_v55 = vcombine.low %v4526_v25, %v4529_v48  ;;  %v7620_v42 = vsel %vm18745_vm14, %v12642_v57, %v7619_v20  ;;  %v7330_v20 = vld [vmem:[#allocation2 + $0x18c] sm:$0xe] }
 0x491   :  { %v7622_v6 = vrot.slane %v15195_v52, 5  ;;  %v7627_v30 = vsel %vm18745_vm14, %v12643_v18, %v7626_v50  ;;  %v7635_v11 = vrot.slane %v7633_v58, 4  ;;  %v12428_v53 = vrot.slane %v4360_v39, 9  ;;  %v15201_v8 = vld [vmem:[#allocation2 + $0xb0] sm:$0x1] }
 0x492   :  { %v7630_v2 = vsel %vm18745_vm14, %v7628_v27, %v7629_v21  ;;  %v4548_v56 = vrot.slane %v4546_v40, 4  ;;  %v12429_v35 = vrot.slane %v4361_v54, 9  ;;  %v4549_v9 = vrot.slane %v15201_v8, 5  ;;  %v4363_v14 = vld [vmem:[#allocation2 + $0xd8] sm:$0xe] }
 0x493   :  { %13691 = vmatmul.mubr.bf16.gmra.mrb[80].mxu0 %v12472_v17  ;;  %v7623_v4 = vsel %vm18745_vm14, %v7621_v63, %v7622_v6  ;;  %v4533_v17 = vsel %vm18745_vm14, %v12427_v19, %v4532_v29  ;;  %v12691_v24 = vcombine.low %v7627_v30, %v7630_v2  ;;  %v7329_v29 = vld [vmem:[#allocation2 + $0x180] sm:$0xe]  ;;  %v4560_v27 = vrot.slane %v18760_v12, 5  ;;  %v15202_v45 = vld [vmem:[#allocation2 + $0x194] sm:$0x1] }
 0x494   :  { %13694 = vmatprep.mubr.bf16.mxu0 %v12473_v47  ;;  %v12475_v0 = vcombine.low %v4533_v17, %v4536_v3  ;;  %v7640_v47 = vrot.slane %v15198_v1, 5  ;;  %v12690_v28 = vcombine.low %v7620_v42, %v7623_v4  ;;  %v4553_v41 = vrot.slane %v18749_v43, 5  ;;  %v15203_v23 = vld [vmem:[#allocation2 + $0x19c] sm:$0xf]  ;;  %v4362_v4 = vld [vmem:[#allocation2 + $0xb4] sm:$0xe] }
 0x495   :  { %v12644_v57 = vrot.slane %v7329_v29, 9  ;;  %v4540_v6 = vsel %vm18745_vm14, %v12428_v53, %v4539_v31  ;;  %v4550_v18 = vsel %vm18745_vm14, %v4548_v56, %v4549_v9  ;;  %v12645_v48 = vrot.slane %v7330_v20, 9  ;;  %v15204_v2 = vld [vmem:[#allocation2 + $0xe0] sm:$0x1]  ;;  %v7331_v1 = vld [vmem:[#allocation2 + $0x198] sm:$0xe] }
 0x496   :  { %v7642_v19 = vrot.slane %v7640_v47, 4  ;;  %v7643_v21 = vrot.slane %v15202_v45, 5  ;;  %v7647_v3 = vrot.slane %v15203_v23, 5  ;;  %v4547_v43 = vsel %vm18745_vm14, %v12429_v35, %v4546_v40  ;;  %v15205_v54 = vld [vmem:[#allocation2 + $0xbc] sm:$0x1] }
 0x497   :  { %13963 = vmatmul.mubr.bf16.gmra.mrb[16].mxu1 %v12688_v32  ;;  %v15199_v32 = vld [vmem:[#allocation2 + $0xa4] sm:$0x1]  ;;  %v12431_v25 = vrot.slane %v4363_v14, 9  ;;  %v4562_v39 = vrot.slane %v4560_v27, 4  ;;  %v12477_v17 = vcombine.low %v4547_v43, %v4550_v18  ;;  %v7634_v42 = vsel %vm18745_vm14, %v12644_v57, %v7633_v58  ;;  %v4364_v8 = vld [vmem:[#allocation2 + $0xe4] sm:$0xe] }
 0x498   :  { %13966 = vmatprep.mubr.bf16.mxu1 %v12689_v34  ;;  %v4542_v15 = vrot.slane %v15199_v32, 5  ;;  %v15200_v34 = vld [vmem:[#allocation2 + $0x188] sm:$0x1]  ;;  %v7644_v31 = vsel %vm18745_vm14, %v7642_v19, %v7643_v21  ;;  %v12430_v40 = vrot.slane %v4362_v4, 9  ;;  %v7649_v32 = vrot.slane %v7647_v3, 4 }
 0x499   :  { %v7636_v63 = vrot.slane %v15200_v34, 5  ;;  %v4574_v34 = vrot.slane %v18770_v13, 5  ;;  %v12432_v57 = vrot.slane %v4364_v8, 9  ;;  %v15207_v13 = vld [vmem:[#allocation2 + $0xec] sm:$0x1]  ;;  %v4581_v21 = vrot.slane %v18788_v59, 5 }
 0x49a   :  { %v4543_v50 = vsel %vm18745_vm14, %v4541_v51, %v4542_v15  ;;  %v4555_v51 = vrot.slane %v4553_v41, 4  ;;  %v4561_v15 = vsel %vm18745_vm14, %v12431_v25, %v4560_v27  ;;  %v4365_v27 = vld [vmem:[#allocation2 + $0xf0] sm:$0xe]  ;;  %v15208_v18 = vld [vmem:[#allocation2 + $0xf8] sm:$0x1]  ;;  %v4588_v23 = vrot.slane %v18793_v22, 5 }
 0x49b   :  { %13695 = vmatmul.mubr.bf16.gmra.mrb[84].mxu0 %v12474_v55  ;;  %v7637_v52 = vsel %vm18745_vm14, %v7635_v11, %v7636_v63  ;;  %v12476_v12 = vcombine.low %v4540_v6, %v4543_v50  ;;  %v4563_v55 = vrot.slane %v15204_v2, 5  ;;  %v4556_v11 = vrot.slane %v15205_v54, 5  ;;  %v14971_v6 = vld [vmem:[#allocation2 + $0x18] sm:$0xff]   ;;  %v14973_v59 = vld [vmem:[#allocation2 + $0x24] sm:$0xff]  }
 0x49c   :  { %13698 = vmatprep.mubr.bf16.mxu0 %v12475_v0  ;;  %v12692_v30 = vcombine.low %v7634_v42, %v7637_v52  ;;  %v7641_v0 = vsel %vm18745_vm14, %v12645_v48, %v7640_v47  ;;  %v12646_v47 = vrot.slane %v7331_v1, 9  ;;  %v4554_v63 = vsel %vm18745_vm14, %v12430_v40, %v4553_v41  ;;  %v4366_v25 = vld [vmem:[#allocation2 + $0xfc] sm:$0xe]  ;;  %v15210_v1 = vld [vmem:[#allocation2 + $0x110] sm:$0x1] }
 0x49d   :  { %v12693_v53 = vcombine.low %v7641_v0, %v7644_v31  ;;  %v4564_v56 = vsel %vm18745_vm14, %v4562_v39, %v4563_v55  ;;  %v4557_v58 = vsel %vm18745_vm14, %v4555_v51, %v4556_v11  ;;  %v4576_v19 = vrot.slane %v4574_v34, 4  ;;  %v4367_v55 = vld [vmem:[#allocation2 + $0x108] sm:$0xe]  ;;  %v15209_v51 = vld [vmem:[#allocation2 + $0x104] sm:$0x1] }
 0x49e   :  { %v12479_v20 = vcombine.low %v4561_v15, %v4564_v56  ;;  %v12478_v35 = vcombine.low %v4554_v63, %v4557_v58  ;;  %v4570_v52 = vrot.slane %v15207_v13, 5  ;;  %v12433_v41 = vrot.slane %v4365_v27, 9  ;;  %v14982_v56 = vld [vmem:[%s21516_s4 + $0x1d0] sm:$0xff]   ;;  %v15211_v63 = vld [vmem:[#allocation2 + $0x11c] sm:$0x1] }
 0x49f   :  { %13967 = vmatmul.mubr.bf16.gmra.mrb[20].mxu1 %v12690_v28  ;;  %v4567_v28 = vrot.slane %v18765_v44, 5  ;;  %v7648_v44 = vsel %vm18745_vm14, %v12646_v47, %v7647_v3  ;;  %v4577_v48 = vrot.slane %v15208_v18, 5  ;;  %v4583_v2 = vrot.slane %v4581_v21, 4 }
 0x4a0   :  { %13970 = vmatprep.mubr.bf16.mxu1 %v12691_v24  ;;  %v15206_v24 = vld [vmem:[#allocation2 + $0x1a0] sm:$0x1]  ;;  %v4575_v4 = vsel %vm18745_vm14, %v12433_v41, %v4574_v34  ;;  %v4590_v31 = vrot.slane %v4588_v23, 4  ;;  %v12434_v22 = vrot.slane %v4366_v25, 9  ;;  %v4584_v42 = vrot.slane %v15209_v51, 5  ;;  %v15009_v51 = vld [vmem:[%s21516_s4 + $0x1f0] sm:$0xff]  }
 0x4a1   :  { %v7650_v29 = vrot.slane %v15206_v24, 5  ;;  %v4569_v9 = vrot.slane %v4567_v28, 4  ;;  %v4568_v3 = vsel %vm18745_vm14, %v12432_v57, %v4567_v28  ;;  %v12435_v0 = vrot.slane %v4367_v55, 9  ;;  %v4368_v28 = vld [vmem:[#allocation2 + $0x114] sm:$0xe] }
 0x4a2   :  { %v4591_v40 = vrot.slane %v15210_v1, 5  ;;  %v4585_v54 = vsel %vm18745_vm14, %v4583_v2, %v4584_v42  ;;  %v4595_v11 = vrot.slane %v18808_v36, 5  ;;  %v4582_v15 = vsel %vm18745_vm14, %v12434_v22, %v4581_v21  ;;  %v4369_v24 = vld [vmem:[#allocation2 + $0x120] sm:$0xe] }
 0x4a3   :  { %13699 = vmatmul.mubr.bf16.gmra.mrb[88].mxu0 %v12476_v12  ;;  %v7651_v50 = vsel %vm18745_vm14, %v7649_v32, %v7650_v29  ;;  %v4571_v45 = vsel %vm18745_vm14, %v4569_v9, %v4570_v52  ;;  %v4578_v12 = vsel %vm18745_vm14, %v4576_v19, %v4577_v48  ;;  %v4602_v32 = vrot.slane %v18813_v62, 5  ;;  %v14975_v62 = vld [vmem:[#allocation2 + $0x3c] sm:$0xff]   ;;  %v15212_v9 = vld [vmem:[#allocation2 + $0x128] sm:$0x1] }
 0x4a4   :  { %13702 = vmatprep.mubr.bf16.mxu0 %v12477_v17  ;;  %v12694_v14 = vcombine.low %v7648_v44, %v7651_v50  ;;  %v12480_v43 = vcombine.low %v4568_v3, %v4571_v45  ;;  %v12481_v39 = vcombine.low %v4575_v4, %v4578_v12  ;;  %v14977_v17 = vld [vmem:[%s21516_s4 + $0x1c8] sm:$0xff]   ;;  %v12482_v58 = vcombine.low %v4582_v15, %v4585_v54  ;;  %v14987_v50 = vld [vmem:[%s21516_s4 + $0x1d8] sm:$0xff]   ;;  %v14992_v52 = vld [vmem:[%s21516_s4 + $0x1e0] sm:$0xff]  }
 0x4a5   :  { %v4589_v36 = vsel %vm18745_vm14, %v12435_v0, %v4588_v23  ;;  %v4597_v47 = vrot.slane %v4595_v11, 4  ;;  %v4604_v29 = vrot.slane %v4602_v32, 4  ;;  %v12436_v34 = vrot.slane %v4368_v28, 9  ;;  %v4371_v45 = vld [vmem:[#allocation2 + $0x138] sm:$0xe]  ;;  %v14979_v4 = vld [vmem:[#allocation2 + $0x60] sm:$0xff]  }
 0x4a6   :  { %v12437_v8 = vrot.slane %v4369_v24, 9  ;;  %v4605_v27 = vrot.slane %v15212_v9, 5  ;;  %v4609_v19 = vrot.slane %v18828_v7, 5  ;;  %v4616_v57 = vrot.slane %v18833_v46, 5  ;;  %v4370_v7 = vld [vmem:[#allocation2 + $0x12c] sm:$0xe] }
 0x4a7   :  { %13971 = vmatmul.mubr.bf16.gmra.mrb[24].mxu1 %v12692_v30  ;;  %v14974_v30 = vld [vmem:[#allocation2 + $0x30] sm:$0xff]   ;;  %v4596_v13 = vsel %vm18745_vm14, %v12436_v34, %v4595_v11  ;;  %v12438_v12 = vrot.slane %v4370_v7, 9  ;;  %v12439_v25 = vrot.slane %v4371_v45, 9  ;;  %v15018_v15 = vld [vmem:[%s21516_s4 + $0x1f8] sm:$0xff]   ;;  %v19149_v34 = vld [vmem:[%s21516_s4 + $0x200] sm:$0xff]  }
 0x4a8   :  { %13974 = vmatprep.mubr.bf16.mxu1 %v12693_v53  ;;  %v4592_v53 = vsel %vm18745_vm14, %v4590_v31, %v4591_v40  ;;  %v4603_v41 = vsel %vm18745_vm14, %v12437_v8, %v4602_v32  ;;  %v4611_v48 = vrot.slane %v4609_v19, 4  ;;  %v4618_v21 = vrot.slane %v4616_v57, 4  ;;  %v14978_v46 = vld [vmem:[#allocation2 + $0x54] sm:$0xff]   ;;  %v4373_v40 = vld [vmem:[#allocation2 + $0x150] sm:$0xe]  ;;  %v14983_v9 = vld [vmem:[#allocation2 + $0x84] sm:$0xff]  }
 0x4a9   :  { %v15213_v23 = vld [vmem:[#allocation2 + $0x134] sm:$0x1]  ;;  %v4623_v31 = vrot.slane %v18850_v38, 5  ;;  %v4610_v22 = vsel %vm18745_vm14, %v12438_v12, %v4609_v19  ;;  %v4372_v38 = vld [vmem:[#allocation2 + $0x144] sm:$0xe] }
 0x4aa   :  { %v4612_v3 = vrot.slane %v15213_v23, 5  ;;  %v12440_v11 = vrot.slane %v4372_v38, 9  ;;  %v4375_v8 = vld [vmem:[#allocation2 + $0x168] sm:$0xe]  ;;  %v4378_v38 = vld [vmem:[#allocation2 + $0x18c] sm:$0xe] }
 0x4ab   :  { %13703 = vmatmul.mubr.bf16.gmra.mrb[92].mxu0 %v12478_v35  ;;  %v14976_v35 = vld [vmem:[#allocation2 + $0x48] sm:$0xff]   ;;  %v4625_v1 = vrot.slane %v4623_v31, 4 }
 0x4ac   :  { %13706 = vmatprep.mubr.bf16.mxu0 %v12479_v20  ;;  %v4598_v20 = vrot.slane %v15211_v63, 5  ;;  %v4613_v55 = vsel %vm18745_vm14, %v4611_v48, %v4612_v3  ;;  %v4377_v3 = vld [vmem:[#allocation2 + $0x180] sm:$0xe] }
 0x4ad   :  { %v12486_v42 = vcombine.low %v4610_v22, %v4613_v55  ;;  %v15220_v55 = vld [vmem:[#allocation2 + $0x188] sm:$0x1] }
 0x4ae   :  { %v4599_v44 = vsel %vm18745_vm14, %v4597_v47, %v4598_v20  ;;  %v4637_v47 = vrot.slane %v18865_v26, 5  ;;  %v4374_v20 = vld [vmem:[#allocation2 + $0x15c] sm:$0xe] }
 0x4af   :  { %13975 = vmatmul.mubr.bf16.gmra.mrb[28].mxu1 %v12694_v14  ;;  %v4606_v14 = vsel %vm18745_vm14, %v4604_v29, %v4605_v27  ;;  %v4644_v29 = vrot.slane %v18870_v16, 5  ;;  %v12442_v27 = vrot.slane %v4374_v20, 9  ;;  %v15005_v20 = vld [vmem:[#allocation2 + $0x48] sm:$0xff]  }
 0x4b0   :  { %13994 = vmatprep.mubr.bf16.mxu1 %v14971_v6  ;;  %v12484_v6 = vcombine.low %v4596_v13, %v4599_v44  ;;  %v12485_v18 = vcombine.low %v4603_v41, %v4606_v14  ;;  %v15217_v44 = vld [vmem:[#allocation2 + $0x164] sm:$0x1]  ;;  %v14984_v14 = vld [vmem:[#allocation2 + $0x90] sm:$0xff]   ;;  %v4651_v41 = vrot.slane %v18877_v37, 5  ;;  %v14985_v37 = vld [vmem:[#allocation2 + $0x9c] sm:$0xff]  }
 0x4b1   :  { %v4646_v16 = vrot.slane %v4644_v29, 4  ;;  %v4640_v19 = vrot.slane %v15217_v44, 5  ;;  %v15218_v13 = vld [vmem:[#allocation2 + $0x170] sm:$0x1]  ;;  %v4638_v48 = vsel %vm18745_vm14, %v12442_v27, %v4637_v47  ;;  %v8874_v27 = vld [vmem:[#allocation2 + $0x1c] sm:$0xf] }
 0x4b2   :  { %v4653_v23 = vrot.slane %v4651_v41, 4  ;;  %v15012_v44 = vld [vmem:[#allocation2 + $0x6c] sm:$0xff]  }
 0x4b3   :  { %13707 = vmatmul.mubr.bf16.gmra.mrb[96].mxu0 %v12480_v43  ;;  %v15000_v43 = vld [vmem:[%s21516_s4 + $0x1e8] sm:$0xff]  }
 0x4b4   :  { %13710 = vmatprep.mubr.bf16.mxu0 %v12481_v39  ;;  %v15214_v39 = vld [vmem:[#allocation2 + $0x140] sm:$0x1] }
 0x4b5   :  { %v4619_v2 = vrot.slane %v15214_v39, 5 }
 0x4b7   :  { %13995 = vmatmul.mubr.bf16.vlgmr.msra.gmra.mrb[32].mxu1 %v14973_v59  ;;  %v4620_v59 = vsel %vm18745_vm14, %v4618_v21, %v4619_v2  ;;  %v14986_v2 = vld [vmem:[#allocation2 + $0xa8] sm:$0xff]  }
 0x4b8   :  { %14059 = vmatpush3.bf16.msra.mxu1 %v18846_v61  ;;  %13998 = vmatprep.mubr.bf16.mxu1 %v14974_v30  ;;  %v12483_v61 = vcombine.low %v4589_v36, %v4592_v53  ;;  %v4617_v30 = vsel %vm18745_vm14, %v12439_v25, %v4616_v57  ;;  %v15215_v53 = vld [vmem:[#allocation2 + $0x14c] sm:$0x1]  ;;  %v15216_v36 = vld [vmem:[#allocation2 + $0x158] sm:$0x1]  ;;  %v12443_v57 = vrot.slane %v4375_v8, 9 }
 0x4b9   :  { %14060 = vmatprep.subr.bf16.mxu1 %v14977_v17  ;;  %v12487_v0 = vcombine.low %v4617_v30, %v4620_v59  ;;  %v4626_v32 = vrot.slane %v15215_v53, 5  ;;  %v4633_v28 = vrot.slane %v15216_v36, 5  ;;  %v15219_v25 = vld [vmem:[#allocation2 + $0x17c] sm:$0x1]  ;;  %v14991_v36 = vld [vmem:[#allocation2 + $0xf0] sm:$0xff]  }
 0x4ba   :  { %v4645_v21 = vsel %vm18745_vm14, %v12443_v57, %v4644_v29  ;;  %v4654_v39 = vrot.slane %v15219_v25, 5  ;;  %v15001_v29 = vld [vmem:[#allocation2 + $0x30] sm:$0xff]   ;;  %v15004_v8 = vld [vmem:[#allocation2 + $0x138] sm:$0xff]  }
 0x4bb   :  { %13711 = vmatmul.mubr.bf16.gmra.mrb[100].mxu0 %v12482_v58  ;;  %v12441_v58 = vrot.slane %v4373_v40, 9  ;;  %v14988_v40 = vld [vmem:[#allocation2 + $0xb4] sm:$0xff]  }
 0x4bc   :  { %14061 = vmatpush3.bf16.msra.mxu1 %v14977_v17  ;;  %13714 = vmatprep.mubr.bf16.mxu0 %v12483_v61  ;;  %v4630_v17 = vrot.slane %v18855_v60, 5  ;;  %v14980_v60 = vld [vmem:[#allocation2 + $0x6c] sm:$0xff]   ;;  %v4627_v61 = vsel %vm18745_vm14, %v4625_v1, %v4626_v32  ;;  %v4655_v59 = vsel %vm18745_vm14, %v4653_v23, %v4654_v39  ;;  %v15016_v23 = vld [vmem:[#allocation2 + $0x84] sm:$0xff]   ;;  %v8880_v25 = vld [vmem:[#allocation2 + $0x34] sm:$0xf] }
 0x4bd   :  { %14062 = vmatprep.subr.bf16.mxu1 %v14982_v56 }
 0x4be   :  { %v4632_v54 = vrot.slane %v4630_v17, 4  ;;  %v4631_v26 = vsel %vm18745_vm14, %v12441_v58, %v4630_v17  ;;  %v4665_v17 = vrot.slane %v18897_v10, 5  ;;  %v14994_v58 = vld [vmem:[#allocation2 + $0xc] sm:$0xff]  }
 0x4bf   :  { %13999 = vmatmul.mubr.bf16.gmra.mrb[36].mxu1 %v14975_v62  ;;  %v4624_v62 = vsel %vm18745_vm14, %v12440_v11, %v4623_v31  ;;  %v4661_v31 = vrot.slane %v15220_v55, 5  ;;  %v14989_v11 = vld [vmem:[#allocation2 + $0xc0] sm:$0xff]  }
 0x4c0   :  { %14002 = vmatprep.mubr.bf16.mxu1 %v14976_v35  ;;  %14063 = vmatpush3.bf16.msra.mxu1 %v14982_v56  ;;  %v14981_v56 = vld [vmem:[#allocation2 + $0x78] sm:$0xff]   ;;  %v4634_v24 = vsel %vm18745_vm14, %v4632_v54, %v4633_v28  ;;  %v12488_v63 = vcombine.low %v4624_v62, %v4627_v61  ;;  %v4639_v35 = vrot.slane %v4637_v47, 4  ;;  %v4667_v1 = vrot.slane %v4665_v17, 4  ;;  %v14998_v61 = vld [vmem:[#allocation2 + $0x24] sm:$0xff]   ;;  %v8875_v55 = vld [vmem:[#allocation2 + $0x20] sm:$0x1] }
 0x4c1   :  { %14064 = vmatprep.subr.bf16.mxu1 %v14987_v50  ;;  %v12446_v54 = vrot.slane %v4378_v38, 9  ;;  %v14996_v28 = vld [vmem:[#allocation2 + $0x18] sm:$0xff]   ;;  %v9031_v38 = vshrl.u32 %v8880_v25, 16 }
 0x4c2   :  { %v14993_v47 = vld [vmem:[#allocation2 + $0xfc] sm:$0xff]  }
 0x4c3   :  { %13715 = vmatmul.mubr.bf16.gmra.mrb[104].mxu0 %v12484_v6  ;;  %v4641_v6 = vsel %vm18745_vm14, %v4639_v35, %v4640_v19  ;;  %v4666_v32 = vsel %vm18745_vm14, %v12446_v54, %v4665_v17  ;;  %v15003_v62 = vld [vmem:[#allocation2 + $0x3c] sm:$0xff]   ;;  %v15002_v35 = vld [vmem:[#allocation2 + $0x12c] sm:$0xff]   ;;  %v15006_v19 = vld [vmem:[#allocation2 + $0x144] sm:$0xff]  }
 0x4c4   :  { %14065 = vmatpush3.bf16.msra.mxu1 %v14987_v50  ;;  %13718 = vmatprep.mubr.bf16.mxu0 %v12485_v18  ;;  %v12489_v50 = vcombine.low %v4631_v26, %v4634_v24  ;;  %v4658_v18 = vrot.slane %v18884_v49, 5  ;;  %v12490_v45 = vcombine.low %v4638_v48, %v4641_v6  ;;  %v12445_v49 = vrot.slane %v4377_v3, 9  ;;  %v14995_v24 = vld [vmem:[#allocation2 + $0x108] sm:$0xff]   ;;  %v14999_v26 = vld [vmem:[#allocation2 + $0x120] sm:$0xff]   ;;  %v15008_v6 = vld [vmem:[#allocation2 + $0x150] sm:$0xff]  }
 0x4c5   :  { %14066 = vmatprep.subr.bf16.mxu1 %v14992_v52  ;;  %v8882_v17 = vld [vmem:[#allocation2 + $0x3c] sm:$0xf] }
 0x4c6   :  { %v4659_v30 = vsel %vm18745_vm14, %v12445_v49, %v4658_v18  ;;  %v15011_v49 = vld [vmem:[#allocation2 + $0x15c] sm:$0xff]  }
 0x4c7   :  { %14003 = vmatmul.mubr.bf16.gmra.mrb[40].mxu1 %v14978_v46  ;;  %v4376_v46 = vld [vmem:[#allocation2 + $0x174] sm:$0xe] }
 0x4c8   :  { %14006 = vmatprep.mubr.bf16.mxu1 %v14979_v4  ;;  %14067 = vmatpush3.bf16.msra.mxu1 %v14992_v52  ;;  %v4647_v52 = vrot.slane %v15218_v13, 5  ;;  %v12444_v4 = vrot.slane %v4376_v46, 9  ;;  %v8979_v13 = vshll.u32 %v8874_v27, 16 }
 0x4c9   :  { %14068 = vmatprep.subr.bf16.mxu1 %v15000_v43 }
 0x4ca   :  { %v4648_v7 = vsel %vm18745_vm14, %v4646_v16, %v4647_v52  ;;  %v15010_v16 = vld [vmem:[#allocation2 + $0x60] sm:$0xff]   ;;  %v8983_v52 = vshrl.u32 %v8874_v27, 16  ;;  %v8885_v27 = vld [vmem:[#allocation2 + $0x48] sm:$0xf] }
 0x4cb   :  { %13719 = vmatmul.mubr.bf16.gmra.mrb[108].mxu0 %v12486_v42  ;;  %v12491_v12 = vcombine.low %v4645_v21, %v4648_v7  ;;  %v8877_v7 = vld [vmem:[#allocation2 + $0x28] sm:$0xf]  ;;  %v19177_v21 = vrot.slane %v8979_v13, 5 }
 0x4cc   :  { %14069 = vmatpush3.bf16.msra.mxu1 %v15000_v43  ;;  %13722 = vmatprep.mubr.bf16.mxu0 %v12487_v0  ;;  %v4660_v43 = vrot.slane %v4658_v18, 4  ;;  %v8879_v18 = vld [vmem:[#allocation2 + $0x30] sm:$0xf]  ;;  %v8985_v46 = vrot.slane %v8983_v52, 4 }
 0x4cd   :  { %14070 = vmatprep.subr.bf16.mxu1 %v15009_v51  ;;  %v9018_v39 = vshrl.u32 %v8879_v18, 16 }
 0x4ce   :  { %v4662_v22 = vsel %vm18745_vm14, %v4660_v43, %v4661_v31 }
 0x4cf   :  { %14007 = vmatmul.mubr.bf16.gmra.mrb[44].mxu1 %v14980_v60  ;;  %v12493_v0 = vcombine.low %v4659_v30, %v4662_v22  ;;  %v15221_v60 = vld [vmem:[#allocation2 + $0x194] sm:$0x1]  ;;  %v15013_v22 = vld [vmem:[#allocation2 + $0x168] sm:$0xff]   ;;  %v9027_v30 = vshll.u32 %v8880_v25, 16 }
 0x4d0   :  { %14010 = vmatprep.mubr.bf16.mxu1 %v14981_v56  ;;  %14071 = vmatpush3.bf16.msra.mxu1 %v15009_v51  ;;  %v4652_v51 = vsel %vm18745_vm14, %v12444_v4, %v4651_v41  ;;  %v4668_v10 = vrot.slane %v15221_v60, 5  ;;  %v14990_v56 = vld [vmem:[#allocation2 + $0xcc] sm:$0xff]   ;;  %v8876_v41 = vld [vmem:[#allocation2 + $0x24] sm:$0xf]  ;;  %v9007_v4 = vshrl.u32 %v8877_v7, 16  ;;  %v8989_v60 = vshll.u32 %v8875_v55, 16 }
 0x4d1   :  { %14072 = vmatprep.subr.bf16.mxu1 %v15018_v15  ;;  %v12492_v42 = vcombine.low %v4652_v51, %v4655_v59  ;;  %v8994_v3 = vshrl.u32 %v8876_v41, 16  ;;  %v8997_v43 = vshll.u32 %v8876_v41, 16  ;;  %v8986_v59 = vor.u32 %v8985_v46, %v19177_v21  ;;  %v8884_v41 = vld [vmem:[#allocation2 + $0x44] sm:$0x1]  ;;  %v15025_v55 = vld [vmem:[#allocation2 + $0xb4] sm:$0xff]  }
 0x4d2   :  { %v4669_v53 = vsel %vm18745_vm14, %v4667_v1, %v4668_v10  ;;  %v9009_v1 = vrot.slane %v9007_v4, 4  ;;  %v8883_v10 = vld [vmem:[#allocation2 + $0x40] sm:$0xf]  ;;  %v9069_v46 = vshll.u32 %v8885_v27, 16 }
 0x4d3   :  { %13723 = vmatmul.mubr.bf16.gmra.mrb[112].mxu0 %v12488_v63  ;;  %v14997_v63 = vld [vmem:[#allocation2 + $0x114] sm:$0xff]   ;;  %v8996_v51 = vrot.slane %v8994_v3, 4 }
 0x4d4   :  { %14073 = vmatpush3.bf16.msra.mxu1 %v15018_v15  ;;  %13726 = vmatprep.mubr.bf16.mxu0 %v12489_v50  ;;  %v12494_v15 = vcombine.low %v4666_v32, %v4669_v53  ;;  %v15007_v50 = vld [vmem:[#allocation2 + $0x54] sm:$0xff]   ;;  %v9045_v53 = vshll.u32 %v8882_v17, 16 }
 0x4d5   :  { %14138 = vmatprep.subr.bf16.mxu1 %v19149_v34  ;;  %v8888_v3 = vld [vmem:[#allocation2 + $0x54] sm:$0xf] }
 0x4d7   :  { %14011 = vmatmul.mubr.bf16.gmra.mrb[48].mxu1 %v14983_v9  ;;  %v8873_v9 = vld [vmem:[#allocation2 + $0x18] sm:$0xf] }
 0x4d8   :  { %14014 = vmatprep.mubr.bf16.mxu1 %v14984_v14  ;;  %v8970_v14 = vshrl.u32 %v8873_v9, 16  ;;  %v8973_v57 = vshll.u32 %v8873_v9, 16 }
 0x4da   :  { %v8972_v48 = vrot.slane %v8970_v14, 4 }
 0x4db   :  { %13727 = vmatmul.mubr.bf16.gmra.mrb[116].mxu0 %v12490_v45  ;;  %v8975_v45 = vrot.slane %v8973_v57, 5 }
 0x4dc   :  { %13730 = vmatprep.mubr.bf16.mxu0 %v12491_v12  ;;  %v15014_v12 = vld [vmem:[#allocation2 + $0x78] sm:$0xff]  }
 0x4dd   :  { %v8976_v31 = vor.u32 %v8975_v45, %v8972_v48  ;;  %v8886_v45 = vld [vmem:[#allocation2 + $0x4c] sm:$0xf] }
 0x4df   :  { %14015 = vmatmul.mubr.bf16.gmra.mrb[52].mxu1 %v14985_v37  ;;  %v9003_v37 = vshll.u32 %v8877_v7, 16  ;;  %v8977_v32 = vrot.slane %v8976_v31, 4 }
 0x4e0   :  { %14018 = vmatprep.mubr.bf16.mxu1 %v14986_v2  ;;  %v9021_v2 = vshll.u32 %v8879_v18, 16 }
 0x4e2   :  { %v9023_v54 = vrot.slane %v9021_v2, 5  ;;  %v8889_v2 = vld [vmem:[#allocation2 + $0x58] sm:$0xf] }
 0x4e3   :  { %13731 = vmatmul.mubr.bf16.gmra.mrb[120].mxu0 %v12492_v42  ;;  %v8999_v42 = vrot.slane %v8997_v43, 5  ;;  %v15023_v43 = vld [vmem:[#allocation2 + $0xa8] sm:$0xff]  }
 0x4e4   :  { %13734 = vmatprep.mubr.bf16.mxu0 %v12493_v0  ;;  %v19180_v0 = vrot.slane %v9003_v37, 5 }
 0x4e7   :  { %14019 = vmatmul.mubr.bf16.gmra.mrb[56].mxu1 %v14988_v40  ;;  %v9020_v40 = vrot.slane %v9018_v39, 4  ;;  %v9061_v39 = vshll.u32 %v8884_v41, 16 }
 0x4e8   :  { %14022 = vmatprep.mubr.bf16.mxu1 %v14989_v11  ;;  %v9042_v11 = vshrl.u32 %v8882_v17, 16 }
 0x4eb   :  { %13735 = vmatmul.mubr.bf16.gmra.mrb[124].mxu0 %v12494_v15  ;;  %v15019_v15 = vld [vmem:[#allocation2 + $0x90] sm:$0xff]  }
 0x4ec   :  { %13754 = vmatprep.mubr.bf16.mxu0 %v14994_v58  ;;  %v8878_v58 = vld [vmem:[#allocation2 + $0x2c] sm:$0x1] }
 0x4ed   :  { %v9013_v9 = vshll.u32 %v8878_v58, 16 }
 0x4ef   :  { %14023 = vmatmul.mubr.bf16.gmra.mrb[60].mxu1 %v14990_v56  ;;  %v8987_v56 = vrot.slane %v8986_v59, 4 }
 0x4f0   :  { %14026 = vmatprep.mubr.bf16.mxu1 %v14991_v36  ;;  %v9000_v36 = vor.u32 %v8999_v42, %v8996_v51  ;;  %v8891_v51 = vld [vmem:[#allocation2 + $0x60] sm:$0xf] }
 0x4f1   :  { %v9114_v58 = vshrl.u32 %v8891_v51, 16 }
 0x4f2   :  { %v19190_v14 = vrot.slane %v9000_v36, 4  ;;  %v9117_v36 = vshll.u32 %v8891_v51, 16 }
 0x4f3   :  { %13755 = vmatmul.mubr.bf16.vlgmr.msra.gmra.mrb[64].mxu0 %v14996_v28  ;;  %v19182_v28 = vrot.slane %v9027_v30, 5 }
 0x4f4   :  { %13758 = vmatprep.mubr.bf16.mxu0 %v14998_v61  ;;  %v9033_v61 = vrot.slane %v9031_v38, 4  ;;  %v9006_v37 = vsel %vm18356_vm11, %v19190_v14, %v19180_v0  ;;  %v9071_v38 = vrot.slane %v9069_v46, 5  ;;  %v9119_v41 = vrot.slane %v9117_v36, 5 }
 0x4f6   :  { %v9034_v57 = vor.u32 %v9033_v61, %v19182_v28 }
 0x4f7   :  { %14027 = vmatmul.mubr.bf16.gmra.mrb[0].mxu1 %v14993_v47  ;;  %v15021_v47 = vld [vmem:[#allocation2 + $0x9c] sm:$0xff]  }
 0x4f8   :  { %14030 = vmatprep.mubr.bf16.mxu1 %v14995_v24  ;;  %v9010_v24 = vor.u32 %v9009_v1, %v19180_v0  ;;  %v19207_v4 = vrot.slane %v9034_v57, 4  ;;  %v9079_v1 = vshrl.u32 %v8886_v45, 16  ;;  %v15027_v57 = vld [vmem:[#allocation2 + $0xc0] sm:$0xff]  }
 0x4fa   :  { %v19193_v52 = vrot.slane %v9010_v24, 4 }
 0x4fb   :  { %13759 = vmatmul.mubr.bf16.gmra.mrb[68].mxu0 %v15001_v29  ;;  %v8881_v29 = vld [vmem:[#allocation2 + $0x38] sm:$0x1] }
 0x4fc   :  { %13762 = vmatprep.mubr.bf16.mxu0 %v15003_v62  ;;  %v9024_v62 = vor.u32 %v9023_v54, %v9020_v40  ;;  %v9037_v13 = vshll.u32 %v8881_v29, 16  ;;  %v8892_v40 = vld [vmem:[#allocation2 + $0x64] sm:$0xf]  ;;  %v19222_v54 = vld [vmem:[#allocation2 + $0x50] sm:$0x1] }
 0x4fd   :  { %v9123_v24 = vshll.u32 %v8892_v40, 16  ;;  %v9127_v29 = vshrl.u32 %v8892_v40, 16 }
 0x4fe   :  { %v19209_v25 = vrot.slane %v9037_v13, 5  ;;  %v9116_v13 = vrot.slane %v9114_v58, 4 }
 0x4ff   :  { %14031 = vmatmul.mubr.bf16.gmra.mrb[4].mxu1 %v14997_v63  ;;  %v9051_v63 = vshll.u32 %v8883_v10, 16 }
 0x500   :  { %14034 = vmatprep.mubr.bf16.mxu1 %v14999_v26  ;;  %v9055_v26 = vshrl.u32 %v8883_v10, 16  ;;  %v9093_v10 = vshll.u32 %v8888_v3, 16  ;;  %v9120_v40 = vor.u32 %v9119_v41, %v9116_v13  ;;  %v8903_v41 = vld [vmem:[#allocation2 + $0x90] sm:$0xf] }
 0x501   :  { %v19197_v7 = vrot.slane %v9051_v63, 5 }
 0x502   :  { %v9057_v18 = vrot.slane %v9055_v26, 4 }
 0x503   :  { %13763 = vmatmul.mubr.bf16.gmra.mrb[72].mxu0 %v15005_v20  ;;  %v8991_v20 = vrot.slane %v8989_v60, 5  ;;  %v9090_v60 = vshrl.u32 %v8888_v3, 16 }
 0x504   :  { %13766 = vmatprep.mubr.bf16.mxu0 %v15007_v50  ;;  %v9044_v50 = vrot.slane %v9042_v11, 4  ;;  %v9058_v17 = vor.u32 %v9057_v18, %v19197_v7  ;;  %v9099_v11 = vshll.u32 %v8889_v2, 16 }
 0x506   :  { %v19230_v61 = vrot.slane %v9058_v17, 4 }
 0x507   :  { %14035 = vmatmul.mubr.bf16.gmra.mrb[8].mxu1 %v15002_v35  ;;  %v9047_v35 = vrot.slane %v9045_v53, 5  ;;  %v9103_v53 = vshrl.u32 %v8889_v2, 16 }
 0x508   :  { %14038 = vmatprep.mubr.bf16.mxu1 %v15004_v8  ;;  %v15015_v8 = vld [vmem:[#allocation2 + $0x174] sm:$0xff]  }
 0x509   :  { %v9048_v48 = vor.u32 %v9047_v35, %v9044_v50  ;;  %v9085_v50 = vshll.u32 %v19222_v54, 16  ;;  %v8895_v35 = vld [vmem:[#allocation2 + $0x70] sm:$0xf] }
 0x50a   :  { %v9147_v46 = vshll.u32 %v8895_v35, 16  ;;  %v9151_v3 = vshrl.u32 %v8895_v35, 16 }
 0x50b   :  { %13767 = vmatmul.mubr.bf16.gmra.mrb[76].mxu0 %v15010_v16  ;;  %v8982_v16 = vsel %vm18356_vm11, %v8977_v32, %v19177_v21  ;;  %v9066_v21 = vshrl.u32 %v8885_v27, 16  ;;  %v19220_v42 = vrot.slane %v9048_v48, 4  ;;  %v15022_v32 = vld [vmem:[#allocation2 + $0x198] sm:$0xff]   ;;  %v19239_v27 = vrot.slane %v9099_v11, 5 }
 0x50c   :  { %13770 = vmatprep.mubr.bf16.mxu0 %v15012_v44  ;;  %v15017_v44 = vld [vmem:[#allocation2 + $0x180] sm:$0xff]   ;;  %v9087_v14 = vrot.slane %v9085_v50, 5 }
 0x50d   :  { %v9068_v30 = vrot.slane %v9066_v21, 4  ;;  %v9054_v63 = vsel %vm18356_vm11, %v19220_v42, %v19197_v7  ;;  %v19241_v21 = vrot.slane %v9123_v24, 5  ;;  %v9129_v7 = vrot.slane %v9127_v29, 4 }
 0x50f   :  { %14039 = vmatmul.mubr.bf16.gmra.mrb[12].mxu1 %v15006_v19  ;;  %v8992_v19 = vsel %vm18356_vm11, %v8987_v56, %v8991_v20  ;;  %v19228_v56 = vrot.slane %v9061_v39, 5  ;;  %v9072_v26 = vor.u32 %v9071_v38, %v9068_v30  ;;  %v9081_v20 = vrot.slane %v9079_v1, 4  ;;  %v15222_v30 = vld [vmem:[%s21515_s0] sm:$0xff]   ;;  %v8893_v1 = vld [vmem:[#allocation2 + $0x68] sm:$0x1] }
 0x510   :  { %14042 = vmatprep.mubr.bf16.mxu1 %v15008_v6  ;;  %v19195_v6 = vrot.slane %v9024_v62, 4  ;;  %v8894_v62 = vld [vmem:[#allocation2 + $0x6c] sm:$0xf]  ;;  %v9130_v11 = vor.u32 %v9129_v7, %v19241_v21 }
 0x511   :  { %v9138_v18 = vshrl.u32 %v8894_v62, 16  ;;  %v9141_v48 = vshll.u32 %v8894_v62, 16  ;;  %v9064_v17 = vsel %vm18356_vm11, %v19230_v61, %v19228_v56 }
 0x512   :  { %v9030_v59 = vsel %vm18356_vm11, %v19195_v6, %v19182_v28  ;;  %v19280_v0 = vcombine.low %v9054_v63, %v9064_v17  ;;  %v8900_v6 = vld [vmem:[#allocation2 + $0x84] sm:$0xf]  ;;  %v9213_v17 = vshll.u32 %v8903_v41, 16 }
 0x513   :  { %13771 = vmatmul.mubr.bf16.gmra.mrb[80].mxu0 %v15014_v12  ;;  %v19199_v12 = vcombine.low %v8982_v16, %v8992_v19  ;;  %v9092_v16 = vrot.slane %v9090_v60, 4  ;;  %v8898_v19 = vld [vmem:[#allocation2 + $0x7c] sm:$0xf]  ;;  %v9140_v54 = vrot.slane %v9138_v18, 4  ;;  %v9143_v60 = vrot.slane %v9141_v48, 5 }
 0x514   :  { %13774 = vmatprep.mubr.bf16.mxu0 %v15016_v23  ;;  %v19201_v23 = vrot.slane %v9013_v9, 5  ;;  %v9095_v9 = vrot.slane %v9093_v10, 5 }
 0x515   :  { %v9144_v35 = vor.u32 %v9143_v60, %v9140_v54 }
 0x516   :  { %v9016_v31 = vsel %vm18356_vm11, %v19193_v52, %v19201_v23  ;;  %v9096_v42 = vor.u32 %v9095_v9, %v9092_v16  ;;  %v9121_v23 = vrot.slane %v9120_v40, 4 }
 0x517   :  { %14043 = vmatmul.mubr.bf16.gmra.mrb[16].mxu1 %v15011_v49  ;;  %v15020_v49 = vld [vmem:[#allocation2 + $0x18c] sm:$0xff]   ;;  %v12776_v24 = vcombine.low %v9006_v37, %v9016_v31  ;;  %v9131_v37 = vrot.slane %v9130_v11, 4 }
 0x518   :  { %14046 = vmatprep.mubr.bf16.mxu1 %v15013_v22  ;;  %v9075_v22 = vshll.u32 %v8886_v45, 16  ;;  %v15024_v45 = vld [vmem:[#allocation2 + $0x1a4] sm:$0xff]   ;;  %v9097_v62 = vrot.slane %v9096_v42, 4 }
 0x51a   :  { %v9102_v63 = vsel %vm18356_vm11, %v9097_v62, %v19239_v27 }
 0x51b   :  { %13775 = vmatmul.mubr.bf16.gmra.mrb[84].mxu0 %v15019_v15  ;;  %v9040_v15 = vsel %vm18356_vm11, %v19207_v4, %v19209_v25 }
 0x51c   :  { %13778 = vmatprep.mubr.bf16.mxu0 %v15021_v47  ;;  %v19232_v47 = vrot.slane %v9075_v22, 5  ;;  %v19247_v22 = vrot.slane %v9072_v26, 4  ;;  %v9133_v26 = vshll.u32 %v8893_v1, 16  ;;  %v12777_v52 = vcombine.low %v9030_v59, %v9040_v15  ;;  %v15028_v15 = vld [vmem:[%s21516_s4 + $0x208] sm:$0xff]  }
 0x51e   :  { %v9082_v51 = vor.u32 %v9081_v20, %v19232_v47  ;;  %v8896_v20 = vld [vmem:[#allocation2 + $0x74] sm:$0x1]  ;;  %v9078_v4 = vsel %vm18356_vm11, %v19247_v22, %v19232_v47  ;;  %v9135_v50 = vrot.slane %v9133_v26, 5 }
 0x51f   :  { %14047 = vmatmul.mubr.bf16.gmra.mrb[20].mxu1 %v15015_v8  ;;  %v8897_v8 = vld [vmem:[#allocation2 + $0x78] sm:$0xf]  ;;  %v9157_v9 = vshll.u32 %v8896_v20, 16 }
 0x520   :  { %14050 = vmatprep.mubr.bf16.mxu1 %v15017_v44  ;;  %v9105_v44 = vrot.slane %v9103_v53, 4  ;;  %v9162_v39 = vshrl.u32 %v8897_v8, 16  ;;  %v9165_v2 = vshll.u32 %v8897_v8, 16  ;;  %v19255_v53 = vrot.slane %v9147_v46, 5  ;;  %v8899_v8 = vld [vmem:[#allocation2 + $0x80] sm:$0x1] }
 0x521   :  { %v9083_v29 = vrot.slane %v9082_v51, 4  ;;  %v9181_v13 = vshll.u32 %v8899_v8, 16  ;;  %v9136_v18 = vsel %vm18356_vm11, %v9131_v37, %v9135_v50  ;;  %v8913_v50 = vld [vmem:[#allocation2 + $0xb8] sm:$0xf] }
 0x522   :  { %v9106_v38 = vor.u32 %v9105_v44, %v19239_v27  ;;  %v9164_v56 = vrot.slane %v9162_v39, 4  ;;  %v9167_v58 = vrot.slane %v9165_v2, 5  ;;  %v8901_v44 = vld [vmem:[#allocation2 + $0x88] sm:$0xf]  ;;  %v9189_v27 = vshll.u32 %v8900_v6, 16 }
 0x523   :  { %13779 = vmatmul.mubr.bf16.gmra.mrb[88].mxu0 %v15023_v43  ;;  %v8890_v43 = vld [vmem:[#allocation2 + $0x5c] sm:$0x1]  ;;  %v9088_v59 = vsel %vm18356_vm11, %v9083_v29, %v9087_v14  ;;  %v9199_v39 = vshrl.u32 %v8901_v44, 16  ;;  %v9183_v42 = vrot.slane %v9181_v13, 5  ;;  %v9215_v29 = vrot.slane %v9213_v17, 5 }
 0x524   :  { %13782 = vmatprep.mubr.bf16.mxu0 %v15025_v55  ;;  %v9175_v55 = vshrl.u32 %v8898_v19, 16  ;;  %v9109_v10 = vshll.u32 %v8890_v43, 16  ;;  %v9168_v16 = vor.u32 %v9167_v58, %v9164_v56  ;;  %v9195_v43 = vshll.u32 %v8901_v44, 16  ;;  %v8909_v58 = vld [vmem:[#allocation2 + $0xa8] sm:$0xf] }
 0x525   :  { %v12779_v2 = vcombine.low %v9078_v4, %v9088_v59  ;;  %v9191_v54 = vrot.slane %v9189_v27, 5  ;;  %v9261_v14 = vshll.u32 %v8909_v58, 16  ;;  %v8915_v13 = vld [vmem:[#allocation2 + $0xc0] sm:$0xf]  ;;  %v8908_v27 = vld [vmem:[#allocation2 + $0xa4] sm:$0x1] }
 0x526   :  { %v9177_v61 = vrot.slane %v9175_v55, 4  ;;  %v9111_v25 = vrot.slane %v9109_v10, 5  ;;  %v9169_v7 = vrot.slane %v9168_v16, 4  ;;  %v9210_v55 = vshrl.u32 %v8903_v41, 16  ;;  %v8907_v10 = vld [vmem:[#allocation2 + $0xa0] sm:$0xf] }
 0x527   :  { %14051 = vmatmul.mubr.bf16.gmra.mrb[24].mxu1 %v15020_v49  ;;  %v9171_v49 = vshll.u32 %v8898_v19, 16  ;;  %v9126_v19 = vsel %vm18356_vm11, %v9121_v23, %v19241_v21  ;;  %v9159_v21 = vrot.slane %v9157_v9, 5  ;;  %v19321_v56 = vrot.slane %v9195_v43, 5  ;;  %v15031_v9 = vld [vmem:[%s21516_s4 + $0x220] sm:$0xff]  }
 0x528   :  { %14054 = vmatprep.mubr.bf16.mxu1 %v15022_v32  ;;  %v9153_v32 = vrot.slane %v9151_v3, 4  ;;  %v8902_v3 = vld [vmem:[#allocation2 + $0x8c] sm:$0x1]  ;;  %v19309_v51 = vcombine.low %v9126_v19, %v9136_v18  ;;  %v9247_v20 = vshrl.u32 %v8907_v10, 16  ;;  %v9263_v18 = vrot.slane %v9261_v14, 5 }
 0x529   :  { %v19258_v36 = vrot.slane %v9171_v49, 5  ;;  %v15029_v49 = vld [vmem:[%s21516_s4 + $0x210] sm:$0xff]   ;;  %v9205_v60 = vshll.u32 %v8902_v3, 16  ;;  %v9291_v3 = vshll.u32 %v8913_v50, 16  ;;  %v9295_v43 = vshrl.u32 %v8913_v50, 16  ;;  %v15034_v50 = vld [vmem:[%s21516_s4 + $0x238] sm:$0xff]  }
 0x52a   :  { %v9154_v31 = vor.u32 %v9153_v32, %v19255_v53  ;;  %v8914_v14 = vld [vmem:[#allocation2 + $0xbc] sm:$0x1] }
 0x52b   :  { %13783 = vmatmul.mubr.bf16.gmra.mrb[92].mxu0 %v15027_v57  ;;  %v9178_v28 = vor.u32 %v9177_v61, %v19258_v36  ;;  %v9145_v57 = vrot.slane %v9144_v35, 4  ;;  %v9174_v11 = vsel %vm18356_vm11, %v9169_v7, %v19258_v36  ;;  %v8910_v61 = vld [vmem:[#allocation2 + $0xac] sm:$0xf]  ;;  %v9243_v36 = vshll.u32 %v8907_v10, 16 }
 0x52c   :  { %14234 = vmatprep.mubr.bf16.mxu0 %v15222_v30  ;;  %v9155_v48 = vrot.slane %v9154_v31, 4  ;;  %v8904_v30 = vld [vmem:[#allocation2 + $0x94] sm:$0xf]  ;;  %v9258_v35 = vshrl.u32 %v8909_v58, 16  ;;  %v9267_v37 = vshll.u32 %v8910_v61, 16  ;;  %v9271_v31 = vshrl.u32 %v8910_v61, 16 }
 0x52d   :  { %v9179_v46 = vrot.slane %v9178_v28, 4  ;;  %v9219_v62 = vshll.u32 %v8904_v30, 16  ;;  %v9223_v26 = vshrl.u32 %v8904_v30, 16  ;;  %v19331_v16 = vrot.slane %v9205_v60, 5  ;;  %v8905_v28 = vld [vmem:[#allocation2 + $0x98] sm:$0x1] }
 0x52e   :  { %v9160_v1 = vsel %vm18356_vm11, %v9155_v48, %v9159_v21  ;;  %v19339_v19 = vrot.slane %v9243_v36, 5  ;;  %v9260_v41 = vrot.slane %v9258_v35, 4  ;;  %v19341_v48 = vrot.slane %v9267_v37, 5 }
 0x52f   :  { %14055 = vmatmul.mubr.bf16.gmra.mrb[28].mxu1 %v15024_v45  ;;  %v9186_v45 = vshrl.u32 %v8900_v6, 16  ;;  %v9184_v32 = vsel %vm18356_vm11, %v9179_v46, %v9183_v42  ;;  %v8912_v6 = vld [vmem:[#allocation2 + $0xb4] sm:$0xf]  ;;  %v9306_v21 = vshrl.u32 %v8915_v13, 16  ;;  %v9297_v58 = vrot.slane %v9295_v43, 4 }
 0x530   :  { %14074 = vmatprep.mubr.bf16.mxu1 %v19199_v12  ;;  %v9107_v12 = vrot.slane %v9106_v38, 4  ;;  %v8906_v38 = vld [vmem:[#allocation2 + $0x9c] sm:$0xf]  ;;  %v19329_v4 = vcombine.low %v9174_v11, %v9184_v32  ;;  %v9282_v7 = vshrl.u32 %v8912_v6, 16  ;;  %v9285_v46 = vshll.u32 %v8912_v6, 16 }
 0x531   :  { %v9188_v40 = vrot.slane %v9186_v45, 4  ;;  %v9237_v23 = vshll.u32 %v8906_v38, 16  ;;  %v9273_v45 = vrot.slane %v9271_v31, 4  ;;  %v9264_v60 = vor.u32 %v9263_v18, %v9260_v41  ;;  %v19401_v43 = vld [vmem:[#allocation2 + $0xf8] sm:$0x1] }
 0x532   :  { %v9112_v47 = vsel %vm18356_vm11, %v9107_v12, %v9111_v25  ;;  %v9234_v12 = vshrl.u32 %v8906_v38, 16  ;;  %v8916_v38 = vld [vmem:[#allocation2 + $0xc4] sm:$0xf]  ;;  %v9284_v11 = vrot.slane %v9282_v7, 4  ;;  %v9287_v32 = vrot.slane %v9285_v46, 5 }
 0x533   :  { %v19307_v22 = vcombine.low %v9102_v63, %v9112_v47  ;;  %v9192_v25 = vor.u32 %v9191_v54, %v9188_v40  ;;  %v19334_v63 = vrot.slane %v9219_v62, 5  ;;  %v9239_v47 = vrot.slane %v9237_v23, 5  ;;  %v8911_v54 = vld [vmem:[#allocation2 + $0xb0] sm:$0x1] }
 0x534   :  { %v9236_v44 = vrot.slane %v9234_v12, 4  ;;  %v9253_v40 = vshll.u32 %v8908_v27, 16  ;;  %v9274_v10 = vor.u32 %v9273_v45, %v19341_v48  ;;  %v9308_v61 = vrot.slane %v9306_v21, 4  ;;  %v8924_v21 = vld [vmem:[#allocation2 + $0xfc] sm:$0xf] }
 0x535   :  { %v9319_v62 = vshrl.u32 %v8916_v38, 16  ;;  %v9277_v12 = vshll.u32 %v8911_v54, 16  ;;  %v9265_v35 = vrot.slane %v9264_v60, 4 }
 0x536   :  { %v9240_v30 = vor.u32 %v9239_v47, %v9236_v44  ;;  %v9275_v31 = vrot.slane %v9274_v10, 4  ;;  %v9255_v6 = vrot.slane %v9253_v40, 5  ;;  %v9301_v47 = vshll.u32 %v8914_v14, 16 }
 0x537   :  { %14075 = vmatmul.mubr.bf16.vlgmr.msra.gmra.mrb[32].mxu1 %v12776_v24  ;;  %v9212_v24 = vrot.slane %v9210_v55, 4  ;;  %v15032_v55 = vld [vmem:[%s21516_s4 + $0x228] sm:$0xff]   ;;  %v9279_v44 = vrot.slane %v9277_v12, 5  ;;  %v9270_v41 = vsel %vm18356_vm11, %v9265_v35, %v19341_v48  ;;  %v10313_v12 = vld [vmem:[#allocation2 + $0x198] sm:$0xe] }
 0x538   :  { %14139 = vmatpush3.bf16.msra.mxu1 %v19149_v34  ;;  %14078 = vmatprep.mubr.bf16.mxu1 %v12777_v52  ;;  %v9150_v34 = vsel %vm18356_vm11, %v9145_v57, %v19255_v53  ;;  %v9201_v53 = vrot.slane %v9199_v39, 4  ;;  %v15030_v52 = vld [vmem:[%s21516_s4 + $0x218] sm:$0xff]   ;;  %v9249_v57 = vrot.slane %v9247_v20, 4  ;;  %v19343_v39 = vrot.slane %v9192_v25, 4 }
 0x539   :  { %14140 = vmatprep.subr.bf16.mxu1 %v15028_v15  ;;  %v19327_v8 = vcombine.low %v9150_v34, %v9160_v1  ;;  %v9288_v25 = vor.u32 %v9287_v32, %v9284_v11  ;;  %v9280_v27 = vsel %vm18356_vm11, %v9275_v31, %v9279_v44  ;;  %v19421_v11 = vld [vmem:[#allocation2 + $0x194] sm:$0x1]  ;;  %v10312_v32 = vld [vmem:[#allocation2 + $0x18c] sm:$0xe] }
 0x53a   :  { %v9202_v59 = vor.u32 %v9201_v53, %v19321_v56  ;;  %v9250_v1 = vor.u32 %v9249_v57, %v19339_v19  ;;  %v19357_v53 = vrot.slane %v9291_v3, 5  ;;  %v8922_v57 = vld [vmem:[#allocation2 + $0xf4] sm:$0xf] }
 0x53b   :  { %v9363_v48 = vshll.u32 %v8922_v57, 16  ;;  %v9367_v10 = vshrl.u32 %v8922_v57, 16  ;;  %v8920_v44 = vld [vmem:[#allocation2 + $0xd4] sm:$0x1] }
 0x53c   :  { %14141 = vmatpush3.bf16.msra.mxu1 %v15028_v15  ;;  %v9216_v15 = vor.u32 %v9215_v29, %v9212_v24  ;;  %v19348_v17 = vrot.slane %v9202_v59, 4  ;;  %v9315_v29 = vshll.u32 %v8916_v38, 16  ;;  %v9251_v20 = vrot.slane %v9250_v1, 4  ;;  %v8917_v59 = vld [vmem:[#allocation2 + $0xc8] sm:$0x1] }
 0x53d   :  { %14142 = vmatprep.subr.bf16.mxu1 %v15029_v49  ;;  %v9325_v46 = vshll.u32 %v8917_v59, 16  ;;  %v8925_v1 = vld [vmem:[#allocation2 + $0x100] sm:$0xf]  ;;  %v9369_v14 = vrot.slane %v9367_v10, 4  ;;  %v12845_v59 = vrot.slane %v10313_v12, 9 }
 0x53e   :  { %v19350_v34 = vrot.slane %v9216_v15, 4  ;;  %v9208_v23 = vsel %vm18356_vm11, %v19348_v17, %v19331_v16  ;;  %v9321_v16 = vrot.slane %v9319_v62, 4  ;;  %v19409_v17 = vcombine.low %v9270_v41, %v9280_v27  ;;  %v19432_v62 = vld [vmem:[#allocation2 + $0x19c] sm:$0xf] }
 0x53f   :  { %14079 = vmatmul.mubr.bf16.gmra.mrb[36].mxu1 %v19280_v0  ;;  %v9225_v0 = vrot.slane %v9223_v26, 4  ;;  %v19419_v60 = vrot.slane %v9325_v46, 5  ;;  %v9387_v31 = vshll.u32 %v8925_v1, 16 }
 0x540   :  { %14082 = vmatprep.mubr.bf16.mxu1 %v12779_v2  ;;  %14143 = vmatpush3.bf16.msra.mxu1 %v15029_v49  ;;  %v9229_v2 = vshll.u32 %v8905_v28, 16  ;;  %v9309_v49 = vshll.u32 %v8915_v13, 16  ;;  %v9222_v37 = vsel %vm18356_vm11, %v19350_v34, %v19334_v63  ;;  %v8921_v28 = vld [vmem:[#allocation2 + $0xf0] sm:$0xf]  ;;  %v9256_v13 = vsel %vm18356_vm11, %v9251_v20, %v9255_v6  ;;  %v8918_v34 = vld [vmem:[#allocation2 + $0xcc] sm:$0xf] }
 0x541   :  { %14144 = vmatprep.subr.bf16.mxu1 %v15030_v52  ;;  %v9226_v42 = vor.u32 %v9225_v0, %v19334_v63  ;;  %v19375_v0 = vrot.slane %v9315_v29, 5  ;;  %v9354_v18 = vshrl.u32 %v8921_v28, 16  ;;  %v9357_v45 = vshll.u32 %v8921_v28, 16 }
 0x542   :  { %v9311_v24 = vrot.slane %v9309_v49, 5  ;;  %v9231_v36 = vrot.slane %v9229_v2, 5  ;;  %v19405_v49 = vld [vmem:[#allocation2 + $0x190] sm:$0xf]  ;;  %v9373_v29 = vshll.u32 %v19401_v43, 16  ;;  %v12844_v20 = vrot.slane %v10312_v32, 9 }
 0x543   :  { %v9227_v26 = vrot.slane %v9226_v42, 4  ;;  %v9322_v3 = vor.u32 %v9321_v16, %v19375_v0  ;;  %v8919_v42 = vld [vmem:[#allocation2 + $0xd0] sm:$0xf]  ;;  %v9359_v38 = vrot.slane %v9357_v45, 5  ;;  %v10616_v35 = vrot.slane %v19405_v49, 5 }
 0x544   :  { %14145 = vmatpush3.bf16.msra.mxu1 %v15030_v52  ;;  %v9241_v52 = vrot.slane %v9240_v30, 4  ;;  %v9312_v15 = vor.u32 %v9311_v24, %v9308_v61  ;;  %v9356_v30 = vrot.slane %v9354_v18, 4  ;;  %v19429_v24 = vrot.slane %v9363_v48, 5  ;;  %v8926_v45 = vld [vmem:[#allocation2 + $0x104] sm:$0x1] }
 0x545   :  { %14146 = vmatprep.subr.bf16.mxu1 %v15031_v9  ;;  %v9232_v63 = vsel %vm18356_vm11, %v9227_v26, %v9231_v36  ;;  %v19427_v61 = vrot.slane %v9322_v3, 4  ;;  %v9339_v26 = vshll.u32 %v8919_v42, 16  ;;  %v9378_v36 = vshrl.u32 %v8924_v21, 16  ;;  %v8927_v3 = vld [vmem:[#allocation2 + $0x108] sm:$0xf] }
 0x546   :  { %v12785_v2 = vcombine.low %v9222_v37, %v9232_v63  ;;  %v9381_v37 = vshll.u32 %v8924_v21, 16  ;;  %v10618_v28 = vrot.slane %v10616_v35, 4  ;;  %v10619_v6 = vrot.slane %v19421_v11, 5  ;;  %v15237_v43 = vld [vmem:[#allocation2 + $0x70] sm:$0xf] }
 0x547   :  { %14083 = vmatmul.mubr.bf16.gmra.mrb[40].mxu1 %v19307_v22  ;;  %v15033_v22 = vld [vmem:[%s21516_s4 + $0x230] sm:$0xff]   ;;  %v19439_v63 = vrot.slane %v9339_v26, 5  ;;  %v9370_v18 = vor.u32 %v9369_v14, %v19429_v24  ;;  %v9380_v27 = vrot.slane %v9378_v36, 4  ;;  %v19453_v48 = vrot.slane %v9387_v31, 5 }
 0x548   :  { %14086 = vmatprep.mubr.bf16.mxu1 %v19309_v51  ;;  %14147 = vmatpush3.bf16.msra.mxu1 %v15031_v9  ;;  %v9198_v51 = vsel %vm18356_vm11, %v19343_v39, %v19321_v56  ;;  %v9298_v56 = vor.u32 %v9297_v58, %v19357_v53  ;;  %v9246_v9 = vsel %vm18356_vm11, %v9241_v52, %v19339_v19  ;;  %v19394_v19 = vrot.slane %v9288_v25, 4  ;;  %v8930_v14 = vld [vmem:[#allocation2 + $0x114] sm:$0xf] }
 0x549   :  { %14148 = vmatprep.subr.bf16.mxu1 %v15032_v55  ;;  %v12784_v39 = vcombine.low %v9198_v51, %v9208_v23  ;;  %v9333_v51 = vshll.u32 %v8918_v34, 16  ;;  %v9343_v52 = vshrl.u32 %v8919_v42, 16  ;;  %v9360_v23 = vor.u32 %v9359_v38, %v9356_v30 }
 0x54a   :  { %v19396_v7 = vrot.slane %v9298_v56, 4  ;;  %v9294_v40 = vsel %vm18356_vm11, %v19394_v19, %v19357_v53  ;;  %v9391_v25 = vshrl.u32 %v8925_v1, 16  ;;  %v19435_v56 = vld [vmem:[#allocation2 + $0x1a0] sm:$0x1]  ;;  %v19447_v57 = vsel %vm18745_vm14, %v10618_v28, %v10619_v6  ;;  %v8934_v28 = vld [vmem:[#allocation2 + $0x124] sm:$0xf] }
 0x54b   :  { %v10626_v41 = vrot.slane %v19435_v56, 5  ;;  %v9383_v46 = vrot.slane %v9381_v37, 5  ;;  %v9349_v38 = vshll.u32 %v8920_v44, 16  ;;  %v9328_v10 = vsel %vm18356_vm11, %v19427_v61, %v19419_v60  ;;  %v10289_v1 = vld [vmem:[#allocation2 + $0x60] sm:$0xe] }
 0x54c   :  { %14149 = vmatpush3.bf16.msra.mxu1 %v15032_v55  ;;  %v19407_v55 = vcombine.low %v9246_v9, %v9256_v13  ;;  %v9345_v9 = vrot.slane %v9343_v52, 4  ;;  %v9361_v32 = vrot.slane %v9360_v23, 4  ;;  %v9371_v26 = vrot.slane %v9370_v18, 4 }
 0x54d   :  { %14150 = vmatprep.subr.bf16.mxu1 %v15033_v22  ;;  %v9405_v52 = vshll.u32 %v8927_v3, 16  ;;  %v9384_v60 = vor.u32 %v9383_v46, %v9380_v27 }
 0x54e   :  { %v9346_v30 = vor.u32 %v9345_v9, %v19439_v63 }
 0x54f   :  { %14087 = vmatmul.mubr.bf16.gmra.mrb[44].mxu1 %v19327_v8  ;;  %v19398_v8 = vrot.slane %v9312_v15, 4  ;;  %v10623_v15 = vrot.slane %v19432_v62, 5  ;;  %v9407_v31 = vrot.slane %v9405_v52, 5  ;;  %v9385_v6 = vrot.slane %v9384_v60, 4 }
 0x550   :  { %14090 = vmatprep.mubr.bf16.mxu1 %v19329_v4  ;;  %14151 = vmatpush3.bf16.msra.mxu1 %v15033_v22  ;;  %v19403_v4 = vrot.slane %v9301_v47, 5  ;;  %v9330_v22 = vshrl.u32 %v8918_v34, 16  ;;  %v19443_v47 = vsel %vm18745_vm14, %v12844_v20, %v10616_v35  ;;  %v9351_v20 = vrot.slane %v9349_v38, 5 }
 0x551   :  { %14152 = vmatprep.subr.bf16.mxu1 %v15034_v50  ;;  %v9318_v58 = vsel %vm18356_vm11, %v19398_v8, %v19375_v0  ;;  %v10625_v13 = vrot.slane %v10623_v15, 4  ;;  %v19457_v21 = vsel %vm18745_vm14, %v12845_v59, %v10623_v15  ;;  %v9375_v35 = vrot.slane %v9373_v29, 5  ;;  %v8929_v15 = vld [vmem:[#allocation2 + $0x110] sm:$0x1] }
 0x552   :  { %v9304_v54 = vsel %vm18356_vm11, %v19396_v7, %v19403_v4  ;;  %v9332_v16 = vrot.slane %v9330_v22, 4  ;;  %v9397_v22 = vshll.u32 %v8926_v45, 16  ;;  %v12789_v7 = vcombine.low %v9318_v58, %v9328_v10 }
 0x553   :  { %v19461_v34 = vsel %vm18745_vm14, %v10625_v13, %v10626_v41  ;;  %v9366_v4 = vsel %vm18356_vm11, %v9361_v32, %v19429_v24  ;;  %v9376_v37 = vsel %vm18356_vm11, %v9371_v26, %v9375_v35  ;;  %v9426_v0 = vshrl.u32 %v8930_v14, 16 }
 0x554   :  { %14153 = vmatpush3.bf16.msra.mxu1 %v15034_v50  ;;  %v9335_v50 = vrot.slane %v9333_v51, 5  ;;  %v9402_v51 = vshrl.u32 %v8927_v3, 16  ;;  %v9399_v53 = vrot.slane %v9397_v22, 5  ;;  %v9429_v8 = vshll.u32 %v8930_v14, 16  ;;  %v8937_v22 = vld [vmem:[#allocation2 + $0x130] sm:$0xf] }
 0x555   :  { %v9459_v13 = vshll.u32 %v8934_v28, 16  ;;  %v9463_v41 = vshrl.u32 %v8934_v28, 16  ;;  %v12791_v18 = vcombine.low %v9366_v4, %v9376_v37  ;;  %v9421_v3 = vshll.u32 %v8929_v15, 16 }
 0x556   :  { %v9336_v42 = vor.u32 %v9335_v50, %v9332_v16  ;;  %v9404_v19 = vrot.slane %v9402_v51, 4  ;;  %v9431_v38 = vrot.slane %v9429_v8, 5  ;;  %v8935_v51 = vld [vmem:[#allocation2 + $0x128] sm:$0x1]  ;;  %v9483_v35 = vshll.u32 %v8937_v22, 16 }
 0x557   :  { %14091 = vmatmul.mubr.bf16.gmra.mrb[48].mxu1 %v12784_v39  ;;  %v9393_v39 = vrot.slane %v9391_v25, 4  ;;  %v9487_v14 = vshrl.u32 %v8937_v22, 16  ;;  %v8942_v8 = vld [vmem:[#allocation2 + $0x144] sm:$0xf] }
 0x558   :  { %14094 = vmatprep.mubr.bf16.mxu1 %v12785_v2  ;;  %v8928_v2 = vld [vmem:[#allocation2 + $0x10c] sm:$0xf]  ;;  %v9337_v23 = vrot.slane %v9336_v42, 4  ;;  %v9408_v45 = vor.u32 %v9407_v31, %v9404_v19  ;;  %v9469_v19 = vshll.u32 %v8935_v51, 16 }
 0x559   :  { %v9411_v12 = vshll.u32 %v8928_v2, 16  ;;  %v9415_v36 = vshrl.u32 %v8928_v2, 16  ;;  %v9394_v61 = vor.u32 %v9393_v39, %v19453_v48  ;;  %v8932_v39 = vld [vmem:[#allocation2 + $0x11c] sm:$0x1]  ;;  %v9428_v2 = vrot.slane %v9426_v0, 4 }
 0x55a   :  { %v9342_v58 = vsel %vm18356_vm11, %v9337_v23, %v19439_v63  ;;  %v9390_v63 = vsel %vm18356_vm11, %v9385_v6, %v19453_v48  ;;  %v8936_v42 = vld [vmem:[#allocation2 + $0x12c] sm:$0xf]  ;;  %v9409_v48 = vrot.slane %v9408_v45, 4  ;;  %v8939_v23 = vld [vmem:[#allocation2 + $0x138] sm:$0xf] }
 0x55b   :  { %v19493_v29 = vrot.slane %v9411_v12, 5  ;;  %v9417_v25 = vrot.slane %v9415_v36, 4  ;;  %v9395_v59 = vrot.slane %v9394_v61, 4  ;;  %v19508_v12 = vrot.slane %v9459_v13, 5 }
 0x55c   :  { %v9465_v36 = vrot.slane %v9463_v41, 4  ;;  %v9474_v60 = vshrl.u32 %v8936_v42, 16  ;;  %v9477_v61 = vshll.u32 %v8936_v42, 16  ;;  %v9498_v31 = vshrl.u32 %v8939_v23, 16 }
 0x55d   :  { %v9418_v27 = vor.u32 %v9417_v25, %v19493_v29  ;;  %v9400_v46 = vsel %vm18356_vm11, %v9395_v59, %v9399_v53  ;;  %v9445_v53 = vshll.u32 %v8932_v39, 16  ;;  %v9501_v25 = vshll.u32 %v8939_v23, 16  ;;  %v8946_v23 = vld [vmem:[#allocation2 + $0x154] sm:$0xf] }
 0x55e   :  { %v9466_v37 = vor.u32 %v9465_v36, %v19508_v12  ;;  %v9414_v28 = vsel %vm18356_vm11, %v9409_v48, %v19493_v29  ;;  %v9476_v59 = vrot.slane %v9474_v60, 4  ;;  %v9479_v0 = vrot.slane %v9477_v61, 5  ;;  %v8945_v61 = vld [vmem:[#allocation2 + $0x150] sm:$0xf] }
 0x55f   :  { %14095 = vmatmul.mubr.bf16.gmra.mrb[52].mxu1 %v19407_v55  ;;  %v12788_v55 = vcombine.low %v9294_v40, %v9304_v54  ;;  %v8931_v40 = vld [vmem:[#allocation2 + $0x118] sm:$0xf]  ;;  %v8933_v54 = vld [vmem:[#allocation2 + $0x120] sm:$0xf]  ;;  %v9447_v13 = vrot.slane %v9445_v53, 5  ;;  %v9471_v41 = vrot.slane %v9469_v19, 5 }
 0x560   :  { %14098 = vmatprep.mubr.bf16.mxu1 %v19409_v17  ;;  %v9347_v17 = vrot.slane %v9346_v30, 4  ;;  %v9435_v16 = vshll.u32 %v8931_v40, 16  ;;  %v9439_v50 = vshrl.u32 %v8931_v40, 16  ;;  %v9450_v9 = vshrl.u32 %v8933_v54, 16  ;;  %v8940_v40 = vld [vmem:[#allocation2 + $0x13c] sm:$0xf] }
 0x561   :  { %v9453_v44 = vshll.u32 %v8933_v54, 16  ;;  %v9507_v15 = vshll.u32 %v8940_v40, 16  ;;  %v9467_v45 = vrot.slane %v9466_v37, 4  ;;  %v9503_v29 = vrot.slane %v9501_v25, 5  ;;  %v8944_v19 = vld [vmem:[#allocation2 + $0x14c] sm:$0x1] }
 0x562   :  { %v9352_v24 = vsel %vm18356_vm11, %v9347_v17, %v9351_v20  ;;  %v19506_v10 = vrot.slane %v9435_v16, 5  ;;  %v9441_v32 = vrot.slane %v9439_v50, 4  ;;  %v9452_v26 = vrot.slane %v9450_v9, 4  ;;  %v8943_v50 = vld [vmem:[#allocation2 + $0x148] sm:$0xf] }
 0x563   :  { %v12790_v30 = vcombine.low %v9342_v58, %v9352_v24  ;;  %v9455_v52 = vrot.slane %v9453_v44, 5  ;;  %v12792_v17 = vcombine.low %v9390_v63, %v9400_v46  ;;  %v9423_v20 = vrot.slane %v9421_v3, 5  ;;  %v8938_v63 = vld [vmem:[#allocation2 + $0x134] sm:$0x1] }
 0x564   :  { %v9442_v4 = vor.u32 %v9441_v32, %v19506_v10  ;;  %v19517_v58 = vrot.slane %v9483_v35, 5  ;;  %v9489_v24 = vrot.slane %v9487_v14, 4  ;;  %v9511_v16 = vshrl.u32 %v8940_v40, 16 }
 0x565   :  { %v9456_v54 = vor.u32 %v9455_v52, %v9452_v26  ;;  %v9522_v46 = vshrl.u32 %v8942_v8, 16  ;;  %v9525_v3 = vshll.u32 %v8942_v8, 16  ;;  %v9531_v39 = vshll.u32 %v8943_v50, 16  ;;  %v8941_v52 = vld [vmem:[#allocation2 + $0x140] sm:$0x1] }
 0x566   :  { %v9443_v44 = vrot.slane %v9442_v4, 4  ;;  %v9480_v42 = vor.u32 %v9479_v0, %v9476_v59  ;;  %v9513_v32 = vrot.slane %v9511_v16, 4  ;;  %v9472_v48 = vsel %vm18356_vm11, %v9467_v45, %v9471_v41 }
 0x567   :  { %14099 = vmatmul.mubr.bf16.gmra.mrb[56].mxu1 %v12788_v55  ;;  %v9419_v55 = vrot.slane %v9418_v27, 4  ;;  %v9500_v27 = vrot.slane %v9498_v31, 4  ;;  %v9527_v35 = vrot.slane %v9525_v3, 5  ;;  %v9517_v53 = vshll.u32 %v8941_v52, 16 }
 0x568   :  { %14102 = vmatprep.mubr.bf16.mxu1 %v12789_v7  ;;  %v9432_v7 = vor.u32 %v9431_v38, %v9428_v2  ;;  %v9535_v2 = vshrl.u32 %v8943_v50, 16  ;;  %v19520_v38 = vrot.slane %v9507_v15, 5  ;;  %v9448_v26 = vsel %vm18356_vm11, %v9443_v44, %v9447_v13  ;;  %v8949_v15 = vld [vmem:[#allocation2 + $0x160] sm:$0xf]  ;;  %v8951_v13 = vld [vmem:[#allocation2 + $0x168] sm:$0xf] }
 0x569   :  { %v9424_v6 = vsel %vm18356_vm11, %v9419_v55, %v9423_v20  ;;  %v9493_v55 = vshll.u32 %v8938_v63, 16  ;;  %v9504_v60 = vor.u32 %v9503_v29, %v9500_v27  ;;  %v9524_v20 = vrot.slane %v9522_v46, 4  ;;  %v19543_v29 = vld [vmem:[#allocation2 + $0x16c] sm:$0xf]  ;;  %v19545_v63 = vld [vmem:[#allocation2 + $0x158] sm:$0x1] }
 0x56a   :  { %v9433_v9 = vrot.slane %v9432_v7, 4  ;;  %v12793_v22 = vcombine.low %v9414_v28, %v9424_v6  ;;  %v9537_v14 = vrot.slane %v9535_v2, 4  ;;  %v9481_v7 = vrot.slane %v9480_v42, 4 }
 0x56b   :  { %v9549_v40 = vshll.u32 %v8945_v61, 16  ;;  %v9559_v37 = vshrl.u32 %v8946_v23, 16  ;;  %v9495_v28 = vrot.slane %v9493_v55, 5  ;;  %v9505_v6 = vrot.slane %v9504_v60, 4 }
 0x56c   :  { %v9438_v51 = vsel %vm18356_vm11, %v9433_v9, %v19506_v10  ;;  %v19532_v10 = vrot.slane %v9531_v39, 5  ;;  %v9528_v59 = vor.u32 %v9527_v35, %v9524_v20  ;;  %v9541_v8 = vshll.u32 %v8944_v19, 16 }
 0x56d   :  { %v12794_v31 = vcombine.low %v9438_v51, %v9448_v26  ;;  %v9486_v16 = vsel %vm18356_vm11, %v9481_v7, %v19517_v58  ;;  %v9519_v44 = vrot.slane %v9517_v53, 5  ;;  %v9561_v27 = vrot.slane %v9559_v37, 4 }
 0x56e   :  { %v9538_v0 = vor.u32 %v9537_v14, %v19532_v10  ;;  %v9579_v39 = vshll.u32 %v8949_v15, 16  ;;  %v9510_v2 = vsel %vm18356_vm11, %v9505_v6, %v19520_v38  ;;  %v9529_v42 = vrot.slane %v9528_v59, 4 }
 0x56f   :  { %14103 = vmatmul.mubr.bf16.gmra.mrb[60].mxu1 %v12790_v30  ;;  %v9490_v30 = vor.u32 %v9489_v24, %v19517_v58  ;;  %v8948_v24 = vld [vmem:[#allocation2 + $0x15c] sm:$0xf]  ;;  %v9583_v58 = vshrl.u32 %v8949_v15, 16  ;;  %v9597_v51 = vshll.u32 %v8951_v13, 16  ;;  %v9603_v26 = vshll.u32 %v19543_v29, 16 }
 0x570   :  { %14106 = vmatprep.mubr.bf16.mxu1 %v12791_v18  ;;  %v9457_v18 = vrot.slane %v9456_v54, 4  ;;  %v9555_v54 = vshll.u32 %v8946_v23, 16  ;;  %v9570_v46 = vshrl.u32 %v8948_v24, 16  ;;  %v9573_v3 = vshll.u32 %v8948_v24, 16  ;;  %v19572_v24 = vld [vmem:[#allocation2 + $0x170] sm:$0x1] }
 0x571   :  { %v9491_v4 = vrot.slane %v9490_v30, 4  ;;  %v9539_v30 = vrot.slane %v9538_v0, 4  ;;  %v9607_v52 = vshrl.u32 %v19543_v29, 16  ;;  %v9565_v60 = vshll.u32 %v19545_v63, 16  ;;  %v19574_v15 = vld [vmem:[#allocation2 + $0x184] sm:$0xf] }
 0x572   :  { %v9462_v36 = vsel %vm18356_vm11, %v9457_v18, %v19508_v12  ;;  %v9546_v12 = vshrl.u32 %v8945_v61, 16  ;;  %v9551_v18 = vrot.slane %v9549_v40, 5  ;;  %v19541_v45 = vrot.slane %v9555_v54, 5  ;;  %v19565_v40 = vld [vmem:[#allocation2 + $0x178] sm:$0xf] }
 0x573   :  { %v12795_v25 = vcombine.low %v9462_v36, %v9472_v48  ;;  %v9496_v50 = vsel %vm18356_vm11, %v9491_v4, %v9495_v28  ;;  %v9572_v61 = vrot.slane %v9570_v46, 4  ;;  %v9575_v23 = vrot.slane %v9573_v3, 5  ;;  %v8954_v4 = vld [vmem:[#allocation2 + $0x174] sm:$0xf]  ;;  %v8957_v28 = vld [vmem:[#allocation2 + $0x180] sm:$0xf] }
 0x574   :  { %v9548_v41 = vrot.slane %v9546_v12, 4  ;;  %v9562_v55 = vor.u32 %v9561_v27, %v19541_v45  ;;  %v9585_v20 = vrot.slane %v9583_v58, 4  ;;  %v12796_v35 = vcombine.low %v9486_v16, %v9496_v50 }
 0x575   :  { %v9534_v14 = vsel %vm18356_vm11, %v9529_v42, %v19532_v10  ;;  %v9599_v53 = vrot.slane %v9597_v51, 5  ;;  %v19563_v19 = vrot.slane %v9603_v26, 5  ;;  %v9609_v12 = vrot.slane %v9607_v52, 4 }
 0x576   :  { %v9552_v48 = vor.u32 %v9551_v18, %v9548_v41  ;;  %v9563_v10 = vrot.slane %v9562_v55, 4  ;;  %v9576_v0 = vor.u32 %v9575_v23, %v9572_v61  ;;  %v9618_v50 = vshrl.u32 %v8954_v4, 16  ;;  %v19596_v61 = vld [vmem:[#allocation2 + $0x17c] sm:$0x1] }
 0x577   :  { %14107 = vmatmul.mubr.bf16.gmra.mrb[0].mxu1 %v12792_v17  ;;  %v9514_v17 = vor.u32 %v9513_v32, %v19520_v38  ;;  %v9543_v32 = vrot.slane %v9541_v8, 5  ;;  %v19556_v38 = vrot.slane %v9579_v39, 5  ;;  %v9610_v27 = vor.u32 %v9609_v12, %v19563_v19 }
 0x578   :  { %14110 = vmatprep.mubr.bf16.mxu1 %v12793_v22  ;;  %v9594_v22 = vshrl.u32 %v8951_v13, 16  ;;  %v9553_v37 = vrot.slane %v9552_v48, 4  ;;  %v9631_v13 = vshrl.u32 %v19565_v40, 16  ;;  %v9642_v46 = vshrl.u32 %v8957_v28, 16 }
 0x579   :  { %v9515_v9 = vrot.slane %v9514_v17, 4  ;;  %v9544_v7 = vsel %vm18356_vm11, %v9539_v30, %v9543_v32  ;;  %v9586_v8 = vor.u32 %v9585_v20, %v19556_v38  ;;  %v9645_v3 = vshll.u32 %v8957_v28, 16 }
 0x57a   :  { %v9596_v17 = vrot.slane %v9594_v22, 4  ;;  %v12798_v6 = vcombine.low %v9534_v14, %v9544_v7  ;;  %v9558_v39 = vsel %vm18356_vm11, %v9553_v37, %v19541_v45  ;;  %v9651_v42 = vshll.u32 %v19574_v15, 16 }
 0x57b   :  { %v9520_v36 = vsel %vm18356_vm11, %v9515_v9, %v9519_v44  ;;  %v9621_v9 = vshll.u32 %v8954_v4, 16  ;;  %v9627_v44 = vshll.u32 %v19565_v40, 16  ;;  %v9655_v30 = vshrl.u32 %v19574_v15, 16 }
 0x57c   :  { %v12797_v54 = vcombine.low %v9510_v2, %v9520_v36  ;;  %v9600_v18 = vor.u32 %v9599_v53, %v9596_v17  ;;  %v9577_v22 = vrot.slane %v9576_v0, 4  ;;  %v9587_v51 = vrot.slane %v9586_v8, 4  ;;  %v8960_v17 = vld [vmem:[#allocation2 + $0x18c] sm:$0xf]  ;;  %v8963_v8 = vld [vmem:[#allocation2 + $0x198] sm:$0xf] }
 0x57d   :  { %v9613_v26 = vshll.u32 %v19572_v24, 16  ;;  %v9620_v52 = vrot.slane %v9618_v50, 4  ;;  %v9623_v36 = vrot.slane %v9621_v9, 5  ;;  %v19594_v48 = vrot.slane %v9627_v44, 5  ;;  %v19618_v9 = vld [vmem:[#allocation2 + $0x188] sm:$0x1] }
 0x57e   :  { %v9633_v45 = vrot.slane %v9631_v13, 4  ;;  %v9601_v55 = vrot.slane %v9600_v18, 4  ;;  %v9644_v23 = vrot.slane %v9642_v46, 4  ;;  %v9647_v20 = vrot.slane %v9645_v3, 5 }
 0x57f   :  { %14111 = vmatmul.mubr.bf16.gmra.mrb[4].mxu1 %v12794_v31  ;;  %v9567_v31 = vrot.slane %v9565_v60, 5  ;;  %v9611_v60 = vrot.slane %v9610_v27, 4  ;;  %v19598_v7 = vrot.slane %v9651_v42, 5  ;;  %v9657_v4 = vrot.slane %v9655_v30, 4 }
 0x580   :  { %14114 = vmatprep.mubr.bf16.mxu1 %v12795_v25  ;;  %v19567_v25 = vld [vmem:[#allocation2 + $0x164] sm:$0x1]  ;;  %v9582_v53 = vsel %vm18356_vm11, %v9577_v22, %v19556_v38  ;;  %v9615_v12 = vrot.slane %v9613_v26, 5  ;;  %v9624_v28 = vor.u32 %v9623_v36, %v9620_v52  ;;  %v9637_v0 = vshll.u32 %v19596_v61, 16 }
 0x581   :  { %v9589_v2 = vshll.u32 %v19567_v25, 16  ;;  %v9568_v32 = vsel %vm18356_vm11, %v9563_v10, %v9567_v31  ;;  %v9634_v10 = vor.u32 %v9633_v45, %v19594_v48  ;;  %v9648_v44 = vor.u32 %v9647_v20, %v9644_v23  ;;  %v19628_v23 = vld [vmem:[#allocation2 + $0x1a8] sm:$0xf] }
 0x582   :  { %v9616_v38 = vsel %vm18356_vm11, %v9611_v60, %v9615_v12  ;;  %v9666_v13 = vshrl.u32 %v8960_v17, 16  ;;  %v9658_v27 = vor.u32 %v9657_v4, %v19598_v7  ;;  %v9669_v46 = vshll.u32 %v8960_v17, 16  ;;  %v8966_v60 = vld [vmem:[#allocation2 + $0x1a4] sm:$0xf] }
 0x583   :  { %v9591_v14 = vrot.slane %v9589_v2, 5  ;;  %v9675_v3 = vshll.u32 %v19405_v49, 16  ;;  %v9690_v2 = vshrl.u32 %v8963_v8, 16  ;;  %v9699_v42 = vshll.u32 %v19432_v62, 16 }
 0x584   :  { %v9703_v30 = vshrl.u32 %v19432_v62, 16  ;;  %v9635_v22 = vrot.slane %v9634_v10, 4  ;;  %v9661_v26 = vshll.u32 %v19618_v9, 16  ;;  %v9649_v45 = vrot.slane %v9648_v44, 4 }
 0x585   :  { %v9592_v37 = vsel %vm18356_vm11, %v9587_v51, %v9591_v14  ;;  %v9639_v51 = vrot.slane %v9637_v0, 5  ;;  %v9659_v20 = vrot.slane %v9658_v27, 4  ;;  %v9692_v62 = vrot.slane %v9690_v2, 4 }
 0x586   :  { %v19569_v59 = vpop.f32.mrb[96].mxu0  ;;  %v12800_v52 = vcombine.low %v9582_v53, %v9592_v37  ;;  %v9701_v12 = vrot.slane %v9699_v42, 5  ;;  %v9714_v53 = vshrl.u32 %v8966_v60, 16  ;;  %v9717_v37 = vshll.u32 %v8966_v60, 16 }
 0x587   :  { %14115 = vmatmul.mubr.bf16.gmra.mrb[8].mxu1 %v12796_v35  ;;  %22231 = vst [vmem:[#allocation7_spill] sm:$0xff] %v19569_v59  ;;  %v19576_v16 = vpop.f32.mrb[97].mxu0  ;;  %v12799_v35 = vcombine.low %v9558_v39, %v9568_v32  ;;  %v9679_v39 = vshrl.u32 %v19405_v49, 16  ;;  %v9625_v32 = vrot.slane %v9624_v28, 4  ;;  %v9671_v49 = vrot.slane %v9669_v46, 5 }
 0x588   :  { %14118 = vmatprep.mubr.bf16.mxu1 %v12797_v54  ;;  %22232 = vst [vmem:[#allocation6_spill] sm:$0xff] %v19576_v16  ;;  %v19580_v41 = vpop.f32.mrb[98].mxu0  ;;  %v9705_v28 = vrot.slane %v9703_v30, 4  ;;  %v9723_v0 = vshll.u32 %v19628_v23, 16  ;;  %v9654_v2 = vsel %vm18356_vm11, %v9649_v45, %v19598_v7  ;;  %v9716_v30 = vrot.slane %v9714_v53, 4 }
 0x589   :  { %22233 = vst [vmem:[#allocation3_spill] sm:$0xff] %v19580_v41  ;;  %v19586_v58 = vpop.f32.mrb[99].mxu0  ;;  %v9681_v14 = vrot.slane %v9679_v39, 4  ;;  %v9685_v39 = vshll.u32 %v19421_v11, 16  ;;  %v10305_v41 = vld [vmem:[#allocation2 + $0x138] sm:$0xe] }
 0x58a   :  { %22234 = vst [vmem:[#allocation5_spill] sm:$0xff] %v19586_v58  ;;  %v9706_v42 = vor.u32 %v9705_v28, %v9701_v12  ;;  %v10304_v58 = vld [vmem:[#allocation2 + $0x12c] sm:$0xe] }
 0x58c   :  { %v9707_v7 = vrot.slane %v9706_v42, 4 }
 0x58e   :  { %v19603_v54 = vpop.f32.mrb[100].mxu0 }
 0x58f   :  { %14119 = vmatmul.mubr.bf16.gmra.mrb[12].mxu1 %v12798_v6  ;;  %22235 = vst [vmem:[#allocation10_spill] sm:$0xff] %v19603_v54  ;;  %v19607_v31 = vpop.f32.mrb[101].mxu0  ;;  %v9606_v6 = vsel %vm18356_vm11, %v9601_v55, %v19563_v19  ;;  %v9693_v19 = vshll.u32 %v8963_v8, 16  ;;  %v9668_v55 = vrot.slane %v9666_v13, 4  ;;  %v9727_v8 = vshrl.u32 %v19628_v23, 16 }
 0x590   :  { %14122 = vmatprep.mubr.bf16.mxu1 %v12799_v35  ;;  %22236 = vst [vmem:[#allocation12_spill] sm:$0xff] %v19607_v31  ;;  %v19616_v50 = vpop.f32.mrb[102].mxu0  ;;  %v12801_v36 = vcombine.low %v9606_v6, %v9616_v38  ;;  %v9677_v35 = vrot.slane %v9675_v3, 5  ;;  %v9630_v6 = vsel %vm18356_vm11, %v9625_v32, %v19594_v48  ;;  %v9663_v38 = vrot.slane %v9661_v26, 5 }
 0x591   :  { %22237 = vst [vmem:[#allocation11_spill] sm:$0xff] %v19616_v50  ;;  %v19620_v18 = vpop.f32.mrb[103].mxu0  ;;  %v9695_v17 = vrot.slane %v9693_v19, 5  ;;  %v9640_v13 = vsel %vm18356_vm11, %v9635_v22, %v9639_v51  ;;  %v9672_v46 = vor.u32 %v9671_v49, %v9668_v55  ;;  %v9719_v32 = vrot.slane %v9717_v37, 5  ;;  %v10303_v50 = vld [vmem:[#allocation2 + $0x120] sm:$0xe] }
 0x592   :  { %22238 = vst [vmem:[#allocation17_spill] sm:$0xff] %v19620_v18  ;;  %v9682_v3 = vor.u32 %v9681_v14, %v9677_v35  ;;  %v9664_v19 = vsel %vm18356_vm11, %v9659_v20, %v9663_v38  ;;  %v9725_v26 = vrot.slane %v9723_v0, 5  ;;  %v12802_v22 = vcombine.low %v9630_v6, %v9640_v13  ;;  %v15223_v13 = vld [vmem:[#allocation2 + $0x1c] sm:$0xf]  ;;  %v10302_v18 = vld [vmem:[#allocation2 + $0x114] sm:$0xe] }
 0x593   :  { %v9696_v48 = vor.u32 %v9695_v17, %v9692_v62  ;;  %v9709_v51 = vshll.u32 %v19435_v56, 16  ;;  %v12803_v55 = vcombine.low %v9654_v2, %v9664_v19  ;;  %v9673_v11 = vrot.slane %v9672_v46, 4 }
 0x594   :  { %v9683_v60 = vrot.slane %v9682_v3, 4  ;;  %v9687_v20 = vrot.slane %v9685_v39, 5  ;;  %v9720_v62 = vor.u32 %v9719_v32, %v9716_v30  ;;  %v10413_v46 = vrot.slane %v15223_v13, 5 }
 0x595   :  { %v9697_v49 = vrot.slane %v9696_v48, 4  ;;  %v9711_v53 = vrot.slane %v9709_v51, 5  ;;  %v9678_v37 = vsel %vm18356_vm11, %v9673_v11, %v9677_v35  ;;  %v10283_v48 = vld [vmem:[#allocation2 + $0x18] sm:$0xe]  ;;  %v15224_v35 = vld [vmem:[#allocation2 + $0x28] sm:$0xf] }
 0x596   :  { %v19630_v4 = vpop.f32.mrb[104].mxu0  ;;  %v9688_v0 = vsel %vm18356_vm11, %v9683_v60, %v9687_v20  ;;  %v9721_v3 = vrot.slane %v9720_v62, 4  ;;  %v10420_v30 = vrot.slane %v15224_v35, 5  ;;  %v10415_v32 = vrot.slane %v10413_v46, 4  ;;  %v15228_v35 = vld [vmem:[#allocation2 + $0x38] sm:$0x1] }
 0x597   :  { %14123 = vmatmul.mubr.bf16.gmra.mrb[16].mxu1 %v12800_v52  ;;  %22239 = vst [vmem:[#allocation20_spill] sm:$0xff] %v19630_v4  ;;  %v19632_v10 = vpop.f32.mrb[105].mxu0  ;;  %v9729_v52 = vrot.slane %v9727_v8, 4  ;;  %v9702_v6 = vsel %vm18356_vm11, %v9697_v49, %v9701_v12  ;;  %v9712_v38 = vsel %vm18356_vm11, %v9707_v7, %v9711_v53  ;;  %v12804_v19 = vcombine.low %v9678_v37, %v9688_v0  ;;  %v15035_v7 = vld [vmem:[%s21519_s7] sm:$0xff]   ;;  %v10285_v37 = vld [vmem:[#allocation2 + $0x30] sm:$0xe] }
 0x598   :  { %14126 = vmatprep.mubr.bf16.mxu1 %v12801_v36  ;;  %22240 = vst [vmem:[#allocation9_spill] sm:$0xff] %v19632_v10  ;;  %v19639_v44 = vpop.f32.mrb[106].mxu0  ;;  %v19652_v36 = vld [vmem:[#allocation2 + $0x1ac] sm:$0x1]  ;;  %v12805_v42 = vcombine.low %v9702_v6, %v9712_v38  ;;  %v9726_v12 = vsel %vm18356_vm11, %v9721_v3, %v9725_v26  ;;  %v12815_v51 = vrot.slane %v10283_v48, 9  ;;  %v10422_v62 = vrot.slane %v10420_v30, 4  ;;  %14218 = vmatprep.subr.bf16.mxu0 %v15035_v7 }
 0x599   :  { %22241 = vst [vmem:[#allocation15_spill] sm:$0xff] %v19639_v44  ;;  %v19643_v27 = vpop.f32.mrb[107].mxu0  ;;  %v9730_v17 = vor.u32 %v9729_v52, %v9725_v26  ;;  %v9733_v28 = vshll.u32 %v19652_v36, 16  ;;  %v10284_v53 = vld [vmem:[#allocation2 + $0x24] sm:$0xe]  ;;  %14219 = vmatpush3.bf16.msra.mxu0 %v15035_v7  ;;  %v15036_v3 = vld [vmem:[%s21519_s7 + $0x8] sm:$0xff]  }
 0x59a   :  { %22242 = vst [vmem:[#allocation8_spill] sm:$0xff] %v19643_v27  ;;  %v10414_v0 = vsel %vm18745_vm14, %v12815_v51, %v10413_v46  ;;  %v12817_v46 = vrot.slane %v10285_v37, 9  ;;  %14220 = vmatprep.subr.bf16.mxu0 %v15036_v3  ;;  %v10301_v27 = vld [vmem:[#allocation2 + $0x108] sm:$0xe] }
 0x59b   :  { %v9731_v39 = vrot.slane %v9730_v17, 4  ;;  %v9735_v2 = vrot.slane %v9733_v28, 5  ;;  %v15226_v17 = vld [vmem:[#allocation2 + $0x34] sm:$0xf] }
 0x59c   :  { %v10427_v28 = vrot.slane %v15226_v17, 5  ;;  %v15230_v17 = vld [vmem:[#allocation2 + $0x4c] sm:$0xf] }
 0x59d   :  { %14221 = vmatpush3.bf16.msra.mxu0 %v15036_v3 }
 0x59e   :  { %v19654_v45 = vpop.f32.mrb[108].mxu0  ;;  %v10429_v38 = vrot.slane %v10427_v28, 4 }
 0x59f   :  { %14127 = vmatmul.mubr.bf16.gmra.mrb[20].mxu1 %v12802_v22  ;;  %22243 = vst [vmem:[#allocation4_spill] sm:$0xff] %v19654_v45  ;;  %v19656_v14 = vpop.f32.mrb[109].mxu0  ;;  %v9736_v22 = vsel %vm18356_vm11, %v9731_v39, %v9735_v2  ;;  %v15037_v39 = vld [vmem:[%s21519_s7 + $0x10] sm:$0xff]   ;;  %v12816_v2 = vrot.slane %v10284_v53, 9 }
 0x5a0   :  { %14130 = vmatprep.mubr.bf16.mxu1 %v12803_v55  ;;  %22244 = vst [vmem:[#allocation27_spill] sm:$0xff] %v19656_v14  ;;  %v19659_v56 = vpop.f32.mrb[110].mxu0  ;;  %v15225_v55 = vld [vmem:[#allocation2 + $0x20] sm:$0x1]  ;;  %v12806_v26 = vcombine.low %v9726_v12, %v9736_v22  ;;  %14222 = vmatprep.subr.bf16.mxu0 %v15037_v39 }
 0x5a1   :  { %22245 = vst [vmem:[#allocation24_spill] sm:$0xff] %v19659_v56  ;;  %v19665_v8 = vpop.f32.mrb[111].mxu0  ;;  %v10416_v11 = vrot.slane %v15225_v55, 5  ;;  %v15229_v55 = vld [vmem:[#allocation2 + $0x40] sm:$0xf]  ;;  %v10421_v53 = vsel %vm18745_vm14, %v12816_v2, %v10420_v30  ;;  %14223 = vmatpush3.bf16.msra.mxu0 %v15037_v39 }
 0x5a2   :  { %22246 = vst [vmem:[#allocation31_spill] sm:$0xff] %v19665_v8  ;;  %v15231_v2 = vld [vmem:[#allocation2 + $0x44] sm:$0x1]  ;;  %v15261_v56 = vld [vmem:[#allocation2 + $0xd4] sm:$0x1] }
 0x5a3   :  { %v10417_v33 = vsel %vm18745_vm14, %v10415_v32, %v10416_v11  ;;  %v10430_v32 = vrot.slane %v15228_v35, 5  ;;  %v10434_v11 = vrot.slane %v15229_v55, 5  ;;  %v15039_v35 = vld [vmem:[%s21519_s7 + $0x20] sm:$0xff]  }
 0x5a4   :  { %v12863_v6 = vcombine.low %v10414_v0, %v10417_v33  ;;  %v15038_v33 = vld [vmem:[%s21519_s7 + $0x18] sm:$0xff]  }
 0x5a5   :  { %v10431_v7 = vsel %vm18745_vm14, %v10429_v38, %v10430_v32  ;;  %v10286_v0 = vld [vmem:[#allocation2 + $0x3c] sm:$0xe]  ;;  %v10436_v3 = vrot.slane %v10434_v11, 4  ;;  %14224 = vmatprep.subr.bf16.mxu0 %v15038_v33  ;;  %v10437_v32 = vrot.slane %v15231_v2, 5 }
 0x5a6   :  { %v19671_v52 = vpop.f32.mrb[112].mxu0  ;;  %v12818_v30 = vrot.slane %v10286_v0, 9  ;;  %14225 = vmatpush3.bf16.msra.mxu0 %v15038_v33  ;;  %v15234_v0 = vld [vmem:[#allocation2 + $0x64] sm:$0xf] }
 0x5a7   :  { %14131 = vmatmul.mubr.bf16.gmra.mrb[24].mxu1 %v12804_v19  ;;  %22247 = vst [vmem:[#allocation28_spill] sm:$0xff] %v19671_v52  ;;  %v19677_v60 = vpop.f32.mrb[113].mxu0  ;;  %v15227_v19 = vld [vmem:[#allocation2 + $0x2c] sm:$0x1]  ;;  %v10438_v39 = vsel %vm18745_vm14, %v10436_v3, %v10437_v32  ;;  %14226 = vmatprep.subr.bf16.mxu0 %v15039_v35  ;;  %v10288_v32 = vld [vmem:[#allocation2 + $0x54] sm:$0xe] }
 0x5a8   :  { %14134 = vmatprep.mubr.bf16.mxu1 %v12805_v42  ;;  %22248 = vst [vmem:[#allocation32_spill] sm:$0xff] %v19677_v60  ;;  %v19679_v49 = vpop.f32.mrb[114].mxu0  ;;  %v10423_v48 = vrot.slane %v15227_v19, 5  ;;  %v10287_v19 = vld [vmem:[#allocation2 + $0x48] sm:$0xe]  ;;  %v10435_v2 = vsel %vm18745_vm14, %v12818_v30, %v10434_v11  ;;  %v12820_v11 = vrot.slane %v10288_v32, 9 }
 0x5a9   :  { %22249 = vst [vmem:[#allocation29_spill] sm:$0xff] %v19679_v49  ;;  %v19684_v20 = vpop.f32.mrb[115].mxu0  ;;  %v15235_v30 = vld [vmem:[#allocation2 + $0x5c] sm:$0x1]  ;;  %v10297_v49 = vld [vmem:[#allocation2 + $0xc0] sm:$0xe] }
 0x5aa   :  { %22250 = vst [vmem:[#allocation33_spill] sm:$0xff] %v19684_v20  ;;  %v10424_v22 = vsel %vm18745_vm14, %v10422_v62, %v10423_v48  ;;  %v10428_v62 = vsel %vm18745_vm14, %v12817_v46, %v10427_v28  ;;  %v12819_v28 = vrot.slane %v10287_v19, 9  ;;  %v15232_v46 = vld [vmem:[#allocation2 + $0x50] sm:$0x1]  ;;  %v15040_v19 = vld [vmem:[%s21519_s7 + $0x28] sm:$0xff]   ;;  %14227 = vmatpush3.bf16.msra.mxu0 %v15039_v35 }
 0x5ab   :  { %v12864_v37 = vcombine.low %v10421_v53, %v10424_v22  ;;  %v10444_v55 = vrot.slane %v15232_v46, 5  ;;  %v15233_v53 = vld [vmem:[#allocation2 + $0x58] sm:$0xf]  ;;  %v12866_v46 = vcombine.low %v10435_v2, %v10438_v39  ;;  %14228 = vmatprep.subr.bf16.mxu0 %v15040_v19  ;;  %v10451_v39 = vrot.slane %v15235_v30, 5  ;;  %v10296_v20 = vld [vmem:[#allocation2 + $0xb4] sm:$0xe] }
 0x5ac   :  { %v10298_v52 = vld [vmem:[#allocation2 + $0xcc] sm:$0xe] }
 0x5ae   :  { %v19690_v13 = vpop.f32.mrb[116].mxu0  ;;  %14229 = vmatpush3.bf16.msra.mxu0 %v15040_v19 }
 0x5af   :  { %14135 = vmatmul.mubr.bf16.gmra.mrb[28].mxu1 %v12806_v26  ;;  %22251 = vst [vmem:[#allocation30_spill] sm:$0xff] %v19690_v13  ;;  %v19698_v42 = vpop.f32.mrb[117].mxu0  ;;  %v10441_v26 = vrot.slane %v15230_v17, 5 }
 0x5b0   :  { %14154 = vmatprep.mubr.bf16.mxu1 %v12863_v6  ;;  %22252 = vst [vmem:[#allocation36_spill] sm:$0xff] %v19698_v42  ;;  %v19700_v12 = vpop.f32.mrb[118].mxu0  ;;  %v12865_v6 = vcombine.low %v10428_v62, %v10431_v7 }
 0x5b1   :  { %22253 = vst [vmem:[#allocation34_spill] sm:$0xff] %v19700_v12  ;;  %v19704_v51 = vpop.f32.mrb[119].mxu0  ;;  %v10443_v38 = vrot.slane %v10441_v26, 4  ;;  %v10442_v3 = vsel %vm18745_vm14, %v12819_v28, %v10441_v26  ;;  %v12821_v26 = vrot.slane %v10289_v1, 9  ;;  %v15236_v28 = vld [vmem:[#allocation2 + $0x68] sm:$0x1] }
 0x5b2   :  { %22254 = vst [vmem:[#allocation37_spill] sm:$0xff] %v19704_v51  ;;  %v15042_v1 = vld [vmem:[%s21519_s7 + $0x38] sm:$0xff]   ;;  %v10295_v12 = vld [vmem:[#allocation2 + $0xa8] sm:$0xe] }
 0x5b3   :  { %v10445_v62 = vsel %vm18745_vm14, %v10443_v38, %v10444_v55  ;;  %v10294_v51 = vld [vmem:[#allocation2 + $0x9c] sm:$0xe] }
 0x5b6   :  { %v19715_v48 = vpop.f32.mrb[120].mxu0 }
 0x5b7   :  { %14155 = vmatmul.mubr.bf16.vlgmr.msra.gmra.mrb[32].mxu1 %v12864_v37  ;;  %22255 = vst [vmem:[#allocation35_spill] sm:$0xff] %v19715_v48  ;;  %v19720_v22 = vpop.f32.mrb[121].mxu0  ;;  %v10448_v37 = vrot.slane %v15233_v53, 5  ;;  %v12867_v53 = vcombine.low %v10442_v3, %v10445_v62  ;;  %v10458_v62 = vrot.slane %v15236_v28, 5 }
 0x5b8   :  { %14158 = vmatprep.mubr.bf16.mxu1 %v12865_v6  ;;  %22256 = vst [vmem:[#allocation38_spill] sm:$0xff] %v19720_v22  ;;  %v19722_v7 = vpop.f32.mrb[122].mxu0  ;;  %v10455_v6 = vrot.slane %v15234_v0, 5  ;;  %v15041_v0 = vld [vmem:[%s21519_s7 + $0x30] sm:$0xff]  }
 0x5b9   :  { %22257 = vst [vmem:[#allocation39_spill] sm:$0xff] %v19722_v7  ;;  %v19726_v17 = vpop.f32.mrb[123].mxu0  ;;  %v10450_v33 = vrot.slane %v10448_v37, 4  ;;  %14230 = vmatprep.subr.bf16.mxu0 %v15041_v0  ;;  %v10449_v28 = vsel %vm18745_vm14, %v12820_v11, %v10448_v37  ;;  %v15240_v11 = vld [vmem:[#allocation2 + $0x80] sm:$0x1] }
 0x5ba   :  { %22258 = vst [vmem:[#allocation16_spill] sm:$0xff] %v19726_v17  ;;  %v10457_v38 = vrot.slane %v10455_v6, 4  ;;  %14231 = vmatpush3.bf16.msra.mxu0 %v15041_v0 }
 0x5bb   :  { %v10452_v35 = vsel %vm18745_vm14, %v10450_v33, %v10451_v39  ;;  %v10456_v33 = vsel %vm18745_vm14, %v12821_v26, %v10455_v6  ;;  %v10290_v39 = vld [vmem:[#allocation2 + $0x6c] sm:$0xe]  ;;  %14232 = vmatprep.subr.bf16.mxu0 %v15042_v1 }
 0x5bc   :  { %v10459_v32 = vsel %vm18745_vm14, %v10457_v38, %v10458_v62 }
 0x5be   :  { %v19737_v55 = vpop.f32.mrb[124].mxu0  ;;  %14233 = vmatpush3.bf16.msra.mxu0 %v15042_v1 }
 0x5bf   :  { %14159 = vmatmul.mubr.bf16.gmra.mrb[36].mxu1 %v12866_v46  ;;  %22259 = vst [vmem:[#allocation40_spill] sm:$0xff] %v19737_v55  ;;  %v19742_v2 = vpop.f32.mrb[125].mxu0  ;;  %v10462_v55 = vrot.slane %v15237_v43, 5  ;;  %v12869_v43 = vcombine.low %v10456_v33, %v10459_v32  ;;  %v15242_v33 = vld [vmem:[#allocation2 + $0x94] sm:$0xf] }
 0x5c0   :  { %14162 = vmatprep.mubr.bf16.mxu1 %v12867_v53  ;;  %22260 = vst [vmem:[#allocation13_spill] sm:$0xff] %v19742_v2  ;;  %v19744_v3 = vpop.f32.mrb[126].mxu0  ;;  %v15238_v53 = vld [vmem:[#allocation2 + $0x7c] sm:$0xf]  ;;  %v15239_v2 = vld [vmem:[#allocation2 + $0x74] sm:$0x1] }
 0x5c1   :  { %22261 = vst [vmem:[#allocation14_spill] sm:$0xff] %v19744_v3  ;;  %v19748_v46 = vpop.f32.mrb[127].mxu0  ;;  %v10469_v30 = vrot.slane %v15238_v53, 5  ;;  %v12868_v3 = vcombine.low %v10449_v28, %v10452_v35  ;;  %v10464_v19 = vrot.slane %v10462_v55, 4  ;;  %v12822_v53 = vrot.slane %v10290_v39, 9 }
 0x5c2   :  { %22262 = vst [vmem:[#allocation41_spill] sm:$0xff] %v19748_v46  ;;  %v10291_v46 = vld [vmem:[#allocation2 + $0x78] sm:$0xe]  ;;  %v10465_v17 = vrot.slane %v15239_v2, 5  ;;  %v10472_v35 = vrot.slane %v15240_v11, 5  ;;  %v10483_v2 = vrot.slane %v15242_v33, 5 }
 0x5c3   :  { %v10471_v38 = vrot.slane %v10469_v30, 4  ;;  %v12823_v37 = vrot.slane %v10291_v46, 9  ;;  %v10463_v46 = vsel %vm18745_vm14, %v12822_v53, %v10462_v55  ;;  %v10292_v11 = vld [vmem:[#allocation2 + $0x84] sm:$0xe] }
 0x5c4   :  { %v10466_v26 = vsel %vm18745_vm14, %v10464_v19, %v10465_v17  ;;  %v15243_v17 = vld [vmem:[%s21515_s0 + $0x8] sm:$0xff]   ;;  %v10485_v55 = vrot.slane %v10483_v2, 4 }
 0x5c5   :  { %v10473_v28 = vsel %vm18745_vm14, %v10471_v38, %v10472_v35  ;;  %v12870_v39 = vcombine.low %v10463_v46, %v10466_v26  ;;  %14235 = vmatmul.mubr.bf16.vlgmr.msra.gmra.mrb[128].mxu0 %v15243_v17  ;;  %v15244_v38 = vld [vmem:[%s21515_s0 + $0x10] sm:$0xff]   ;;  %v15246_v46 = vld [vmem:[#allocation2 + $0x98] sm:$0x1] }
 0x5c6   :  { %v19759_v62 = vpop.f32.mrb[64].mxu0  ;;  %14238 = vmatprep.mubr.bf16.mxu0 %v15244_v38 }
 0x5c7   :  { %14163 = vmatmul.mubr.bf16.gmra.mrb[40].mxu1 %v12868_v3  ;;  %v19761_v7 = vpop.f32.mrb[65].mxu0  ;;  %v15241_v3 = vld [vmem:[#allocation2 + $0x88] sm:$0xf] }
 0x5c8   :  { %14166 = vmatprep.mubr.bf16.mxu1 %v12869_v43  ;;  %v19763_v6 = vpop.f32.mrb[66].mxu0  ;;  %v10476_v32 = vrot.slane %v15241_v3, 5  ;;  %v10470_v43 = vsel %vm18745_vm14, %v12823_v37, %v10469_v30  ;;  %v10293_v3 = vld [vmem:[#allocation2 + $0x90] sm:$0xe]  ;;  %v12824_v30 = vrot.slane %v10292_v11, 9 }
 0x5c9   :  { %v19767_v0 = vpop.f32.mrb[67].mxu0  ;;  %v12871_v19 = vcombine.low %v10470_v43, %v10473_v28  ;;  %v15245_v37 = vld [vmem:[#allocation2 + $0x8c] sm:$0x1]  ;;  %v12825_v33 = vrot.slane %v10293_v3, 9  ;;  %v10486_v28 = vrot.slane %v15246_v46, 5 }
 0x5ca   :  { %v10478_v1 = vrot.slane %v10476_v32, 4  ;;  %v10479_v35 = vrot.slane %v15245_v37, 5  ;;  %v15248_v11 = vld [vmem:[#allocation2 + $0xac] sm:$0xf]  ;;  %v10477_v37 = vsel %vm18745_vm14, %v12824_v30, %v10476_v32 }
 0x5cb   :  { %v10497_v48 = vrot.slane %v15248_v11, 5  ;;  %v10484_v46 = vsel %vm18745_vm14, %v12825_v33, %v10483_v2  ;;  %v12826_v2 = vrot.slane %v10294_v51, 9  ;;  %v15251_v33 = vld [vmem:[#allocation2 + $0xa4] sm:$0x1]  ;;  %v12827_v11 = vrot.slane %v10295_v12, 9 }
 0x5cc   :  { %v10480_v17 = vsel %vm18745_vm14, %v10478_v1, %v10479_v35  ;;  %v15249_v1 = vld [vmem:[%s21515_s0 + $0x18] sm:$0xff]   ;;  %v15254_v51 = vld [vmem:[#allocation2 + $0xc4] sm:$0xf] }
 0x5cd   :  { %v12872_v3 = vcombine.low %v10477_v37, %v10480_v17  ;;  %14239 = vmatmul.mubr.bf16.gmra.mrb[132].mxu0 %v15249_v1  ;;  %v10499_v32 = vrot.slane %v10497_v48, 4  ;;  %v15252_v37 = vld [vmem:[#allocation2 + $0xb0] sm:$0x1]  ;;  %v10511_v13 = vrot.slane %v15254_v51, 5 }
 0x5ce   :  { %v19781_v53 = vpop.f32.mrb[68].mxu0  ;;  %v15258_v51 = vld [vmem:[#allocation2 + $0xd0] sm:$0xf] }
 0x5cf   :  { %14167 = vmatmul.mubr.bf16.gmra.mrb[44].mxu1 %v12870_v39  ;;  %v19783_v26 = vpop.f32.mrb[69].mxu0  ;;  %v15247_v39 = vld [vmem:[#allocation2 + $0xa0] sm:$0xf] }
 0x5d0   :  { %14170 = vmatprep.mubr.bf16.mxu1 %v12871_v19  ;;  %v19785_v43 = vpop.f32.mrb[70].mxu0  ;;  %v10490_v38 = vrot.slane %v15247_v39, 5  ;;  %v10487_v19 = vsel %vm18745_vm14, %v10485_v55, %v10486_v28  ;;  %v15250_v55 = vld [vmem:[%s21515_s0 + $0x20] sm:$0xff]   ;;  %v10493_v28 = vrot.slane %v15251_v33, 5 }
 0x5d1   :  { %v19789_v22 = vpop.f32.mrb[71].mxu0  ;;  %v12873_v35 = vcombine.low %v10484_v46, %v10487_v19  ;;  %14242 = vmatprep.mubr.bf16.mxu0 %v15250_v55  ;;  %v10500_v19 = vrot.slane %v15252_v37, 5  ;;  %v10498_v37 = vsel %vm18745_vm14, %v12827_v11, %v10497_v48  ;;  %v12828_v48 = vrot.slane %v10296_v20, 9  ;;  %v15257_v11 = vld [vmem:[#allocation2 + $0xbc] sm:$0x1] }
 0x5d2   :  { %v10492_v39 = vrot.slane %v10490_v38, 4  ;;  %v10491_v33 = vsel %vm18745_vm14, %v12826_v2, %v10490_v38  ;;  %v10513_v38 = vrot.slane %v10511_v13, 4 }
 0x5d4   :  { %v10494_v1 = vsel %vm18745_vm14, %v10492_v39, %v10493_v28  ;;  %v15255_v39 = vld [vmem:[%s21515_s0 + $0x28] sm:$0xff]  }
 0x5d5   :  { %v12874_v12 = vcombine.low %v10491_v33, %v10494_v1  ;;  %14243 = vmatmul.mubr.bf16.gmra.mrb[136].mxu0 %v15255_v39  ;;  %v10518_v33 = vrot.slane %v15258_v51, 5  ;;  %v12830_v51 = vrot.slane %v10298_v52, 9 }
 0x5d6   :  { %v19803_v30 = vpop.f32.mrb[72].mxu0 }
 0x5d7   :  { %14171 = vmatmul.mubr.bf16.gmra.mrb[48].mxu1 %v12872_v3  ;;  %v19805_v17 = vpop.f32.mrb[73].mxu0  ;;  %v15253_v3 = vld [vmem:[#allocation2 + $0xb8] sm:$0xf] }
 0x5d8   :  { %14174 = vmatprep.mubr.bf16.mxu1 %v12873_v35  ;;  %v19807_v46 = vpop.f32.mrb[74].mxu0  ;;  %v10504_v55 = vrot.slane %v15253_v3, 5  ;;  %v10501_v35 = vsel %vm18745_vm14, %v10499_v32, %v10500_v19  ;;  %v15256_v32 = vld [vmem:[%s21515_s0 + $0x30] sm:$0xff]   ;;  %v10507_v19 = vrot.slane %v15257_v11, 5 }
 0x5d9   :  { %v19811_v42 = vpop.f32.mrb[75].mxu0  ;;  %v12875_v28 = vcombine.low %v10498_v37, %v10501_v35  ;;  %14246 = vmatprep.mubr.bf16.mxu0 %v15256_v32  ;;  %v12829_v35 = vrot.slane %v10297_v49, 9  ;;  %v15259_v37 = vld [vmem:[#allocation2 + $0xc8] sm:$0x1]  ;;  %v10520_v49 = vrot.slane %v10518_v33, 4 }
 0x5da   :  { %v10506_v3 = vrot.slane %v10504_v55, 4  ;;  %v10514_v39 = vrot.slane %v15259_v37, 5  ;;  %v10505_v8 = vsel %vm18745_vm14, %v12828_v48, %v10504_v55  ;;  %v10521_v37 = vrot.slane %v15261_v56, 5  ;;  %v15264_v48 = vld [vmem:[#allocation2 + $0xf8] sm:$0x1] }
 0x5db   :  { %v10512_v45 = vsel %vm18745_vm14, %v12829_v35, %v10511_v13  ;;  %v10519_v56 = vsel %vm18745_vm14, %v12830_v51, %v10518_v33  ;;  %v10528_v35 = vrot.slane %v15264_v48, 5 }
 0x5dc   :  { %v10515_v20 = vsel %vm18745_vm14, %v10513_v38, %v10514_v39  ;;  %v10299_v38 = vld [vmem:[#allocation2 + $0xf0] sm:$0xe]  ;;  %v15263_v39 = vld [vmem:[%s21515_s0 + $0x40] sm:$0xff]  }
 0x5de   :  { %v19825_v2 = vpop.f32.mrb[76].mxu0 }
 0x5df   :  { %14175 = vmatmul.mubr.bf16.gmra.mrb[52].mxu1 %v12874_v12  ;;  %v19827_v1 = vpop.f32.mrb[77].mxu0  ;;  %v10508_v12 = vsel %vm18745_vm14, %v10506_v3, %v10507_v19  ;;  %v15262_v3 = vld [vmem:[%s21515_s0 + $0x38] sm:$0xff]   ;;  %v12877_v19 = vcombine.low %v10512_v45, %v10515_v20  ;;  %v12831_v45 = vrot.slane %v10299_v38, 9 }
 0x5e0   :  { %14178 = vmatprep.mubr.bf16.mxu1 %v12875_v28  ;;  %v19829_v60 = vpop.f32.mrb[78].mxu0  ;;  %v15260_v28 = vld [vmem:[#allocation2 + $0xf4] sm:$0xf]  ;;  %v12876_v14 = vcombine.low %v10505_v8, %v10508_v12  ;;  %14247 = vmatmul.mubr.bf16.gmra.mrb[140].mxu0 %v15262_v3  ;;  %v10522_v8 = vsel %vm18745_vm14, %v10520_v49, %v10521_v37  ;;  %v10300_v49 = vld [vmem:[#allocation2 + $0xfc] sm:$0xe]  ;;  %v15267_v37 = vld [vmem:[%s21515_s0 + $0x48] sm:$0xff]  }
 0x5e1   :  { %v19833_v32 = vpop.f32.mrb[79].mxu0  ;;  %v10525_v11 = vrot.slane %v15260_v28, 5  ;;  %14250 = vmatprep.mubr.bf16.mxu0 %v15263_v39  ;;  %v12878_v3 = vcombine.low %v10519_v56, %v10522_v8  ;;  %v15266_v39 = vld [vmem:[#allocation2 + $0x10c] sm:$0xf]  ;;  %v15268_v56 = vld [vmem:[%s21515_s0 + $0x50] sm:$0xff]  }
 0x5e2   :  { %v10539_v33 = vrot.slane %v15266_v39, 5  ;;  %v12833_v39 = vrot.slane %v10301_v27, 9 }
 0x5e3   :  { %v10527_v52 = vrot.slane %v10525_v11, 4  ;;  %v10526_v51 = vsel %vm18745_vm14, %v12831_v45, %v10525_v11  ;;  %v12832_v11 = vrot.slane %v10300_v49, 9  ;;  %v15269_v45 = vld [vmem:[#allocation2 + $0x104] sm:$0x1] }
 0x5e4   :  { %v15272_v49 = vld [vmem:[#allocation2 + $0x124] sm:$0xf] }
 0x5e5   :  { %v10553_v4 = vrot.slane %v15272_v49, 5  ;;  %v12835_v49 = vrot.slane %v10303_v50, 9 }
 0x5e6   :  { %v19847_v55 = vpop.f32.mrb[80].mxu0 }
 0x5e7   :  { %14179 = vmatmul.mubr.bf16.gmra.mrb[56].mxu1 %v12876_v14  ;;  %v19853_v13 = vpop.f32.mrb[81].mxu0  ;;  %v15265_v14 = vld [vmem:[#allocation2 + $0x100] sm:$0xf] }
 0x5e8   :  { %14182 = vmatprep.mubr.bf16.mxu1 %v12877_v19  ;;  %v19855_v12 = vpop.f32.mrb[82].mxu0  ;;  %v10532_v28 = vrot.slane %v15265_v14, 5  ;;  %v10529_v19 = vsel %vm18745_vm14, %v10527_v52, %v10528_v35  ;;  %14251 = vmatmul.mubr.bf16.gmra.mrb[144].mxu0 %v15267_v37  ;;  %v10541_v52 = vrot.slane %v10539_v33, 4  ;;  %v10535_v35 = vrot.slane %v15269_v45, 5  ;;  %v15270_v37 = vld [vmem:[#allocation2 + $0x110] sm:$0x1] }
 0x5e9   :  { %v19857_v20 = vpop.f32.mrb[83].mxu0  ;;  %v12879_v38 = vcombine.low %v10526_v51, %v10529_v19  ;;  %14254 = vmatprep.mubr.bf16.mxu0 %v15268_v56  ;;  %v10542_v19 = vrot.slane %v15270_v37, 5  ;;  %v10540_v37 = vsel %vm18745_vm14, %v12833_v39, %v10539_v33  ;;  %v12834_v33 = vrot.slane %v10302_v18, 9  ;;  %v15278_v18 = vld [vmem:[#allocation2 + $0x13c] sm:$0xf] }
 0x5ea   :  { %v10534_v48 = vrot.slane %v10532_v28, 4  ;;  %v10533_v45 = vsel %vm18745_vm14, %v12832_v11, %v10532_v28  ;;  %v10555_v28 = vrot.slane %v10553_v4, 4  ;;  %v15275_v11 = vld [vmem:[#allocation2 + $0x11c] sm:$0x1]  ;;  %v10567_v54 = vrot.slane %v15278_v18, 5 }
 0x5eb   :  { %v10549_v39 = vrot.slane %v15275_v11, 5  ;;  %v12837_v18 = vrot.slane %v10305_v41, 9 }
 0x5ec   :  { %v10536_v44 = vsel %vm18745_vm14, %v10534_v48, %v10535_v35  ;;  %v15273_v48 = vld [vmem:[%s21515_s0 + $0x58] sm:$0xff]  }
 0x5ed   :  { %v12880_v27 = vcombine.low %v10533_v45, %v10536_v44  ;;  %v15276_v45 = vld [vmem:[#allocation2 + $0x128] sm:$0x1] }
 0x5ee   :  { %v19869_v8 = vpop.f32.mrb[84].mxu0 }
 0x5ef   :  { %14183 = vmatmul.mubr.bf16.gmra.mrb[60].mxu1 %v12878_v3  ;;  %v19871_v14 = vpop.f32.mrb[85].mxu0  ;;  %v15271_v3 = vld [vmem:[#allocation2 + $0x118] sm:$0xf] }
 0x5f0   :  { %14186 = vmatprep.mubr.bf16.mxu1 %v12879_v38  ;;  %v19873_v51 = vpop.f32.mrb[86].mxu0  ;;  %v10546_v56 = vrot.slane %v15271_v3, 5  ;;  %v10543_v38 = vsel %vm18745_vm14, %v10541_v52, %v10542_v19  ;;  %14255 = vmatmul.mubr.bf16.gmra.mrb[148].mxu0 %v15273_v48  ;;  %v15274_v52 = vld [vmem:[%s21515_s0 + $0x60] sm:$0xff]  }
 0x5f1   :  { %v19877_v10 = vpop.f32.mrb[87].mxu0  ;;  %v12881_v35 = vcombine.low %v10540_v37, %v10543_v38  ;;  %14258 = vmatprep.mubr.bf16.mxu0 %v15274_v52  ;;  %v10556_v38 = vrot.slane %v15276_v45, 5  ;;  %v10554_v45 = vsel %vm18745_vm14, %v12835_v49, %v10553_v4  ;;  %v12836_v4 = vrot.slane %v10304_v58, 9  ;;  %v15281_v49 = vld [vmem:[#allocation2 + $0x134] sm:$0x1] }
 0x5f2   :  { %v10548_v3 = vrot.slane %v10546_v56, 4  ;;  %v10547_v11 = vsel %vm18745_vm14, %v12834_v33, %v10546_v56  ;;  %v10569_v56 = vrot.slane %v10567_v54, 4  ;;  %v15284_v58 = vld [vmem:[#allocation2 + $0x154] sm:$0xf] }
 0x5f3   :  { %v10581_v59 = vrot.slane %v15284_v58, 5 }
 0x5f4   :  { %v10550_v48 = vsel %vm18745_vm14, %v10548_v3, %v10549_v39  ;;  %v15279_v3 = vld [vmem:[%s21515_s0 + $0x68] sm:$0xff]  }
 0x5f5   :  { %v12882_v50 = vcombine.low %v10547_v11, %v10550_v48  ;;  %v15282_v11 = vld [vmem:[#allocation2 + $0x140] sm:$0x1] }
 0x5f6   :  { %v19891_v44 = vpop.f32.mrb[88].mxu0 }
 0x5f7   :  { %14187 = vmatmul.mubr.bf16.gmra.mrb[0].mxu1 %v12880_v27  ;;  %v19893_v19 = vpop.f32.mrb[89].mxu0  ;;  %v15277_v27 = vld [vmem:[#allocation2 + $0x130] sm:$0xf] }
 0x5f8   :  { %14190 = vmatprep.mubr.bf16.mxu1 %v12881_v35  ;;  %v19895_v37 = vpop.f32.mrb[90].mxu0  ;;  %v10560_v52 = vrot.slane %v15277_v27, 5  ;;  %v10557_v35 = vsel %vm18745_vm14, %v10555_v28, %v10556_v38  ;;  %14259 = vmatmul.mubr.bf16.gmra.mrb[152].mxu0 %v15279_v3  ;;  %v15280_v28 = vld [vmem:[%s21515_s0 + $0x70] sm:$0xff]   ;;  %v10563_v38 = vrot.slane %v15281_v49, 5 }
 0x5f9   :  { %v19899_v31 = vpop.f32.mrb[91].mxu0  ;;  %v12883_v39 = vcombine.low %v10554_v45, %v10557_v35  ;;  %14262 = vmatprep.mubr.bf16.mxu0 %v15280_v28  ;;  %v10570_v35 = vrot.slane %v15282_v11, 5  ;;  %v10568_v11 = vsel %vm18745_vm14, %v12837_v18, %v10567_v54 }
 0x5fa   :  { %v10562_v27 = vrot.slane %v10560_v52, 4  ;;  %v10561_v49 = vsel %vm18745_vm14, %v12836_v4, %v10560_v52  ;;  %v10583_v52 = vrot.slane %v10581_v59, 4 }
 0x5fc   :  { %v10564_v3 = vsel %vm18745_vm14, %v10562_v27, %v10563_v38  ;;  %v15285_v27 = vld [vmem:[%s21515_s0 + $0x78] sm:$0xff]  }
 0x5fd   :  { %v12884_v41 = vcombine.low %v10561_v49, %v10564_v3  ;;  %v10584_v3 = vrot.slane %v19545_v63, 5  ;;  %v15289_v63 = vld [vmem:[%s21515_s0 + $0x88] sm:$0xff]  }
 0x5fe   :  { %v19913_v33 = vpop.f32.mrb[92].mxu0 }
 0x5ff   :  { %14191 = vmatmul.mubr.bf16.gmra.mrb[4].mxu1 %v12882_v50  ;;  %v19915_v48 = vpop.f32.mrb[93].mxu0  ;;  %v15283_v50 = vld [vmem:[#allocation2 + $0x148] sm:$0xf] }
 0x600   :  { %14194 = vmatprep.mubr.bf16.mxu1 %v12883_v39  ;;  %v19917_v45 = vpop.f32.mrb[94].mxu0  ;;  %v10574_v28 = vrot.slane %v15283_v50, 5  ;;  %v10571_v39 = vsel %vm18745_vm14, %v10569_v56, %v10570_v35  ;;  %14263 = vmatmul.mubr.bf16.gmra.mrb[156].mxu0 %v15285_v27  ;;  %v15286_v56 = vld [vmem:[%s21515_s0 + $0x80] sm:$0xff]   ;;  %v15287_v35 = vld [vmem:[#allocation2 + $0x14c] sm:$0x1]  ;;  %v10595_v27 = vrot.slane %v19543_v29, 5 }
 0x601   :  { %22263 = vst [vmem:[#allocation25_spill] sm:$0xff] %v19917_v45  ;;  %v19921_v16 = vpop.f32.mrb[95].mxu0  ;;  %v10306_v45 = vld [vmem:[#allocation2 + $0x144] sm:$0xe]  ;;  %v12885_v38 = vcombine.low %v10568_v11, %v10571_v39  ;;  %14266 = vmatprep.mubr.bf16.mxu0 %v15286_v56  ;;  %v10577_v54 = vrot.slane %v15287_v35, 5  ;;  %v10585_v11 = vsel %vm18745_vm14, %v10583_v52, %v10584_v3  ;;  %v15290_v29 = vld [vmem:[%s21515_s0 + $0x90] sm:$0xff]  }
 0x602   :  { %22264 = vst [vmem:[#allocation22_spill] sm:$0xff] %v19921_v16  ;;  %v10576_v50 = vrot.slane %v10574_v28, 4  ;;  %v10307_v16 = vld [vmem:[#allocation2 + $0x150] sm:$0xe]  ;;  %v12838_v4 = vrot.slane %v10306_v45, 9  ;;  %v10602_v3 = vrot.slane %v19565_v40, 5 }
 0x603   :  { %v12839_v18 = vrot.slane %v10307_v16, 9  ;;  %v15288_v39 = vld [vmem:[#allocation2 + $0x160] sm:$0xf]  ;;  %v10308_v16 = vld [vmem:[#allocation2 + $0x15c] sm:$0xe] }
 0x604   :  { %v10578_v58 = vsel %vm18745_vm14, %v10576_v50, %v10577_v54  ;;  %v10588_v49 = vrot.slane %v15288_v39, 5  ;;  %v10309_v35 = vld [vmem:[#allocation2 + $0x168] sm:$0xe]  ;;  %v12840_v52 = vrot.slane %v10308_v16, 9  ;;  %v10598_v54 = vrot.slane %v19572_v24, 5  ;;  %v15291_v24 = vld [vmem:[%s21515_s0 + $0x98] sm:$0xff]  }
 0x605   :  { %v10582_v45 = vsel %vm18745_vm14, %v12839_v18, %v10581_v59  ;;  %v10591_v59 = vrot.slane %v19567_v25, 5  ;;  %v10609_v39 = vrot.slane %v19574_v15, 5  ;;  %v10604_v40 = vrot.slane %v10602_v3, 4  ;;  %v10311_v16 = vld [vmem:[#allocation2 + $0x180] sm:$0xe] }
 0x606   :  { %v12887_v50 = vcombine.low %v10582_v45, %v10585_v11  ;;  %v10590_v56 = vrot.slane %v10588_v49, 4  ;;  %v10589_v11 = vsel %vm18745_vm14, %v12840_v52, %v10588_v49  ;;  %v15292_v15 = vld [vmem:[%s21515_s0 + $0xa0] sm:$0xff]  }
 0x607   :  { %14195 = vmatmul.mubr.bf16.gmra.mrb[8].mxu1 %v12884_v41  ;;  %v10575_v41 = vsel %vm18745_vm14, %v12838_v4, %v10574_v28  ;;  %v10597_v28 = vrot.slane %v10595_v27, 4  ;;  %v12841_v4 = vrot.slane %v10309_v35, 9  ;;  %v10611_v49 = vrot.slane %v10609_v39, 4 }
 0x608   :  { %14198 = vmatprep.mubr.bf16.mxu1 %v12885_v38  ;;  %v12886_v38 = vcombine.low %v10575_v41, %v10578_v58  ;;  %14267 = vmatmul.mubr.bf16.gmra.mrb[160].mxu0 %v15289_v63  ;;  %v10592_v18 = vsel %vm18745_vm14, %v10590_v56, %v10591_v59  ;;  %v10612_v56 = vrot.slane %v19618_v9, 5  ;;  %v15294_v9 = vld [vmem:[%s21515_s0 + $0xb0] sm:$0xff]  }
 0x609   :  { %14270 = vmatprep.mubr.bf16.mxu0 %v15290_v29  ;;  %v10599_v58 = vsel %vm18745_vm14, %v10597_v28, %v10598_v54  ;;  %v12888_v41 = vcombine.low %v10589_v11, %v10592_v18  ;;  %v10596_v25 = vsel %vm18745_vm14, %v12841_v4, %v10595_v27  ;;  %v10605_v27 = vrot.slane %v19596_v61, 5  ;;  %v15293_v61 = vld [vmem:[%s21515_s0 + $0xa8] sm:$0xff]   ;;  %v10314_v18 = vld [vmem:[#allocation2 + $0x1a4] sm:$0xe]  ;;  %v15295_v11 = vld [vmem:[%s21515_s0 + $0xb8] sm:$0xff]  }
 0x60a   :  { %v12889_v45 = vcombine.low %v10596_v25, %v10599_v58  ;;  %v10613_v29 = vsel %vm18745_vm14, %v10611_v49, %v10612_v56  ;;  %v10630_v54 = vrot.slane %v19628_v23, 5  ;;  %v22265_v25 = vcombine.low %v19443_v47, %v19447_v57  ;;  %v15298_v47 = vld [vmem:[%s21515_s0 + $0xd0] sm:$0xff]   ;;  %v15299_v57 = vld [vmem:[%s21515_s0 + $0xd8] sm:$0xff]  }
 0x60b   :  { %v10606_v35 = vsel %vm18745_vm14, %v10604_v40, %v10605_v27  ;;  %v22266_v23 = vcombine.low %v19457_v21, %v19461_v34  ;;  %v15301_v21 = vld [vmem:[%s21515_s0 + $0xe8] sm:$0xff]   ;;  %v15302_v34 = vld [vmem:[%s21515_s0 + $0xf0] sm:$0xff]   ;;  %v15303_v40 = vld [vmem:[%s21515_s0 + $0xf8] sm:$0xff]  }
 0x60c   :  { %v10632_v58 = vrot.slane %v10630_v54, 4 }
 0x60f   :  { %14199 = vmatmul.mubr.bf16.gmra.mrb[12].mxu1 %v12886_v38  ;;  %v10310_v38 = vld [vmem:[#allocation2 + $0x174] sm:$0xe] }
 0x610   :  { %14202 = vmatprep.mubr.bf16.mxu1 %v12887_v50  ;;  %14271 = vmatmul.mubr.bf16.gmra.mrb[164].mxu0 %v15291_v24  ;;  %v12842_v63 = vrot.slane %v10310_v38, 9  ;;  %v12843_v50 = vrot.slane %v10311_v16, 9 }
 0x611   :  { %14274 = vmatprep.mubr.bf16.mxu0 %v15292_v15 }
 0x612   :  { %v10603_v28 = vsel %vm18745_vm14, %v12842_v63, %v10602_v3  ;;  %v10610_v59 = vsel %vm18745_vm14, %v12843_v50, %v10609_v39  ;;  %v12846_v3 = vrot.slane %v10314_v18, 9  ;;  %v10633_v39 = vrot.slane %v19652_v36, 5 }
 0x613   :  { %v12890_v52 = vcombine.low %v10603_v28, %v10606_v35  ;;  %v12891_v4 = vcombine.low %v10610_v59, %v10613_v29 }
 0x614   :  { %v10631_v36 = vsel %vm18745_vm14, %v12846_v3, %v10630_v54  ;;  %v10634_v38 = vsel %vm18745_vm14, %v10632_v58, %v10633_v39 }
 0x615   :  { %v12894_v24 = vcombine.low %v10631_v36, %v10634_v38 }
 0x617   :  { %14203 = vmatmul.mubr.bf16.gmra.mrb[16].mxu1 %v12888_v41  ;;  %v15296_v41 = vld [vmem:[%s21515_s0 + $0xc0] sm:$0xff]  }
 0x618   :  { %14206 = vmatprep.mubr.bf16.mxu1 %v12889_v45  ;;  %14275 = vmatmul.mubr.bf16.gmra.mrb[168].mxu0 %v15293_v61  ;;  %v15297_v45 = vld [vmem:[%s21515_s0 + $0xc8] sm:$0xff]  }
 0x619   :  { %14278 = vmatprep.mubr.bf16.mxu0 %v15294_v9 }
 0x61f   :  { %14207 = vmatmul.mubr.bf16.gmra.mrb[20].mxu1 %v12890_v52 }
 0x620   :  { %14210 = vmatprep.mubr.bf16.mxu1 %v12891_v4  ;;  %14279 = vmatmul.mubr.bf16.gmra.mrb[172].mxu0 %v15295_v11 }
 0x621   :  { %14282 = vmatprep.mubr.bf16.mxu0 %v15296_v41 }
 0x627   :  { %14211 = vmatmul.mubr.bf16.gmra.mrb[24].mxu1 %v22265_v25 }
 0x628   :  { %14214 = vmatprep.mubr.bf16.mxu1 %v22266_v23  ;;  %14283 = vmatmul.mubr.bf16.gmra.mrb[176].mxu0 %v15297_v45 }
 0x629   :  { %14286 = vmatprep.mubr.bf16.mxu0 %v15298_v47 }
 0x62f   :  { %14215 = vmatmul.mubr.bf16.gmra.mrb[28].mxu1 %v12894_v24 }
 0x630   :  { %14287 = vmatmul.mubr.bf16.gmra.mrb[180].mxu0 %v15299_v57 }
 0x631   :  { %14290 = vmatprep.mubr.bf16.mxu0 %v15300_v5 }
 0x638   :  { %14291 = vmatmul.mubr.bf16.gmra.mrb[184].mxu0 %v15301_v21 }
 0x639   :  { %14294 = vmatprep.mubr.bf16.mxu0 %v15302_v34 }
 0x640   :  { %14295 = vmatmul.mubr.bf16.gmra.mrb[188].mxu0 %v15303_v40 }
 0x68a   :  { %v14156_v16 = vpop.f32.mrb[32].mxu1 }
 0x68b   :  { %v20025_v15 = vadd.f32 %v14156_v16, %v19759_v62  ;;  %v10862_v49 = vpop.f32.mrb[33].mxu1 }
 0x68c   :  { %v20028_v63 = vadd.f32 %v10862_v49, %v19761_v7  ;;  %v14157_v27 = vpop.f32.mrb[34].mxu1 }
 0x68d   :  { %v20031_v50 = vadd.f32 %v14157_v27, %v19763_v6  ;;  %v10865_v56 = vpop.f32.mrb[35].mxu1 }
 0x68e   :  { %v20034_v35 = vadd.f32 %v10865_v56, %v19767_v0 }
 0x690   :  { %v11183_v29 = vadd.f32 %v20034_v35, %v20028_v63 }
 0x692   :  { %v11184_v28 = vadd.f32 %v20025_v15, %v11183_v29  ;;  %v14160_v52 = vpop.f32.mrb[36].mxu1 }
 0x693   :  { %v20040_v62 = vadd.f32 %v14160_v52, %v19781_v53  ;;  %v10878_v59 = vpop.f32.mrb[37].mxu1 }
 0x694   :  { %v20043_v7 = vadd.f32 %v10878_v59, %v19783_v26  ;;  %v11185_v6 = vadd.f32 %v20031_v50, %v11184_v28  ;;  %v14161_v61 = vpop.f32.mrb[38].mxu1 }
 0x695   :  { %v20047_v4 = vadd.f32 %v14161_v61, %v19785_v43  ;;  %v10881_v0 = vpop.f32.mrb[39].mxu1 }
 0x696   :  { %v11186_v9 = vadd.f32 %v20043_v7, %v11185_v6  ;;  %v20051_v54 = vadd.f32 %v10881_v0, %v19789_v22 }
 0x698   :  { %v11187_v18 = vadd.f32 %v20051_v54, %v11186_v9 }
 0x69a   :  { %v11188_v53 = vadd.f32 %v20040_v62, %v11187_v18  ;;  %v14164_v3 = vpop.f32.mrb[40].mxu1 }
 0x69b   :  { %v20056_v26 = vadd.f32 %v14164_v3, %v19803_v30  ;;  %v10894_v58 = vpop.f32.mrb[41].mxu1 }
 0x69c   :  { %v20059_v39 = vadd.f32 %v10894_v58, %v19805_v17  ;;  %v11189_v43 = vadd.f32 %v20047_v4, %v11188_v53  ;;  %v14165_v11 = vpop.f32.mrb[42].mxu1 }
 0x69d   :  { %v20063_v41 = vadd.f32 %v14165_v11, %v19807_v46  ;;  %v10897_v22 = vpop.f32.mrb[43].mxu1 }
 0x69e   :  { %v11190_v25 = vadd.f32 %v20059_v39, %v11189_v43  ;;  %v20067_v23 = vadd.f32 %v10897_v22, %v19811_v42 }
 0x6a0   :  { %v11191_v36 = vadd.f32 %v20067_v23, %v11190_v25 }
 0x6a2   :  { %v11192_v30 = vadd.f32 %v20056_v26, %v11191_v36  ;;  %v14168_v38 = vpop.f32.mrb[44].mxu1 }
 0x6a3   :  { %v20072_v17 = vadd.f32 %v14168_v38, %v19825_v2  ;;  %v10910_v24 = vpop.f32.mrb[45].mxu1 }
 0x6a4   :  { %v20075_v45 = vadd.f32 %v10910_v24, %v19827_v1  ;;  %v11193_v46 = vadd.f32 %v20063_v41, %v11192_v30  ;;  %v14169_v47 = vpop.f32.mrb[46].mxu1 }
 0x6a5   :  { %v20079_v57 = vadd.f32 %v14169_v47, %v19829_v60  ;;  %v10913_v42 = vpop.f32.mrb[47].mxu1 }
 0x6a6   :  { %v11194_v5 = vadd.f32 %v20075_v45, %v11193_v46  ;;  %v20083_v21 = vadd.f32 %v10913_v42, %v19833_v32 }
 0x6a8   :  { %v11195_v34 = vadd.f32 %v20083_v21, %v11194_v5  ;;  %v22271_v5 = vld [vmem:[#allocation25_spill] sm:$0xff] }
 0x6aa   :  { %v11196_v2 = vadd.f32 %v20072_v17, %v11195_v34  ;;  %v14172_v40 = vpop.f32.mrb[48].mxu1 }
 0x6ab   :  { %v20088_v1 = vadd.f32 %v14172_v40, %v19847_v55  ;;  %v10926_v16 = vpop.f32.mrb[49].mxu1  ;;  %v22273_v40 = vld [vmem:[#allocation22_spill] sm:$0xff] }
 0x6ac   :  { %v20091_v49 = vadd.f32 %v10926_v16, %v19853_v13  ;;  %v11197_v60 = vadd.f32 %v20079_v57, %v11196_v2  ;;  %v14173_v27 = vpop.f32.mrb[50].mxu1 }
 0x6ad   :  { %v20095_v56 = vadd.f32 %v14173_v27, %v19855_v12  ;;  %v10929_v32 = vpop.f32.mrb[51].mxu1 }
 0x6ae   :  { %v11198_v29 = vadd.f32 %v20091_v49, %v11197_v60  ;;  %v20099_v28 = vadd.f32 %v10929_v32, %v19857_v20  ;;  %v22275_v32 = vld [vmem:[#allocation7_spill] sm:$0xff] }
 0x6b0   :  { %v11199_v52 = vadd.f32 %v20099_v28, %v11198_v29 }
 0x6b2   :  { %v11200_v55 = vadd.f32 %v20088_v1, %v11199_v52  ;;  %v14176_v59 = vpop.f32.mrb[52].mxu1  ;;  %v22277_v52 = vld [vmem:[#allocation6_spill] sm:$0xff] }
 0x6b3   :  { %v20104_v13 = vadd.f32 %v14176_v59, %v19869_v8  ;;  %v10942_v6 = vpop.f32.mrb[53].mxu1 }
 0x6b4   :  { %v20107_v61 = vadd.f32 %v10942_v6, %v19871_v14  ;;  %v11201_v12 = vadd.f32 %v20095_v56, %v11200_v55  ;;  %v14177_v0 = vpop.f32.mrb[54].mxu1 }
 0x6b5   :  { %v20111_v9 = vadd.f32 %v14177_v0, %v19873_v51  ;;  %v10945_v20 = vpop.f32.mrb[55].mxu1 }
 0x6b6   :  { %v11202_v18 = vadd.f32 %v20107_v61, %v11201_v12  ;;  %v20115_v53 = vadd.f32 %v10945_v20, %v19877_v10  ;;  %v22279_v12 = vld [vmem:[#allocation3_spill] sm:$0xff] }
 0x6b8   :  { %v11203_v3 = vadd.f32 %v20115_v53, %v11202_v18 }
 0x6ba   :  { %v11204_v8 = vadd.f32 %v20104_v13, %v11203_v3  ;;  %v14180_v58 = vpop.f32.mrb[56].mxu1  ;;  %v22281_v3 = vld [vmem:[#allocation5_spill] sm:$0xff] }
 0x6bb   :  { %v20120_v14 = vadd.f32 %v14180_v58, %v19891_v44  ;;  %v10958_v43 = vpop.f32.mrb[57].mxu1 }
 0x6bc   :  { %v20123_v11 = vadd.f32 %v10958_v43, %v19893_v19  ;;  %v11205_v51 = vadd.f32 %v20111_v9, %v11204_v8  ;;  %v14181_v22 = vpop.f32.mrb[58].mxu1 }
 0x6bd   :  { %22267 = vst [vmem:[#allocation18_spill] sm:$0xff] %v20120_v14  ;;  %v20127_v25 = vadd.f32 %v14181_v22, %v19895_v37  ;;  %v10961_v10 = vpop.f32.mrb[59].mxu1  ;;  %v22283_v22 = vld [vmem:[#allocation10_spill] sm:$0xff] }
 0x6be   :  { %v11206_v36 = vadd.f32 %v20123_v11, %v11205_v51  ;;  %v20131_v30 = vadd.f32 %v10961_v10, %v19899_v31 }
 0x6bf   :  { %22268 = vst [vmem:[#allocation23_spill] sm:$0xff] %v20127_v25 }
 0x6c0   :  { %v11207_v38 = vadd.f32 %v20131_v30, %v11206_v36 }
 0x6c2   :  { %v11208_v44 = vadd.f32 %v20120_v14, %v11207_v38  ;;  %v14184_v24 = vpop.f32.mrb[60].mxu1  ;;  %v22285_v38 = vld [vmem:[#allocation12_spill] sm:$0xff] }
 0x6c3   :  { %v20136_v19 = vadd.f32 %v14184_v24, %v19913_v33  ;;  %v10974_v46 = vpop.f32.mrb[61].mxu1 }
 0x6c4   :  { %v20139_v47 = vadd.f32 %v10974_v46, %v19915_v48  ;;  %v11209_v37 = vadd.f32 %v20127_v25, %v11208_v44  ;;  %v14185_v42 = vpop.f32.mrb[62].mxu1 }
 0x6c5   :  { %22269 = vst [vmem:[#allocation19_spill] sm:$0xff] %v20136_v19  ;;  %v20143_v34 = vadd.f32 %v14185_v42, %v22271_v5  ;;  %v10977_v31 = vpop.f32.mrb[63].mxu1 }
 0x6c6   :  { %22270 = vst [vmem:[#allocation26_spill] sm:$0xff] %v20139_v47  ;;  %v11210_v2 = vadd.f32 %v20139_v47, %v11209_v37  ;;  %v20147_v16 = vadd.f32 %v10977_v31, %v22273_v40  ;;  %v22287_v37 = vld [vmem:[#allocation11_spill] sm:$0xff]  ;;  %v22319_v47 = vld [vmem:[#allocation41_spill] sm:$0xff] }
 0x6c7   :  { %22272 = vst [vmem:[#allocation21_spill] sm:$0xff] %v20143_v34 }
 0x6c8   :  { %22274 = vst [vmem:[#allocation25_spill] sm:$0xff] %v20147_v16  ;;  %v11211_v60 = vadd.f32 %v20147_v16, %v11210_v2  ;;  %v22289_v2 = vld [vmem:[#allocation17_spill] sm:$0xff]  ;;  %v22318_v16 = vld [vmem:[#allocation14_spill] sm:$0xff] }
 0x6ca   :  { %v11212_v33 = vadd.f32 %v20136_v19, %v11211_v60  ;;  %v14188_v27 = vpop.f32.mrb[0].mxu1 }
 0x6cb   :  { %v20152_v48 = vadd.f32 %v14188_v27, %v22275_v32  ;;  %v10990_v29 = vpop.f32.mrb[1].mxu1  ;;  %v22291_v32 = vld [vmem:[#allocation20_spill] sm:$0xff] }
 0x6cc   :  { %v20155_v55 = vadd.f32 %v10990_v29, %v22277_v52  ;;  %v11213_v59 = vadd.f32 %v20143_v34, %v11212_v33  ;;  %v14189_v6 = vpop.f32.mrb[2].mxu1 }
 0x6cd   :  { %22276 = vst [vmem:[#allocation22_spill] sm:$0xff] %v20152_v48  ;;  %v20159_v0 = vadd.f32 %v14189_v6, %v22279_v12  ;;  %v10993_v20 = vpop.f32.mrb[3].mxu1 }
 0x6ce   :  { %22278 = vst [vmem:[#allocation7_spill] sm:$0xff] %v20155_v55  ;;  %v11214_v18 = vadd.f32 %v20155_v55, %v11213_v59  ;;  %v20163_v8 = vadd.f32 %v10993_v20, %v22281_v3  ;;  %v22293_v59 = vld [vmem:[#allocation9_spill] sm:$0xff]  ;;  %v22315_v55 = vld [vmem:[#allocation16_spill] sm:$0xff] }
 0x6cf   :  { %22280 = vst [vmem:[#allocation6_spill] sm:$0xff] %v20159_v0 }
 0x6d0   :  { %22282 = vst [vmem:[#allocation3_spill] sm:$0xff] %v20163_v8  ;;  %v11215_v58 = vadd.f32 %v20163_v8, %v11214_v18  ;;  %v22295_v18 = vld [vmem:[#allocation15_spill] sm:$0xff] }
 0x6d1   :  { %v22314_v8 = vld [vmem:[#allocation39_spill] sm:$0xff] }
 0x6d2   :  { %v11216_v43 = vadd.f32 %v20152_v48, %v11215_v58  ;;  %v14192_v51 = vpop.f32.mrb[4].mxu1 }
 0x6d3   :  { %v20168_v10 = vadd.f32 %v14192_v51, %v22283_v22  ;;  %v11006_v36 = vpop.f32.mrb[5].mxu1  ;;  %v22297_v51 = vld [vmem:[#allocation8_spill] sm:$0xff] }
 0x6d4   :  { %v20171_v44 = vadd.f32 %v11006_v36, %v22285_v38  ;;  %v11217_v24 = vadd.f32 %v20159_v0, %v11216_v43  ;;  %v14193_v46 = vpop.f32.mrb[6].mxu1 }
 0x6d5   :  { %22284 = vst [vmem:[#allocation5_spill] sm:$0xff] %v20168_v10  ;;  %v20175_v42 = vadd.f32 %v14193_v46, %v22287_v37  ;;  %v11009_v5 = vpop.f32.mrb[7].mxu1  ;;  %v22299_v46 = vld [vmem:[#allocation4_spill] sm:$0xff] }
 0x6d6   :  { %22286 = vst [vmem:[#allocation10_spill] sm:$0xff] %v20171_v44  ;;  %v11218_v31 = vadd.f32 %v20171_v44, %v11217_v24  ;;  %v20179_v40 = vadd.f32 %v11009_v5, %v22289_v2  ;;  %v22311_v44 = vld [vmem:[#allocation37_spill] sm:$0xff] }
 0x6d7   :  { %22288 = vst [vmem:[#allocation12_spill] sm:$0xff] %v20175_v42 }
 0x6d8   :  { %22290 = vst [vmem:[#allocation11_spill] sm:$0xff] %v20179_v40  ;;  %v11219_v60 = vadd.f32 %v20179_v40, %v11218_v31  ;;  %v22300_v31 = vld [vmem:[#allocation27_spill] sm:$0xff] }
 0x6da   :  { %v11220_v33 = vadd.f32 %v20168_v10, %v11219_v60  ;;  %v14196_v27 = vpop.f32.mrb[8].mxu1 }
 0x6db   :  { %v20184_v29 = vadd.f32 %v14196_v27, %v22291_v32  ;;  %v11022_v52 = vpop.f32.mrb[9].mxu1  ;;  %v22302_v27 = vld [vmem:[#allocation24_spill] sm:$0xff] }
 0x6dc   :  { %v20187_v6 = vadd.f32 %v11022_v52, %v22293_v59  ;;  %v11221_v12 = vadd.f32 %v20175_v42, %v11220_v33  ;;  %v14197_v20 = vpop.f32.mrb[10].mxu1  ;;  %v22309_v42 = vld [vmem:[#allocation36_spill] sm:$0xff] }
 0x6dd   :  { %22292 = vst [vmem:[#allocation17_spill] sm:$0xff] %v20184_v29  ;;  %v20191_v3 = vadd.f32 %v14197_v20, %v22295_v18  ;;  %v11025_v58 = vpop.f32.mrb[11].mxu1 }
 0x6de   :  { %22294 = vst [vmem:[#allocation20_spill] sm:$0xff] %v20187_v6  ;;  %v11222_v43 = vadd.f32 %v20187_v6, %v11221_v12  ;;  %v20195_v22 = vadd.f32 %v11025_v58, %v22297_v51  ;;  %v22303_v12 = vld [vmem:[#allocation31_spill] sm:$0xff]  ;;  %v22304_v51 = vld [vmem:[#allocation28_spill] sm:$0xff] }
 0x6df   :  { %22296 = vst [vmem:[#allocation9_spill] sm:$0xff] %v20191_v3 }
 0x6e0   :  { %22298 = vst [vmem:[#allocation15_spill] sm:$0xff] %v20195_v22  ;;  %v11223_v36 = vadd.f32 %v20195_v22, %v11222_v43  ;;  %v22307_v22 = vld [vmem:[#allocation33_spill] sm:$0xff] }
 0x6e2   :  { %v11224_v38 = vadd.f32 %v20184_v29, %v11223_v36  ;;  %v14200_v24 = vpop.f32.mrb[12].mxu1 }
 0x6e3   :  { %v20200_v37 = vadd.f32 %v14200_v24, %v22299_v46  ;;  %v11038_v5 = vpop.f32.mrb[13].mxu1  ;;  %v22305_v46 = vld [vmem:[#allocation32_spill] sm:$0xff] }
 0x6e4   :  { %v20203_v2 = vadd.f32 %v11038_v5, %v22300_v31  ;;  %v11225_v60 = vadd.f32 %v20191_v3, %v11224_v38  ;;  %v14201_v33 = vpop.f32.mrb[14].mxu1  ;;  %v22306_v3 = vld [vmem:[#allocation29_spill] sm:$0xff] }
 0x6e5   :  { %v20207_v32 = vadd.f32 %v14201_v33, %v22302_v27  ;;  %v11041_v52 = vpop.f32.mrb[15].mxu1 }
 0x6e6   :  { %22301 = vst [vmem:[#allocation8_spill] sm:$0xff] %v20203_v2  ;;  %v11226_v59 = vadd.f32 %v20203_v2, %v11225_v60  ;;  %v14361_v20 = vadd.f32 %v11041_v52, %v22303_v12  ;;  %v22308_v12 = vld [vmem:[#allocation30_spill] sm:$0xff] }
 0x6e8   :  { %v11227_v18 = vadd.f32 %v14361_v20, %v11226_v59 }
 0x6ea   :  { %v11228_v58 = vadd.f32 %v20200_v37, %v11227_v18  ;;  %v14204_v43 = vpop.f32.mrb[16].mxu1 }
 0x6eb   :  { %v14362_v36 = vadd.f32 %v14204_v43, %v22304_v51  ;;  %v11054_v24 = vpop.f32.mrb[17].mxu1 }
 0x6ec   :  { %v14363_v5 = vadd.f32 %v11054_v24, %v22305_v46  ;;  %v11229_v38 = vadd.f32 %v20207_v32, %v11228_v58  ;;  %v14205_v31 = vpop.f32.mrb[18].mxu1  ;;  %v22310_v24 = vld [vmem:[#allocation34_spill] sm:$0xff] }
 0x6ed   :  { %v14364_v33 = vadd.f32 %v14205_v31, %v22306_v3  ;;  %v11057_v27 = vpop.f32.mrb[19].mxu1 }
 0x6ee   :  { %v11230_v29 = vadd.f32 %v14363_v5, %v11229_v38  ;;  %v14365_v60 = vadd.f32 %v11057_v27, %v22307_v22  ;;  %v22312_v22 = vld [vmem:[#allocation35_spill] sm:$0xff]  ;;  %v22313_v27 = vld [vmem:[#allocation38_spill] sm:$0xff] }
 0x6f0   :  { %v11231_v2 = vadd.f32 %v14365_v60, %v11230_v29 }
 0x6f2   :  { %v11232_v52 = vadd.f32 %v14362_v36, %v11231_v2  ;;  %v14208_v59 = vpop.f32.mrb[20].mxu1 }
 0x6f3   :  { %v14366_v18 = vadd.f32 %v14208_v59, %v22308_v12  ;;  %v11070_v6 = vpop.f32.mrb[21].mxu1 }
 0x6f4   :  { %v14367_v43 = vadd.f32 %v11070_v6, %v22309_v42  ;;  %v11233_v51 = vadd.f32 %v14364_v33, %v11232_v52  ;;  %v14209_v10 = vpop.f32.mrb[22].mxu1 }
 0x6f5   :  { %v14368_v46 = vadd.f32 %v14209_v10, %v22310_v24  ;;  %v11073_v58 = vpop.f32.mrb[23].mxu1 }
 0x6f6   :  { %v11234_v40 = vadd.f32 %v14367_v43, %v11233_v51  ;;  %v14369_v3 = vadd.f32 %v11073_v58, %v22311_v44  ;;  %v22316_v44 = vld [vmem:[#allocation40_spill] sm:$0xff] }
 0x6f8   :  { %v11235_v31 = vadd.f32 %v14369_v3, %v11234_v40 }
 0x6fa   :  { %v11236_v38 = vadd.f32 %v14366_v18, %v11235_v31  ;;  %v14212_v0 = vpop.f32.mrb[24].mxu1  ;;  %v22317_v31 = vld [vmem:[#allocation13_spill] sm:$0xff] }
 0x6fb   :  { %v14370_v29 = vadd.f32 %v14212_v0, %v22312_v22  ;;  %v11086_v2 = vpop.f32.mrb[25].mxu1 }
 0x6fc   :  { %v14371_v48 = vadd.f32 %v11086_v2, %v22313_v27  ;;  %v11237_v59 = vadd.f32 %v14368_v46, %v11236_v38  ;;  %v14213_v12 = vpop.f32.mrb[26].mxu1 }
 0x6fd   :  { %v14372_v42 = vadd.f32 %v14213_v12, %v22314_v8  ;;  %v11089_v6 = vpop.f32.mrb[27].mxu1 }
 0x6fe   :  { %v11238_v52 = vadd.f32 %v14371_v48, %v11237_v59  ;;  %v14373_v10 = vadd.f32 %v11089_v6, %v22315_v55 }
 0x700   :  { %v11239_v24 = vadd.f32 %v14373_v10, %v11238_v52 }
 0x702   :  { %v11240_v51 = vadd.f32 %v14370_v29, %v11239_v24  ;;  %v14216_v34 = vpop.f32.mrb[28].mxu1 }
 0x703   :  { %v14374_v40 = vadd.f32 %v14216_v34, %v22316_v44  ;;  %v11102_v58 = vpop.f32.mrb[29].mxu1 }
 0x704   :  { %v14375_v19 = vadd.f32 %v11102_v58, %v22317_v31  ;;  %v11241_v0 = vadd.f32 %v14372_v42, %v11240_v51  ;;  %v14217_v22 = vpop.f32.mrb[30].mxu1 }
 0x705   :  { %v14376_v2 = vadd.f32 %v14217_v22, %v22318_v16  ;;  %v11105_v38 = vpop.f32.mrb[31].mxu1 }
 0x706   :  { %v11242_v27 = vadd.f32 %v14375_v19, %v11241_v0  ;;  %v14377_v8 = vadd.f32 %v11105_v38, %v22319_v47 }
 0x708   :  { %v11243_v12 = vadd.f32 %v14377_v8, %v11242_v27 }
 0x70a   :  { %v11244_v59 = vadd.f32 %v14374_v40, %v11243_v12 }
 0x70c   :  { %v11245_v25 = vadd.f32 %v14376_v2, %v11244_v59 }
 0x70e   :  { %v11246_v55 = vrot.slane %v11245_v25, 4 }
 0x710   :  { %v11247_v6 = vadd.f32 %v11246_v55, %v11245_v25 }
 0x712   :  { %v11248_v52 = vrot.slane %v11247_v6, 2 }
 0x714   :  { %v11249_v24 = vadd.f32 %v11248_v52, %v11247_v6 }
 0x716   :  { %v11250_v14 = vrot.slane %v11249_v24, 1 }
 0x718   :  { %v11251_v34 = vadd.f32 %v11250_v14, %v11249_v24 }
 0x71a   :  { %v20229_v44 = vmul.f32 0.001953125, %v11251_v34 }
 0x71c   :  { %v20232_v51 = vsub.f32 %v14361_v20, %v20229_v44  ;;  %v20236_v16 = vsub.f32 %v20200_v37, %v20229_v44  ;;  %v20240_v47 = vsub.f32 %v20207_v32, %v20229_v44  ;;  %v20243_v58 = vsub.f32 %v14363_v5, %v20229_v44 }
 0x71d   :  { %v20246_v25 = vsub.f32 %v14365_v60, %v20229_v44  ;;  %v20249_v14 = vsub.f32 %v14362_v36, %v20229_v44  ;;  %v20252_v20 = vsub.f32 %v14364_v33, %v20229_v44  ;;  %v20255_v31 = vsub.f32 %v14367_v43, %v20229_v44 }
 0x71e   :  { %22320 = vst [vmem:[#allocation4_spill] sm:$0xff] %v20232_v51  ;;  %22321 = vst [vmem:[#allocation27_spill] sm:$0xff] %v20236_v16  ;;  %v20258_v37 = vsub.f32 %v14369_v3, %v20229_v44  ;;  %v20261_v32 = vsub.f32 %v14366_v18, %v20229_v44  ;;  %v20264_v5 = vsub.f32 %v14368_v46, %v20229_v44 }
 0x71f   :  { %22322 = vst [vmem:[#allocation24_spill] sm:$0xff] %v20240_v47  ;;  %22323 = vst [vmem:[#allocation31_spill] sm:$0xff] %v20243_v58  ;;  %v20267_v60 = vsub.f32 %v14371_v48, %v20229_v44  ;;  %v20270_v36 = vsub.f32 %v14373_v10, %v20229_v44  ;;  %v20273_v33 = vsub.f32 %v14370_v29, %v20229_v44 }
 0x720   :  { %22324 = vst [vmem:[#allocation28_spill] sm:$0xff] %v20246_v25  ;;  %22325 = vst [vmem:[#allocation32_spill] sm:$0xff] %v20249_v14  ;;  %v20276_v43 = vsub.f32 %v14372_v42, %v20229_v44  ;;  %v20279_v3 = vsub.f32 %v14375_v19, %v20229_v44  ;;  %v20282_v18 = vsub.f32 %v14377_v8, %v20229_v44 }
 0x721   :  { %22326 = vst [vmem:[#allocation29_spill] sm:$0xff] %v20252_v20  ;;  %22327 = vst [vmem:[#allocation33_spill] sm:$0xff] %v20255_v31  ;;  %v20285_v46 = vsub.f32 %v14374_v40, %v20229_v44  ;;  %v20288_v48 = vsub.f32 %v14376_v2, %v20229_v44  ;;  %v20292_v10 = vsub.f32 %v20028_v63, %v20229_v44 }
 0x722   :  { %22328 = vst [vmem:[#allocation30_spill] sm:$0xff] %v20258_v37  ;;  %22329 = vst [vmem:[#allocation36_spill] sm:$0xff] %v20261_v32  ;;  %v20296_v29 = vsub.f32 %v20034_v35, %v20229_v44  ;;  %v20300_v19 = vsub.f32 %v20025_v15, %v20229_v44  ;;  %v20308_v0 = vsub.f32 %v20031_v50, %v20229_v44 }
 0x723   :  { %22330 = vst [vmem:[#allocation34_spill] sm:$0xff] %v20264_v5  ;;  %22331 = vst [vmem:[#allocation37_spill] sm:$0xff] %v20267_v60  ;;  %v11317_v42 = vmul.f32 %v20292_v10, %v20292_v10  ;;  %v20312_v63 = vsub.f32 %v20043_v7, %v20229_v44  ;;  %v20318_v15 = vsub.f32 %v20051_v54, %v20229_v44 }
 0x724   :  { %22332 = vst [vmem:[#allocation35_spill] sm:$0xff] %v20270_v36  ;;  %22333 = vst [vmem:[#allocation38_spill] sm:$0xff] %v20273_v33  ;;  %v11318_v40 = vmul.f32 %v20296_v29, %v20296_v29  ;;  %v11319_v35 = vmul.f32 %v20300_v19, %v20300_v19  ;;  %v11320_v2 = vmul.f32 %v20308_v0, %v20308_v0 }
 0x725   :  { %22334 = vst [vmem:[#allocation39_spill] sm:$0xff] %v20276_v43  ;;  %22335 = vst [vmem:[#allocation16_spill] sm:$0xff] %v20279_v3  ;;  %v20324_v50 = vsub.f32 %v20040_v62, %v20229_v44  ;;  %v11321_v7 = vmul.f32 %v20312_v63, %v20312_v63  ;;  %v20330_v8 = vsub.f32 %v20047_v4, %v20229_v44 }
 0x726   :  { %22336 = vst [vmem:[#allocation40_spill] sm:$0xff] %v20285_v46  ;;  %22337 = vst [vmem:[#allocation13_spill] sm:$0xff] %v20288_v48  ;;  %v11381_v22 = vadd.f32 %v11318_v40, %v11317_v42  ;;  %v11322_v54 = vmul.f32 %v20318_v15, %v20318_v15  ;;  %v20336_v59 = vsub.f32 %v20059_v39, %v20229_v44 }
 0x727   :  { %22338 = vst [vmem:[#allocation14_spill] sm:$0xff] %v20292_v10  ;;  %22339 = vst [vmem:[#allocation41_spill] sm:$0xff] %v20296_v29  ;;  %v11323_v62 = vmul.f32 %v20324_v50, %v20324_v50  ;;  %v20342_v6 = vsub.f32 %v20067_v23, %v20229_v44  ;;  %v11324_v4 = vmul.f32 %v20330_v8, %v20330_v8 }
 0x728   :  { %22340 = vst [vmem:[#allocation42_spill] sm:$0xff] %v20300_v19  ;;  %22341 = vst [vmem:[#allocation43_spill] sm:$0xff] %v20308_v0  ;;  %v11382_v38 = vadd.f32 %v11381_v22, %v11319_v35  ;;  %v20348_v24 = vsub.f32 %v20056_v26, %v20229_v44  ;;  %v11325_v39 = vmul.f32 %v20336_v59, %v20336_v59  ;;  %v22392_v0 = vld [vmem:[#allocation12_spill] sm:$0xff] }
 0x729   :  { %22342 = vst [vmem:[#allocation44_spill] sm:$0xff] %v20312_v63  ;;  %22343 = vst [vmem:[#allocation45_spill] sm:$0xff] %v20318_v15  ;;  %v20354_v42 = vsub.f32 %v20063_v41, %v20229_v44  ;;  %v11326_v23 = vmul.f32 %v20342_v6, %v20342_v6  ;;  %v20360_v35 = vsub.f32 %v20075_v45, %v20229_v44  ;;  %v22386_v63 = vld [vmem:[#allocation11_spill] sm:$0xff]  ;;  %v22396_v19 = vld [vmem:[#allocation20_spill] sm:$0xff] }
 0x72a   :  { %22344 = vst [vmem:[#allocation46_spill] sm:$0xff] %v20324_v50  ;;  %v11383_v27 = vadd.f32 %v11382_v38, %v11320_v2  ;;  %22345 = vst [vmem:[#allocation47_spill] sm:$0xff] %v20330_v8  ;;  %v11327_v26 = vmul.f32 %v20348_v24, %v20348_v24  ;;  %v20366_v2 = vsub.f32 %v20083_v21, %v20229_v44 }
 0x72b   :  { %22346 = vst [vmem:[#allocation48_spill] sm:$0xff] %v20336_v59  ;;  %22347 = vst [vmem:[#allocation49_spill] sm:$0xff] %v20342_v6  ;;  %v11328_v41 = vmul.f32 %v20354_v42, %v20354_v42  ;;  %v11329_v45 = vmul.f32 %v20360_v35, %v20360_v35 }
 0x72c   :  { %v11384_v12 = vadd.f32 %v11383_v27, %v11321_v7  ;;  %22348 = vst [vmem:[#allocation50_spill] sm:$0xff] %v20348_v24  ;;  %22349 = vst [vmem:[#allocation51_spill] sm:$0xff] %v20354_v42  ;;  %v20372_v7 = vsub.f32 %v20072_v17, %v20229_v44  ;;  %v11330_v21 = vmul.f32 %v20366_v2, %v20366_v2  ;;  %v22380_v42 = vld [vmem:[#allocation22_spill] sm:$0xff] }
 0x72d   :  { %22350 = vst [vmem:[#allocation52_spill] sm:$0xff] %v20360_v35  ;;  %22351 = vst [vmem:[#allocation53_spill] sm:$0xff] %v20366_v2  ;;  %v22376_v35 = vld [vmem:[#allocation7_spill] sm:$0xff]  ;;  %v22382_v24 = vld [vmem:[#allocation6_spill] sm:$0xff] }
 0x72e   :  { %v11385_v55 = vadd.f32 %v11384_v12, %v11322_v54  ;;  %22352 = vst [vmem:[#allocation54_spill] sm:$0xff] %v20372_v7  ;;  %v20378_v54 = vsub.f32 %v20079_v57, %v20229_v44  ;;  %v11331_v17 = vmul.f32 %v20372_v7, %v20372_v7 }
 0x730   :  { %v11386_v52 = vadd.f32 %v11385_v55, %v11323_v62  ;;  %22353 = vst [vmem:[#allocation55_spill] sm:$0xff] %v20378_v54  ;;  %v20384_v62 = vsub.f32 %v20091_v49, %v20229_v44  ;;  %v11332_v57 = vmul.f32 %v20378_v54, %v20378_v54 }
 0x732   :  { %v11387_v34 = vadd.f32 %v11386_v52, %v11324_v4  ;;  %22354 = vst [vmem:[#allocation56_spill] sm:$0xff] %v20384_v62  ;;  %v20390_v4 = vsub.f32 %v20099_v28, %v20229_v44  ;;  %v11333_v49 = vmul.f32 %v20384_v62, %v20384_v62 }
 0x734   :  { %v11388_v40 = vadd.f32 %v11387_v34, %v11325_v39  ;;  %22355 = vst [vmem:[#allocation57_spill] sm:$0xff] %v20390_v4  ;;  %v20396_v39 = vsub.f32 %v20088_v1, %v20229_v44  ;;  %v11334_v28 = vmul.f32 %v20390_v4, %v20390_v4 }
 0x736   :  { %v11389_v22 = vadd.f32 %v11388_v40, %v11326_v23  ;;  %22356 = vst [vmem:[#allocation58_spill] sm:$0xff] %v20396_v39  ;;  %v20400_v23 = vpop.f32.mrb[128].mxu0  ;;  %v20404_v40 = vsub.f32 %v20095_v56, %v20229_v44  ;;  %v11335_v1 = vmul.f32 %v20396_v39, %v20396_v39  ;;  %v22372_v39 = vld [vmem:[#allocation19_spill] sm:$0xff] }
 0x738   :  { %v11390_v38 = vadd.f32 %v11389_v22, %v11327_v26  ;;  %22357 = vst [vmem:[#allocation59_spill] sm:$0xff] %v20404_v40  ;;  %v20410_v22 = vsub.f32 %v20107_v61, %v20229_v44  ;;  %v11336_v56 = vmul.f32 %v20404_v40, %v20404_v40  ;;  %v22370_v40 = vld [vmem:[#allocation25_spill] sm:$0xff] }
 0x73a   :  { %v11391_v27 = vadd.f32 %v11390_v38, %v11328_v41  ;;  %22358 = vst [vmem:[#allocation60_spill] sm:$0xff] %v20410_v22  ;;  %v20416_v38 = vsub.f32 %v20115_v53, %v20229_v44  ;;  %v11337_v61 = vmul.f32 %v20410_v22, %v20410_v22  ;;  %v20434_v53 = vsub.f32 %v20111_v9, %v20229_v44  ;;  %v22366_v22 = vld [vmem:[#allocation23_spill] sm:$0xff] }
 0x73c   :  { %v11392_v12 = vadd.f32 %v11391_v27, %v11329_v45  ;;  %22359 = vst [vmem:[#allocation61_spill] sm:$0xff] %v20416_v38  ;;  %v20420_v27 = vpop.f32.mrb[129].mxu0  ;;  %22361 = vst [vmem:[#allocation63_spill] sm:$0xff] %v20434_v53 }
 0x73e   :  { %v11393_v55 = vadd.f32 %v11392_v12, %v11330_v21  ;;  %v20424_v21 = vsub.f32 %v20104_v13, %v20229_v44 }
 0x740   :  { %v11394_v52 = vadd.f32 %v11393_v55, %v11331_v17  ;;  %22360 = vst [vmem:[#allocation62_spill] sm:$0xff] %v20424_v21  ;;  %v20428_v17 = vpop.f32.mrb[130].mxu0 }
 0x741   :  { %v20430_v55 = vpop.f32.mrb[131].mxu0 }
 0x742   :  { %v11395_v34 = vadd.f32 %v11394_v52, %v11332_v57  ;;  %v11338_v57 = vmul.f32 %v20416_v38, %v20416_v38 }
 0x744   :  { %v11396_v26 = vadd.f32 %v11395_v34, %v11333_v49  ;;  %v20438_v49 = vpop.f32.mrb[132].mxu0  ;;  %v20444_v34 = vsub.f32 %v20123_v11, %v20229_v44  ;;  %v22364_v11 = vld [vmem:[#allocation18_spill] sm:$0xff] }
 0x745   :  { %v20440_v13 = vpop.f32.mrb[133].mxu0 }
 0x746   :  { %v11397_v41 = vadd.f32 %v11396_v26, %v11334_v28  ;;  %22362 = vst [vmem:[#allocation64_spill] sm:$0xff] %v20444_v34  ;;  %v11339_v28 = vmul.f32 %v20424_v21, %v20424_v21 }
 0x748   :  { %v11398_v45 = vadd.f32 %v11397_v41, %v11335_v1  ;;  %v20448_v1 = vpop.f32.mrb[134].mxu0  ;;  %v20454_v41 = vsub.f32 %v20131_v30, %v20229_v44  ;;  %v20470_v30 = vsub.f32 %v22366_v22, %v20229_v44 }
 0x749   :  { %v20450_v9 = vpop.f32.mrb[135].mxu0 }
 0x74a   :  { %v11399_v12 = vadd.f32 %v11398_v45, %v11336_v56  ;;  %22363 = vst [vmem:[#allocation65_spill] sm:$0xff] %v20454_v41  ;;  %v11340_v56 = vmul.f32 %v20434_v53, %v20434_v53  ;;  %22367 = vst [vmem:[#allocation23_spill] sm:$0xff] %v20470_v30  ;;  %v11342_v53 = vmul.f32 %v20454_v41, %v20454_v41 }
 0x74b   :  { %v20490_v41 = vsub.f32 %v22370_v40, %v20229_v44  ;;  %v22374_v40 = vld [vmem:[#allocation21_spill] sm:$0xff] }
 0x74c   :  { %v11400_v52 = vadd.f32 %v11399_v12, %v11337_v61  ;;  %v20458_v61 = vpop.f32.mrb[136].mxu0  ;;  %v20462_v12 = vsub.f32 %v22364_v11, %v20229_v44  ;;  %v22368_v11 = vld [vmem:[#allocation26_spill] sm:$0xff]  ;;  %v20508_v54 = vsub.f32 %v22374_v40, %v20229_v44  ;;  %v22378_v40 = vld [vmem:[#allocation3_spill] sm:$0xff] }
 0x74d   :  { %v20466_v38 = vpop.f32.mrb[137].mxu0  ;;  %v20480_v4 = vsub.f32 %v22368_v11, %v20229_v44  ;;  %22371 = vst [vmem:[#allocation25_spill] sm:$0xff] %v20490_v41  ;;  %v20526_v6 = vsub.f32 %v22378_v40, %v20229_v44 }
 0x74e   :  { %v11401_v26 = vadd.f32 %v11400_v52, %v11338_v57  ;;  %22365 = vst [vmem:[#allocation18_spill] sm:$0xff] %v20462_v12  ;;  %v11341_v57 = vmul.f32 %v20444_v34, %v20444_v34  ;;  %22375 = vst [vmem:[#allocation21_spill] sm:$0xff] %v20508_v54 }
 0x74f   :  { %22369 = vst [vmem:[#allocation26_spill] sm:$0xff] %v20480_v4  ;;  %22379 = vst [vmem:[#allocation3_spill] sm:$0xff] %v20526_v6 }
 0x750   :  { %v11402_v45 = vadd.f32 %v11401_v26, %v11339_v28  ;;  %v20474_v26 = vpop.f32.mrb[138].mxu0 }
 0x751   :  { %v20476_v21 = vpop.f32.mrb[139].mxu0 }
 0x752   :  { %v11403_v52 = vadd.f32 %v11402_v45, %v11340_v56  ;;  %v11343_v56 = vmul.f32 %v20462_v12, %v20462_v12  ;;  %v20484_v34 = vpop.f32.mrb[140].mxu0  ;;  %v20500_v12 = vsub.f32 %v22372_v39, %v20229_v44  ;;  %v20516_v39 = vsub.f32 %v22376_v35, %v20229_v44 }
 0x753   :  { %v20486_v22 = vpop.f32.mrb[141].mxu0 }
 0x754   :  { %v11404_v28 = vadd.f32 %v11403_v52, %v11341_v57  ;;  %v11344_v57 = vmul.f32 %v20470_v30, %v20470_v30  ;;  %v20494_v62 = vpop.f32.mrb[142].mxu0  ;;  %22373 = vst [vmem:[#allocation19_spill] sm:$0xff] %v20500_v12  ;;  %22377 = vst [vmem:[#allocation7_spill] sm:$0xff] %v20516_v39 }
 0x755   :  { %v20496_v11 = vpop.f32.mrb[143].mxu0 }
 0x756   :  { %v11405_v45 = vadd.f32 %v11404_v28, %v11342_v53  ;;  %v11345_v53 = vmul.f32 %v20480_v4, %v20480_v4  ;;  %v20504_v2 = vpop.f32.mrb[144].mxu0  ;;  %v11347_v4 = vmul.f32 %v20500_v12, %v20500_v12  ;;  %v20536_v12 = vsub.f32 %v22380_v42, %v20229_v44  ;;  %v22384_v42 = vld [vmem:[#allocation10_spill] sm:$0xff] }
 0x757   :  { %v20512_v30 = vpop.f32.mrb[145].mxu0  ;;  %v20554_v8 = vsub.f32 %v22384_v42, %v20229_v44  ;;  %v22388_v42 = vld [vmem:[#allocation5_spill] sm:$0xff] }
 0x758   :  { %v11406_v52 = vadd.f32 %v11405_v45, %v11343_v56  ;;  %v11346_v56 = vmul.f32 %v20490_v41, %v20490_v41  ;;  %22381 = vst [vmem:[#allocation22_spill] sm:$0xff] %v20536_v12  ;;  %v20572_v29 = vsub.f32 %v22388_v42, %v20229_v44 }
 0x759   :  { %22385 = vst [vmem:[#allocation10_spill] sm:$0xff] %v20554_v8 }
 0x75a   :  { %v11407_v28 = vadd.f32 %v11406_v52, %v11344_v57  ;;  %v20520_v52 = vpop.f32.mrb[146].mxu0  ;;  %22389 = vst [vmem:[#allocation5_spill] sm:$0xff] %v20572_v29 }
 0x75b   :  { %v20522_v7 = vpop.f32.mrb[147].mxu0 }
 0x75c   :  { %v11408_v45 = vadd.f32 %v11407_v28, %v11345_v53  ;;  %v11348_v53 = vmul.f32 %v20508_v54, %v20508_v54  ;;  %v20530_v41 = vpop.f32.mrb[148].mxu0  ;;  %v20546_v54 = vsub.f32 %v22382_v24, %v20229_v44  ;;  %v20562_v24 = vsub.f32 %v22386_v63, %v20229_v44 }
 0x75d   :  { %v20532_v35 = vpop.f32.mrb[149].mxu0 }
 0x75e   :  { %v11409_v57 = vadd.f32 %v11408_v45, %v11346_v56  ;;  %v11349_v56 = vmul.f32 %v20516_v39, %v20516_v39  ;;  %v20540_v59 = vpop.f32.mrb[150].mxu0  ;;  %22383 = vst [vmem:[#allocation6_spill] sm:$0xff] %v20546_v54  ;;  %22387 = vst [vmem:[#allocation11_spill] sm:$0xff] %v20562_v24 }
 0x75f   :  { %v20542_v40 = vpop.f32.mrb[151].mxu0 }
 0x760   :  { %v11410_v28 = vadd.f32 %v11409_v57, %v11347_v4  ;;  %v11350_v4 = vmul.f32 %v20526_v6, %v20526_v6  ;;  %v20550_v15 = vpop.f32.mrb[152].mxu0  ;;  %v11352_v6 = vmul.f32 %v20546_v54, %v20546_v54  ;;  %v20582_v54 = vsub.f32 %v22392_v0, %v20229_v44  ;;  %v22399_v0 = vld [vmem:[#allocation15_spill] sm:$0xff] }
 0x761   :  { %v20558_v39 = vpop.f32.mrb[153].mxu0 }
 0x762   :  { %v11411_v45 = vadd.f32 %v11410_v28, %v11348_v53  ;;  %v11351_v53 = vmul.f32 %v20536_v12, %v20536_v12  ;;  %22393 = vst [vmem:[#allocation12_spill] sm:$0xff] %v20582_v54 }
 0x764   :  { %v11412_v57 = vadd.f32 %v11411_v45, %v11349_v56  ;;  %v20566_v45 = vpop.f32.mrb[154].mxu0 }
 0x765   :  { %v20568_v50 = vpop.f32.mrb[155].mxu0 }
 0x766   :  { %v11413_v28 = vadd.f32 %v11412_v57, %v11350_v4  ;;  %v11353_v4 = vmul.f32 %v20554_v8, %v20554_v8  ;;  %v20576_v12 = vpop.f32.mrb[156].mxu0  ;;  %v20592_v8 = vsub.f32 %v22396_v19, %v20229_v44 }
 0x767   :  { %22390 = vst [vmem:[#allocation66_spill] sm:$0xff] %v20576_v12  ;;  %v20578_v63 = vpop.f32.mrb[157].mxu0  ;;  %v20600_v12 = vsub.f32 %v22399_v0, %v20229_v44  ;;  %v22405_v0 = vld [vmem:[#allocation9_spill] sm:$0xff] }
 0x768   :  { %v11414_v56 = vadd.f32 %v11413_v28, %v11351_v53  ;;  %22391 = vst [vmem:[#allocation67_spill] sm:$0xff] %v20578_v63  ;;  %v11354_v53 = vmul.f32 %v20562_v24, %v20562_v24  ;;  %v20586_v10 = vpop.f32.mrb[158].mxu0  ;;  %22397 = vst [vmem:[#allocation20_spill] sm:$0xff] %v20592_v8 }
 0x769   :  { %22394 = vst [vmem:[#allocation68_spill] sm:$0xff] %v20586_v10  ;;  %v20588_v42 = vpop.f32.mrb[159].mxu0  ;;  %22400 = vst [vmem:[#allocation15_spill] sm:$0xff] %v20600_v12  ;;  %v20618_v10 = vsub.f32 %v22405_v0, %v20229_v44 }
 0x76a   :  { %v11415_v57 = vadd.f32 %v11414_v56, %v11352_v6  ;;  %22395 = vst [vmem:[#allocation69_spill] sm:$0xff] %v20588_v42  ;;  %v11355_v6 = vmul.f32 %v20572_v29, %v20572_v29  ;;  %v20596_v63 = vpop.f32.mrb[160].mxu0  ;;  %v22402_v42 = vld [vmem:[#allocation17_spill] sm:$0xff]  ;;  %v11357_v29 = vmul.f32 %v20592_v8, %v20592_v8 }
 0x76b   :  { %22398 = vst [vmem:[#allocation70_spill] sm:$0xff] %v20596_v63  ;;  %v20604_v24 = vpop.f32.mrb[161].mxu0  ;;  %v20608_v19 = vsub.f32 %v22402_v42, %v20229_v44  ;;  %22406 = vst [vmem:[#allocation9_spill] sm:$0xff] %v20618_v10 }
 0x76c   :  { %v11416_v28 = vadd.f32 %v11415_v57, %v11353_v4  ;;  %v11356_v4 = vmul.f32 %v20582_v54, %v20582_v54  ;;  %22401 = vst [vmem:[#allocation71_spill] sm:$0xff] %v20604_v24  ;;  %v22409_v24 = vld [vmem:[#allocation8_spill] sm:$0xff] }
 0x76d   :  { %22403 = vst [vmem:[#allocation17_spill] sm:$0xff] %v20608_v19  ;;  %v20628_v8 = vsub.f32 %v22409_v24, %v20229_v44  ;;  %v11362_v24 = vmul.f32 %v20232_v51, %v20232_v51 }
 0x76e   :  { %v11417_v56 = vadd.f32 %v11416_v28, %v11354_v53  ;;  %v20612_v28 = vpop.f32.mrb[162].mxu0 }
 0x76f   :  { %v20614_v63 = vpop.f32.mrb[163].mxu0  ;;  %22410 = vst [vmem:[#allocation8_spill] sm:$0xff] %v20628_v8 }
 0x770   :  { %v11418_v57 = vadd.f32 %v11417_v56, %v11355_v6  ;;  %22404 = vst [vmem:[#allocation72_spill] sm:$0xff] %v20614_v63  ;;  %v11358_v6 = vmul.f32 %v20600_v12, %v20600_v12  ;;  %v20622_v54 = vpop.f32.mrb[164].mxu0  ;;  %v11360_v12 = vmul.f32 %v20618_v10, %v20618_v10  ;;  %v11363_v10 = vmul.f32 %v20236_v16, %v20236_v16 }
 0x771   :  { %22407 = vst [vmem:[#allocation73_spill] sm:$0xff] %v20622_v54  ;;  %v20624_v42 = vpop.f32.mrb[165].mxu0 }
 0x772   :  { %v11419_v53 = vadd.f32 %v11418_v57, %v11356_v4  ;;  %22408 = vst [vmem:[#allocation74_spill] sm:$0xff] %v20624_v42  ;;  %v11359_v4 = vmul.f32 %v20608_v19, %v20608_v19  ;;  %v20632_v63 = vpop.f32.mrb[166].mxu0  ;;  %v11361_v42 = vmul.f32 %v20628_v8, %v20628_v8 }
 0x773   :  { %v20634_v0 = vpop.f32.mrb[167].mxu0 }
 0x774   :  { %v11420_v56 = vadd.f32 %v11419_v53, %v11357_v29  ;;  %v20638_v53 = vpop.f32.mrb[168].mxu0 }
 0x775   :  { %22411 = vst [vmem:[#allocation75_spill] sm:$0xff] %v20638_v53  ;;  %v20642_v44 = vpop.f32.mrb[169].mxu0 }
 0x776   :  { %v11421_v57 = vadd.f32 %v11420_v56, %v11358_v6  ;;  %v20646_v56 = vpop.f32.mrb[170].mxu0 }
 0x777   :  { %v20648_v19 = vpop.f32.mrb[171].mxu0 }
 0x778   :  { %v11422_v29 = vadd.f32 %v11421_v57, %v11359_v4  ;;  %22412 = vst [vmem:[#allocation76_spill] sm:$0xff] %v20648_v19  ;;  %v20652_v57 = vpop.f32.mrb[172].mxu0 }
 0x779   :  { %v20654_v53 = vpop.f32.mrb[173].mxu0 }
 0x77a   :  { %v11423_v54 = vadd.f32 %v11422_v29, %v11360_v12  ;;  %v11364_v12 = vmul.f32 %v20240_v47, %v20240_v47  ;;  %v20658_v8 = vpop.f32.mrb[174].mxu0  ;;  %v11367_v47 = vmul.f32 %v20249_v14, %v20249_v14 }
 0x77b   :  { %22413 = vst [vmem:[#allocation77_spill] sm:$0xff] %v20658_v8  ;;  %v20660_v51 = vpop.f32.mrb[175].mxu0 }
 0x77c   :  { %v11424_v6 = vadd.f32 %v11423_v54, %v11361_v42  ;;  %v11365_v54 = vmul.f32 %v20243_v58, %v20243_v58  ;;  %v20664_v19 = vpop.f32.mrb[176].mxu0  ;;  %v11368_v58 = vmul.f32 %v20252_v20, %v20252_v20 }
 0x77d   :  { %22414 = vst [vmem:[#allocation78_spill] sm:$0xff] %v20664_v19  ;;  %v20668_v16 = vpop.f32.mrb[177].mxu0 }
 0x77e   :  { %v11425_v4 = vadd.f32 %v11424_v6, %v11362_v24  ;;  %v11366_v24 = vmul.f32 %v20246_v25, %v20246_v25 }
 0x780   :  { %v11426_v29 = vadd.f32 %v11425_v4, %v11363_v10  ;;  %v20672_v4 = vpop.f32.mrb[178].mxu0 }
 0x781   :  { %v20674_v8 = vpop.f32.mrb[179].mxu0 }
 0x782   :  { %v11427_v42 = vadd.f32 %v11426_v29, %v11364_v12  ;;  %22415 = vst [vmem:[#allocation79_spill] sm:$0xff] %v20674_v8  ;;  %v20678_v29 = vpop.f32.mrb[180].mxu0 }
 0x783   :  { %v20680_v19 = vpop.f32.mrb[181].mxu0 }
 0x784   :  { %v11428_v6 = vadd.f32 %v11427_v42, %v11365_v54  ;;  %v11369_v54 = vmul.f32 %v20255_v31, %v20255_v31  ;;  %v20684_v25 = vpop.f32.mrb[182].mxu0  ;;  %v11372_v31 = vmul.f32 %v20264_v5, %v20264_v5 }
 0x785   :  { %22416 = vst [vmem:[#allocation80_spill] sm:$0xff] %v20684_v25  ;;  %v20686_v14 = vpop.f32.mrb[183].mxu0 }
 0x786   :  { %v11429_v10 = vadd.f32 %v11428_v6, %v11366_v24  ;;  %v11370_v24 = vmul.f32 %v20258_v37, %v20258_v37  ;;  %v20690_v8 = vpop.f32.mrb[184].mxu0  ;;  %v11373_v37 = vmul.f32 %v20267_v60, %v20267_v60  ;;  %v11376_v60 = vmul.f32 %v20276_v43, %v20276_v43 }
 0x787   :  { %22417 = vst [vmem:[#allocation81_spill] sm:$0xff] %v20690_v8  ;;  %v20694_v20 = vpop.f32.mrb[185].mxu0 }
 0x788   :  { %v11430_v12 = vadd.f32 %v11429_v10, %v11367_v47  ;;  %v11371_v47 = vmul.f32 %v20261_v32, %v20261_v32 }
 0x78a   :  { %v11431_v42 = vadd.f32 %v11430_v12, %v11368_v58  ;;  %v20698_v12 = vpop.f32.mrb[186].mxu0 }
 0x78b   :  { %v20700_v25 = vpop.f32.mrb[187].mxu0 }
 0x78c   :  { %v11432_v6 = vadd.f32 %v11431_v42, %v11369_v54  ;;  %v20704_v42 = vpop.f32.mrb[188].mxu0 }
 0x78d   :  { %v20706_v8 = vpop.f32.mrb[189].mxu0 }
 0x78e   :  { %v11433_v10 = vadd.f32 %v11432_v6, %v11370_v24  ;;  %22418 = vst [vmem:[#allocation82_spill] sm:$0xff] %v20706_v8  ;;  %v11374_v24 = vmul.f32 %v20270_v36, %v20270_v36  ;;  %v20710_v32 = vpop.f32.mrb[190].mxu0  ;;  %v11378_v36 = vmul.f32 %v20282_v18, %v20282_v18 }
 0x78f   :  { %22419 = vst [vmem:[#allocation83_spill] sm:$0xff] %v20710_v32  ;;  %v20712_v5 = vpop.f32.mrb[191].mxu0 }
 0x790   :  { %v11434_v58 = vadd.f32 %v11433_v10, %v11371_v47  ;;  %22420 = vst [vmem:[#allocation84_spill] sm:$0xff] %v20712_v5  ;;  %v11375_v47 = vmul.f32 %v20273_v33, %v20273_v33  ;;  %v11380_v33 = vmul.f32 %v20288_v48, %v20288_v48  ;;  %v22430_v48 = vld [vmem:[#allocation75_spill] sm:$0xff] }
 0x792   :  { %v11435_v54 = vadd.f32 %v11434_v58, %v11372_v31  ;;  %v11377_v58 = vmul.f32 %v20279_v3, %v20279_v3  ;;  %v22433_v3 = vld [vmem:[#allocation76_spill] sm:$0xff] }
 0x794   :  { %v11436_v6 = vadd.f32 %v11435_v54, %v11373_v37  ;;  %v11379_v54 = vmul.f32 %v20285_v46, %v20285_v46  ;;  %v22437_v46 = vld [vmem:[#allocation77_spill] sm:$0xff] }
 0x796   :  { %v11437_v10 = vadd.f32 %v11436_v6, %v11374_v24 }
 0x798   :  { %v11438_v31 = vadd.f32 %v11437_v10, %v11375_v47 }
 0x79a   :  { %v11439_v8 = vadd.f32 %v11438_v31, %v11376_v60  ;;  %v20729_v60 = vld [vmem:[%s21520_s8] ss:$0 sm:$0xff] }
 0x79c   :  { %v11440_v37 = vadd.f32 %v11439_v8, %v11377_v58  ;;  %v20733_v58 = vadd.f32 %v20400_v23, %v20729_v60  ;;  %v20757_v23 = vadd.f32 %v20448_v1, %v20729_v60  ;;  %v20777_v1 = vadd.f32 %v20729_v60, %v20476_v21 }
 0x79d   :  { %v20797_v21 = vadd.f32 %v20504_v2, %v20729_v60  ;;  %v20817_v2 = vadd.f32 %v20729_v60, %v20532_v35  ;;  %v20837_v35 = vadd.f32 %v20566_v45, %v20729_v60 }
 0x79e   :  { %v11441_v5 = vadd.f32 %v11440_v37, %v11378_v36  ;;  %v20737_v36 = vadd.f32 %v20729_v60, %v20420_v27 }
 0x7a0   :  { %v11442_v24 = vadd.f32 %v11441_v5, %v11379_v54  ;;  %v20745_v5 = vadd.f32 %v20729_v60, %v20430_v55  ;;  %v20765_v55 = vadd.f32 %v20458_v61, %v20729_v60  ;;  %v20785_v61 = vadd.f32 %v20729_v60, %v20486_v22  ;;  %v22421_v54 = vld [vmem:[#allocation66_spill] sm:$0xff] }
 0x7a1   :  { %v20805_v22 = vadd.f32 %v20520_v52, %v20729_v60  ;;  %v20825_v52 = vadd.f32 %v20729_v60, %v20542_v40  ;;  %v20845_v40 = vadd.f32 %v22421_v54, %v20729_v60 }
 0x7a2   :  { %v11443_v6 = vadd.f32 %v11442_v24, %v11380_v33  ;;  %v20749_v33 = vadd.f32 %v20438_v49, %v20729_v60  ;;  %v20769_v49 = vadd.f32 %v20729_v60, %v20466_v38  ;;  %v20789_v38 = vadd.f32 %v20494_v62, %v20729_v60  ;;  %v22422_v24 = vld [vmem:[#allocation67_spill] sm:$0xff] }
 0x7a3   :  { %v20809_v62 = vadd.f32 %v20729_v60, %v20522_v7  ;;  %v20829_v7 = vadd.f32 %v20550_v15, %v20729_v60  ;;  %v20849_v15 = vadd.f32 %v20729_v60, %v22422_v24  ;;  %v22428_v24 = vld [vmem:[#allocation73_spill] sm:$0xff] }
 0x7a4   :  { %v11444_v32 = vrot.slane %v11443_v6, 4 }
 0x7a6   :  { %v11445_v43 = vadd.f32 %v11444_v32, %v11443_v6  ;;  %v20741_v32 = vadd.f32 %v20428_v17, %v20729_v60  ;;  %v20761_v17 = vadd.f32 %v20729_v60, %v20450_v9  ;;  %v20781_v9 = vadd.f32 %v20484_v34, %v20729_v60  ;;  %v22423_v6 = vld [vmem:[#allocation68_spill] sm:$0xff] }
 0x7a7   :  { %v20801_v34 = vadd.f32 %v20729_v60, %v20512_v30  ;;  %v20821_v30 = vadd.f32 %v20540_v59, %v20729_v60  ;;  %v20841_v59 = vadd.f32 %v20729_v60, %v20568_v50 }
 0x7a8   :  { %v11446_v47 = vrot.slane %v11445_v43, 2 }
 0x7aa   :  { %v11447_v10 = vadd.f32 %v11446_v47, %v11445_v43  ;;  %v20753_v43 = vadd.f32 %v20729_v60, %v20440_v13  ;;  %v20773_v13 = vadd.f32 %v20474_v26, %v20729_v60  ;;  %v20793_v26 = vadd.f32 %v20729_v60, %v20496_v11  ;;  %v22424_v47 = vld [vmem:[#allocation69_spill] sm:$0xff] }
 0x7ab   :  { %v20813_v11 = vadd.f32 %v20530_v41, %v20729_v60  ;;  %v20833_v41 = vadd.f32 %v20729_v60, %v20558_v39  ;;  %v20853_v39 = vadd.f32 %v22423_v6, %v20729_v60  ;;  %v20857_v45 = vadd.f32 %v20729_v60, %v22424_v47  ;;  %v22429_v47 = vld [vmem:[#allocation74_spill] sm:$0xff] }
 0x7ac   :  { %v11448_v31 = vrot.slane %v11447_v10, 1  ;;  %v20877_v6 = vadd.f32 %v22428_v24, %v20729_v60  ;;  %v20897_v24 = vadd.f32 %v20729_v60, %v20642_v44  ;;  %v20917_v44 = vadd.f32 %v22437_v46, %v20729_v60 }
 0x7ae   :  { %v11449_v8 = vadd.f32 %v11448_v31, %v11447_v10  ;;  %v22425_v10 = vld [vmem:[#allocation70_spill] sm:$0xff]  ;;  %v22426_v31 = vld [vmem:[#allocation71_spill] sm:$0xff]  ;;  %22431 = vst [vmem:[#allocation66_spill] sm:$0xff] %v20897_v24 }
 0x7af   :  { %v20861_v50 = vadd.f32 %v22425_v10, %v20729_v60  ;;  %v20881_v10 = vadd.f32 %v20729_v60, %v22429_v47  ;;  %v20901_v47 = vadd.f32 %v20646_v56, %v20729_v60  ;;  %22438 = vst [vmem:[#allocation71_spill] sm:$0xff] %v20917_v44  ;;  %v20921_v56 = vadd.f32 %v20729_v60, %v20660_v51 }
 0x7b0   :  { %v11450_v27 = vmul.f32 0.001953125, %v11449_v8  ;;  %v20865_v8 = vadd.f32 %v20729_v60, %v22426_v31  ;;  %v20885_v31 = vadd.f32 %v20632_v63, %v20729_v60  ;;  %v20905_v63 = vadd.f32 %v20729_v60, %v22433_v3 }
 0x7b1   :  { %22432 = vst [vmem:[#allocation67_spill] sm:$0xff] %v20901_v47  ;;  %v22440_v47 = vld [vmem:[#allocation78_spill] sm:$0xff]  ;;  %v20941_v51 = vadd.f32 %v20678_v29, %v20729_v60  ;;  %v20961_v29 = vadd.f32 %v20729_v60, %v20694_v20 }
 0x7b2   :  { %v11451_v37 = vadd.f32 1e-05, %v11450_v27  ;;  %v20869_v27 = vadd.f32 %v20612_v28, %v20729_v60  ;;  %v20889_v28 = vadd.f32 %v20729_v60, %v20634_v0  ;;  %22434 = vst [vmem:[#allocation68_spill] sm:$0xff] %v20905_v63  ;;  %v20909_v0 = vadd.f32 %v20652_v57, %v20729_v60  ;;  %v22457_v20 = vld [vmem:[#allocation82_spill] sm:$0xff] }
 0x7b3   :  { %v20925_v3 = vadd.f32 %v22440_v47, %v20729_v60  ;;  %v20929_v57 = vadd.f32 %v20729_v60, %v20668_v16  ;;  %22446 = vst [vmem:[#allocation77_spill] sm:$0xff] %v20941_v51  ;;  %v20945_v47 = vadd.f32 %v20729_v60, %v20680_v19  ;;  %22453 = vst [vmem:[#allocation85_spill] sm:$0xff] %v20961_v29 }
 0x7b4   :  { %15045 = vrsqrt.f32 %v11451_v37  ;;  %v22427_v37 = vld [vmem:[#allocation72_spill] sm:$0xff]  ;;  %22435 = vst [vmem:[#allocation69_spill] sm:$0xff] %v20909_v0  ;;  %v20965_v19 = vadd.f32 %v20698_v12, %v20729_v60  ;;  %v20984_v29 = vadd.f32 %v20729_v60, %v22457_v20  ;;  %v22459_v12 = vld [vmem:[#allocation83_spill] sm:$0xff] }
 0x7b5   :  { %v20873_v54 = vadd.f32 %v20729_v60, %v22427_v37  ;;  %v20893_v37 = vadd.f32 %v22430_v48, %v20729_v60  ;;  %v20913_v48 = vadd.f32 %v20729_v60, %v20654_v53  ;;  %22439 = vst [vmem:[#allocation72_spill] sm:$0xff] %v20921_v56  ;;  %22441 = vst [vmem:[#allocation73_spill] sm:$0xff] %v20925_v3  ;;  %v22448_v3 = vld [vmem:[#allocation80_spill] sm:$0xff]  ;;  %v22466_v20 = vld [vmem:[#allocation43_spill] sm:$0xff] }
 0x7b6   :  { %22442 = vst [vmem:[#allocation74_spill] sm:$0xff] %v20929_v57  ;;  %v20933_v53 = vadd.f32 %v20672_v4, %v20729_v60  ;;  %22447 = vst [vmem:[#allocation78_spill] sm:$0xff] %v20945_v47  ;;  %v20949_v16 = vadd.f32 %v22448_v3, %v20729_v60  ;;  %v20953_v4 = vadd.f32 %v20729_v60, %v20686_v14  ;;  %v20976_v14 = vld [vmem:[%s21521_s5] ss:$0 sm:$0xff] }
 0x7b7   :  { %22436 = vst [vmem:[#allocation70_spill] sm:$0xff] %v20913_v48  ;;  %v22444_v48 = vld [vmem:[#allocation79_spill] sm:$0xff]  ;;  %22454 = vst [vmem:[#allocation86_spill] sm:$0xff] %v20965_v19  ;;  %v20969_v3 = vadd.f32 %v20729_v60, %v20700_v25  ;;  %v20988_v19 = vadd.f32 %v22459_v12, %v20729_v60  ;;  %v22461_v25 = vld [vmem:[#allocation84_spill] sm:$0xff] }
 0x7b8   :  { %22443 = vst [vmem:[#allocation75_spill] sm:$0xff] %v20933_v53  ;;  %v20937_v46 = vadd.f32 %v20729_v60, %v22444_v48  ;;  %22449 = vst [vmem:[#allocation79_spill] sm:$0xff] %v20949_v16  ;;  %v22451_v53 = vld [vmem:[#allocation81_spill] sm:$0xff] }
 0x7b9   :  { %22450 = vst [vmem:[#allocation80_spill] sm:$0xff] %v20953_v4  ;;  %v20957_v48 = vadd.f32 %v22451_v53, %v20729_v60  ;;  %22455 = vst [vmem:[#allocation87_spill] sm:$0xff] %v20969_v3  ;;  %v20980_v53 = vadd.f32 %v20704_v42, %v20729_v60  ;;  %v20992_v3 = vadd.f32 %v20729_v60, %v22461_v25  ;;  %v22464_v4 = vld [vmem:[#allocation42_spill] sm:$0xff]  ;;  %v21007_v12 = vld [vmem:[%s21522_s6] ss:$0 sm:$0xff] }
 0x7ba   :  { %22445 = vst [vmem:[#allocation76_spill] sm:$0xff] %v20937_v46  ;;  %22458 = vst [vmem:[#allocation82_spill] sm:$0xff] %v20984_v29  ;;  %v22467_v60 = vld [vmem:[#allocation41_spill] sm:$0xff] }
 0x7bb   :  { %22452 = vst [vmem:[#allocation81_spill] sm:$0xff] %v20957_v48  ;;  %22456 = vst [vmem:[#allocation88_spill] sm:$0xff] %v20980_v53  ;;  %v22465_v53 = vld [vmem:[#allocation14_spill] sm:$0xff]  ;;  %v22471_v57 = vld [vmem:[#allocation45_spill] sm:$0xff] }
 0x7bc   :  { %22460 = vst [vmem:[#allocation83_spill] sm:$0xff] %v20988_v19  ;;  %22462 = vst [vmem:[#allocation84_spill] sm:$0xff] %v20992_v3  ;;  %v22468_v19 = vld [vmem:[#allocation46_spill] sm:$0xff]  ;;  %v22469_v3 = vld [vmem:[#allocation44_spill] sm:$0xff] }
 0x7be   :  { %v20971_v16 = vpop.eup %15045 }
 0x7bf   :  { %v20996_v48 = vmul.f32 %v20971_v16, %v20282_v18  ;;  %v11455_v42 = vmul.f32 %v20971_v16, %v22464_v4  ;;  %v11453_v47 = vmul.f32 %v20971_v16, %v22465_v53  ;;  %v11456_v29 = vmul.f32 %v20971_v16, %v22466_v20 }
 0x7c0   :  { %v11454_v25 = vmul.f32 %v20971_v16, %v22467_v60  ;;  %v11459_v18 = vmul.f32 %v20971_v16, %v22468_v19  ;;  %v11457_v4 = vmul.f32 %v20971_v16, %v22469_v3  ;;  %v11458_v56 = vmul.f32 %v20971_v16, %v22471_v57 }
 0x7c1   :  { %22463 = vst [vmem:[#allocation89_spill] sm:$0xff] %v20996_v48  ;;  %v22470_v48 = vld [vmem:[#allocation47_spill] sm:$0xff]  ;;  %v11525_v51 = vmul.f32 %v20976_v14, %v11455_v42  ;;  %v11523_v20 = vmul.f32 %v20976_v14, %v11453_v47  ;;  %v11526_v46 = vmul.f32 %v20976_v14, %v11456_v29 }
 0x7c2   :  { %v11460_v53 = vmul.f32 %v20971_v16, %v22470_v48  ;;  %v11524_v60 = vmul.f32 %v20976_v14, %v11454_v25  ;;  %v11529_v44 = vmul.f32 %v20976_v14, %v11459_v18  ;;  %v11527_v19 = vmul.f32 %v20976_v14, %v11457_v4 }
 0x7c3   :  { %v11595_v0 = vadd.f32 %v21007_v12, %v11525_v51  ;;  %v11593_v48 = vadd.f32 %v21007_v12, %v11523_v20  ;;  %v11596_v42 = vadd.f32 %v21007_v12, %v11526_v46  ;;  %v11528_v47 = vmul.f32 %v20976_v14, %v11458_v56 }
 0x7c4   :  { %v11530_v3 = vmul.f32 %v20976_v14, %v11460_v53  ;;  %v11594_v29 = vadd.f32 %v21007_v12, %v11524_v60  ;;  %v11599_v57 = vadd.f32 %v21007_v12, %v11529_v44  ;;  %v11597_v25 = vadd.f32 %v21007_v12, %v11527_v19 }
 0x7c5   :  { %v12019_v4 = vadd.f32 %v20733_v58, %v11595_v0  ;;  %v12017_v53 = vadd.f32 %v20737_v36, %v11593_v48  ;;  %v12020_v51 = vadd.f32 %v20741_v32, %v11596_v42  ;;  %v11598_v20 = vadd.f32 %v21007_v12, %v11528_v47  ;;  %v22476_v47 = vld [vmem:[#allocation54_spill] sm:$0xff] }
 0x7c6   :  { %v11600_v18 = vadd.f32 %v21007_v12, %v11530_v3  ;;  %v12018_v46 = vadd.f32 %v20745_v5, %v11594_v29  ;;  %v12023_v56 = vadd.f32 %v20749_v33, %v11599_v57  ;;  %v12021_v60 = vadd.f32 %v20753_v43, %v11597_v25  ;;  %v22472_v5 = vld [vmem:[#allocation50_spill] sm:$0xff]  ;;  %v22473_v43 = vld [vmem:[#allocation48_spill] sm:$0xff] }
 0x7c7   :  { %v12083_v63 = vmax.f32 %v12019_v4, 0.0  ;;  %v12081_v19 = vmax.f32 %v12017_v53, 0.0  ;;  %v12084_v24 = vmax.f32 %v12020_v51, 0.0  ;;  %v12022_v3 = vadd.f32 %v20761_v17, %v11598_v20  ;;  %v22474_v17 = vld [vmem:[#allocation51_spill] sm:$0xff]  ;;  %v22477_v57 = vld [vmem:[#allocation52_spill] sm:$0xff] }
 0x7c8   :  { %v12024_v44 = vadd.f32 %v20757_v23, %v11600_v18  ;;  %v12082_v58 = vmax.f32 %v12018_v46, 0.0  ;;  %v12087_v0 = vmax.f32 %v12023_v56, 0.0  ;;  %v12085_v36 = vmax.f32 %v12021_v60, 0.0  ;;  %v22478_v18 = vld [vmem:[#allocation55_spill] sm:$0xff]  ;;  %v22479_v46 = vld [vmem:[#allocation53_spill] sm:$0xff] }
 0x7c9   :  { %12147 = vst [vmem:[%s21523_s9 + $0x10] sm:$0xff] %v12083_v63  ;;  %12145 = vst [vmem:[%s21523_s9] sm:$0xff] %v12081_v19  ;;  %v12086_v32 = vmax.f32 %v12022_v3, 0.0  ;;  %v11463_v33 = vmul.f32 %v20971_v16, %v22472_v5  ;;  %v11461_v23 = vmul.f32 %v20971_v16, %v22473_v43  ;;  %v11464_v42 = vmul.f32 %v20971_v16, %v22474_v17 }
 0x7ca   :  { %v12088_v48 = vmax.f32 %v12024_v44, 0.0  ;;  %12148 = vst [vmem:[%s21523_s9 + $0x18] sm:$0xff] %v12084_v24  ;;  %12146 = vst [vmem:[%s21523_s9 + $0x8] sm:$0xff] %v12082_v58  ;;  %v22475_v24 = vld [vmem:[#allocation49_spill] sm:$0xff]  ;;  %v11467_v29 = vmul.f32 %v20971_v16, %v22476_v47  ;;  %v11465_v25 = vmul.f32 %v20971_v16, %v22477_v57  ;;  %v11468_v4 = vmul.f32 %v20971_v16, %v22478_v18 }
 0x7cb   :  { %12151 = vst [vmem:[%s21523_s9 + $0x30] sm:$0xff] %v12087_v0  ;;  %12149 = vst [vmem:[%s21523_s9 + $0x20] sm:$0xff] %v12085_v36  ;;  %v11462_v63 = vmul.f32 %v20971_v16, %v22475_v24  ;;  %v11533_v53 = vmul.f32 %v20976_v14, %v11463_v33  ;;  %v11531_v51 = vmul.f32 %v20976_v14, %v11461_v23 }
 0x7cc   :  { %12152 = vst [vmem:[%s21523_s9 + $0x38] sm:$0xff] %v12088_v48  ;;  %12150 = vst [vmem:[%s21523_s9 + $0x28] sm:$0xff] %v12086_v32  ;;  %v11534_v20 = vmul.f32 %v20976_v14, %v11464_v42  ;;  %v11466_v56 = vmul.f32 %v20971_v16, %v22479_v46  ;;  %v11537_v44 = vmul.f32 %v20976_v14, %v11467_v29 }
 0x7cd   :  { %v11532_v60 = vmul.f32 %v20976_v14, %v11462_v63  ;;  %v11535_v19 = vmul.f32 %v20976_v14, %v11465_v25  ;;  %v11538_v3 = vmul.f32 %v20976_v14, %v11468_v4  ;;  %v11603_v58 = vadd.f32 %v21007_v12, %v11533_v53 }
 0x7ce   :  { %v11601_v0 = vadd.f32 %v21007_v12, %v11531_v51  ;;  %v11604_v36 = vadd.f32 %v21007_v12, %v11534_v20  ;;  %v11536_v48 = vmul.f32 %v20976_v14, %v11466_v56  ;;  %v11607_v5 = vadd.f32 %v21007_v12, %v11537_v44  ;;  %v22483_v56 = vld [vmem:[#allocation57_spill] sm:$0xff]  ;;  %v22484_v44 = vld [vmem:[#allocation62_spill] sm:$0xff] }
 0x7cf   :  { %v11602_v32 = vadd.f32 %v21007_v12, %v11532_v60  ;;  %v11605_v33 = vadd.f32 %v21007_v12, %v11535_v19  ;;  %v11608_v43 = vadd.f32 %v21007_v12, %v11538_v3  ;;  %v12027_v23 = vadd.f32 %v20765_v55, %v11603_v58  ;;  %v22485_v3 = vld [vmem:[#allocation60_spill] sm:$0xff] }
 0x7d0   :  { %v12025_v17 = vadd.f32 %v20769_v49, %v11601_v0  ;;  %v12028_v42 = vadd.f32 %v20773_v13, %v11604_v36  ;;  %v11606_v24 = vadd.f32 %v21007_v12, %v11536_v48  ;;  %v12031_v47 = vadd.f32 %v20781_v9, %v11607_v5  ;;  %v22486_v0 = vld [vmem:[#allocation63_spill] sm:$0xff] }
 0x7d1   :  { %v12026_v63 = vadd.f32 %v20777_v1, %v11602_v32  ;;  %v12029_v29 = vadd.f32 %v20785_v61, %v11605_v33  ;;  %v12032_v57 = vadd.f32 %v20789_v38, %v11608_v43  ;;  %v12091_v25 = vmax.f32 %v12027_v23, 0.0  ;;  %v22480_v1 = vld [vmem:[#allocation58_spill] sm:$0xff]  ;;  %v22481_v61 = vld [vmem:[#allocation56_spill] sm:$0xff]  ;;  %v22487_v33 = vld [vmem:[#allocation61_spill] sm:$0xff] }
 0x7d2   :  { %v12089_v18 = vmax.f32 %v12025_v17, 0.0  ;;  %v12092_v4 = vmax.f32 %v12028_v42, 0.0  ;;  %v12030_v53 = vadd.f32 %v20793_v26, %v11606_v24  ;;  %v12095_v51 = vmax.f32 %v12031_v47, 0.0  ;;  %v22482_v26 = vld [vmem:[#allocation59_spill] sm:$0xff] }
 0x7d3   :  { %v12090_v55 = vmax.f32 %v12026_v63, 0.0  ;;  %v12093_v49 = vmax.f32 %v12029_v29, 0.0  ;;  %v12096_v20 = vmax.f32 %v12032_v57, 0.0  ;;  %12155 = vst [vmem:[%s21523_s9 + $0x50] sm:$0xff] %v12091_v25  ;;  %v11471_v9 = vmul.f32 %v20971_v16, %v22480_v1 }
 0x7d4   :  { %12153 = vst [vmem:[%s21523_s9 + $0x40] sm:$0xff] %v12089_v18  ;;  %12156 = vst [vmem:[%s21523_s9 + $0x58] sm:$0xff] %v12092_v4  ;;  %v12094_v13 = vmax.f32 %v12030_v53, 0.0  ;;  %v11469_v38 = vmul.f32 %v20971_v16, %v22481_v61  ;;  %v11472_v46 = vmul.f32 %v20971_v16, %v22482_v26  ;;  %v11470_v60 = vmul.f32 %v20971_v16, %v22483_v56 }
 0x7d5   :  { %12154 = vst [vmem:[%s21523_s9 + $0x48] sm:$0xff] %v12090_v55  ;;  %12159 = vst [vmem:[%s21523_s9 + $0x70] sm:$0xff] %v12095_v51  ;;  %v11475_v19 = vmul.f32 %v20971_v16, %v22484_v44  ;;  %v11473_v58 = vmul.f32 %v20971_v16, %v22485_v3  ;;  %v11476_v36 = vmul.f32 %v20971_v16, %v22486_v0  ;;  %v22491_v3 = vld [vmem:[#allocation65_spill] sm:$0xff]  ;;  %v22492_v0 = vld [vmem:[#allocation19_spill] sm:$0xff] }
 0x7d6   :  { %12157 = vst [vmem:[%s21523_s9 + $0x60] sm:$0xff] %v12093_v49  ;;  %12160 = vst [vmem:[%s21523_s9 + $0x78] sm:$0xff] %v12096_v20  ;;  %v11541_v48 = vmul.f32 %v20976_v14, %v11471_v9  ;;  %v11539_v32 = vmul.f32 %v20976_v14, %v11469_v38  ;;  %v11542_v5 = vmul.f32 %v20976_v14, %v11472_v46 }
 0x7d7   :  { %12158 = vst [vmem:[%s21523_s9 + $0x68] sm:$0xff] %v12094_v13  ;;  %v11474_v43 = vmul.f32 %v20971_v16, %v22487_v33  ;;  %v11540_v23 = vmul.f32 %v20976_v14, %v11470_v60  ;;  %v11545_v17 = vmul.f32 %v20976_v14, %v11475_v19  ;;  %v11543_v42 = vmul.f32 %v20976_v14, %v11473_v58 }
 0x7d8   :  { %v11546_v24 = vmul.f32 %v20976_v14, %v11476_v36  ;;  %v11611_v63 = vadd.f32 %v21007_v12, %v11541_v48  ;;  %v11609_v47 = vadd.f32 %v21007_v12, %v11539_v32  ;;  %v11612_v29 = vadd.f32 %v21007_v12, %v11542_v5  ;;  %v22493_v48 = vld [vmem:[#allocation26_spill] sm:$0xff]  ;;  %v22494_v5 = vld [vmem:[#allocation21_spill] sm:$0xff] }
 0x7d9   :  { %v11544_v57 = vmul.f32 %v20976_v14, %v11474_v43  ;;  %v11610_v25 = vadd.f32 %v21007_v12, %v11540_v23  ;;  %v11615_v18 = vadd.f32 %v21007_v12, %v11545_v17  ;;  %v11613_v4 = vadd.f32 %v21007_v12, %v11543_v42  ;;  %v22495_v42 = vld [vmem:[#allocation25_spill] sm:$0xff] }
 0x7da   :  { %v11616_v53 = vadd.f32 %v21007_v12, %v11546_v24  ;;  %v12035_v55 = vadd.f32 %v20797_v21, %v11611_v63  ;;  %v12033_v51 = vadd.f32 %v20801_v34, %v11609_v47  ;;  %v12036_v49 = vadd.f32 %v20805_v22, %v11612_v29 }
 0x7db   :  { %v11614_v20 = vadd.f32 %v21007_v12, %v11544_v57  ;;  %v12034_v13 = vadd.f32 %v20809_v62, %v11610_v25  ;;  %v12039_v1 = vadd.f32 %v20813_v11, %v11615_v18  ;;  %v12037_v9 = vadd.f32 %v20817_v2, %v11613_v4  ;;  %v22488_v62 = vld [vmem:[#allocation18_spill] sm:$0xff]  ;;  %v22489_v2 = vld [vmem:[#allocation64_spill] sm:$0xff] }
 0x7dc   :  { %v12040_v61 = vadd.f32 %v20821_v30, %v11616_v53  ;;  %v12099_v38 = vmax.f32 %v12035_v55, 0.0  ;;  %v12097_v26 = vmax.f32 %v12033_v51, 0.0  ;;  %v12100_v46 = vmax.f32 %v12036_v49, 0.0 }
 0x7dd   :  { %v12038_v56 = vadd.f32 %v20825_v52, %v11614_v20  ;;  %v12098_v21 = vmax.f32 %v12034_v13, 0.0  ;;  %v12103_v60 = vmax.f32 %v12039_v1, 0.0  ;;  %v12101_v34 = vmax.f32 %v12037_v9, 0.0  ;;  %v22490_v52 = vld [vmem:[#allocation23_spill] sm:$0xff] }
 0x7de   :  { %v12104_v44 = vmax.f32 %v12040_v61, 0.0  ;;  %12163 = vst [vmem:[%s21523_s9 + $0x90] sm:$0xff] %v12099_v38  ;;  %12161 = vst [vmem:[%s21523_s9 + $0x80] sm:$0xff] %v12097_v26  ;;  %v11479_v11 = vmul.f32 %v20971_v16, %v22488_v62  ;;  %v11477_v30 = vmul.f32 %v20971_v16, %v22489_v2  ;;  %v11480_v19 = vmul.f32 %v20971_v16, %v22490_v52  ;;  %v22499_v2 = vld [vmem:[#allocation3_spill] sm:$0xff]  ;;  %v22500_v52 = vld [vmem:[#allocation5_spill] sm:$0xff] }
 0x7df   :  { %12164 = vst [vmem:[%s21523_s9 + $0x98] sm:$0xff] %v12100_v46  ;;  %v12102_v22 = vmax.f32 %v12038_v56, 0.0  ;;  %12162 = vst [vmem:[%s21523_s9 + $0x88] sm:$0xff] %v12098_v21  ;;  %v11478_v58 = vmul.f32 %v20971_v16, %v22491_v3  ;;  %v11483_v36 = vmul.f32 %v20971_v16, %v22492_v0  ;;  %v11481_v32 = vmul.f32 %v20971_v16, %v22493_v48  ;;  %v22501_v3 = vld [vmem:[#allocation10_spill] sm:$0xff]  ;;  %v22502_v0 = vld [vmem:[#allocation12_spill] sm:$0xff] }
 0x7e0   :  { %12167 = vst [vmem:[%s21523_s9 + $0xb0] sm:$0xff] %v12103_v60  ;;  %12165 = vst [vmem:[%s21523_s9 + $0xa0] sm:$0xff] %v12101_v34  ;;  %v11484_v33 = vmul.f32 %v20971_v16, %v22494_v5  ;;  %v11549_v43 = vmul.f32 %v20976_v14, %v11479_v11  ;;  %v11547_v23 = vmul.f32 %v20976_v14, %v11477_v30 }
 0x7e1   :  { %12168 = vst [vmem:[%s21523_s9 + $0xb8] sm:$0xff] %v12104_v44  ;;  %12166 = vst [vmem:[%s21523_s9 + $0xa8] sm:$0xff] %v12102_v22  ;;  %v11550_v17 = vmul.f32 %v20976_v14, %v11480_v19  ;;  %v11482_v24 = vmul.f32 %v20971_v16, %v22495_v42  ;;  %v11548_v63 = vmul.f32 %v20976_v14, %v11478_v58 }
 0x7e2   :  { %v11553_v47 = vmul.f32 %v20976_v14, %v11483_v36  ;;  %v11551_v29 = vmul.f32 %v20976_v14, %v11481_v32  ;;  %v11554_v57 = vmul.f32 %v20976_v14, %v11484_v33  ;;  %v11619_v25 = vadd.f32 %v21007_v12, %v11549_v43  ;;  %v22503_v33 = vld [vmem:[#allocation11_spill] sm:$0xff] }
 0x7e3   :  { %v11617_v18 = vadd.f32 %v21007_v12, %v11547_v23  ;;  %v11620_v4 = vadd.f32 %v21007_v12, %v11550_v17  ;;  %v11552_v53 = vmul.f32 %v20976_v14, %v11482_v24  ;;  %v11618_v55 = vadd.f32 %v21007_v12, %v11548_v63 }
 0x7e4   :  { %v11623_v51 = vadd.f32 %v21007_v12, %v11553_v47  ;;  %v11621_v49 = vadd.f32 %v21007_v12, %v11551_v29  ;;  %v11624_v20 = vadd.f32 %v21007_v12, %v11554_v57  ;;  %v12043_v13 = vadd.f32 %v20829_v7, %v11619_v25 }
 0x7e5   :  { %v12041_v1 = vadd.f32 %v20833_v41, %v11617_v18  ;;  %v12044_v9 = vadd.f32 %v20837_v35, %v11620_v4  ;;  %v11622_v61 = vadd.f32 %v21007_v12, %v11552_v53  ;;  %v12042_v38 = vadd.f32 %v20841_v59, %v11618_v55  ;;  %v22496_v59 = vld [vmem:[#allocation22_spill] sm:$0xff] }
 0x7e6   :  { %v12047_v26 = vadd.f32 %v20845_v40, %v11623_v51  ;;  %v12045_v46 = vadd.f32 %v20849_v15, %v11621_v49  ;;  %v12048_v56 = vadd.f32 %v20853_v39, %v11624_v20  ;;  %v12107_v21 = vmax.f32 %v12043_v13, 0.0  ;;  %v22497_v15 = vld [vmem:[#allocation7_spill] sm:$0xff] }
 0x7e7   :  { %v12105_v60 = vmax.f32 %v12041_v1, 0.0  ;;  %v12108_v34 = vmax.f32 %v12044_v9, 0.0  ;;  %v12046_v44 = vadd.f32 %v20857_v45, %v11622_v61  ;;  %v12106_v7 = vmax.f32 %v12042_v38, 0.0  ;;  %v22498_v45 = vld [vmem:[#allocation6_spill] sm:$0xff] }
 0x7e8   :  { %v12111_v22 = vmax.f32 %v12047_v26, 0.0  ;;  %v12109_v41 = vmax.f32 %v12045_v46, 0.0  ;;  %v12112_v62 = vmax.f32 %v12048_v56, 0.0  ;;  %12171 = vst [vmem:[%s21523_s9 + $0xd0] sm:$0xff] %v12107_v21  ;;  %v11487_v40 = vmul.f32 %v20971_v16, %v22496_v59  ;;  %v22510_v59 = vld [vmem:[#allocation24_spill] sm:$0xff] }
 0x7e9   :  { %12169 = vst [vmem:[%s21523_s9 + $0xc0] sm:$0xff] %v12105_v60  ;;  %12172 = vst [vmem:[%s21523_s9 + $0xd8] sm:$0xff] %v12108_v34  ;;  %v12110_v35 = vmax.f32 %v12046_v44, 0.0  ;;  %v11485_v39 = vmul.f32 %v20971_v16, %v22497_v15  ;;  %v11488_v11 = vmul.f32 %v20971_v16, %v22498_v45  ;;  %v11486_v30 = vmul.f32 %v20971_v16, %v22499_v2  ;;  %v22507_v44 = vld [vmem:[#allocation15_spill] sm:$0xff] }
 0x7ea   :  { %12170 = vst [vmem:[%s21523_s9 + $0xc8] sm:$0xff] %v12106_v7  ;;  %12175 = vst [vmem:[%s21523_s9 + $0xf0] sm:$0xff] %v12111_v22  ;;  %v11491_v19 = vmul.f32 %v20971_v16, %v22500_v52  ;;  %v11489_v58 = vmul.f32 %v20971_v16, %v22501_v3  ;;  %v11492_v36 = vmul.f32 %v20971_v16, %v22502_v0  ;;  %v22508_v22 = vld [vmem:[#allocation27_spill] sm:$0xff] }
 0x7eb   :  { %12173 = vst [vmem:[%s21523_s9 + $0xe0] sm:$0xff] %v12109_v41  ;;  %12176 = vst [vmem:[%s21523_s9 + $0xf8] sm:$0xff] %v12112_v62  ;;  %v11557_v48 = vmul.f32 %v20976_v14, %v11487_v40  ;;  %v11555_v32 = vmul.f32 %v20976_v14, %v11485_v39  ;;  %v11558_v5 = vmul.f32 %v20976_v14, %v11488_v11  ;;  %v22509_v62 = vld [vmem:[#allocation8_spill] sm:$0xff] }
 0x7ec   :  { %12174 = vst [vmem:[%s21523_s9 + $0xe8] sm:$0xff] %v12110_v35  ;;  %v11490_v43 = vmul.f32 %v20971_v16, %v22503_v33  ;;  %v11556_v23 = vmul.f32 %v20976_v14, %v11486_v30  ;;  %v11561_v17 = vmul.f32 %v20976_v14, %v11491_v19  ;;  %v11559_v42 = vmul.f32 %v20976_v14, %v11489_v58  ;;  %v22511_v11 = vld [vmem:[#allocation4_spill] sm:$0xff] }
 0x7ed   :  { %v11562_v24 = vmul.f32 %v20976_v14, %v11492_v36  ;;  %v11627_v63 = vadd.f32 %v21007_v12, %v11557_v48  ;;  %v11625_v47 = vadd.f32 %v21007_v12, %v11555_v32  ;;  %v11628_v29 = vadd.f32 %v21007_v12, %v11558_v5 }
 0x7ee   :  { %v11560_v57 = vmul.f32 %v20976_v14, %v11490_v43  ;;  %v11626_v25 = vadd.f32 %v21007_v12, %v11556_v23  ;;  %v11631_v18 = vadd.f32 %v21007_v12, %v11561_v17  ;;  %v11629_v4 = vadd.f32 %v21007_v12, %v11559_v42  ;;  %v22512_v17 = vld [vmem:[#allocation66_spill] sm:$0xff] }
 0x7ef   :  { %v11632_v53 = vadd.f32 %v21007_v12, %v11562_v24  ;;  %v12051_v55 = vadd.f32 %v20861_v50, %v11627_v63  ;;  %v12049_v51 = vadd.f32 %v20865_v8, %v11625_v47  ;;  %v12052_v49 = vadd.f32 %v20869_v27, %v11628_v29  ;;  %v22513_v24 = vld [vmem:[#allocation67_spill] sm:$0xff]  ;;  %v22514_v29 = vld [vmem:[#allocation68_spill] sm:$0xff] }
 0x7f0   :  { %v11630_v20 = vadd.f32 %v21007_v12, %v11560_v57  ;;  %v12050_v13 = vadd.f32 %v20873_v54, %v11626_v25  ;;  %v12055_v1 = vadd.f32 %v20877_v6, %v11631_v18  ;;  %v12053_v9 = vadd.f32 %v20881_v10, %v11629_v4  ;;  %v22504_v54 = vld [vmem:[#allocation17_spill] sm:$0xff]  ;;  %v22505_v10 = vld [vmem:[#allocation20_spill] sm:$0xff]  ;;  %v22516_v4 = vld [vmem:[#allocation70_spill] sm:$0xff] }
 0x7f1   :  { %v12056_v61 = vadd.f32 %v20885_v31, %v11632_v53  ;;  %v12115_v38 = vmax.f32 %v12051_v55, 0.0  ;;  %v12113_v26 = vmax.f32 %v12049_v51, 0.0  ;;  %v12116_v46 = vmax.f32 %v12052_v49, 0.0  ;;  %v22515_v25 = vld [vmem:[#allocation69_spill] sm:$0xff]  ;;  %v22517_v55 = vld [vmem:[#allocation71_spill] sm:$0xff] }
 0x7f2   :  { %v12054_v56 = vadd.f32 %v20889_v28, %v11630_v20  ;;  %v12114_v50 = vmax.f32 %v12050_v13, 0.0  ;;  %v12119_v21 = vmax.f32 %v12055_v1, 0.0  ;;  %v12117_v8 = vmax.f32 %v12053_v9, 0.0  ;;  %v22506_v28 = vld [vmem:[#allocation9_spill] sm:$0xff]  ;;  %v22518_v1 = vld [vmem:[#allocation72_spill] sm:$0xff] }
 0x7f3   :  { %v12120_v60 = vmax.f32 %v12056_v61, 0.0  ;;  %12179 = vst [vmem:[%s21523_s9 + $0x110] sm:$0xff] %v12115_v38  ;;  %12177 = vst [vmem:[%s21523_s9 + $0x100] sm:$0xff] %v12113_v26  ;;  %v11495_v6 = vmul.f32 %v20971_v16, %v22504_v54  ;;  %v11493_v31 = vmul.f32 %v20971_v16, %v22505_v10  ;;  %v11496_v34 = vmul.f32 %v20971_v16, %v22506_v28  ;;  %v22522_v54 = vld [vmem:[#allocation28_spill] sm:$0xff]  ;;  %v22524_v28 = vld [vmem:[#allocation33_spill] sm:$0xff] }
 0x7f4   :  { %12180 = vst [vmem:[%s21523_s9 + $0x118] sm:$0xff] %v12116_v46  ;;  %v12118_v27 = vmax.f32 %v12054_v56, 0.0  ;;  %12178 = vst [vmem:[%s21523_s9 + $0x108] sm:$0xff] %v12114_v50  ;;  %v11494_v7 = vmul.f32 %v20971_v16, %v22507_v44  ;;  %v11499_v41 = vmul.f32 %v20971_v16, %v22508_v22  ;;  %v11497_v35 = vmul.f32 %v20971_v16, %v22509_v62  ;;  %v22519_v56 = vld [vmem:[#allocation32_spill] sm:$0xff]  ;;  %v22525_v44 = vld [vmem:[#allocation34_spill] sm:$0xff] }
 0x7f5   :  { %12183 = vst [vmem:[%s21523_s9 + $0x130] sm:$0xff] %v12119_v21  ;;  %12181 = vst [vmem:[%s21523_s9 + $0x120] sm:$0xff] %v12117_v8  ;;  %v11500_v40 = vmul.f32 %v20971_v16, %v22510_v59  ;;  %v11565_v15 = vmul.f32 %v20976_v14, %v11495_v6  ;;  %v11563_v39 = vmul.f32 %v20976_v14, %v11493_v31  ;;  %v22520_v21 = vld [vmem:[#allocation31_spill] sm:$0xff]  ;;  %v22523_v10 = vld [vmem:[#allocation36_spill] sm:$0xff] }
 0x7f6   :  { %12184 = vst [vmem:[%s21523_s9 + $0x138] sm:$0xff] %v12120_v60  ;;  %12182 = vst [vmem:[%s21523_s9 + $0x128] sm:$0xff] %v12118_v27  ;;  %v11566_v45 = vmul.f32 %v20976_v14, %v11496_v34  ;;  %v11498_v2 = vmul.f32 %v20971_v16, %v22511_v11  ;;  %v11564_v30 = vmul.f32 %v20976_v14, %v11494_v7  ;;  %v22521_v60 = vld [vmem:[#allocation29_spill] sm:$0xff] }
 0x7f7   :  { %v11569_v52 = vmul.f32 %v20976_v14, %v11499_v41  ;;  %v11567_v19 = vmul.f32 %v20976_v14, %v11497_v35  ;;  %v11570_v3 = vmul.f32 %v20976_v14, %v11500_v40  ;;  %v11635_v58 = vadd.f32 %v21007_v12, %v11565_v15  ;;  %v22526_v35 = vld [vmem:[#allocation30_spill] sm:$0xff] }
 0x7f8   :  { %v11633_v0 = vadd.f32 %v21007_v12, %v11563_v39  ;;  %v11636_v36 = vadd.f32 %v21007_v12, %v11566_v45  ;;  %v11568_v48 = vmul.f32 %v20976_v14, %v11498_v2  ;;  %v11634_v32 = vadd.f32 %v21007_v12, %v11564_v30 }
 0x7f9   :  { %v11639_v5 = vadd.f32 %v21007_v12, %v11569_v52  ;;  %v11637_v33 = vadd.f32 %v21007_v12, %v11567_v19  ;;  %v11640_v43 = vadd.f32 %v21007_v12, %v11570_v3  ;;  %v12059_v23 = vadd.f32 %v20893_v37, %v11635_v58 }
 0x7fa   :  { %v12057_v42 = vadd.f32 %v22512_v17, %v11633_v0  ;;  %v12060_v63 = vadd.f32 %v22513_v24, %v11636_v36  ;;  %v11638_v47 = vadd.f32 %v21007_v12, %v11568_v48  ;;  %v12058_v57 = vadd.f32 %v22514_v29, %v11634_v32  ;;  %v22527_v36 = vld [vmem:[#allocation73_spill] sm:$0xff]  ;;  %v22528_v32 = vld [vmem:[#allocation74_spill] sm:$0xff]  ;;  %v22530_v17 = vld [vmem:[#allocation76_spill] sm:$0xff] }
 0x7fb   :  { %v12063_v18 = vadd.f32 %v22515_v25, %v11639_v5  ;;  %v12061_v53 = vadd.f32 %v22516_v4, %v11637_v33  ;;  %v12064_v51 = vadd.f32 %v22517_v55, %v11640_v43  ;;  %v12123_v49 = vmax.f32 %v12059_v23, 0.0  ;;  %v22529_v33 = vld [vmem:[#allocation75_spill] sm:$0xff]  ;;  %v22531_v24 = vld [vmem:[#allocation77_spill] sm:$0xff]  ;;  %v22534_v55 = vld [vmem:[#allocation80_spill] sm:$0xff] }
 0x7fc   :  { %v12121_v20 = vmax.f32 %v12057_v42, 0.0  ;;  %v12124_v13 = vmax.f32 %v12060_v63, 0.0  ;;  %v12062_v9 = vadd.f32 %v22518_v1, %v11638_v47  ;;  %v12122_v37 = vmax.f32 %v12058_v57, 0.0  ;;  %v22532_v47 = vld [vmem:[#allocation78_spill] sm:$0xff]  ;;  %v22533_v57 = vld [vmem:[#allocation79_spill] sm:$0xff] }
 0x7fd   :  { %v12127_v61 = vmax.f32 %v12063_v18, 0.0  ;;  %v12125_v38 = vmax.f32 %v12061_v53, 0.0  ;;  %v12128_v26 = vmax.f32 %v12064_v51, 0.0  ;;  %12187 = vst [vmem:[%s21523_s9 + $0x150] sm:$0xff] %v12123_v49  ;;  %v11503_v50 = vmul.f32 %v20971_v16, %v22519_v56 }
 0x7fe   :  { %12185 = vst [vmem:[%s21523_s9 + $0x140] sm:$0xff] %v12121_v20  ;;  %12188 = vst [vmem:[%s21523_s9 + $0x158] sm:$0xff] %v12124_v13  ;;  %v12126_v46 = vmax.f32 %v12062_v9, 0.0  ;;  %v11501_v8 = vmul.f32 %v20971_v16, %v22520_v21  ;;  %v11504_v27 = vmul.f32 %v20971_v16, %v22521_v60  ;;  %v11502_v6 = vmul.f32 %v20971_v16, %v22522_v54 }
 0x7ff   :  { %12186 = vst [vmem:[%s21523_s9 + $0x148] sm:$0xff] %v12122_v37  ;;  %12191 = vst [vmem:[%s21523_s9 + $0x170] sm:$0xff] %v12127_v61  ;;  %v11507_v31 = vmul.f32 %v20971_v16, %v22523_v10  ;;  %v11505_v34 = vmul.f32 %v20971_v16, %v22524_v28  ;;  %v11508_v7 = vmul.f32 %v20971_v16, %v22525_v44  ;;  %v22535_v37 = vld [vmem:[#allocation38_spill] sm:$0xff]  ;;  %v22542_v44 = vld [vmem:[#allocation89_spill] sm:$0xff] }
 0x800   :  { %12189 = vst [vmem:[%s21523_s9 + $0x160] sm:$0xff] %v12125_v38  ;;  %12192 = vst [vmem:[%s21523_s9 + $0x178] sm:$0xff] %v12128_v26  ;;  %v11573_v22 = vmul.f32 %v20976_v14, %v11503_v50  ;;  %v11571_v41 = vmul.f32 %v20976_v14, %v11501_v8  ;;  %v11574_v62 = vmul.f32 %v20976_v14, %v11504_v27  ;;  %v22536_v38 = vld [vmem:[#allocation37_spill] sm:$0xff]  ;;  %v22538_v50 = vld [vmem:[#allocation35_spill] sm:$0xff] }
 0x801   :  { %12190 = vst [vmem:[%s21523_s9 + $0x168] sm:$0xff] %v12126_v46  ;;  %v11506_v59 = vmul.f32 %v20971_v16, %v22526_v35  ;;  %v11572_v40 = vmul.f32 %v20976_v14, %v11502_v6  ;;  %v11577_v15 = vmul.f32 %v20976_v14, %v11507_v31  ;;  %v11575_v39 = vmul.f32 %v20976_v14, %v11505_v34  ;;  %v22537_v46 = vld [vmem:[#allocation39_spill] sm:$0xff]  ;;  %v22539_v8 = vld [vmem:[#allocation40_spill] sm:$0xff]  ;;  %v22541_v6 = vld [vmem:[#allocation13_spill] sm:$0xff] }
 0x802   :  { %v11578_v45 = vmul.f32 %v20976_v14, %v11508_v7  ;;  %v11643_v11 = vadd.f32 %v21007_v12, %v11573_v22  ;;  %v11641_v2 = vadd.f32 %v21007_v12, %v11571_v41  ;;  %v11644_v30 = vadd.f32 %v21007_v12, %v11574_v62  ;;  %v22540_v27 = vld [vmem:[#allocation16_spill] sm:$0xff] }
 0x803   :  { %v11576_v52 = vmul.f32 %v20976_v14, %v11506_v59  ;;  %v11642_v19 = vadd.f32 %v21007_v12, %v11572_v40  ;;  %v11647_v3 = vadd.f32 %v21007_v12, %v11577_v15  ;;  %v11645_v58 = vadd.f32 %v21007_v12, %v11575_v39 }
 0x804   :  { %v11648_v0 = vadd.f32 %v21007_v12, %v11578_v45  ;;  %v12067_v48 = vadd.f32 %v22527_v36, %v11643_v11  ;;  %v12065_v5 = vadd.f32 %v22528_v32, %v11641_v2  ;;  %v12068_v43 = vadd.f32 %v22529_v33, %v11644_v30  ;;  %v22543_v30 = vld [vmem:[#allocation81_spill] sm:$0xff] }
 0x805   :  { %v11646_v23 = vadd.f32 %v21007_v12, %v11576_v52  ;;  %v12066_v42 = vadd.f32 %v22530_v17, %v11642_v19  ;;  %v12071_v63 = vadd.f32 %v22531_v24, %v11647_v3  ;;  %v12069_v29 = vadd.f32 %v22532_v47, %v11645_v58  ;;  %v22544_v19 = vld [vmem:[#allocation85_spill] sm:$0xff]  ;;  %v22545_v3 = vld [vmem:[#allocation86_spill] sm:$0xff]  ;;  %v22550_v17 = vld [vmem:[#allocation83_spill] sm:$0xff] }
 0x806   :  { %v12072_v25 = vadd.f32 %v22533_v57, %v11648_v0  ;;  %v12131_v18 = vmax.f32 %v12067_v48, 0.0  ;;  %v12129_v4 = vmax.f32 %v12065_v5, 0.0  ;;  %v12132_v53 = vmax.f32 %v12068_v43, 0.0  ;;  %v22546_v0 = vld [vmem:[#allocation84_spill] sm:$0xff]  ;;  %v22547_v48 = vld [vmem:[#allocation87_spill] sm:$0xff]  ;;  %v22549_v43 = vld [vmem:[#allocation82_spill] sm:$0xff] }
 0x807   :  { %v12070_v51 = vadd.f32 %v22534_v55, %v11646_v23  ;;  %v12130_v49 = vmax.f32 %v12066_v42, 0.0  ;;  %v12135_v20 = vmax.f32 %v12071_v63, 0.0  ;;  %v12133_v13 = vmax.f32 %v12069_v29, 0.0  ;;  %v22548_v5 = vld [vmem:[#allocation88_spill] sm:$0xff] }
 0x808   :  { %v12136_v1 = vmax.f32 %v12072_v25, 0.0  ;;  %12195 = vst [vmem:[%s21523_s9 + $0x190] sm:$0xff] %v12131_v18  ;;  %12193 = vst [vmem:[%s21523_s9 + $0x180] sm:$0xff] %v12129_v4  ;;  %v11511_v61 = vmul.f32 %v20971_v16, %v22535_v37  ;;  %v11509_v26 = vmul.f32 %v20971_v16, %v22536_v38  ;;  %v11512_v56 = vmul.f32 %v20971_v16, %v22537_v46 }
 0x809   :  { %12196 = vst [vmem:[%s21523_s9 + $0x198] sm:$0xff] %v12132_v53  ;;  %v12134_v9 = vmax.f32 %v12070_v51, 0.0  ;;  %12194 = vst [vmem:[%s21523_s9 + $0x188] sm:$0xff] %v12130_v49  ;;  %v11510_v21 = vmul.f32 %v20971_v16, %v22538_v50  ;;  %v11515_v60 = vmul.f32 %v20971_v16, %v22539_v8  ;;  %v11513_v54 = vmul.f32 %v20971_v16, %v22540_v27 }
 0x80a   :  { %12199 = vst [vmem:[%s21523_s9 + $0x1b0] sm:$0xff] %v12135_v20  ;;  %12197 = vst [vmem:[%s21523_s9 + $0x1a0] sm:$0xff] %v12133_v13  ;;  %v11516_v10 = vmul.f32 %v20971_v16, %v22541_v6  ;;  %v11581_v31 = vmul.f32 %v20976_v14, %v11511_v61  ;;  %v11579_v28 = vmul.f32 %v20976_v14, %v11509_v26 }
 0x80b   :  { %12200 = vst [vmem:[%s21523_s9 + $0x1b8] sm:$0xff] %v12136_v1  ;;  %12198 = vst [vmem:[%s21523_s9 + $0x1a8] sm:$0xff] %v12134_v9  ;;  %v11582_v34 = vmul.f32 %v20976_v14, %v11512_v56  ;;  %v11584_v7 = vmul.f32 %v20976_v14, %v22542_v44  ;;  %v11580_v22 = vmul.f32 %v20976_v14, %v11510_v21 }
 0x80c   :  { %v11585_v41 = vmul.f32 %v20976_v14, %v11515_v60  ;;  %v11583_v62 = vmul.f32 %v20976_v14, %v11513_v54  ;;  %v11586_v16 = vmul.f32 %v20976_v14, %v11516_v10  ;;  %v11651_v35 = vadd.f32 %v21007_v12, %v11581_v31 }
 0x80d   :  { %v11649_v59 = vadd.f32 %v21007_v12, %v11579_v28  ;;  %v11652_v40 = vadd.f32 %v21007_v12, %v11582_v34  ;;  %v11654_v15 = vadd.f32 %v21007_v12, %v11584_v7  ;;  %v11650_v39 = vadd.f32 %v21007_v12, %v11580_v22 }
 0x80e   :  { %v11655_v45 = vadd.f32 %v21007_v12, %v11585_v41  ;;  %v11653_v11 = vadd.f32 %v21007_v12, %v11583_v62  ;;  %v11656_v2 = vadd.f32 %v21007_v12, %v11586_v16  ;;  %v12075_v52 = vadd.f32 %v22543_v30, %v11651_v35 }
 0x80f   :  { %v12073_v14 = vadd.f32 %v22544_v19, %v11649_v59  ;;  %v12076_v58 = vadd.f32 %v22545_v3, %v11652_v40  ;;  %v12078_v36 = vadd.f32 %v22546_v0, %v11654_v15  ;;  %v12074_v32 = vadd.f32 %v22547_v48, %v11650_v39 }
 0x810   :  { %v12079_v33 = vadd.f32 %v22548_v5, %v11655_v45  ;;  %v12077_v23 = vadd.f32 %v22549_v43, %v11653_v11  ;;  %v12080_v42 = vadd.f32 %v22550_v17, %v11656_v2  ;;  %v12139_v24 = vmax.f32 %v12075_v52, 0.0 }
 0x811   :  { %v12137_v63 = vmax.f32 %v12073_v14, 0.0  ;;  %v12140_v47 = vmax.f32 %v12076_v58, 0.0  ;;  %v12142_v12 = vmax.f32 %v12078_v36, 0.0  ;;  %v12138_v29 = vmax.f32 %v12074_v32, 0.0 }
 0x812   :  { %v12143_v57 = vmax.f32 %v12079_v33, 0.0  ;;  %v12141_v25 = vmax.f32 %v12077_v23, 0.0  ;;  %v12144_v18 = vmax.f32 %v12080_v42, 0.0  ;;  %12203 = vst [vmem:[%s21523_s9 + $0x1d0] sm:$0xff] %v12139_v24 }
 0x813   :  { %12201 = vst [vmem:[%s21523_s9 + $0x1c0] sm:$0xff] %v12137_v63  ;;  %12204 = vst [vmem:[%s21523_s9 + $0x1d8] sm:$0xff] %v12140_v47 }
 0x814   :  { %12206 = vst [vmem:[%s21523_s9 + $0x1e8] sm:$0xff] %v12142_v12  ;;  %12202 = vst [vmem:[%s21523_s9 + $0x1c8] sm:$0xff] %v12138_v29 }
 0x815   :  { %12207 = vst [vmem:[%s21523_s9 + $0x1f0] sm:$0xff] %v12143_v57  ;;  %12205 = vst [vmem:[%s21523_s9 + $0x1e0] sm:$0xff] %v12141_v25 }
 0x816   :  { %12208 = vst [vmem:[%s21523_s9 + $0x1f8] sm:$0xff] %v12144_v18 }

</bundles_post_ra>
